<compile_context>
chip_gen: v5e
topology: v5e:2x2
jax: 0.10.0
libtpu: 0.0.40
codegen_flags: <defaults>
</compile_context>

<pallas_src>
import math

import jax
import jax.numpy as jnp
from jax.experimental import pallas as pl
from jax.experimental.pallas import tpu as pltpu

D_MODEL = 96
N_HEADS = 8
HEAD_DIM = D_MODEL // N_HEADS          # 12
DIM_FF = 2048                          # nn.TransformerEncoderLayer default
NUM_LAYERS = 6 // 3                    # num_layers // 3 == 2
LN_EPS = 1e-5

DH_PAD = 16                            # head dim padded 12 -> 16 (aligned lane groups)
D_PAD = N_HEADS * DH_PAD               # 128 (padded Q/K/V width)


# ----------------------------- fused Pallas kernel ---------------------------

def _encoder_stack_kernel(x_ref, wqkv_ref, bqkv_ref, wout_ref, bout_ref,
                          w1_ref, b1_ref, w2_ref, b2_ref,
                          g1_ref, be1_ref, g2_ref, be2_ref, o_ref):
    B, S, D = x_ref.shape
    N = B * S
    inv_d = 1.0 / D

    def add_layernorm(y, res, gamma, beta):
        # LayerNorm(y + res) over the 96 real lanes (biased variance, like torch).
        z = y + res
        mean = jnp.sum(z, axis=-1, keepdims=True) * inv_d
        zc = z - mean
        var = jnp.sum(zc * zc, axis=-1, keepdims=True) * inv_d
        return zc * jax.lax.rsqrt(var + LN_EPS) * gamma + beta

    # Whole batch as one (B*S, 96) tile; leading-dim merge is a free reshape.
    x = x_ref[...].reshape(N, D).astype(jnp.float32)

    for l in range(NUM_LAYERS):
        # --- packed QKV projection: bf16 operands, f32 accumulation ----------
        qkv = jnp.dot(x.astype(jnp.bfloat16), wqkv_ref[l],
                      preferred_element_type=jnp.float32) + bqkv_ref[l]   # (N, 384)
        q = qkv[:, 0 * D_PAD:1 * D_PAD]       # (N, 128) head-padded, scale folded
        k = qkv[:, 1 * D_PAD:2 * D_PAD]
        v = qkv[:, 2 * D_PAD:3 * D_PAD]

        # --- scores for every (batch, head), stacked along sublanes ----------
        scores = []
        for b in range(B):
            rows = slice(b * S, (b + 1) * S)
            qb, kb = q[rows], k[rows]
            for h in range(N_HEADS):
                cols = slice(h * DH_PAD, (h + 1) * DH_PAD)
                scores.append(jax.lax.dot_general(
                    qb[:, cols], kb[:, cols], (((1,), (1,)), ((), ())),
                    preferred_element_type=jnp.float32))         # (S, S)
        s_all = jnp.concatenate(scores, axis=0)                  # (B*H*S, S)

        # --- one batched softmax (single max/sum reduce pair per layer) ------
        s_all = s_all - jnp.max(s_all, axis=-1, keepdims=True)
        p_all = jnp.exp(s_all)
        p_all = p_all * pl.reciprocal(jnp.sum(p_all, axis=-1, keepdims=True),
                                      approx=False)              # exact, torch parity

        # --- attention context + out-projection, accumulated per head --------
        # (no lane concat of head outputs; Wout pre-split per head at pack time)
        attn_rows = []
        for b in range(B):
            rows = slice(b * S, (b + 1) * S)
            vb = v[rows]
            acc_b = jnp.zeros((S, D), jnp.float32)
            for h in range(N_HEADS):
                cols = slice(h * DH_PAD, (h + 1) * DH_PAD)
                idx = b * N_HEADS + h
                p_h = p_all[idx * S:(idx + 1) * S]               # (S, S)
                o_h = jnp.dot(p_h, vb[:, cols],
                              preferred_element_type=jnp.float32)  # (S, 16)
                acc_b = acc_b + jnp.dot(o_h.astype(jnp.bfloat16), wout_ref[l, h],
                                        preferred_element_type=jnp.float32)
            attn_rows.append(acc_b)
        attn = jnp.concatenate(attn_rows, axis=0) + bout_ref[l]  # (N, 96)

        h1 = add_layernorm(attn, x, g1_ref[l], be1_ref[l])       # norm1(x + attn)

        # --- feed-forward (ReLU), bf16 matmul operands, f32 elementwise ------
        ff = jnp.dot(h1.astype(jnp.bfloat16), w1_ref[l],
                     preferred_element_type=jnp.float32) + b1_ref[l]      # (N, 2048)
        ff = jnp.maximum(ff, 0.0)
        ff = jnp.dot(ff.astype(jnp.bfloat16), w2_ref[l],
                     preferred_element_type=jnp.float32) + b2_ref[l]      # (N, 96)
        x = add_layernorm(ff, h1, g2_ref[l], be2_ref[l])         # norm2(h1 + ff)

    o_ref[...] = x.reshape(B, S, D).astype(o_ref.dtype)


# ------------------------------ wrapper / specs ------------------------------

_PACK_ORDER = ("wqkv", "bqkv", "wout", "bout", "w1", "b1", "w2", "b2",
               "g1", "be1", "g2", "be2")


def _const_index_map(ndim):
    def imap(i):
        return (0,) * ndim
    return imap


def combined_attention_forward(x, packed):
    # forward() only runs the self-attention stack; lin_attn is unused.
    B, S, D = x.shape
    weights = [packed[n] for n in _PACK_ORDER]

    # Advisory cost estimate so XLA overlaps this small custom call.
    per_tok_flops = (2 * D_MODEL * 3 * D_PAD        # QKV projection
                     + 4 * S * D_PAD                # scores + p @ v
                     + 2 * D_PAD * D_MODEL          # out projection
                     + 4 * D_MODEL * DIM_FF)        # feed-forward
    cost = pl.CostEstimate(
        flops=int(B * S * NUM_LAYERS * per_tok_flops),
        transcendentals=int(B * NUM_LAYERS * N_HEADS * S * S),
        bytes_accessed=int(sum(w.size * w.dtype.itemsize for w in weights)
                           + 2 * x.size * x.dtype.itemsize))

    return pl.pallas_call(
        _encoder_stack_kernel,
        out_shape=jax.ShapeDtypeStruct((B, S, D), x.dtype),
        grid=(1,),                                   # whole batch in one step
        in_specs=[pl.BlockSpec((B, S, D), lambda i: (0, 0, 0))]
                 + [pl.BlockSpec(w.shape, _const_index_map(w.ndim)) for w in weights],
        out_specs=pl.BlockSpec((B, S, D), lambda i: (0, 0, 0)),
        compiler_params=pltpu.CompilerParams(
            dimension_semantics=("arbitrary",),      # no megacore batch split
            vmem_limit_bytes=32 * 1024 * 1024),
        cost_estimate=cost,
    )(x, *weights)


# ----------------------- parameter init (PyTorch layout) ---------------------

def init_layer_params(key):
    ks = jax.random.split(key, 4)
    scale = 0.02
    return {
        # nn.MultiheadAttention packed in-projection: (3*D, D) + (3*D,)
        "in_proj_w": jax.random.normal(ks[0], (3 * D_MODEL, D_MODEL), jnp.float32) * scale,
        "in_proj_b": jnp.zeros((3 * D_MODEL,), jnp.float32),
        "out_proj_w": jax.random.normal(ks[1], (D_MODEL, D_MODEL), jnp.float32) * scale,
        "out_proj_b": jnp.zeros((D_MODEL,), jnp.float32),
        # feed-forward
        "lin1_w": jax.random.normal(ks[2], (DIM_FF, D_MODEL), jnp.float32) * scale,
        "lin1_b": jnp.zeros((DIM_FF,), jnp.float32),
        "lin2_w": jax.random.normal(ks[3], (D_MODEL, DIM_FF), jnp.float32) * scale,
        "lin2_b": jnp.zeros((D_MODEL,), jnp.float32),
        # layer norms
        "norm1_w": jnp.ones((D_MODEL,), jnp.float32),
        "norm1_b": jnp.zeros((D_MODEL,), jnp.float32),
        "norm2_w": jnp.ones((D_MODEL,), jnp.float32),
        "norm2_b": jnp.zeros((D_MODEL,), jnp.float32),
    }


def pack_params(params):
    """One-time packing: pre-transpose to x @ W layout, head-pad only the Q/K/V
    columns (12 -> 16), fold the 1/sqrt(head_dim) scale into the Q projection,
    split Wout per head, store big matrices in bf16 (biases / LN params stay f32),
    and stack both layers along a leading axis."""
    pad_h = DH_PAD - HEAD_DIM
    qscale = 1.0 / math.sqrt(HEAD_DIM)

    def head_pad_cols(m):   # (r, 96) -> (r, 128); cols h*12+j -> h*16+j, pad lanes zero
        r = m.shape[0]
        return jnp.pad(m.reshape(r, N_HEADS, HEAD_DIM),
                       ((0, 0), (0, 0), (0, pad_h))).reshape(r, D_PAD)

    def head_pad_vec(v):    # (96,) -> (128,), head-strided
        return jnp.pad(v.reshape(N_HEADS, HEAD_DIM),
                       ((0, 0), (0, pad_h))).reshape(D_PAD)

    packed = {n: [] for n in _PACK_ORDER}
    for p in params:
        W_in, b_in = p["in_proj_w"], p["in_proj_b"]
        Wq, Wk, Wv = W_in[:D_MODEL], W_in[D_MODEL:2 * D_MODEL], W_in[2 * D_MODEL:]
        bq, bk, bv = b_in[:D_MODEL], b_in[D_MODEL:2 * D_MODEL], b_in[2 * D_MODEL:]

        # x @ W^T layout; fold 1/sqrt(head_dim) into the Q projection
        wq_p = head_pad_cols(Wq.T * qscale)                      # (96, 128)
        wk_p = head_pad_cols(Wk.T)
        wv_p = head_pad_cols(Wv.T)
        packed["wqkv"].append(jnp.concatenate([wq_p, wk_p, wv_p], axis=1)
                              .astype(jnp.bfloat16))             # (96, 384) bf16
        packed["bqkv"].append(jnp.concatenate(
            [head_pad_vec(bq * qscale), head_pad_vec(bk), head_pad_vec(bv)])[None, :])

        # out_proj split per head along the contraction dim, rows padded 12 -> 16
        wo = p["out_proj_w"].T.reshape(N_HEADS, HEAD_DIM, D_MODEL)
        wo = jnp.pad(wo, ((0, 0), (0, pad_h), (0, 0)))           # (8, 16, 96)
        packed["wout"].append(wo.astype(jnp.bfloat16))
        packed["bout"].append(p["out_proj_b"][None, :])          # (1, 96) f32

        packed["w1"].append(p["lin1_w"].T.astype(jnp.bfloat16))  # (96, 2048) bf16
        packed["b1"].append(p["lin1_b"][None, :])                # (1, 2048) f32
        packed["w2"].append(p["lin2_w"].T.astype(jnp.bfloat16))  # (2048, 96) bf16
        packed["b2"].append(p["lin2_b"][None, :])                # (1, 96) f32

        packed["g1"].append(p["norm1_w"][None, :])
        packed["be1"].append(p["norm1_b"][None, :])
        packed["g2"].append(p["norm2_w"][None, :])
        packed["be2"].append(p["norm2_b"][None, :])

    return {n: jnp.stack(v) for n, v in packed.items()}


# ---------------------------------- main -------------------------------------

if __name__ == "__main__":
    key = jax.random.PRNGKey(0)
    k_x, *k_layers = jax.random.split(key, 1 + NUM_LAYERS)

    B, S = 2, 8
    x = jax.random.normal(k_x, (B, S, D_MODEL), jnp.float32)  # (B, S, D) batch-first

    params = [init_layer_params(k) for k in k_layers]
    packed = pack_params(params)   # one-time transpose / head-pad / bf16 / scale fold

    # TODO(synk): self.lin_attn (LinearAttentionTransformer) is constructed but
    # never executed by the PyTorch forward(); intentionally not implemented.
    fwd = jax.jit(combined_attention_forward)
    out = fwd(x, packed)
    jax.block_until_ready(out)

    assert out.shape == (B, S, D_MODEL)
    assert bool(jnp.all(jnp.isfinite(out)))
    print("KERNEL_OK")
</pallas_src>

<mosaic_0001>
module attributes {stable_mosaic.version = 11 : i64} {
  func.func @_encoder_stack_kernel(%arg0: i32, %arg1: memref<2x8x96xf32, #tpu.memory_space<vmem>>, %arg2: memref<2x96x384xbf16, #tpu.memory_space<vmem>>, %arg3: memref<2x1x384xf32, #tpu.memory_space<vmem>>, %arg4: memref<2x8x16x96xbf16, #tpu.memory_space<vmem>>, %arg5: memref<2x1x96xf32, #tpu.memory_space<vmem>>, %arg6: memref<2x96x2048xbf16, #tpu.memory_space<vmem>>, %arg7: memref<2x1x2048xf32, #tpu.memory_space<vmem>>, %arg8: memref<2x2048x96xbf16, #tpu.memory_space<vmem>>, %arg9: memref<2x1x96xf32, #tpu.memory_space<vmem>>, %arg10: memref<2x1x96xf32, #tpu.memory_space<vmem>>, %arg11: memref<2x1x96xf32, #tpu.memory_space<vmem>>, %arg12: memref<2x1x96xf32, #tpu.memory_space<vmem>>, %arg13: memref<2x1x96xf32, #tpu.memory_space<vmem>>, %arg14: memref<2x8x96xf32, #tpu.memory_space<vmem>>) attributes {dimension_semantics = [#tpu.dimension_semantics<arbitrary>], iteration_bounds = array<i64: 1>, scalar_prefetch = 0 : i64, scratch_operands = 0 : i64, tpu.core_type = #tpu.core_type<tc>, window_params = [{pipeline_mode = #tpu.pipeline_mode<synchronous>, transform_indices = @transform_0, window_bounds = array<i64: 2, 8, 96>}, {pipeline_mode = #tpu.pipeline_mode<synchronous>, transform_indices = @transform_1, window_bounds = array<i64: 2, 96, 384>}, {pipeline_mode = #tpu.pipeline_mode<synchronous>, transform_indices = @transform_2, window_bounds = array<i64: 2, 1, 384>}, {pipeline_mode = #tpu.pipeline_mode<synchronous>, transform_indices = @transform_3, window_bounds = array<i64: 2, 8, 16, 96>}, {pipeline_mode = #tpu.pipeline_mode<synchronous>, transform_indices = @transform_4, window_bounds = array<i64: 2, 1, 96>}, {pipeline_mode = #tpu.pipeline_mode<synchronous>, transform_indices = @transform_5, window_bounds = array<i64: 2, 96, 2048>}, {pipeline_mode = #tpu.pipeline_mode<synchronous>, transform_indices = @transform_6, window_bounds = array<i64: 2, 1, 2048>}, {pipeline_mode = #tpu.pipeline_mode<synchronous>, transform_indices = @transform_7, window_bounds = array<i64: 2, 2048, 96>}, {pipeline_mode = #tpu.pipeline_mode<synchronous>, transform_indices = @transform_8, window_bounds = array<i64: 2, 1, 96>}, {pipeline_mode = #tpu.pipeline_mode<synchronous>, transform_indices = @transform_9, window_bounds = array<i64: 2, 1, 96>}, {pipeline_mode = #tpu.pipeline_mode<synchronous>, transform_indices = @transform_10, window_bounds = array<i64: 2, 1, 96>}, {pipeline_mode = #tpu.pipeline_mode<synchronous>, transform_indices = @transform_11, window_bounds = array<i64: 2, 1, 96>}, {pipeline_mode = #tpu.pipeline_mode<synchronous>, transform_indices = @transform_12, window_bounds = array<i64: 2, 1, 96>}, {pipeline_mode = #tpu.pipeline_mode<synchronous>, transform_indices = @transform_13, window_bounds = array<i64: 2, 8, 96>}]} {
    %c0 = arith.constant 0 : index
    %c0_0 = arith.constant 0 : index
    %c0_1 = arith.constant 0 : index
    %0 = vector.load %arg1[%c0, %c0_0, %c0_1] : memref<2x8x96xf32, #tpu.memory_space<vmem>>, vector<2x8x96xf32>
    %1 = vector.shape_cast %0 : vector<2x8x96xf32> to vector<16x96xf32>
    %2 = arith.truncf %1 : vector<16x96xf32> to vector<16x96xbf16>
    %c0_2 = arith.constant 0 : index
    %c0_3 = arith.constant 0 : index
    %c0_4 = arith.constant 0 : index
    %3 = vector.load %arg2[%c0_2, %c0_3, %c0_4] : memref<2x96x384xbf16, #tpu.memory_space<vmem>>, vector<1x96x384xbf16>
    %4 = vector.shape_cast %3 : vector<1x96x384xbf16> to vector<96x384xbf16>
    %cst = arith.constant dense<0.000000e+00> : vector<16x384xf32>
    %5 = tpu.matmul %2, %4, %cst {dimension_numbers = #tpu.dot_dimension_numbers<[1], [0], [0], [1], [0, 0, 1, 1], [], []>} : vector<16x96xbf16>, vector<96x384xbf16>, vector<16x384xf32> -> vector<16x384xf32>
    %c0_5 = arith.constant 0 : index
    %c0_6 = arith.constant 0 : index
    %c0_7 = arith.constant 0 : index
    %6 = vector.load %arg3[%c0_5, %c0_6, %c0_7] : memref<2x1x384xf32, #tpu.memory_space<vmem>>, vector<1x1x384xf32>
    %7 = vector.shape_cast %6 : vector<1x1x384xf32> to vector<1x384xf32>
    %8 = vector.broadcast %7 : vector<1x384xf32> to vector<16x384xf32>
    %9 = arith.addf %5, %8 : vector<16x384xf32>
    %10 = vector.extract_strided_slice %9 {offsets = [0, 0], sizes = [16, 128], strides = [1, 1]} : vector<16x384xf32> to vector<16x128xf32>
    %11 = vector.extract_strided_slice %9 {offsets = [0, 128], sizes = [16, 128], strides = [1, 1]} : vector<16x384xf32> to vector<16x128xf32>
    %12 = vector.extract_strided_slice %9 {offsets = [0, 256], sizes = [16, 128], strides = [1, 1]} : vector<16x384xf32> to vector<16x128xf32>
    %13 = vector.extract_strided_slice %10 {offsets = [0, 0], sizes = [8, 128], strides = [1, 1]} : vector<16x128xf32> to vector<8x128xf32>
    %14 = vector.extract_strided_slice %11 {offsets = [0, 0], sizes = [8, 128], strides = [1, 1]} : vector<16x128xf32> to vector<8x128xf32>
    %15 = vector.extract_strided_slice %13 {offsets = [0, 0], sizes = [8, 16], strides = [1, 1]} : vector<8x128xf32> to vector<8x16xf32>
    %16 = vector.extract_strided_slice %14 {offsets = [0, 0], sizes = [8, 16], strides = [1, 1]} : vector<8x128xf32> to vector<8x16xf32>
    %cst_8 = arith.constant dense<0.000000e+00> : vector<8x8xf32>
    %17 = tpu.matmul %15, %16, %cst_8 {dimension_numbers = #tpu.dot_dimension_numbers<[1], [1], [0], [0], [0, 0, 1, 0], [], []>} : vector<8x16xf32>, vector<8x16xf32>, vector<8x8xf32> -> vector<8x8xf32>
    %18 = vector.extract_strided_slice %13 {offsets = [0, 16], sizes = [8, 16], strides = [1, 1]} : vector<8x128xf32> to vector<8x16xf32>
    %19 = vector.extract_strided_slice %14 {offsets = [0, 16], sizes = [8, 16], strides = [1, 1]} : vector<8x128xf32> to vector<8x16xf32>
    %cst_9 = arith.constant dense<0.000000e+00> : vector<8x8xf32>
    %20 = tpu.matmul %18, %19, %cst_9 {dimension_numbers = #tpu.dot_dimension_numbers<[1], [1], [0], [0], [0, 0, 1, 0], [], []>} : vector<8x16xf32>, vector<8x16xf32>, vector<8x8xf32> -> vector<8x8xf32>
    %21 = vector.extract_strided_slice %13 {offsets = [0, 32], sizes = [8, 16], strides = [1, 1]} : vector<8x128xf32> to vector<8x16xf32>
    %22 = vector.extract_strided_slice %14 {offsets = [0, 32], sizes = [8, 16], strides = [1, 1]} : vector<8x128xf32> to vector<8x16xf32>
    %cst_10 = arith.constant dense<0.000000e+00> : vector<8x8xf32>
    %23 = tpu.matmul %21, %22, %cst_10 {dimension_numbers = #tpu.dot_dimension_numbers<[1], [1], [0], [0], [0, 0, 1, 0], [], []>} : vector<8x16xf32>, vector<8x16xf32>, vector<8x8xf32> -> vector<8x8xf32>
    %24 = vector.extract_strided_slice %13 {offsets = [0, 48], sizes = [8, 16], strides = [1, 1]} : vector<8x128xf32> to vector<8x16xf32>
    %25 = vector.extract_strided_slice %14 {offsets = [0, 48], sizes = [8, 16], strides = [1, 1]} : vector<8x128xf32> to vector<8x16xf32>
    %cst_11 = arith.constant dense<0.000000e+00> : vector<8x8xf32>
    %26 = tpu.matmul %24, %25, %cst_11 {dimension_numbers = #tpu.dot_dimension_numbers<[1], [1], [0], [0], [0, 0, 1, 0], [], []>} : vector<8x16xf32>, vector<8x16xf32>, vector<8x8xf32> -> vector<8x8xf32>
    %27 = vector.extract_strided_slice %13 {offsets = [0, 64], sizes = [8, 16], strides = [1, 1]} : vector<8x128xf32> to vector<8x16xf32>
    %28 = vector.extract_strided_slice %14 {offsets = [0, 64], sizes = [8, 16], strides = [1, 1]} : vector<8x128xf32> to vector<8x16xf32>
    %cst_12 = arith.constant dense<0.000000e+00> : vector<8x8xf32>
    %29 = tpu.matmul %27, %28, %cst_12 {dimension_numbers = #tpu.dot_dimension_numbers<[1], [1], [0], [0], [0, 0, 1, 0], [], []>} : vector<8x16xf32>, vector<8x16xf32>, vector<8x8xf32> -> vector<8x8xf32>
    %30 = vector.extract_strided_slice %13 {offsets = [0, 80], sizes = [8, 16], strides = [1, 1]} : vector<8x128xf32> to vector<8x16xf32>
    %31 = vector.extract_strided_slice %14 {offsets = [0, 80], sizes = [8, 16], strides = [1, 1]} : vector<8x128xf32> to vector<8x16xf32>
    %cst_13 = arith.constant dense<0.000000e+00> : vector<8x8xf32>
    %32 = tpu.matmul %30, %31, %cst_13 {dimension_numbers = #tpu.dot_dimension_numbers<[1], [1], [0], [0], [0, 0, 1, 0], [], []>} : vector<8x16xf32>, vector<8x16xf32>, vector<8x8xf32> -> vector<8x8xf32>
    %33 = vector.extract_strided_slice %13 {offsets = [0, 96], sizes = [8, 16], strides = [1, 1]} : vector<8x128xf32> to vector<8x16xf32>
    %34 = vector.extract_strided_slice %14 {offsets = [0, 96], sizes = [8, 16], strides = [1, 1]} : vector<8x128xf32> to vector<8x16xf32>
    %cst_14 = arith.constant dense<0.000000e+00> : vector<8x8xf32>
    %35 = tpu.matmul %33, %34, %cst_14 {dimension_numbers = #tpu.dot_dimension_numbers<[1], [1], [0], [0], [0, 0, 1, 0], [], []>} : vector<8x16xf32>, vector<8x16xf32>, vector<8x8xf32> -> vector<8x8xf32>
    %36 = vector.extract_strided_slice %13 {offsets = [0, 112], sizes = [8, 16], strides = [1, 1]} : vector<8x128xf32> to vector<8x16xf32>
    %37 = vector.extract_strided_slice %14 {offsets = [0, 112], sizes = [8, 16], strides = [1, 1]} : vector<8x128xf32> to vector<8x16xf32>
    %cst_15 = arith.constant dense<0.000000e+00> : vector<8x8xf32>
    %38 = tpu.matmul %36, %37, %cst_15 {dimension_numbers = #tpu.dot_dimension_numbers<[1], [1], [0], [0], [0, 0, 1, 0], [], []>} : vector<8x16xf32>, vector<8x16xf32>, vector<8x8xf32> -> vector<8x8xf32>
    %39 = vector.extract_strided_slice %10 {offsets = [8, 0], sizes = [8, 128], strides = [1, 1]} : vector<16x128xf32> to vector<8x128xf32>
    %40 = vector.extract_strided_slice %11 {offsets = [8, 0], sizes = [8, 128], strides = [1, 1]} : vector<16x128xf32> to vector<8x128xf32>
    %41 = vector.extract_strided_slice %39 {offsets = [0, 0], sizes = [8, 16], strides = [1, 1]} : vector<8x128xf32> to vector<8x16xf32>
    %42 = vector.extract_strided_slice %40 {offsets = [0, 0], sizes = [8, 16], strides = [1, 1]} : vector<8x128xf32> to vector<8x16xf32>
    %cst_16 = arith.constant dense<0.000000e+00> : vector<8x8xf32>
    %43 = tpu.matmul %41, %42, %cst_16 {dimension_numbers = #tpu.dot_dimension_numbers<[1], [1], [0], [0], [0, 0, 1, 0], [], []>} : vector<8x16xf32>, vector<8x16xf32>, vector<8x8xf32> -> vector<8x8xf32>
    %44 = vector.extract_strided_slice %39 {offsets = [0, 16], sizes = [8, 16], strides = [1, 1]} : vector<8x128xf32> to vector<8x16xf32>
    %45 = vector.extract_strided_slice %40 {offsets = [0, 16], sizes = [8, 16], strides = [1, 1]} : vector<8x128xf32> to vector<8x16xf32>
    %cst_17 = arith.constant dense<0.000000e+00> : vector<8x8xf32>
    %46 = tpu.matmul %44, %45, %cst_17 {dimension_numbers = #tpu.dot_dimension_numbers<[1], [1], [0], [0], [0, 0, 1, 0], [], []>} : vector<8x16xf32>, vector<8x16xf32>, vector<8x8xf32> -> vector<8x8xf32>
    %47 = vector.extract_strided_slice %39 {offsets = [0, 32], sizes = [8, 16], strides = [1, 1]} : vector<8x128xf32> to vector<8x16xf32>
    %48 = vector.extract_strided_slice %40 {offsets = [0, 32], sizes = [8, 16], strides = [1, 1]} : vector<8x128xf32> to vector<8x16xf32>
    %cst_18 = arith.constant dense<0.000000e+00> : vector<8x8xf32>
    %49 = tpu.matmul %47, %48, %cst_18 {dimension_numbers = #tpu.dot_dimension_numbers<[1], [1], [0], [0], [0, 0, 1, 0], [], []>} : vector<8x16xf32>, vector<8x16xf32>, vector<8x8xf32> -> vector<8x8xf32>
    %50 = vector.extract_strided_slice %39 {offsets = [0, 48], sizes = [8, 16], strides = [1, 1]} : vector<8x128xf32> to vector<8x16xf32>
    %51 = vector.extract_strided_slice %40 {offsets = [0, 48], sizes = [8, 16], strides = [1, 1]} : vector<8x128xf32> to vector<8x16xf32>
    %cst_19 = arith.constant dense<0.000000e+00> : vector<8x8xf32>
    %52 = tpu.matmul %50, %51, %cst_19 {dimension_numbers = #tpu.dot_dimension_numbers<[1], [1], [0], [0], [0, 0, 1, 0], [], []>} : vector<8x16xf32>, vector<8x16xf32>, vector<8x8xf32> -> vector<8x8xf32>
    %53 = vector.extract_strided_slice %39 {offsets = [0, 64], sizes = [8, 16], strides = [1, 1]} : vector<8x128xf32> to vector<8x16xf32>
    %54 = vector.extract_strided_slice %40 {offsets = [0, 64], sizes = [8, 16], strides = [1, 1]} : vector<8x128xf32> to vector<8x16xf32>
    %cst_20 = arith.constant dense<0.000000e+00> : vector<8x8xf32>
    %55 = tpu.matmul %53, %54, %cst_20 {dimension_numbers = #tpu.dot_dimension_numbers<[1], [1], [0], [0], [0, 0, 1, 0], [], []>} : vector<8x16xf32>, vector<8x16xf32>, vector<8x8xf32> -> vector<8x8xf32>
    %56 = vector.extract_strided_slice %39 {offsets = [0, 80], sizes = [8, 16], strides = [1, 1]} : vector<8x128xf32> to vector<8x16xf32>
    %57 = vector.extract_strided_slice %40 {offsets = [0, 80], sizes = [8, 16], strides = [1, 1]} : vector<8x128xf32> to vector<8x16xf32>
    %cst_21 = arith.constant dense<0.000000e+00> : vector<8x8xf32>
    %58 = tpu.matmul %56, %57, %cst_21 {dimension_numbers = #tpu.dot_dimension_numbers<[1], [1], [0], [0], [0, 0, 1, 0], [], []>} : vector<8x16xf32>, vector<8x16xf32>, vector<8x8xf32> -> vector<8x8xf32>
    %59 = vector.extract_strided_slice %39 {offsets = [0, 96], sizes = [8, 16], strides = [1, 1]} : vector<8x128xf32> to vector<8x16xf32>
    %60 = vector.extract_strided_slice %40 {offsets = [0, 96], sizes = [8, 16], strides = [1, 1]} : vector<8x128xf32> to vector<8x16xf32>
    %cst_22 = arith.constant dense<0.000000e+00> : vector<8x8xf32>
    %61 = tpu.matmul %59, %60, %cst_22 {dimension_numbers = #tpu.dot_dimension_numbers<[1], [1], [0], [0], [0, 0, 1, 0], [], []>} : vector<8x16xf32>, vector<8x16xf32>, vector<8x8xf32> -> vector<8x8xf32>
    %62 = vector.extract_strided_slice %39 {offsets = [0, 112], sizes = [8, 16], strides = [1, 1]} : vector<8x128xf32> to vector<8x16xf32>
    %63 = vector.extract_strided_slice %40 {offsets = [0, 112], sizes = [8, 16], strides = [1, 1]} : vector<8x128xf32> to vector<8x16xf32>
    %cst_23 = arith.constant dense<0.000000e+00> : vector<8x8xf32>
    %64 = tpu.matmul %62, %63, %cst_23 {dimension_numbers = #tpu.dot_dimension_numbers<[1], [1], [0], [0], [0, 0, 1, 0], [], []>} : vector<8x16xf32>, vector<8x16xf32>, vector<8x8xf32> -> vector<8x8xf32>
    %65 = tpu.concatenate %17, %20, %23, %26, %29, %32, %35, %38, %43, %46, %49, %52, %55, %58, %61, %64 in 0 : vector<8x8xf32>, vector<8x8xf32>, vector<8x8xf32>, vector<8x8xf32>, vector<8x8xf32>, vector<8x8xf32>, vector<8x8xf32>, vector<8x8xf32>, vector<8x8xf32>, vector<8x8xf32>, vector<8x8xf32>, vector<8x8xf32>, vector<8x8xf32>, vector<8x8xf32>, vector<8x8xf32>, vector<8x8xf32> -> vector<128x8xf32>
    %cst_24 = arith.constant dense<0xFF800000> : vector<128xf32>
    %66 = vector.multi_reduction <maximumf>, %65, %cst_24 [1] : vector<128x8xf32> to vector<128xf32>
    %67 = vector.shape_cast %66 : vector<128xf32> to vector<128x1xf32>
    %68 = vector.broadcast %67 : vector<128x1xf32> to vector<128x8xf32>
    %69 = arith.subf %65, %68 : vector<128x8xf32>
    %70 = math.exp %69 : vector<128x8xf32>
    %cst_25 = arith.constant dense<0.000000e+00> : vector<128xf32>
    %71 = vector.multi_reduction <add>, %70, %cst_25 [1] : vector<128x8xf32> to vector<128xf32>
    %72 = vector.shape_cast %71 : vector<128xf32> to vector<128x1xf32>
    %73 = tpu.reciprocal %72 : vector<128x1xf32> -> vector<128x1xf32>
    %74 = vector.broadcast %73 : vector<128x1xf32> to vector<128x8xf32>
    %75 = arith.mulf %70, %74 : vector<128x8xf32>
    %76 = vector.extract_strided_slice %12 {offsets = [0, 0], sizes = [8, 128], strides = [1, 1]} : vector<16x128xf32> to vector<8x128xf32>
    %cst_26 = arith.constant 0.000000e+00 : f32
    %77 = vector.broadcast %cst_26 : f32 to vector<8x96xf32>
    %78 = vector.extract_strided_slice %75 {offsets = [0, 0], sizes = [8, 8], strides = [1, 1]} : vector<128x8xf32> to vector<8x8xf32>
    %79 = vector.extract_strided_slice %76 {offsets = [0, 0], sizes = [8, 16], strides = [1, 1]} : vector<8x128xf32> to vector<8x16xf32>
    %cst_27 = arith.constant dense<0.000000e+00> : vector<8x16xf32>
    %80 = tpu.matmul %78, %79, %cst_27 {dimension_numbers = #tpu.dot_dimension_numbers<[1], [0], [0], [1], [0, 0, 1, 1], [], []>} : vector<8x8xf32>, vector<8x16xf32>, vector<8x16xf32> -> vector<8x16xf32>
    %81 = arith.truncf %80 : vector<8x16xf32> to vector<8x16xbf16>
    %c0_28 = arith.constant 0 : index
    %c0_29 = arith.constant 0 : index
    %c0_30 = arith.constant 0 : index
    %c0_31 = arith.constant 0 : index
    %82 = vector.load %arg4[%c0_28, %c0_29, %c0_30, %c0_31] : memref<2x8x16x96xbf16, #tpu.memory_space<vmem>>, vector<1x1x16x96xbf16>
    %83 = vector.shape_cast %82 : vector<1x1x16x96xbf16> to vector<16x96xbf16>
    %cst_32 = arith.constant dense<0.000000e+00> : vector<8x96xf32>
    %84 = tpu.matmul %81, %83, %cst_32 {dimension_numbers = #tpu.dot_dimension_numbers<[1], [0], [0], [1], [0, 0, 1, 1], [], []>} : vector<8x16xbf16>, vector<16x96xbf16>, vector<8x96xf32> -> vector<8x96xf32>
    %85 = arith.addf %77, %84 : vector<8x96xf32>
    %86 = vector.extract_strided_slice %75 {offsets = [8, 0], sizes = [8, 8], strides = [1, 1]} : vector<128x8xf32> to vector<8x8xf32>
    %87 = vector.extract_strided_slice %76 {offsets = [0, 16], sizes = [8, 16], strides = [1, 1]} : vector<8x128xf32> to vector<8x16xf32>
    %cst_33 = arith.constant dense<0.000000e+00> : vector<8x16xf32>
    %88 = tpu.matmul %86, %87, %cst_33 {dimension_numbers = #tpu.dot_dimension_numbers<[1], [0], [0], [1], [0, 0, 1, 1], [], []>} : vector<8x8xf32>, vector<8x16xf32>, vector<8x16xf32> -> vector<8x16xf32>
    %89 = arith.truncf %88 : vector<8x16xf32> to vector<8x16xbf16>
    %c0_34 = arith.constant 0 : index
    %c1 = arith.constant 1 : index
    %c0_35 = arith.constant 0 : index
    %c0_36 = arith.constant 0 : index
    %90 = vector.load %arg4[%c0_34, %c1, %c0_35, %c0_36] : memref<2x8x16x96xbf16, #tpu.memory_space<vmem>>, vector<1x1x16x96xbf16>
    %91 = vector.shape_cast %90 : vector<1x1x16x96xbf16> to vector<16x96xbf16>
    %cst_37 = arith.constant dense<0.000000e+00> : vector<8x96xf32>
    %92 = tpu.matmul %89, %91, %cst_37 {dimension_numbers = #tpu.dot_dimension_numbers<[1], [0], [0], [1], [0, 0, 1, 1], [], []>} : vector<8x16xbf16>, vector<16x96xbf16>, vector<8x96xf32> -> vector<8x96xf32>
    %93 = arith.addf %85, %92 : vector<8x96xf32>
    %94 = vector.extract_strided_slice %75 {offsets = [16, 0], sizes = [8, 8], strides = [1, 1]} : vector<128x8xf32> to vector<8x8xf32>
    %95 = vector.extract_strided_slice %76 {offsets = [0, 32], sizes = [8, 16], strides = [1, 1]} : vector<8x128xf32> to vector<8x16xf32>
    %cst_38 = arith.constant dense<0.000000e+00> : vector<8x16xf32>
    %96 = tpu.matmul %94, %95, %cst_38 {dimension_numbers = #tpu.dot_dimension_numbers<[1], [0], [0], [1], [0, 0, 1, 1], [], []>} : vector<8x8xf32>, vector<8x16xf32>, vector<8x16xf32> -> vector<8x16xf32>
    %97 = arith.truncf %96 : vector<8x16xf32> to vector<8x16xbf16>
    %c0_39 = arith.constant 0 : index
    %c2 = arith.constant 2 : index
    %c0_40 = arith.constant 0 : index
    %c0_41 = arith.constant 0 : index
    %98 = vector.load %arg4[%c0_39, %c2, %c0_40, %c0_41] : memref<2x8x16x96xbf16, #tpu.memory_space<vmem>>, vector<1x1x16x96xbf16>
    %99 = vector.shape_cast %98 : vector<1x1x16x96xbf16> to vector<16x96xbf16>
    %cst_42 = arith.constant dense<0.000000e+00> : vector<8x96xf32>
    %100 = tpu.matmul %97, %99, %cst_42 {dimension_numbers = #tpu.dot_dimension_numbers<[1], [0], [0], [1], [0, 0, 1, 1], [], []>} : vector<8x16xbf16>, vector<16x96xbf16>, vector<8x96xf32> -> vector<8x96xf32>
    %101 = arith.addf %93, %100 : vector<8x96xf32>
    %102 = vector.extract_strided_slice %75 {offsets = [24, 0], sizes = [8, 8], strides = [1, 1]} : vector<128x8xf32> to vector<8x8xf32>
    %103 = vector.extract_strided_slice %76 {offsets = [0, 48], sizes = [8, 16], strides = [1, 1]} : vector<8x128xf32> to vector<8x16xf32>
    %cst_43 = arith.constant dense<0.000000e+00> : vector<8x16xf32>
    %104 = tpu.matmul %102, %103, %cst_43 {dimension_numbers = #tpu.dot_dimension_numbers<[1], [0], [0], [1], [0, 0, 1, 1], [], []>} : vector<8x8xf32>, vector<8x16xf32>, vector<8x16xf32> -> vector<8x16xf32>
    %105 = arith.truncf %104 : vector<8x16xf32> to vector<8x16xbf16>
    %c0_44 = arith.constant 0 : index
    %c3 = arith.constant 3 : index
    %c0_45 = arith.constant 0 : index
    %c0_46 = arith.constant 0 : index
    %106 = vector.load %arg4[%c0_44, %c3, %c0_45, %c0_46] : memref<2x8x16x96xbf16, #tpu.memory_space<vmem>>, vector<1x1x16x96xbf16>
    %107 = vector.shape_cast %106 : vector<1x1x16x96xbf16> to vector<16x96xbf16>
    %cst_47 = arith.constant dense<0.000000e+00> : vector<8x96xf32>
    %108 = tpu.matmul %105, %107, %cst_47 {dimension_numbers = #tpu.dot_dimension_numbers<[1], [0], [0], [1], [0, 0, 1, 1], [], []>} : vector<8x16xbf16>, vector<16x96xbf16>, vector<8x96xf32> -> vector<8x96xf32>
    %109 = arith.addf %101, %108 : vector<8x96xf32>
    %110 = vector.extract_strided_slice %75 {offsets = [32, 0], sizes = [8, 8], strides = [1, 1]} : vector<128x8xf32> to vector<8x8xf32>
    %111 = vector.extract_strided_slice %76 {offsets = [0, 64], sizes = [8, 16], strides = [1, 1]} : vector<8x128xf32> to vector<8x16xf32>
    %cst_48 = arith.constant dense<0.000000e+00> : vector<8x16xf32>
    %112 = tpu.matmul %110, %111, %cst_48 {dimension_numbers = #tpu.dot_dimension_numbers<[1], [0], [0], [1], [0, 0, 1, 1], [], []>} : vector<8x8xf32>, vector<8x16xf32>, vector<8x16xf32> -> vector<8x16xf32>
    %113 = arith.truncf %112 : vector<8x16xf32> to vector<8x16xbf16>
    %c0_49 = arith.constant 0 : index
    %c4 = arith.constant 4 : index
    %c0_50 = arith.constant 0 : index
    %c0_51 = arith.constant 0 : index
    %114 = vector.load %arg4[%c0_49, %c4, %c0_50, %c0_51] : memref<2x8x16x96xbf16, #tpu.memory_space<vmem>>, vector<1x1x16x96xbf16>
    %115 = vector.shape_cast %114 : vector<1x1x16x96xbf16> to vector<16x96xbf16>
    %cst_52 = arith.constant dense<0.000000e+00> : vector<8x96xf32>
    %116 = tpu.matmul %113, %115, %cst_52 {dimension_numbers = #tpu.dot_dimension_numbers<[1], [0], [0], [1], [0, 0, 1, 1], [], []>} : vector<8x16xbf16>, vector<16x96xbf16>, vector<8x96xf32> -> vector<8x96xf32>
    %117 = arith.addf %109, %116 : vector<8x96xf32>
    %118 = vector.extract_strided_slice %75 {offsets = [40, 0], sizes = [8, 8], strides = [1, 1]} : vector<128x8xf32> to vector<8x8xf32>
    %119 = vector.extract_strided_slice %76 {offsets = [0, 80], sizes = [8, 16], strides = [1, 1]} : vector<8x128xf32> to vector<8x16xf32>
    %cst_53 = arith.constant dense<0.000000e+00> : vector<8x16xf32>
    %120 = tpu.matmul %118, %119, %cst_53 {dimension_numbers = #tpu.dot_dimension_numbers<[1], [0], [0], [1], [0, 0, 1, 1], [], []>} : vector<8x8xf32>, vector<8x16xf32>, vector<8x16xf32> -> vector<8x16xf32>
    %121 = arith.truncf %120 : vector<8x16xf32> to vector<8x16xbf16>
    %c0_54 = arith.constant 0 : index
    %c5 = arith.constant 5 : index
    %c0_55 = arith.constant 0 : index
    %c0_56 = arith.constant 0 : index
    %122 = vector.load %arg4[%c0_54, %c5, %c0_55, %c0_56] : memref<2x8x16x96xbf16, #tpu.memory_space<vmem>>, vector<1x1x16x96xbf16>
    %123 = vector.shape_cast %122 : vector<1x1x16x96xbf16> to vector<16x96xbf16>
    %cst_57 = arith.constant dense<0.000000e+00> : vector<8x96xf32>
    %124 = tpu.matmul %121, %123, %cst_57 {dimension_numbers = #tpu.dot_dimension_numbers<[1], [0], [0], [1], [0, 0, 1, 1], [], []>} : vector<8x16xbf16>, vector<16x96xbf16>, vector<8x96xf32> -> vector<8x96xf32>
    %125 = arith.addf %117, %124 : vector<8x96xf32>
    %126 = vector.extract_strided_slice %75 {offsets = [48, 0], sizes = [8, 8], strides = [1, 1]} : vector<128x8xf32> to vector<8x8xf32>
    %127 = vector.extract_strided_slice %76 {offsets = [0, 96], sizes = [8, 16], strides = [1, 1]} : vector<8x128xf32> to vector<8x16xf32>
    %cst_58 = arith.constant dense<0.000000e+00> : vector<8x16xf32>
    %128 = tpu.matmul %126, %127, %cst_58 {dimension_numbers = #tpu.dot_dimension_numbers<[1], [0], [0], [1], [0, 0, 1, 1], [], []>} : vector<8x8xf32>, vector<8x16xf32>, vector<8x16xf32> -> vector<8x16xf32>
    %129 = arith.truncf %128 : vector<8x16xf32> to vector<8x16xbf16>
    %c0_59 = arith.constant 0 : index
    %c6 = arith.constant 6 : index
    %c0_60 = arith.constant 0 : index
    %c0_61 = arith.constant 0 : index
    %130 = vector.load %arg4[%c0_59, %c6, %c0_60, %c0_61] : memref<2x8x16x96xbf16, #tpu.memory_space<vmem>>, vector<1x1x16x96xbf16>
    %131 = vector.shape_cast %130 : vector<1x1x16x96xbf16> to vector<16x96xbf16>
    %cst_62 = arith.constant dense<0.000000e+00> : vector<8x96xf32>
    %132 = tpu.matmul %129, %131, %cst_62 {dimension_numbers = #tpu.dot_dimension_numbers<[1], [0], [0], [1], [0, 0, 1, 1], [], []>} : vector<8x16xbf16>, vector<16x96xbf16>, vector<8x96xf32> -> vector<8x96xf32>
    %133 = arith.addf %125, %132 : vector<8x96xf32>
    %134 = vector.extract_strided_slice %75 {offsets = [56, 0], sizes = [8, 8], strides = [1, 1]} : vector<128x8xf32> to vector<8x8xf32>
    %135 = vector.extract_strided_slice %76 {offsets = [0, 112], sizes = [8, 16], strides = [1, 1]} : vector<8x128xf32> to vector<8x16xf32>
    %cst_63 = arith.constant dense<0.000000e+00> : vector<8x16xf32>
    %136 = tpu.matmul %134, %135, %cst_63 {dimension_numbers = #tpu.dot_dimension_numbers<[1], [0], [0], [1], [0, 0, 1, 1], [], []>} : vector<8x8xf32>, vector<8x16xf32>, vector<8x16xf32> -> vector<8x16xf32>
    %137 = arith.truncf %136 : vector<8x16xf32> to vector<8x16xbf16>
    %c0_64 = arith.constant 0 : index
    %c7 = arith.constant 7 : index
    %c0_65 = arith.constant 0 : index
    %c0_66 = arith.constant 0 : index
    %138 = vector.load %arg4[%c0_64, %c7, %c0_65, %c0_66] : memref<2x8x16x96xbf16, #tpu.memory_space<vmem>>, vector<1x1x16x96xbf16>
    %139 = vector.shape_cast %138 : vector<1x1x16x96xbf16> to vector<16x96xbf16>
    %cst_67 = arith.constant dense<0.000000e+00> : vector<8x96xf32>
    %140 = tpu.matmul %137, %139, %cst_67 {dimension_numbers = #tpu.dot_dimension_numbers<[1], [0], [0], [1], [0, 0, 1, 1], [], []>} : vector<8x16xbf16>, vector<16x96xbf16>, vector<8x96xf32> -> vector<8x96xf32>
    %141 = arith.addf %133, %140 : vector<8x96xf32>
    %142 = vector.extract_strided_slice %12 {offsets = [8, 0], sizes = [8, 128], strides = [1, 1]} : vector<16x128xf32> to vector<8x128xf32>
    %cst_68 = arith.constant 0.000000e+00 : f32
    %143 = vector.broadcast %cst_68 : f32 to vector<8x96xf32>
    %144 = vector.extract_strided_slice %75 {offsets = [64, 0], sizes = [8, 8], strides = [1, 1]} : vector<128x8xf32> to vector<8x8xf32>
    %145 = vector.extract_strided_slice %142 {offsets = [0, 0], sizes = [8, 16], strides = [1, 1]} : vector<8x128xf32> to vector<8x16xf32>
    %cst_69 = arith.constant dense<0.000000e+00> : vector<8x16xf32>
    %146 = tpu.matmul %144, %145, %cst_69 {dimension_numbers = #tpu.dot_dimension_numbers<[1], [0], [0], [1], [0, 0, 1, 1], [], []>} : vector<8x8xf32>, vector<8x16xf32>, vector<8x16xf32> -> vector<8x16xf32>
    %147 = arith.truncf %146 : vector<8x16xf32> to vector<8x16xbf16>
    %c0_70 = arith.constant 0 : index
    %c0_71 = arith.constant 0 : index
    %c0_72 = arith.constant 0 : index
    %c0_73 = arith.constant 0 : index
    %148 = vector.load %arg4[%c0_70, %c0_71, %c0_72, %c0_73] : memref<2x8x16x96xbf16, #tpu.memory_space<vmem>>, vector<1x1x16x96xbf16>
    %149 = vector.shape_cast %148 : vector<1x1x16x96xbf16> to vector<16x96xbf16>
    %cst_74 = arith.constant dense<0.000000e+00> : vector<8x96xf32>
    %150 = tpu.matmul %147, %149, %cst_74 {dimension_numbers = #tpu.dot_dimension_numbers<[1], [0], [0], [1], [0, 0, 1, 1], [], []>} : vector<8x16xbf16>, vector<16x96xbf16>, vector<8x96xf32> -> vector<8x96xf32>
    %151 = arith.addf %143, %150 : vector<8x96xf32>
    %152 = vector.extract_strided_slice %75 {offsets = [72, 0], sizes = [8, 8], strides = [1, 1]} : vector<128x8xf32> to vector<8x8xf32>
    %153 = vector.extract_strided_slice %142 {offsets = [0, 16], sizes = [8, 16], strides = [1, 1]} : vector<8x128xf32> to vector<8x16xf32>
    %cst_75 = arith.constant dense<0.000000e+00> : vector<8x16xf32>
    %154 = tpu.matmul %152, %153, %cst_75 {dimension_numbers = #tpu.dot_dimension_numbers<[1], [0], [0], [1], [0, 0, 1, 1], [], []>} : vector<8x8xf32>, vector<8x16xf32>, vector<8x16xf32> -> vector<8x16xf32>
    %155 = arith.truncf %154 : vector<8x16xf32> to vector<8x16xbf16>
    %c0_76 = arith.constant 0 : index
    %c1_77 = arith.constant 1 : index
    %c0_78 = arith.constant 0 : index
    %c0_79 = arith.constant 0 : index
    %156 = vector.load %arg4[%c0_76, %c1_77, %c0_78, %c0_79] : memref<2x8x16x96xbf16, #tpu.memory_space<vmem>>, vector<1x1x16x96xbf16>
    %157 = vector.shape_cast %156 : vector<1x1x16x96xbf16> to vector<16x96xbf16>
    %cst_80 = arith.constant dense<0.000000e+00> : vector<8x96xf32>
    %158 = tpu.matmul %155, %157, %cst_80 {dimension_numbers = #tpu.dot_dimension_numbers<[1], [0], [0], [1], [0, 0, 1, 1], [], []>} : vector<8x16xbf16>, vector<16x96xbf16>, vector<8x96xf32> -> vector<8x96xf32>
    %159 = arith.addf %151, %158 : vector<8x96xf32>
    %160 = vector.extract_strided_slice %75 {offsets = [80, 0], sizes = [8, 8], strides = [1, 1]} : vector<128x8xf32> to vector<8x8xf32>
    %161 = vector.extract_strided_slice %142 {offsets = [0, 32], sizes = [8, 16], strides = [1, 1]} : vector<8x128xf32> to vector<8x16xf32>
    %cst_81 = arith.constant dense<0.000000e+00> : vector<8x16xf32>
    %162 = tpu.matmul %160, %161, %cst_81 {dimension_numbers = #tpu.dot_dimension_numbers<[1], [0], [0], [1], [0, 0, 1, 1], [], []>} : vector<8x8xf32>, vector<8x16xf32>, vector<8x16xf32> -> vector<8x16xf32>
    %163 = arith.truncf %162 : vector<8x16xf32> to vector<8x16xbf16>
    %c0_82 = arith.constant 0 : index
    %c2_83 = arith.constant 2 : index
    %c0_84 = arith.constant 0 : index
    %c0_85 = arith.constant 0 : index
    %164 = vector.load %arg4[%c0_82, %c2_83, %c0_84, %c0_85] : memref<2x8x16x96xbf16, #tpu.memory_space<vmem>>, vector<1x1x16x96xbf16>
    %165 = vector.shape_cast %164 : vector<1x1x16x96xbf16> to vector<16x96xbf16>
    %cst_86 = arith.constant dense<0.000000e+00> : vector<8x96xf32>
    %166 = tpu.matmul %163, %165, %cst_86 {dimension_numbers = #tpu.dot_dimension_numbers<[1], [0], [0], [1], [0, 0, 1, 1], [], []>} : vector<8x16xbf16>, vector<16x96xbf16>, vector<8x96xf32> -> vector<8x96xf32>
    %167 = arith.addf %159, %166 : vector<8x96xf32>
    %168 = vector.extract_strided_slice %75 {offsets = [88, 0], sizes = [8, 8], strides = [1, 1]} : vector<128x8xf32> to vector<8x8xf32>
    %169 = vector.extract_strided_slice %142 {offsets = [0, 48], sizes = [8, 16], strides = [1, 1]} : vector<8x128xf32> to vector<8x16xf32>
    %cst_87 = arith.constant dense<0.000000e+00> : vector<8x16xf32>
    %170 = tpu.matmul %168, %169, %cst_87 {dimension_numbers = #tpu.dot_dimension_numbers<[1], [0], [0], [1], [0, 0, 1, 1], [], []>} : vector<8x8xf32>, vector<8x16xf32>, vector<8x16xf32> -> vector<8x16xf32>
    %171 = arith.truncf %170 : vector<8x16xf32> to vector<8x16xbf16>
    %c0_88 = arith.constant 0 : index
    %c3_89 = arith.constant 3 : index
    %c0_90 = arith.constant 0 : index
    %c0_91 = arith.constant 0 : index
    %172 = vector.load %arg4[%c0_88, %c3_89, %c0_90, %c0_91] : memref<2x8x16x96xbf16, #tpu.memory_space<vmem>>, vector<1x1x16x96xbf16>
    %173 = vector.shape_cast %172 : vector<1x1x16x96xbf16> to vector<16x96xbf16>
    %cst_92 = arith.constant dense<0.000000e+00> : vector<8x96xf32>
    %174 = tpu.matmul %171, %173, %cst_92 {dimension_numbers = #tpu.dot_dimension_numbers<[1], [0], [0], [1], [0, 0, 1, 1], [], []>} : vector<8x16xbf16>, vector<16x96xbf16>, vector<8x96xf32> -> vector<8x96xf32>
    %175 = arith.addf %167, %174 : vector<8x96xf32>
    %176 = vector.extract_strided_slice %75 {offsets = [96, 0], sizes = [8, 8], strides = [1, 1]} : vector<128x8xf32> to vector<8x8xf32>
    %177 = vector.extract_strided_slice %142 {offsets = [0, 64], sizes = [8, 16], strides = [1, 1]} : vector<8x128xf32> to vector<8x16xf32>
    %cst_93 = arith.constant dense<0.000000e+00> : vector<8x16xf32>
    %178 = tpu.matmul %176, %177, %cst_93 {dimension_numbers = #tpu.dot_dimension_numbers<[1], [0], [0], [1], [0, 0, 1, 1], [], []>} : vector<8x8xf32>, vector<8x16xf32>, vector<8x16xf32> -> vector<8x16xf32>
    %179 = arith.truncf %178 : vector<8x16xf32> to vector<8x16xbf16>
    %c0_94 = arith.constant 0 : index
    %c4_95 = arith.constant 4 : index
    %c0_96 = arith.constant 0 : index
    %c0_97 = arith.constant 0 : index
    %180 = vector.load %arg4[%c0_94, %c4_95, %c0_96, %c0_97] : memref<2x8x16x96xbf16, #tpu.memory_space<vmem>>, vector<1x1x16x96xbf16>
    %181 = vector.shape_cast %180 : vector<1x1x16x96xbf16> to vector<16x96xbf16>
    %cst_98 = arith.constant dense<0.000000e+00> : vector<8x96xf32>
    %182 = tpu.matmul %179, %181, %cst_98 {dimension_numbers = #tpu.dot_dimension_numbers<[1], [0], [0], [1], [0, 0, 1, 1], [], []>} : vector<8x16xbf16>, vector<16x96xbf16>, vector<8x96xf32> -> vector<8x96xf32>
    %183 = arith.addf %175, %182 : vector<8x96xf32>
    %184 = vector.extract_strided_slice %75 {offsets = [104, 0], sizes = [8, 8], strides = [1, 1]} : vector<128x8xf32> to vector<8x8xf32>
    %185 = vector.extract_strided_slice %142 {offsets = [0, 80], sizes = [8, 16], strides = [1, 1]} : vector<8x128xf32> to vector<8x16xf32>
    %cst_99 = arith.constant dense<0.000000e+00> : vector<8x16xf32>
    %186 = tpu.matmul %184, %185, %cst_99 {dimension_numbers = #tpu.dot_dimension_numbers<[1], [0], [0], [1], [0, 0, 1, 1], [], []>} : vector<8x8xf32>, vector<8x16xf32>, vector<8x16xf32> -> vector<8x16xf32>
    %187 = arith.truncf %186 : vector<8x16xf32> to vector<8x16xbf16>
    %c0_100 = arith.constant 0 : index
    %c5_101 = arith.constant 5 : index
    %c0_102 = arith.constant 0 : index
    %c0_103 = arith.constant 0 : index
    %188 = vector.load %arg4[%c0_100, %c5_101, %c0_102, %c0_103] : memref<2x8x16x96xbf16, #tpu.memory_space<vmem>>, vector<1x1x16x96xbf16>
    %189 = vector.shape_cast %188 : vector<1x1x16x96xbf16> to vector<16x96xbf16>
    %cst_104 = arith.constant dense<0.000000e+00> : vector<8x96xf32>
    %190 = tpu.matmul %187, %189, %cst_104 {dimension_numbers = #tpu.dot_dimension_numbers<[1], [0], [0], [1], [0, 0, 1, 1], [], []>} : vector<8x16xbf16>, vector<16x96xbf16>, vector<8x96xf32> -> vector<8x96xf32>
    %191 = arith.addf %183, %190 : vector<8x96xf32>
    %192 = vector.extract_strided_slice %75 {offsets = [112, 0], sizes = [8, 8], strides = [1, 1]} : vector<128x8xf32> to vector<8x8xf32>
    %193 = vector.extract_strided_slice %142 {offsets = [0, 96], sizes = [8, 16], strides = [1, 1]} : vector<8x128xf32> to vector<8x16xf32>
    %cst_105 = arith.constant dense<0.000000e+00> : vector<8x16xf32>
    %194 = tpu.matmul %192, %193, %cst_105 {dimension_numbers = #tpu.dot_dimension_numbers<[1], [0], [0], [1], [0, 0, 1, 1], [], []>} : vector<8x8xf32>, vector<8x16xf32>, vector<8x16xf32> -> vector<8x16xf32>
    %195 = arith.truncf %194 : vector<8x16xf32> to vector<8x16xbf16>
    %c0_106 = arith.constant 0 : index
    %c6_107 = arith.constant 6 : index
    %c0_108 = arith.constant 0 : index
    %c0_109 = arith.constant 0 : index
    %196 = vector.load %arg4[%c0_106, %c6_107, %c0_108, %c0_109] : memref<2x8x16x96xbf16, #tpu.memory_space<vmem>>, vector<1x1x16x96xbf16>
    %197 = vector.shape_cast %196 : vector<1x1x16x96xbf16> to vector<16x96xbf16>
    %cst_110 = arith.constant dense<0.000000e+00> : vector<8x96xf32>
    %198 = tpu.matmul %195, %197, %cst_110 {dimension_numbers = #tpu.dot_dimension_numbers<[1], [0], [0], [1], [0, 0, 1, 1], [], []>} : vector<8x16xbf16>, vector<16x96xbf16>, vector<8x96xf32> -> vector<8x96xf32>
    %199 = arith.addf %191, %198 : vector<8x96xf32>
    %200 = vector.extract_strided_slice %75 {offsets = [120, 0], sizes = [8, 8], strides = [1, 1]} : vector<128x8xf32> to vector<8x8xf32>
    %201 = vector.extract_strided_slice %142 {offsets = [0, 112], sizes = [8, 16], strides = [1, 1]} : vector<8x128xf32> to vector<8x16xf32>
    %cst_111 = arith.constant dense<0.000000e+00> : vector<8x16xf32>
    %202 = tpu.matmul %200, %201, %cst_111 {dimension_numbers = #tpu.dot_dimension_numbers<[1], [0], [0], [1], [0, 0, 1, 1], [], []>} : vector<8x8xf32>, vector<8x16xf32>, vector<8x16xf32> -> vector<8x16xf32>
    %203 = arith.truncf %202 : vector<8x16xf32> to vector<8x16xbf16>
    %c0_112 = arith.constant 0 : index
    %c7_113 = arith.constant 7 : index
    %c0_114 = arith.constant 0 : index
    %c0_115 = arith.constant 0 : index
    %204 = vector.load %arg4[%c0_112, %c7_113, %c0_114, %c0_115] : memref<2x8x16x96xbf16, #tpu.memory_space<vmem>>, vector<1x1x16x96xbf16>
    %205 = vector.shape_cast %204 : vector<1x1x16x96xbf16> to vector<16x96xbf16>
    %cst_116 = arith.constant dense<0.000000e+00> : vector<8x96xf32>
    %206 = tpu.matmul %203, %205, %cst_116 {dimension_numbers = #tpu.dot_dimension_numbers<[1], [0], [0], [1], [0, 0, 1, 1], [], []>} : vector<8x16xbf16>, vector<16x96xbf16>, vector<8x96xf32> -> vector<8x96xf32>
    %207 = arith.addf %199, %206 : vector<8x96xf32>
    %208 = tpu.concatenate %141, %207 in 0 : vector<8x96xf32>, vector<8x96xf32> -> vector<16x96xf32>
    %c0_117 = arith.constant 0 : index
    %c0_118 = arith.constant 0 : index
    %c0_119 = arith.constant 0 : index
    %209 = vector.load %arg5[%c0_117, %c0_118, %c0_119] : memref<2x1x96xf32, #tpu.memory_space<vmem>>, vector<1x1x96xf32>
    %210 = vector.shape_cast %209 : vector<1x1x96xf32> to vector<1x96xf32>
    %211 = vector.broadcast %210 : vector<1x96xf32> to vector<16x96xf32>
    %212 = arith.addf %208, %211 : vector<16x96xf32>
    %c0_120 = arith.constant 0 : index
    %c0_121 = arith.constant 0 : index
    %c0_122 = arith.constant 0 : index
    %213 = vector.load %arg10[%c0_120, %c0_121, %c0_122] : memref<2x1x96xf32, #tpu.memory_space<vmem>>, vector<1x1x96xf32>
    %214 = vector.shape_cast %213 : vector<1x1x96xf32> to vector<1x96xf32>
    %c0_123 = arith.constant 0 : index
    %c0_124 = arith.constant 0 : index
    %c0_125 = arith.constant 0 : index
    %215 = vector.load %arg11[%c0_123, %c0_124, %c0_125] : memref<2x1x96xf32, #tpu.memory_space<vmem>>, vector<1x1x96xf32>
    %216 = vector.shape_cast %215 : vector<1x1x96xf32> to vector<1x96xf32>
    %217 = arith.addf %212, %1 : vector<16x96xf32>
    %cst_126 = arith.constant dense<0.000000e+00> : vector<16xf32>
    %218 = vector.multi_reduction <add>, %217, %cst_126 [1] : vector<16x96xf32> to vector<16xf32>
    %219 = vector.shape_cast %218 : vector<16xf32> to vector<16x1xf32>
    %cst_127 = arith.constant 0.010416667 : f32
    %220 = vector.broadcast %cst_127 : f32 to vector<16x1xf32>
    %221 = arith.mulf %219, %220 : vector<16x1xf32>
    %222 = vector.broadcast %221 : vector<16x1xf32> to vector<16x96xf32>
    %223 = arith.subf %217, %222 : vector<16x96xf32>
    %224 = arith.mulf %223, %223 : vector<16x96xf32>
    %cst_128 = arith.constant dense<0.000000e+00> : vector<16xf32>
    %225 = vector.multi_reduction <add>, %224, %cst_128 [1] : vector<16x96xf32> to vector<16xf32>
    %226 = vector.shape_cast %225 : vector<16xf32> to vector<16x1xf32>
    %cst_129 = arith.constant 0.010416667 : f32
    %227 = vector.broadcast %cst_129 : f32 to vector<16x1xf32>
    %228 = arith.mulf %226, %227 : vector<16x1xf32>
    %cst_130 = arith.constant 9.99999974E-6 : f32
    %229 = vector.broadcast %cst_130 : f32 to vector<16x1xf32>
    %230 = arith.addf %228, %229 : vector<16x1xf32>
    %231 = math.rsqrt %230 : vector<16x1xf32>
    %232 = vector.broadcast %231 : vector<16x1xf32> to vector<16x96xf32>
    %233 = arith.mulf %223, %232 : vector<16x96xf32>
    %234 = vector.broadcast %214 : vector<1x96xf32> to vector<16x96xf32>
    %235 = arith.mulf %233, %234 : vector<16x96xf32>
    %236 = vector.broadcast %216 : vector<1x96xf32> to vector<16x96xf32>
    %237 = arith.addf %235, %236 : vector<16x96xf32>
    %238 = arith.truncf %237 : vector<16x96xf32> to vector<16x96xbf16>
    %c0_131 = arith.constant 0 : index
    %c0_132 = arith.constant 0 : index
    %c0_133 = arith.constant 0 : index
    %239 = vector.load %arg6[%c0_131, %c0_132, %c0_133] : memref<2x96x2048xbf16, #tpu.memory_space<vmem>>, vector<1x96x2048xbf16>
    %240 = vector.shape_cast %239 : vector<1x96x2048xbf16> to vector<96x2048xbf16>
    %cst_134 = arith.constant dense<0.000000e+00> : vector<16x2048xf32>
    %241 = tpu.matmul %238, %240, %cst_134 {dimension_numbers = #tpu.dot_dimension_numbers<[1], [0], [0], [1], [0, 0, 1, 1], [], []>} : vector<16x96xbf16>, vector<96x2048xbf16>, vector<16x2048xf32> -> vector<16x2048xf32>
    %c0_135 = arith.constant 0 : index
    %c0_136 = arith.constant 0 : index
    %c0_137 = arith.constant 0 : index
    %242 = vector.load %arg7[%c0_135, %c0_136, %c0_137] : memref<2x1x2048xf32, #tpu.memory_space<vmem>>, vector<1x1x2048xf32>
    %243 = vector.shape_cast %242 : vector<1x1x2048xf32> to vector<1x2048xf32>
    %244 = vector.broadcast %243 : vector<1x2048xf32> to vector<16x2048xf32>
    %245 = arith.addf %241, %244 : vector<16x2048xf32>
    %cst_138 = arith.constant 0.000000e+00 : f32
    %246 = vector.broadcast %cst_138 : f32 to vector<16x2048xf32>
    %247 = arith.maximumf %245, %246 : vector<16x2048xf32>
    %248 = arith.truncf %247 : vector<16x2048xf32> to vector<16x2048xbf16>
    %c0_139 = arith.constant 0 : index
    %c0_140 = arith.constant 0 : index
    %c0_141 = arith.constant 0 : index
    %249 = vector.load %arg8[%c0_139, %c0_140, %c0_141] : memref<2x2048x96xbf16, #tpu.memory_space<vmem>>, vector<1x2048x96xbf16>
    %250 = vector.shape_cast %249 : vector<1x2048x96xbf16> to vector<2048x96xbf16>
    %cst_142 = arith.constant dense<0.000000e+00> : vector<16x96xf32>
    %251 = tpu.matmul %248, %250, %cst_142 {dimension_numbers = #tpu.dot_dimension_numbers<[1], [0], [0], [1], [0, 0, 1, 1], [], []>} : vector<16x2048xbf16>, vector<2048x96xbf16>, vector<16x96xf32> -> vector<16x96xf32>
    %c0_143 = arith.constant 0 : index
    %c0_144 = arith.constant 0 : index
    %c0_145 = arith.constant 0 : index
    %252 = vector.load %arg9[%c0_143, %c0_144, %c0_145] : memref<2x1x96xf32, #tpu.memory_space<vmem>>, vector<1x1x96xf32>
    %253 = vector.shape_cast %252 : vector<1x1x96xf32> to vector<1x96xf32>
    %254 = vector.broadcast %253 : vector<1x96xf32> to vector<16x96xf32>
    %255 = arith.addf %251, %254 : vector<16x96xf32>
    %c0_146 = arith.constant 0 : index
    %c0_147 = arith.constant 0 : index
    %c0_148 = arith.constant 0 : index
    %256 = vector.load %arg12[%c0_146, %c0_147, %c0_148] : memref<2x1x96xf32, #tpu.memory_space<vmem>>, vector<1x1x96xf32>
    %257 = vector.shape_cast %256 : vector<1x1x96xf32> to vector<1x96xf32>
    %c0_149 = arith.constant 0 : index
    %c0_150 = arith.constant 0 : index
    %c0_151 = arith.constant 0 : index
    %258 = vector.load %arg13[%c0_149, %c0_150, %c0_151] : memref<2x1x96xf32, #tpu.memory_space<vmem>>, vector<1x1x96xf32>
    %259 = vector.shape_cast %258 : vector<1x1x96xf32> to vector<1x96xf32>
    %260 = arith.addf %255, %237 : vector<16x96xf32>
    %cst_152 = arith.constant dense<0.000000e+00> : vector<16xf32>
    %261 = vector.multi_reduction <add>, %260, %cst_152 [1] : vector<16x96xf32> to vector<16xf32>
    %262 = vector.shape_cast %261 : vector<16xf32> to vector<16x1xf32>
    %cst_153 = arith.constant 0.010416667 : f32
    %263 = vector.broadcast %cst_153 : f32 to vector<16x1xf32>
    %264 = arith.mulf %262, %263 : vector<16x1xf32>
    %265 = vector.broadcast %264 : vector<16x1xf32> to vector<16x96xf32>
    %266 = arith.subf %260, %265 : vector<16x96xf32>
    %267 = arith.mulf %266, %266 : vector<16x96xf32>
    %cst_154 = arith.constant dense<0.000000e+00> : vector<16xf32>
    %268 = vector.multi_reduction <add>, %267, %cst_154 [1] : vector<16x96xf32> to vector<16xf32>
    %269 = vector.shape_cast %268 : vector<16xf32> to vector<16x1xf32>
    %cst_155 = arith.constant 0.010416667 : f32
    %270 = vector.broadcast %cst_155 : f32 to vector<16x1xf32>
    %271 = arith.mulf %269, %270 : vector<16x1xf32>
    %cst_156 = arith.constant 9.99999974E-6 : f32
    %272 = vector.broadcast %cst_156 : f32 to vector<16x1xf32>
    %273 = arith.addf %271, %272 : vector<16x1xf32>
    %274 = math.rsqrt %273 : vector<16x1xf32>
    %275 = vector.broadcast %274 : vector<16x1xf32> to vector<16x96xf32>
    %276 = arith.mulf %266, %275 : vector<16x96xf32>
    %277 = vector.broadcast %257 : vector<1x96xf32> to vector<16x96xf32>
    %278 = arith.mulf %276, %277 : vector<16x96xf32>
    %279 = vector.broadcast %259 : vector<1x96xf32> to vector<16x96xf32>
    %280 = arith.addf %278, %279 : vector<16x96xf32>
    %281 = arith.truncf %280 : vector<16x96xf32> to vector<16x96xbf16>
    %c1_157 = arith.constant 1 : index
    %c0_158 = arith.constant 0 : index
    %c0_159 = arith.constant 0 : index
    %282 = vector.load %arg2[%c1_157, %c0_158, %c0_159] : memref<2x96x384xbf16, #tpu.memory_space<vmem>>, vector<1x96x384xbf16>
    %283 = vector.shape_cast %282 : vector<1x96x384xbf16> to vector<96x384xbf16>
    %cst_160 = arith.constant dense<0.000000e+00> : vector<16x384xf32>
    %284 = tpu.matmul %281, %283, %cst_160 {dimension_numbers = #tpu.dot_dimension_numbers<[1], [0], [0], [1], [0, 0, 1, 1], [], []>} : vector<16x96xbf16>, vector<96x384xbf16>, vector<16x384xf32> -> vector<16x384xf32>
    %c1_161 = arith.constant 1 : index
    %c0_162 = arith.constant 0 : index
    %c0_163 = arith.constant 0 : index
    %285 = vector.load %arg3[%c1_161, %c0_162, %c0_163] : memref<2x1x384xf32, #tpu.memory_space<vmem>>, vector<1x1x384xf32>
    %286 = vector.shape_cast %285 : vector<1x1x384xf32> to vector<1x384xf32>
    %287 = vector.broadcast %286 : vector<1x384xf32> to vector<16x384xf32>
    %288 = arith.addf %284, %287 : vector<16x384xf32>
    %289 = vector.extract_strided_slice %288 {offsets = [0, 0], sizes = [16, 128], strides = [1, 1]} : vector<16x384xf32> to vector<16x128xf32>
    %290 = vector.extract_strided_slice %288 {offsets = [0, 128], sizes = [16, 128], strides = [1, 1]} : vector<16x384xf32> to vector<16x128xf32>
    %291 = vector.extract_strided_slice %288 {offsets = [0, 256], sizes = [16, 128], strides = [1, 1]} : vector<16x384xf32> to vector<16x128xf32>
    %292 = vector.extract_strided_slice %289 {offsets = [0, 0], sizes = [8, 128], strides = [1, 1]} : vector<16x128xf32> to vector<8x128xf32>
    %293 = vector.extract_strided_slice %290 {offsets = [0, 0], sizes = [8, 128], strides = [1, 1]} : vector<16x128xf32> to vector<8x128xf32>
    %294 = vector.extract_strided_slice %292 {offsets = [0, 0], sizes = [8, 16], strides = [1, 1]} : vector<8x128xf32> to vector<8x16xf32>
    %295 = vector.extract_strided_slice %293 {offsets = [0, 0], sizes = [8, 16], strides = [1, 1]} : vector<8x128xf32> to vector<8x16xf32>
    %cst_164 = arith.constant dense<0.000000e+00> : vector<8x8xf32>
    %296 = tpu.matmul %294, %295, %cst_164 {dimension_numbers = #tpu.dot_dimension_numbers<[1], [1], [0], [0], [0, 0, 1, 0], [], []>} : vector<8x16xf32>, vector<8x16xf32>, vector<8x8xf32> -> vector<8x8xf32>
    %297 = vector.extract_strided_slice %292 {offsets = [0, 16], sizes = [8, 16], strides = [1, 1]} : vector<8x128xf32> to vector<8x16xf32>
    %298 = vector.extract_strided_slice %293 {offsets = [0, 16], sizes = [8, 16], strides = [1, 1]} : vector<8x128xf32> to vector<8x16xf32>
    %cst_165 = arith.constant dense<0.000000e+00> : vector<8x8xf32>
    %299 = tpu.matmul %297, %298, %cst_165 {dimension_numbers = #tpu.dot_dimension_numbers<[1], [1], [0], [0], [0, 0, 1, 0], [], []>} : vector<8x16xf32>, vector<8x16xf32>, vector<8x8xf32> -> vector<8x8xf32>
    %300 = vector.extract_strided_slice %292 {offsets = [0, 32], sizes = [8, 16], strides = [1, 1]} : vector<8x128xf32> to vector<8x16xf32>
    %301 = vector.extract_strided_slice %293 {offsets = [0, 32], sizes = [8, 16], strides = [1, 1]} : vector<8x128xf32> to vector<8x16xf32>
    %cst_166 = arith.constant dense<0.000000e+00> : vector<8x8xf32>
    %302 = tpu.matmul %300, %301, %cst_166 {dimension_numbers = #tpu.dot_dimension_numbers<[1], [1], [0], [0], [0, 0, 1, 0], [], []>} : vector<8x16xf32>, vector<8x16xf32>, vector<8x8xf32> -> vector<8x8xf32>
    %303 = vector.extract_strided_slice %292 {offsets = [0, 48], sizes = [8, 16], strides = [1, 1]} : vector<8x128xf32> to vector<8x16xf32>
    %304 = vector.extract_strided_slice %293 {offsets = [0, 48], sizes = [8, 16], strides = [1, 1]} : vector<8x128xf32> to vector<8x16xf32>
    %cst_167 = arith.constant dense<0.000000e+00> : vector<8x8xf32>
    %305 = tpu.matmul %303, %304, %cst_167 {dimension_numbers = #tpu.dot_dimension_numbers<[1], [1], [0], [0], [0, 0, 1, 0], [], []>} : vector<8x16xf32>, vector<8x16xf32>, vector<8x8xf32> -> vector<8x8xf32>
    %306 = vector.extract_strided_slice %292 {offsets = [0, 64], sizes = [8, 16], strides = [1, 1]} : vector<8x128xf32> to vector<8x16xf32>
    %307 = vector.extract_strided_slice %293 {offsets = [0, 64], sizes = [8, 16], strides = [1, 1]} : vector<8x128xf32> to vector<8x16xf32>
    %cst_168 = arith.constant dense<0.000000e+00> : vector<8x8xf32>
    %308 = tpu.matmul %306, %307, %cst_168 {dimension_numbers = #tpu.dot_dimension_numbers<[1], [1], [0], [0], [0, 0, 1, 0], [], []>} : vector<8x16xf32>, vector<8x16xf32>, vector<8x8xf32> -> vector<8x8xf32>
    %309 = vector.extract_strided_slice %292 {offsets = [0, 80], sizes = [8, 16], strides = [1, 1]} : vector<8x128xf32> to vector<8x16xf32>
    %310 = vector.extract_strided_slice %293 {offsets = [0, 80], sizes = [8, 16], strides = [1, 1]} : vector<8x128xf32> to vector<8x16xf32>
    %cst_169 = arith.constant dense<0.000000e+00> : vector<8x8xf32>
    %311 = tpu.matmul %309, %310, %cst_169 {dimension_numbers = #tpu.dot_dimension_numbers<[1], [1], [0], [0], [0, 0, 1, 0], [], []>} : vector<8x16xf32>, vector<8x16xf32>, vector<8x8xf32> -> vector<8x8xf32>
    %312 = vector.extract_strided_slice %292 {offsets = [0, 96], sizes = [8, 16], strides = [1, 1]} : vector<8x128xf32> to vector<8x16xf32>
    %313 = vector.extract_strided_slice %293 {offsets = [0, 96], sizes = [8, 16], strides = [1, 1]} : vector<8x128xf32> to vector<8x16xf32>
    %cst_170 = arith.constant dense<0.000000e+00> : vector<8x8xf32>
    %314 = tpu.matmul %312, %313, %cst_170 {dimension_numbers = #tpu.dot_dimension_numbers<[1], [1], [0], [0], [0, 0, 1, 0], [], []>} : vector<8x16xf32>, vector<8x16xf32>, vector<8x8xf32> -> vector<8x8xf32>
    %315 = vector.extract_strided_slice %292 {offsets = [0, 112], sizes = [8, 16], strides = [1, 1]} : vector<8x128xf32> to vector<8x16xf32>
    %316 = vector.extract_strided_slice %293 {offsets = [0, 112], sizes = [8, 16], strides = [1, 1]} : vector<8x128xf32> to vector<8x16xf32>
    %cst_171 = arith.constant dense<0.000000e+00> : vector<8x8xf32>
    %317 = tpu.matmul %315, %316, %cst_171 {dimension_numbers = #tpu.dot_dimension_numbers<[1], [1], [0], [0], [0, 0, 1, 0], [], []>} : vector<8x16xf32>, vector<8x16xf32>, vector<8x8xf32> -> vector<8x8xf32>
    %318 = vector.extract_strided_slice %289 {offsets = [8, 0], sizes = [8, 128], strides = [1, 1]} : vector<16x128xf32> to vector<8x128xf32>
    %319 = vector.extract_strided_slice %290 {offsets = [8, 0], sizes = [8, 128], strides = [1, 1]} : vector<16x128xf32> to vector<8x128xf32>
    %320 = vector.extract_strided_slice %318 {offsets = [0, 0], sizes = [8, 16], strides = [1, 1]} : vector<8x128xf32> to vector<8x16xf32>
    %321 = vector.extract_strided_slice %319 {offsets = [0, 0], sizes = [8, 16], strides = [1, 1]} : vector<8x128xf32> to vector<8x16xf32>
    %cst_172 = arith.constant dense<0.000000e+00> : vector<8x8xf32>
    %322 = tpu.matmul %320, %321, %cst_172 {dimension_numbers = #tpu.dot_dimension_numbers<[1], [1], [0], [0], [0, 0, 1, 0], [], []>} : vector<8x16xf32>, vector<8x16xf32>, vector<8x8xf32> -> vector<8x8xf32>
    %323 = vector.extract_strided_slice %318 {offsets = [0, 16], sizes = [8, 16], strides = [1, 1]} : vector<8x128xf32> to vector<8x16xf32>
    %324 = vector.extract_strided_slice %319 {offsets = [0, 16], sizes = [8, 16], strides = [1, 1]} : vector<8x128xf32> to vector<8x16xf32>
    %cst_173 = arith.constant dense<0.000000e+00> : vector<8x8xf32>
    %325 = tpu.matmul %323, %324, %cst_173 {dimension_numbers = #tpu.dot_dimension_numbers<[1], [1], [0], [0], [0, 0, 1, 0], [], []>} : vector<8x16xf32>, vector<8x16xf32>, vector<8x8xf32> -> vector<8x8xf32>
    %326 = vector.extract_strided_slice %318 {offsets = [0, 32], sizes = [8, 16], strides = [1, 1]} : vector<8x128xf32> to vector<8x16xf32>
    %327 = vector.extract_strided_slice %319 {offsets = [0, 32], sizes = [8, 16], strides = [1, 1]} : vector<8x128xf32> to vector<8x16xf32>
    %cst_174 = arith.constant dense<0.000000e+00> : vector<8x8xf32>
    %328 = tpu.matmul %326, %327, %cst_174 {dimension_numbers = #tpu.dot_dimension_numbers<[1], [1], [0], [0], [0, 0, 1, 0], [], []>} : vector<8x16xf32>, vector<8x16xf32>, vector<8x8xf32> -> vector<8x8xf32>
    %329 = vector.extract_strided_slice %318 {offsets = [0, 48], sizes = [8, 16], strides = [1, 1]} : vector<8x128xf32> to vector<8x16xf32>
    %330 = vector.extract_strided_slice %319 {offsets = [0, 48], sizes = [8, 16], strides = [1, 1]} : vector<8x128xf32> to vector<8x16xf32>
    %cst_175 = arith.constant dense<0.000000e+00> : vector<8x8xf32>
    %331 = tpu.matmul %329, %330, %cst_175 {dimension_numbers = #tpu.dot_dimension_numbers<[1], [1], [0], [0], [0, 0, 1, 0], [], []>} : vector<8x16xf32>, vector<8x16xf32>, vector<8x8xf32> -> vector<8x8xf32>
    %332 = vector.extract_strided_slice %318 {offsets = [0, 64], sizes = [8, 16], strides = [1, 1]} : vector<8x128xf32> to vector<8x16xf32>
    %333 = vector.extract_strided_slice %319 {offsets = [0, 64], sizes = [8, 16], strides = [1, 1]} : vector<8x128xf32> to vector<8x16xf32>
    %cst_176 = arith.constant dense<0.000000e+00> : vector<8x8xf32>
    %334 = tpu.matmul %332, %333, %cst_176 {dimension_numbers = #tpu.dot_dimension_numbers<[1], [1], [0], [0], [0, 0, 1, 0], [], []>} : vector<8x16xf32>, vector<8x16xf32>, vector<8x8xf32> -> vector<8x8xf32>
    %335 = vector.extract_strided_slice %318 {offsets = [0, 80], sizes = [8, 16], strides = [1, 1]} : vector<8x128xf32> to vector<8x16xf32>
    %336 = vector.extract_strided_slice %319 {offsets = [0, 80], sizes = [8, 16], strides = [1, 1]} : vector<8x128xf32> to vector<8x16xf32>
    %cst_177 = arith.constant dense<0.000000e+00> : vector<8x8xf32>
    %337 = tpu.matmul %335, %336, %cst_177 {dimension_numbers = #tpu.dot_dimension_numbers<[1], [1], [0], [0], [0, 0, 1, 0], [], []>} : vector<8x16xf32>, vector<8x16xf32>, vector<8x8xf32> -> vector<8x8xf32>
    %338 = vector.extract_strided_slice %318 {offsets = [0, 96], sizes = [8, 16], strides = [1, 1]} : vector<8x128xf32> to vector<8x16xf32>
    %339 = vector.extract_strided_slice %319 {offsets = [0, 96], sizes = [8, 16], strides = [1, 1]} : vector<8x128xf32> to vector<8x16xf32>
    %cst_178 = arith.constant dense<0.000000e+00> : vector<8x8xf32>
    %340 = tpu.matmul %338, %339, %cst_178 {dimension_numbers = #tpu.dot_dimension_numbers<[1], [1], [0], [0], [0, 0, 1, 0], [], []>} : vector<8x16xf32>, vector<8x16xf32>, vector<8x8xf32> -> vector<8x8xf32>
    %341 = vector.extract_strided_slice %318 {offsets = [0, 112], sizes = [8, 16], strides = [1, 1]} : vector<8x128xf32> to vector<8x16xf32>
    %342 = vector.extract_strided_slice %319 {offsets = [0, 112], sizes = [8, 16], strides = [1, 1]} : vector<8x128xf32> to vector<8x16xf32>
    %cst_179 = arith.constant dense<0.000000e+00> : vector<8x8xf32>
    %343 = tpu.matmul %341, %342, %cst_179 {dimension_numbers = #tpu.dot_dimension_numbers<[1], [1], [0], [0], [0, 0, 1, 0], [], []>} : vector<8x16xf32>, vector<8x16xf32>, vector<8x8xf32> -> vector<8x8xf32>
    %344 = tpu.concatenate %296, %299, %302, %305, %308, %311, %314, %317, %322, %325, %328, %331, %334, %337, %340, %343 in 0 : vector<8x8xf32>, vector<8x8xf32>, vector<8x8xf32>, vector<8x8xf32>, vector<8x8xf32>, vector<8x8xf32>, vector<8x8xf32>, vector<8x8xf32>, vector<8x8xf32>, vector<8x8xf32>, vector<8x8xf32>, vector<8x8xf32>, vector<8x8xf32>, vector<8x8xf32>, vector<8x8xf32>, vector<8x8xf32> -> vector<128x8xf32>
    %cst_180 = arith.constant dense<0xFF800000> : vector<128xf32>
    %345 = vector.multi_reduction <maximumf>, %344, %cst_180 [1] : vector<128x8xf32> to vector<128xf32>
    %346 = vector.shape_cast %345 : vector<128xf32> to vector<128x1xf32>
    %347 = vector.broadcast %346 : vector<128x1xf32> to vector<128x8xf32>
    %348 = arith.subf %344, %347 : vector<128x8xf32>
    %349 = math.exp %348 : vector<128x8xf32>
    %cst_181 = arith.constant dense<0.000000e+00> : vector<128xf32>
    %350 = vector.multi_reduction <add>, %349, %cst_181 [1] : vector<128x8xf32> to vector<128xf32>
    %351 = vector.shape_cast %350 : vector<128xf32> to vector<128x1xf32>
    %352 = tpu.reciprocal %351 : vector<128x1xf32> -> vector<128x1xf32>
    %353 = vector.broadcast %352 : vector<128x1xf32> to vector<128x8xf32>
    %354 = arith.mulf %349, %353 : vector<128x8xf32>
    %355 = vector.extract_strided_slice %291 {offsets = [0, 0], sizes = [8, 128], strides = [1, 1]} : vector<16x128xf32> to vector<8x128xf32>
    %cst_182 = arith.constant 0.000000e+00 : f32
    %356 = vector.broadcast %cst_182 : f32 to vector<8x96xf32>
    %357 = vector.extract_strided_slice %354 {offsets = [0, 0], sizes = [8, 8], strides = [1, 1]} : vector<128x8xf32> to vector<8x8xf32>
    %358 = vector.extract_strided_slice %355 {offsets = [0, 0], sizes = [8, 16], strides = [1, 1]} : vector<8x128xf32> to vector<8x16xf32>
    %cst_183 = arith.constant dense<0.000000e+00> : vector<8x16xf32>
    %359 = tpu.matmul %357, %358, %cst_183 {dimension_numbers = #tpu.dot_dimension_numbers<[1], [0], [0], [1], [0, 0, 1, 1], [], []>} : vector<8x8xf32>, vector<8x16xf32>, vector<8x16xf32> -> vector<8x16xf32>
    %360 = arith.truncf %359 : vector<8x16xf32> to vector<8x16xbf16>
    %c1_184 = arith.constant 1 : index
    %c0_185 = arith.constant 0 : index
    %c0_186 = arith.constant 0 : index
    %c0_187 = arith.constant 0 : index
    %361 = vector.load %arg4[%c1_184, %c0_185, %c0_186, %c0_187] : memref<2x8x16x96xbf16, #tpu.memory_space<vmem>>, vector<1x1x16x96xbf16>
    %362 = vector.shape_cast %361 : vector<1x1x16x96xbf16> to vector<16x96xbf16>
    %cst_188 = arith.constant dense<0.000000e+00> : vector<8x96xf32>
    %363 = tpu.matmul %360, %362, %cst_188 {dimension_numbers = #tpu.dot_dimension_numbers<[1], [0], [0], [1], [0, 0, 1, 1], [], []>} : vector<8x16xbf16>, vector<16x96xbf16>, vector<8x96xf32> -> vector<8x96xf32>
    %364 = arith.addf %356, %363 : vector<8x96xf32>
    %365 = vector.extract_strided_slice %354 {offsets = [8, 0], sizes = [8, 8], strides = [1, 1]} : vector<128x8xf32> to vector<8x8xf32>
    %366 = vector.extract_strided_slice %355 {offsets = [0, 16], sizes = [8, 16], strides = [1, 1]} : vector<8x128xf32> to vector<8x16xf32>
    %cst_189 = arith.constant dense<0.000000e+00> : vector<8x16xf32>
    %367 = tpu.matmul %365, %366, %cst_189 {dimension_numbers = #tpu.dot_dimension_numbers<[1], [0], [0], [1], [0, 0, 1, 1], [], []>} : vector<8x8xf32>, vector<8x16xf32>, vector<8x16xf32> -> vector<8x16xf32>
    %368 = arith.truncf %367 : vector<8x16xf32> to vector<8x16xbf16>
    %c1_190 = arith.constant 1 : index
    %c1_191 = arith.constant 1 : index
    %c0_192 = arith.constant 0 : index
    %c0_193 = arith.constant 0 : index
    %369 = vector.load %arg4[%c1_190, %c1_191, %c0_192, %c0_193] : memref<2x8x16x96xbf16, #tpu.memory_space<vmem>>, vector<1x1x16x96xbf16>
    %370 = vector.shape_cast %369 : vector<1x1x16x96xbf16> to vector<16x96xbf16>
    %cst_194 = arith.constant dense<0.000000e+00> : vector<8x96xf32>
    %371 = tpu.matmul %368, %370, %cst_194 {dimension_numbers = #tpu.dot_dimension_numbers<[1], [0], [0], [1], [0, 0, 1, 1], [], []>} : vector<8x16xbf16>, vector<16x96xbf16>, vector<8x96xf32> -> vector<8x96xf32>
    %372 = arith.addf %364, %371 : vector<8x96xf32>
    %373 = vector.extract_strided_slice %354 {offsets = [16, 0], sizes = [8, 8], strides = [1, 1]} : vector<128x8xf32> to vector<8x8xf32>
    %374 = vector.extract_strided_slice %355 {offsets = [0, 32], sizes = [8, 16], strides = [1, 1]} : vector<8x128xf32> to vector<8x16xf32>
    %cst_195 = arith.constant dense<0.000000e+00> : vector<8x16xf32>
    %375 = tpu.matmul %373, %374, %cst_195 {dimension_numbers = #tpu.dot_dimension_numbers<[1], [0], [0], [1], [0, 0, 1, 1], [], []>} : vector<8x8xf32>, vector<8x16xf32>, vector<8x16xf32> -> vector<8x16xf32>
    %376 = arith.truncf %375 : vector<8x16xf32> to vector<8x16xbf16>
    %c1_196 = arith.constant 1 : index
    %c2_197 = arith.constant 2 : index
    %c0_198 = arith.constant 0 : index
    %c0_199 = arith.constant 0 : index
    %377 = vector.load %arg4[%c1_196, %c2_197, %c0_198, %c0_199] : memref<2x8x16x96xbf16, #tpu.memory_space<vmem>>, vector<1x1x16x96xbf16>
    %378 = vector.shape_cast %377 : vector<1x1x16x96xbf16> to vector<16x96xbf16>
    %cst_200 = arith.constant dense<0.000000e+00> : vector<8x96xf32>
    %379 = tpu.matmul %376, %378, %cst_200 {dimension_numbers = #tpu.dot_dimension_numbers<[1], [0], [0], [1], [0, 0, 1, 1], [], []>} : vector<8x16xbf16>, vector<16x96xbf16>, vector<8x96xf32> -> vector<8x96xf32>
    %380 = arith.addf %372, %379 : vector<8x96xf32>
    %381 = vector.extract_strided_slice %354 {offsets = [24, 0], sizes = [8, 8], strides = [1, 1]} : vector<128x8xf32> to vector<8x8xf32>
    %382 = vector.extract_strided_slice %355 {offsets = [0, 48], sizes = [8, 16], strides = [1, 1]} : vector<8x128xf32> to vector<8x16xf32>
    %cst_201 = arith.constant dense<0.000000e+00> : vector<8x16xf32>
    %383 = tpu.matmul %381, %382, %cst_201 {dimension_numbers = #tpu.dot_dimension_numbers<[1], [0], [0], [1], [0, 0, 1, 1], [], []>} : vector<8x8xf32>, vector<8x16xf32>, vector<8x16xf32> -> vector<8x16xf32>
    %384 = arith.truncf %383 : vector<8x16xf32> to vector<8x16xbf16>
    %c1_202 = arith.constant 1 : index
    %c3_203 = arith.constant 3 : index
    %c0_204 = arith.constant 0 : index
    %c0_205 = arith.constant 0 : index
    %385 = vector.load %arg4[%c1_202, %c3_203, %c0_204, %c0_205] : memref<2x8x16x96xbf16, #tpu.memory_space<vmem>>, vector<1x1x16x96xbf16>
    %386 = vector.shape_cast %385 : vector<1x1x16x96xbf16> to vector<16x96xbf16>
    %cst_206 = arith.constant dense<0.000000e+00> : vector<8x96xf32>
    %387 = tpu.matmul %384, %386, %cst_206 {dimension_numbers = #tpu.dot_dimension_numbers<[1], [0], [0], [1], [0, 0, 1, 1], [], []>} : vector<8x16xbf16>, vector<16x96xbf16>, vector<8x96xf32> -> vector<8x96xf32>
    %388 = arith.addf %380, %387 : vector<8x96xf32>
    %389 = vector.extract_strided_slice %354 {offsets = [32, 0], sizes = [8, 8], strides = [1, 1]} : vector<128x8xf32> to vector<8x8xf32>
    %390 = vector.extract_strided_slice %355 {offsets = [0, 64], sizes = [8, 16], strides = [1, 1]} : vector<8x128xf32> to vector<8x16xf32>
    %cst_207 = arith.constant dense<0.000000e+00> : vector<8x16xf32>
    %391 = tpu.matmul %389, %390, %cst_207 {dimension_numbers = #tpu.dot_dimension_numbers<[1], [0], [0], [1], [0, 0, 1, 1], [], []>} : vector<8x8xf32>, vector<8x16xf32>, vector<8x16xf32> -> vector<8x16xf32>
    %392 = arith.truncf %391 : vector<8x16xf32> to vector<8x16xbf16>
    %c1_208 = arith.constant 1 : index
    %c4_209 = arith.constant 4 : index
    %c0_210 = arith.constant 0 : index
    %c0_211 = arith.constant 0 : index
    %393 = vector.load %arg4[%c1_208, %c4_209, %c0_210, %c0_211] : memref<2x8x16x96xbf16, #tpu.memory_space<vmem>>, vector<1x1x16x96xbf16>
    %394 = vector.shape_cast %393 : vector<1x1x16x96xbf16> to vector<16x96xbf16>
    %cst_212 = arith.constant dense<0.000000e+00> : vector<8x96xf32>
    %395 = tpu.matmul %392, %394, %cst_212 {dimension_numbers = #tpu.dot_dimension_numbers<[1], [0], [0], [1], [0, 0, 1, 1], [], []>} : vector<8x16xbf16>, vector<16x96xbf16>, vector<8x96xf32> -> vector<8x96xf32>
    %396 = arith.addf %388, %395 : vector<8x96xf32>
    %397 = vector.extract_strided_slice %354 {offsets = [40, 0], sizes = [8, 8], strides = [1, 1]} : vector<128x8xf32> to vector<8x8xf32>
    %398 = vector.extract_strided_slice %355 {offsets = [0, 80], sizes = [8, 16], strides = [1, 1]} : vector<8x128xf32> to vector<8x16xf32>
    %cst_213 = arith.constant dense<0.000000e+00> : vector<8x16xf32>
    %399 = tpu.matmul %397, %398, %cst_213 {dimension_numbers = #tpu.dot_dimension_numbers<[1], [0], [0], [1], [0, 0, 1, 1], [], []>} : vector<8x8xf32>, vector<8x16xf32>, vector<8x16xf32> -> vector<8x16xf32>
    %400 = arith.truncf %399 : vector<8x16xf32> to vector<8x16xbf16>
    %c1_214 = arith.constant 1 : index
    %c5_215 = arith.constant 5 : index
    %c0_216 = arith.constant 0 : index
    %c0_217 = arith.constant 0 : index
    %401 = vector.load %arg4[%c1_214, %c5_215, %c0_216, %c0_217] : memref<2x8x16x96xbf16, #tpu.memory_space<vmem>>, vector<1x1x16x96xbf16>
    %402 = vector.shape_cast %401 : vector<1x1x16x96xbf16> to vector<16x96xbf16>
    %cst_218 = arith.constant dense<0.000000e+00> : vector<8x96xf32>
    %403 = tpu.matmul %400, %402, %cst_218 {dimension_numbers = #tpu.dot_dimension_numbers<[1], [0], [0], [1], [0, 0, 1, 1], [], []>} : vector<8x16xbf16>, vector<16x96xbf16>, vector<8x96xf32> -> vector<8x96xf32>
    %404 = arith.addf %396, %403 : vector<8x96xf32>
    %405 = vector.extract_strided_slice %354 {offsets = [48, 0], sizes = [8, 8], strides = [1, 1]} : vector<128x8xf32> to vector<8x8xf32>
    %406 = vector.extract_strided_slice %355 {offsets = [0, 96], sizes = [8, 16], strides = [1, 1]} : vector<8x128xf32> to vector<8x16xf32>
    %cst_219 = arith.constant dense<0.000000e+00> : vector<8x16xf32>
    %407 = tpu.matmul %405, %406, %cst_219 {dimension_numbers = #tpu.dot_dimension_numbers<[1], [0], [0], [1], [0, 0, 1, 1], [], []>} : vector<8x8xf32>, vector<8x16xf32>, vector<8x16xf32> -> vector<8x16xf32>
    %408 = arith.truncf %407 : vector<8x16xf32> to vector<8x16xbf16>
    %c1_220 = arith.constant 1 : index
    %c6_221 = arith.constant 6 : index
    %c0_222 = arith.constant 0 : index
    %c0_223 = arith.constant 0 : index
    %409 = vector.load %arg4[%c1_220, %c6_221, %c0_222, %c0_223] : memref<2x8x16x96xbf16, #tpu.memory_space<vmem>>, vector<1x1x16x96xbf16>
    %410 = vector.shape_cast %409 : vector<1x1x16x96xbf16> to vector<16x96xbf16>
    %cst_224 = arith.constant dense<0.000000e+00> : vector<8x96xf32>
    %411 = tpu.matmul %408, %410, %cst_224 {dimension_numbers = #tpu.dot_dimension_numbers<[1], [0], [0], [1], [0, 0, 1, 1], [], []>} : vector<8x16xbf16>, vector<16x96xbf16>, vector<8x96xf32> -> vector<8x96xf32>
    %412 = arith.addf %404, %411 : vector<8x96xf32>
    %413 = vector.extract_strided_slice %354 {offsets = [56, 0], sizes = [8, 8], strides = [1, 1]} : vector<128x8xf32> to vector<8x8xf32>
    %414 = vector.extract_strided_slice %355 {offsets = [0, 112], sizes = [8, 16], strides = [1, 1]} : vector<8x128xf32> to vector<8x16xf32>
    %cst_225 = arith.constant dense<0.000000e+00> : vector<8x16xf32>
    %415 = tpu.matmul %413, %414, %cst_225 {dimension_numbers = #tpu.dot_dimension_numbers<[1], [0], [0], [1], [0, 0, 1, 1], [], []>} : vector<8x8xf32>, vector<8x16xf32>, vector<8x16xf32> -> vector<8x16xf32>
    %416 = arith.truncf %415 : vector<8x16xf32> to vector<8x16xbf16>
    %c1_226 = arith.constant 1 : index
    %c7_227 = arith.constant 7 : index
    %c0_228 = arith.constant 0 : index
    %c0_229 = arith.constant 0 : index
    %417 = vector.load %arg4[%c1_226, %c7_227, %c0_228, %c0_229] : memref<2x8x16x96xbf16, #tpu.memory_space<vmem>>, vector<1x1x16x96xbf16>
    %418 = vector.shape_cast %417 : vector<1x1x16x96xbf16> to vector<16x96xbf16>
    %cst_230 = arith.constant dense<0.000000e+00> : vector<8x96xf32>
    %419 = tpu.matmul %416, %418, %cst_230 {dimension_numbers = #tpu.dot_dimension_numbers<[1], [0], [0], [1], [0, 0, 1, 1], [], []>} : vector<8x16xbf16>, vector<16x96xbf16>, vector<8x96xf32> -> vector<8x96xf32>
    %420 = arith.addf %412, %419 : vector<8x96xf32>
    %421 = vector.extract_strided_slice %291 {offsets = [8, 0], sizes = [8, 128], strides = [1, 1]} : vector<16x128xf32> to vector<8x128xf32>
    %cst_231 = arith.constant 0.000000e+00 : f32
    %422 = vector.broadcast %cst_231 : f32 to vector<8x96xf32>
    %423 = vector.extract_strided_slice %354 {offsets = [64, 0], sizes = [8, 8], strides = [1, 1]} : vector<128x8xf32> to vector<8x8xf32>
    %424 = vector.extract_strided_slice %421 {offsets = [0, 0], sizes = [8, 16], strides = [1, 1]} : vector<8x128xf32> to vector<8x16xf32>
    %cst_232 = arith.constant dense<0.000000e+00> : vector<8x16xf32>
    %425 = tpu.matmul %423, %424, %cst_232 {dimension_numbers = #tpu.dot_dimension_numbers<[1], [0], [0], [1], [0, 0, 1, 1], [], []>} : vector<8x8xf32>, vector<8x16xf32>, vector<8x16xf32> -> vector<8x16xf32>
    %426 = arith.truncf %425 : vector<8x16xf32> to vector<8x16xbf16>
    %c1_233 = arith.constant 1 : index
    %c0_234 = arith.constant 0 : index
    %c0_235 = arith.constant 0 : index
    %c0_236 = arith.constant 0 : index
    %427 = vector.load %arg4[%c1_233, %c0_234, %c0_235, %c0_236] : memref<2x8x16x96xbf16, #tpu.memory_space<vmem>>, vector<1x1x16x96xbf16>
    %428 = vector.shape_cast %427 : vector<1x1x16x96xbf16> to vector<16x96xbf16>
    %cst_237 = arith.constant dense<0.000000e+00> : vector<8x96xf32>
    %429 = tpu.matmul %426, %428, %cst_237 {dimension_numbers = #tpu.dot_dimension_numbers<[1], [0], [0], [1], [0, 0, 1, 1], [], []>} : vector<8x16xbf16>, vector<16x96xbf16>, vector<8x96xf32> -> vector<8x96xf32>
    %430 = arith.addf %422, %429 : vector<8x96xf32>
    %431 = vector.extract_strided_slice %354 {offsets = [72, 0], sizes = [8, 8], strides = [1, 1]} : vector<128x8xf32> to vector<8x8xf32>
    %432 = vector.extract_strided_slice %421 {offsets = [0, 16], sizes = [8, 16], strides = [1, 1]} : vector<8x128xf32> to vector<8x16xf32>
    %cst_238 = arith.constant dense<0.000000e+00> : vector<8x16xf32>
    %433 = tpu.matmul %431, %432, %cst_238 {dimension_numbers = #tpu.dot_dimension_numbers<[1], [0], [0], [1], [0, 0, 1, 1], [], []>} : vector<8x8xf32>, vector<8x16xf32>, vector<8x16xf32> -> vector<8x16xf32>
    %434 = arith.truncf %433 : vector<8x16xf32> to vector<8x16xbf16>
    %c1_239 = arith.constant 1 : index
    %c1_240 = arith.constant 1 : index
    %c0_241 = arith.constant 0 : index
    %c0_242 = arith.constant 0 : index
    %435 = vector.load %arg4[%c1_239, %c1_240, %c0_241, %c0_242] : memref<2x8x16x96xbf16, #tpu.memory_space<vmem>>, vector<1x1x16x96xbf16>
    %436 = vector.shape_cast %435 : vector<1x1x16x96xbf16> to vector<16x96xbf16>
    %cst_243 = arith.constant dense<0.000000e+00> : vector<8x96xf32>
    %437 = tpu.matmul %434, %436, %cst_243 {dimension_numbers = #tpu.dot_dimension_numbers<[1], [0], [0], [1], [0, 0, 1, 1], [], []>} : vector<8x16xbf16>, vector<16x96xbf16>, vector<8x96xf32> -> vector<8x96xf32>
    %438 = arith.addf %430, %437 : vector<8x96xf32>
    %439 = vector.extract_strided_slice %354 {offsets = [80, 0], sizes = [8, 8], strides = [1, 1]} : vector<128x8xf32> to vector<8x8xf32>
    %440 = vector.extract_strided_slice %421 {offsets = [0, 32], sizes = [8, 16], strides = [1, 1]} : vector<8x128xf32> to vector<8x16xf32>
    %cst_244 = arith.constant dense<0.000000e+00> : vector<8x16xf32>
    %441 = tpu.matmul %439, %440, %cst_244 {dimension_numbers = #tpu.dot_dimension_numbers<[1], [0], [0], [1], [0, 0, 1, 1], [], []>} : vector<8x8xf32>, vector<8x16xf32>, vector<8x16xf32> -> vector<8x16xf32>
    %442 = arith.truncf %441 : vector<8x16xf32> to vector<8x16xbf16>
    %c1_245 = arith.constant 1 : index
    %c2_246 = arith.constant 2 : index
    %c0_247 = arith.constant 0 : index
    %c0_248 = arith.constant 0 : index
    %443 = vector.load %arg4[%c1_245, %c2_246, %c0_247, %c0_248] : memref<2x8x16x96xbf16, #tpu.memory_space<vmem>>, vector<1x1x16x96xbf16>
    %444 = vector.shape_cast %443 : vector<1x1x16x96xbf16> to vector<16x96xbf16>
    %cst_249 = arith.constant dense<0.000000e+00> : vector<8x96xf32>
    %445 = tpu.matmul %442, %444, %cst_249 {dimension_numbers = #tpu.dot_dimension_numbers<[1], [0], [0], [1], [0, 0, 1, 1], [], []>} : vector<8x16xbf16>, vector<16x96xbf16>, vector<8x96xf32> -> vector<8x96xf32>
    %446 = arith.addf %438, %445 : vector<8x96xf32>
    %447 = vector.extract_strided_slice %354 {offsets = [88, 0], sizes = [8, 8], strides = [1, 1]} : vector<128x8xf32> to vector<8x8xf32>
    %448 = vector.extract_strided_slice %421 {offsets = [0, 48], sizes = [8, 16], strides = [1, 1]} : vector<8x128xf32> to vector<8x16xf32>
    %cst_250 = arith.constant dense<0.000000e+00> : vector<8x16xf32>
    %449 = tpu.matmul %447, %448, %cst_250 {dimension_numbers = #tpu.dot_dimension_numbers<[1], [0], [0], [1], [0, 0, 1, 1], [], []>} : vector<8x8xf32>, vector<8x16xf32>, vector<8x16xf32> -> vector<8x16xf32>
    %450 = arith.truncf %449 : vector<8x16xf32> to vector<8x16xbf16>
    %c1_251 = arith.constant 1 : index
    %c3_252 = arith.constant 3 : index
    %c0_253 = arith.constant 0 : index
    %c0_254 = arith.constant 0 : index
    %451 = vector.load %arg4[%c1_251, %c3_252, %c0_253, %c0_254] : memref<2x8x16x96xbf16, #tpu.memory_space<vmem>>, vector<1x1x16x96xbf16>
    %452 = vector.shape_cast %451 : vector<1x1x16x96xbf16> to vector<16x96xbf16>
    %cst_255 = arith.constant dense<0.000000e+00> : vector<8x96xf32>
    %453 = tpu.matmul %450, %452, %cst_255 {dimension_numbers = #tpu.dot_dimension_numbers<[1], [0], [0], [1], [0, 0, 1, 1], [], []>} : vector<8x16xbf16>, vector<16x96xbf16>, vector<8x96xf32> -> vector<8x96xf32>
    %454 = arith.addf %446, %453 : vector<8x96xf32>
    %455 = vector.extract_strided_slice %354 {offsets = [96, 0], sizes = [8, 8], strides = [1, 1]} : vector<128x8xf32> to vector<8x8xf32>
    %456 = vector.extract_strided_slice %421 {offsets = [0, 64], sizes = [8, 16], strides = [1, 1]} : vector<8x128xf32> to vector<8x16xf32>
    %cst_256 = arith.constant dense<0.000000e+00> : vector<8x16xf32>
    %457 = tpu.matmul %455, %456, %cst_256 {dimension_numbers = #tpu.dot_dimension_numbers<[1], [0], [0], [1], [0, 0, 1, 1], [], []>} : vector<8x8xf32>, vector<8x16xf32>, vector<8x16xf32> -> vector<8x16xf32>
    %458 = arith.truncf %457 : vector<8x16xf32> to vector<8x16xbf16>
    %c1_257 = arith.constant 1 : index
    %c4_258 = arith.constant 4 : index
    %c0_259 = arith.constant 0 : index
    %c0_260 = arith.constant 0 : index
    %459 = vector.load %arg4[%c1_257, %c4_258, %c0_259, %c0_260] : memref<2x8x16x96xbf16, #tpu.memory_space<vmem>>, vector<1x1x16x96xbf16>
    %460 = vector.shape_cast %459 : vector<1x1x16x96xbf16> to vector<16x96xbf16>
    %cst_261 = arith.constant dense<0.000000e+00> : vector<8x96xf32>
    %461 = tpu.matmul %458, %460, %cst_261 {dimension_numbers = #tpu.dot_dimension_numbers<[1], [0], [0], [1], [0, 0, 1, 1], [], []>} : vector<8x16xbf16>, vector<16x96xbf16>, vector<8x96xf32> -> vector<8x96xf32>
    %462 = arith.addf %454, %461 : vector<8x96xf32>
    %463 = vector.extract_strided_slice %354 {offsets = [104, 0], sizes = [8, 8], strides = [1, 1]} : vector<128x8xf32> to vector<8x8xf32>
    %464 = vector.extract_strided_slice %421 {offsets = [0, 80], sizes = [8, 16], strides = [1, 1]} : vector<8x128xf32> to vector<8x16xf32>
    %cst_262 = arith.constant dense<0.000000e+00> : vector<8x16xf32>
    %465 = tpu.matmul %463, %464, %cst_262 {dimension_numbers = #tpu.dot_dimension_numbers<[1], [0], [0], [1], [0, 0, 1, 1], [], []>} : vector<8x8xf32>, vector<8x16xf32>, vector<8x16xf32> -> vector<8x16xf32>
    %466 = arith.truncf %465 : vector<8x16xf32> to vector<8x16xbf16>
    %c1_263 = arith.constant 1 : index
    %c5_264 = arith.constant 5 : index
    %c0_265 = arith.constant 0 : index
    %c0_266 = arith.constant 0 : index
    %467 = vector.load %arg4[%c1_263, %c5_264, %c0_265, %c0_266] : memref<2x8x16x96xbf16, #tpu.memory_space<vmem>>, vector<1x1x16x96xbf16>
    %468 = vector.shape_cast %467 : vector<1x1x16x96xbf16> to vector<16x96xbf16>
    %cst_267 = arith.constant dense<0.000000e+00> : vector<8x96xf32>
    %469 = tpu.matmul %466, %468, %cst_267 {dimension_numbers = #tpu.dot_dimension_numbers<[1], [0], [0], [1], [0, 0, 1, 1], [], []>} : vector<8x16xbf16>, vector<16x96xbf16>, vector<8x96xf32> -> vector<8x96xf32>
    %470 = arith.addf %462, %469 : vector<8x96xf32>
    %471 = vector.extract_strided_slice %354 {offsets = [112, 0], sizes = [8, 8], strides = [1, 1]} : vector<128x8xf32> to vector<8x8xf32>
    %472 = vector.extract_strided_slice %421 {offsets = [0, 96], sizes = [8, 16], strides = [1, 1]} : vector<8x128xf32> to vector<8x16xf32>
    %cst_268 = arith.constant dense<0.000000e+00> : vector<8x16xf32>
    %473 = tpu.matmul %471, %472, %cst_268 {dimension_numbers = #tpu.dot_dimension_numbers<[1], [0], [0], [1], [0, 0, 1, 1], [], []>} : vector<8x8xf32>, vector<8x16xf32>, vector<8x16xf32> -> vector<8x16xf32>
    %474 = arith.truncf %473 : vector<8x16xf32> to vector<8x16xbf16>
    %c1_269 = arith.constant 1 : index
    %c6_270 = arith.constant 6 : index
    %c0_271 = arith.constant 0 : index
    %c0_272 = arith.constant 0 : index
    %475 = vector.load %arg4[%c1_269, %c6_270, %c0_271, %c0_272] : memref<2x8x16x96xbf16, #tpu.memory_space<vmem>>, vector<1x1x16x96xbf16>
    %476 = vector.shape_cast %475 : vector<1x1x16x96xbf16> to vector<16x96xbf16>
    %cst_273 = arith.constant dense<0.000000e+00> : vector<8x96xf32>
    %477 = tpu.matmul %474, %476, %cst_273 {dimension_numbers = #tpu.dot_dimension_numbers<[1], [0], [0], [1], [0, 0, 1, 1], [], []>} : vector<8x16xbf16>, vector<16x96xbf16>, vector<8x96xf32> -> vector<8x96xf32>
    %478 = arith.addf %470, %477 : vector<8x96xf32>
    %479 = vector.extract_strided_slice %354 {offsets = [120, 0], sizes = [8, 8], strides = [1, 1]} : vector<128x8xf32> to vector<8x8xf32>
    %480 = vector.extract_strided_slice %421 {offsets = [0, 112], sizes = [8, 16], strides = [1, 1]} : vector<8x128xf32> to vector<8x16xf32>
    %cst_274 = arith.constant dense<0.000000e+00> : vector<8x16xf32>
    %481 = tpu.matmul %479, %480, %cst_274 {dimension_numbers = #tpu.dot_dimension_numbers<[1], [0], [0], [1], [0, 0, 1, 1], [], []>} : vector<8x8xf32>, vector<8x16xf32>, vector<8x16xf32> -> vector<8x16xf32>
    %482 = arith.truncf %481 : vector<8x16xf32> to vector<8x16xbf16>
    %c1_275 = arith.constant 1 : index
    %c7_276 = arith.constant 7 : index
    %c0_277 = arith.constant 0 : index
    %c0_278 = arith.constant 0 : index
    %483 = vector.load %arg4[%c1_275, %c7_276, %c0_277, %c0_278] : memref<2x8x16x96xbf16, #tpu.memory_space<vmem>>, vector<1x1x16x96xbf16>
    %484 = vector.shape_cast %483 : vector<1x1x16x96xbf16> to vector<16x96xbf16>
    %cst_279 = arith.constant dense<0.000000e+00> : vector<8x96xf32>
    %485 = tpu.matmul %482, %484, %cst_279 {dimension_numbers = #tpu.dot_dimension_numbers<[1], [0], [0], [1], [0, 0, 1, 1], [], []>} : vector<8x16xbf16>, vector<16x96xbf16>, vector<8x96xf32> -> vector<8x96xf32>
    %486 = arith.addf %478, %485 : vector<8x96xf32>
    %487 = tpu.concatenate %420, %486 in 0 : vector<8x96xf32>, vector<8x96xf32> -> vector<16x96xf32>
    %c1_280 = arith.constant 1 : index
    %c0_281 = arith.constant 0 : index
    %c0_282 = arith.constant 0 : index
    %488 = vector.load %arg5[%c1_280, %c0_281, %c0_282] : memref<2x1x96xf32, #tpu.memory_space<vmem>>, vector<1x1x96xf32>
    %489 = vector.shape_cast %488 : vector<1x1x96xf32> to vector<1x96xf32>
    %490 = vector.broadcast %489 : vector<1x96xf32> to vector<16x96xf32>
    %491 = arith.addf %487, %490 : vector<16x96xf32>
    %c1_283 = arith.constant 1 : index
    %c0_284 = arith.constant 0 : index
    %c0_285 = arith.constant 0 : index
    %492 = vector.load %arg10[%c1_283, %c0_284, %c0_285] : memref<2x1x96xf32, #tpu.memory_space<vmem>>, vector<1x1x96xf32>
    %493 = vector.shape_cast %492 : vector<1x1x96xf32> to vector<1x96xf32>
    %c1_286 = arith.constant 1 : index
    %c0_287 = arith.constant 0 : index
    %c0_288 = arith.constant 0 : index
    %494 = vector.load %arg11[%c1_286, %c0_287, %c0_288] : memref<2x1x96xf32, #tpu.memory_space<vmem>>, vector<1x1x96xf32>
    %495 = vector.shape_cast %494 : vector<1x1x96xf32> to vector<1x96xf32>
    %496 = arith.addf %491, %280 : vector<16x96xf32>
    %cst_289 = arith.constant dense<0.000000e+00> : vector<16xf32>
    %497 = vector.multi_reduction <add>, %496, %cst_289 [1] : vector<16x96xf32> to vector<16xf32>
    %498 = vector.shape_cast %497 : vector<16xf32> to vector<16x1xf32>
    %cst_290 = arith.constant 0.010416667 : f32
    %499 = vector.broadcast %cst_290 : f32 to vector<16x1xf32>
    %500 = arith.mulf %498, %499 : vector<16x1xf32>
    %501 = vector.broadcast %500 : vector<16x1xf32> to vector<16x96xf32>
    %502 = arith.subf %496, %501 : vector<16x96xf32>
    %503 = arith.mulf %502, %502 : vector<16x96xf32>
    %cst_291 = arith.constant dense<0.000000e+00> : vector<16xf32>
    %504 = vector.multi_reduction <add>, %503, %cst_291 [1] : vector<16x96xf32> to vector<16xf32>
    %505 = vector.shape_cast %504 : vector<16xf32> to vector<16x1xf32>
    %cst_292 = arith.constant 0.010416667 : f32
    %506 = vector.broadcast %cst_292 : f32 to vector<16x1xf32>
    %507 = arith.mulf %505, %506 : vector<16x1xf32>
    %cst_293 = arith.constant 9.99999974E-6 : f32
    %508 = vector.broadcast %cst_293 : f32 to vector<16x1xf32>
    %509 = arith.addf %507, %508 : vector<16x1xf32>
    %510 = math.rsqrt %509 : vector<16x1xf32>
    %511 = vector.broadcast %510 : vector<16x1xf32> to vector<16x96xf32>
    %512 = arith.mulf %502, %511 : vector<16x96xf32>
    %513 = vector.broadcast %493 : vector<1x96xf32> to vector<16x96xf32>
    %514 = arith.mulf %512, %513 : vector<16x96xf32>
    %515 = vector.broadcast %495 : vector<1x96xf32> to vector<16x96xf32>
    %516 = arith.addf %514, %515 : vector<16x96xf32>
    %517 = arith.truncf %516 : vector<16x96xf32> to vector<16x96xbf16>
    %c1_294 = arith.constant 1 : index
    %c0_295 = arith.constant 0 : index
    %c0_296 = arith.constant 0 : index
    %518 = vector.load %arg6[%c1_294, %c0_295, %c0_296] : memref<2x96x2048xbf16, #tpu.memory_space<vmem>>, vector<1x96x2048xbf16>
    %519 = vector.shape_cast %518 : vector<1x96x2048xbf16> to vector<96x2048xbf16>
    %cst_297 = arith.constant dense<0.000000e+00> : vector<16x2048xf32>
    %520 = tpu.matmul %517, %519, %cst_297 {dimension_numbers = #tpu.dot_dimension_numbers<[1], [0], [0], [1], [0, 0, 1, 1], [], []>} : vector<16x96xbf16>, vector<96x2048xbf16>, vector<16x2048xf32> -> vector<16x2048xf32>
    %c1_298 = arith.constant 1 : index
    %c0_299 = arith.constant 0 : index
    %c0_300 = arith.constant 0 : index
    %521 = vector.load %arg7[%c1_298, %c0_299, %c0_300] : memref<2x1x2048xf32, #tpu.memory_space<vmem>>, vector<1x1x2048xf32>
    %522 = vector.shape_cast %521 : vector<1x1x2048xf32> to vector<1x2048xf32>
    %523 = vector.broadcast %522 : vector<1x2048xf32> to vector<16x2048xf32>
    %524 = arith.addf %520, %523 : vector<16x2048xf32>
    %cst_301 = arith.constant 0.000000e+00 : f32
    %525 = vector.broadcast %cst_301 : f32 to vector<16x2048xf32>
    %526 = arith.maximumf %524, %525 : vector<16x2048xf32>
    %527 = arith.truncf %526 : vector<16x2048xf32> to vector<16x2048xbf16>
    %c1_302 = arith.constant 1 : index
    %c0_303 = arith.constant 0 : index
    %c0_304 = arith.constant 0 : index
    %528 = vector.load %arg8[%c1_302, %c0_303, %c0_304] : memref<2x2048x96xbf16, #tpu.memory_space<vmem>>, vector<1x2048x96xbf16>
    %529 = vector.shape_cast %528 : vector<1x2048x96xbf16> to vector<2048x96xbf16>
    %cst_305 = arith.constant dense<0.000000e+00> : vector<16x96xf32>
    %530 = tpu.matmul %527, %529, %cst_305 {dimension_numbers = #tpu.dot_dimension_numbers<[1], [0], [0], [1], [0, 0, 1, 1], [], []>} : vector<16x2048xbf16>, vector<2048x96xbf16>, vector<16x96xf32> -> vector<16x96xf32>
    %c1_306 = arith.constant 1 : index
    %c0_307 = arith.constant 0 : index
    %c0_308 = arith.constant 0 : index
    %531 = vector.load %arg9[%c1_306, %c0_307, %c0_308] : memref<2x1x96xf32, #tpu.memory_space<vmem>>, vector<1x1x96xf32>
    %532 = vector.shape_cast %531 : vector<1x1x96xf32> to vector<1x96xf32>
    %533 = vector.broadcast %532 : vector<1x96xf32> to vector<16x96xf32>
    %534 = arith.addf %530, %533 : vector<16x96xf32>
    %c1_309 = arith.constant 1 : index
    %c0_310 = arith.constant 0 : index
    %c0_311 = arith.constant 0 : index
    %535 = vector.load %arg12[%c1_309, %c0_310, %c0_311] : memref<2x1x96xf32, #tpu.memory_space<vmem>>, vector<1x1x96xf32>
    %536 = vector.shape_cast %535 : vector<1x1x96xf32> to vector<1x96xf32>
    %c1_312 = arith.constant 1 : index
    %c0_313 = arith.constant 0 : index
    %c0_314 = arith.constant 0 : index
    %537 = vector.load %arg13[%c1_312, %c0_313, %c0_314] : memref<2x1x96xf32, #tpu.memory_space<vmem>>, vector<1x1x96xf32>
    %538 = vector.shape_cast %537 : vector<1x1x96xf32> to vector<1x96xf32>
    %539 = arith.addf %534, %516 : vector<16x96xf32>
    %cst_315 = arith.constant dense<0.000000e+00> : vector<16xf32>
    %540 = vector.multi_reduction <add>, %539, %cst_315 [1] : vector<16x96xf32> to vector<16xf32>
    %541 = vector.shape_cast %540 : vector<16xf32> to vector<16x1xf32>
    %cst_316 = arith.constant 0.010416667 : f32
    %542 = vector.broadcast %cst_316 : f32 to vector<16x1xf32>
    %543 = arith.mulf %541, %542 : vector<16x1xf32>
    %544 = vector.broadcast %543 : vector<16x1xf32> to vector<16x96xf32>
    %545 = arith.subf %539, %544 : vector<16x96xf32>
    %546 = arith.mulf %545, %545 : vector<16x96xf32>
    %cst_317 = arith.constant dense<0.000000e+00> : vector<16xf32>
    %547 = vector.multi_reduction <add>, %546, %cst_317 [1] : vector<16x96xf32> to vector<16xf32>
    %548 = vector.shape_cast %547 : vector<16xf32> to vector<16x1xf32>
    %cst_318 = arith.constant 0.010416667 : f32
    %549 = vector.broadcast %cst_318 : f32 to vector<16x1xf32>
    %550 = arith.mulf %548, %549 : vector<16x1xf32>
    %cst_319 = arith.constant 9.99999974E-6 : f32
    %551 = vector.broadcast %cst_319 : f32 to vector<16x1xf32>
    %552 = arith.addf %550, %551 : vector<16x1xf32>
    %553 = math.rsqrt %552 : vector<16x1xf32>
    %554 = vector.broadcast %553 : vector<16x1xf32> to vector<16x96xf32>
    %555 = arith.mulf %545, %554 : vector<16x96xf32>
    %556 = vector.broadcast %536 : vector<1x96xf32> to vector<16x96xf32>
    %557 = arith.mulf %555, %556 : vector<16x96xf32>
    %558 = vector.broadcast %538 : vector<1x96xf32> to vector<16x96xf32>
    %559 = arith.addf %557, %558 : vector<16x96xf32>
    %560 = vector.shape_cast %559 : vector<16x96xf32> to vector<2x8x96xf32>
    %c0_320 = arith.constant 0 : index
    %c0_321 = arith.constant 0 : index
    %c0_322 = arith.constant 0 : index
    %561 = vector.load %arg14[%c0_320, %c0_321, %c0_322] : memref<2x8x96xf32, #tpu.memory_space<vmem>>, vector<2x8x96xf32>
    tpu.vector_store %arg14[%c0_320, %c0_321, %c0_322], %560 {strides = array<i32>} : memref<2x8x96xf32, #tpu.memory_space<vmem>>, vector<2x8x96xf32>,
    return
  }
  func.func @transform_0(%arg0: i32) -> (i32, i32, i32) {
    %c0_i32 = arith.constant 0 : i32
    %c0_i32_0 = arith.constant 0 : i32
    %c0_i32_1 = arith.constant 0 : i32
    %c0_i32_2 = arith.constant 0 : i32
    return %c0_i32, %c0_i32_0, %c0_i32_1 : i32, i32, i32
  }
  func.func @transform_1(%arg0: i32) -> (i32, i32, i32) {
    %c0_i32 = arith.constant 0 : i32
    %c0_i32_0 = arith.constant 0 : i32
    %c0_i32_1 = arith.constant 0 : i32
    %c0_i32_2 = arith.constant 0 : i32
    return %c0_i32, %c0_i32_0, %c0_i32_1 : i32, i32, i32
  }
  func.func @transform_2(%arg0: i32) -> (i32, i32, i32) {
    %c0_i32 = arith.constant 0 : i32
    %c0_i32_0 = arith.constant 0 : i32
    %c0_i32_1 = arith.constant 0 : i32
    %c0_i32_2 = arith.constant 0 : i32
    return %c0_i32, %c0_i32_0, %c0_i32_1 : i32, i32, i32
  }
  func.func @transform_3(%arg0: i32) -> (i32, i32, i32, i32) {
    %c0_i32 = arith.constant 0 : i32
    %c0_i32_0 = arith.constant 0 : i32
    %c0_i32_1 = arith.constant 0 : i32
    %c0_i32_2 = arith.constant 0 : i32
    %c0_i32_3 = arith.constant 0 : i32
    return %c0_i32, %c0_i32_0, %c0_i32_1, %c0_i32_2 : i32, i32, i32, i32
  }
  func.func @transform_4(%arg0: i32) -> (i32, i32, i32) {
    %c0_i32 = arith.constant 0 : i32
    %c0_i32_0 = arith.constant 0 : i32
    %c0_i32_1 = arith.constant 0 : i32
    %c0_i32_2 = arith.constant 0 : i32
    return %c0_i32, %c0_i32_0, %c0_i32_1 : i32, i32, i32
  }
  func.func @transform_5(%arg0: i32) -> (i32, i32, i32) {
    %c0_i32 = arith.constant 0 : i32
    %c0_i32_0 = arith.constant 0 : i32
    %c0_i32_1 = arith.constant 0 : i32
    %c0_i32_2 = arith.constant 0 : i32
    return %c0_i32, %c0_i32_0, %c0_i32_1 : i32, i32, i32
  }
  func.func @transform_6(%arg0: i32) -> (i32, i32, i32) {
    %c0_i32 = arith.constant 0 : i32
    %c0_i32_0 = arith.constant 0 : i32
    %c0_i32_1 = arith.constant 0 : i32
    %c0_i32_2 = arith.constant 0 : i32
    return %c0_i32, %c0_i32_0, %c0_i32_1 : i32, i32, i32
  }
  func.func @transform_7(%arg0: i32) -> (i32, i32, i32) {
    %c0_i32 = arith.constant 0 : i32
    %c0_i32_0 = arith.constant 0 : i32
    %c0_i32_1 = arith.constant 0 : i32
    %c0_i32_2 = arith.constant 0 : i32
    return %c0_i32, %c0_i32_0, %c0_i32_1 : i32, i32, i32
  }
  func.func @transform_8(%arg0: i32) -> (i32, i32, i32) {
    %c0_i32 = arith.constant 0 : i32
    %c0_i32_0 = arith.constant 0 : i32
    %c0_i32_1 = arith.constant 0 : i32
    %c0_i32_2 = arith.constant 0 : i32
    return %c0_i32, %c0_i32_0, %c0_i32_1 : i32, i32, i32
  }
  func.func @transform_9(%arg0: i32) -> (i32, i32, i32) {
    %c0_i32 = arith.constant 0 : i32
    %c0_i32_0 = arith.constant 0 : i32
    %c0_i32_1 = arith.constant 0 : i32
    %c0_i32_2 = arith.constant 0 : i32
    return %c0_i32, %c0_i32_0, %c0_i32_1 : i32, i32, i32
  }
  func.func @transform_10(%arg0: i32) -> (i32, i32, i32) {
    %c0_i32 = arith.constant 0 : i32
    %c0_i32_0 = arith.constant 0 : i32
    %c0_i32_1 = arith.constant 0 : i32
    %c0_i32_2 = arith.constant 0 : i32
    return %c0_i32, %c0_i32_0, %c0_i32_1 : i32, i32, i32
  }
  func.func @transform_11(%arg0: i32) -> (i32, i32, i32) {
    %c0_i32 = arith.constant 0 : i32
    %c0_i32_0 = arith.constant 0 : i32
    %c0_i32_1 = arith.constant 0 : i32
    %c0_i32_2 = arith.constant 0 : i32
    return %c0_i32, %c0_i32_0, %c0_i32_1 : i32, i32, i32
  }
  func.func @transform_12(%arg0: i32) -> (i32, i32, i32) {
    %c0_i32 = arith.constant 0 : i32
    %c0_i32_0 = arith.constant 0 : i32
    %c0_i32_1 = arith.constant 0 : i32
    %c0_i32_2 = arith.constant 0 : i32
    return %c0_i32, %c0_i32_0, %c0_i32_1 : i32, i32, i32
  }
  func.func @transform_13(%arg0: i32) -> (i32, i32, i32) {
    %c0_i32 = arith.constant 0 : i32
    %c0_i32_0 = arith.constant 0 : i32
    %c0_i32_1 = arith.constant 0 : i32
    %c0_i32_2 = arith.constant 0 : i32
    return %c0_i32, %c0_i32_0, %c0_i32_1 : i32, i32, i32
  }
}

</mosaic_0001>

<bundles_post_ra>
// kernel: combined_attention_forward.1
= control target key start
LH: loop header
LB: loop body
LE: loop exit
PB: predicated region body
PF: predicated region fallthrough
CT: control target
= control target key end

     0   :  { %s14794_s0 = inlined_call_operand.vmem [shape: f32[2,8,96], index: 0, kind: input, shape index: {}]   ;;  %s14795_s1 = inlined_call_operand.vmem [shape: bf16[2,96,384], index: 1, kind: input, shape index: {}]   ;;  %s14796_s2 = inlined_call_operand.vmem [shape: f32[2,1,384], index: 2, kind: input, shape index: {}]   ;;  %s14797_s3 = inlined_call_operand.vmem [shape: bf16[2,8,16,96], index: 3, kind: input, shape index: {}]   ;;  %s14798_s4 = inlined_call_operand.vmem [shape: f32[2,1,96], index: 4, kind: input, shape index: {}]   ;;  %s14799_s5 = inlined_call_operand.vmem [shape: bf16[2,96,2048], index: 5, kind: input, shape index: {}]   ;;  %s14800_s6 = inlined_call_operand.vmem [shape: f32[2,1,2048], index: 6, kind: input, shape index: {}]   ;;  %s14801_s7 = inlined_call_operand.vmem [shape: bf16[2,2048,96], index: 7, kind: input, shape index: {}]   ;;  %s14802_s8 = inlined_call_operand.vmem [shape: f32[2,1,96], index: 8, kind: input, shape index: {}]   ;;  %s14803_s9 = inlined_call_operand.vmem [shape: f32[2,1,96], index: 9, kind: input, shape index: {}]   ;;  %s14804_s10 = inlined_call_operand.vmem [shape: f32[2,1,96], index: 10, kind: input, shape index: {}]   ;;  %s14805_s11 = inlined_call_operand.vmem [shape: f32[2,1,96], index: 11, kind: input, shape index: {}]   ;;  %s14806_s12 = inlined_call_operand.vmem [shape: f32[2,1,96], index: 12, kind: input, shape index: {}]   ;;  %s14807_s13 = inlined_call_operand.hbm [shape: f32[2,8,96], index: 13, kind: output, shape index: {}]  }
   0x1   :  { %v8207_v0 = vld [vmem:[%s14795_s1 + $0x78] sm:$0xf]  ;;  %v10742_v1 = vld [vmem:[%s14795_s1 + $0x80] sm:$0xf0]  ;;  %v10741_v2 = vld [vmem:[%s14795_s1 + $0x7c] sm:$0xf] }
   0x2   :  { %v8208_v3 = vor.u32 %v10742_v1, %v8207_v0  ;;  %v8209_v4 = vld [vmem:[%s14795_s1 + $0x84] sm:$0xf0]  ;;  %v8195_v5 = vld [vmem:[%s14795_s1 + $0x60] sm:$0xf]  ;;  %v10739_v6 = vld [vmem:[%s14795_s1 + $0x68] sm:$0xf0] }
   0x3   :  { %v8212_v7 = vor.u32 %v10741_v2, %v8209_v4  ;;  %v10738_v8 = vld [vmem:[%s14795_s1 + $0x64] sm:$0xf]  ;;  %v8197_v9 = vld [vmem:[%s14795_s1 + $0x6c] sm:$0xf0]  ;;  %v8196_v10 = vor.u32 %v10739_v6, %v8195_v5  ;;  %v8183_v12 = vld [vmem:[%s14795_s1 + $0x48] sm:$0xf] }
   0x4   :  { %183 = vmatpush.bf16.msra.mxu0 %v8208_v3  ;;  %v8200_v11 = vor.u32 %v10738_v8, %v8197_v9  ;;  %v10736_v13 = vld [vmem:[%s14795_s1 + $0x50] sm:$0xf0]  ;;  %v10735_v14 = vld [vmem:[%s14795_s1 + $0x4c] sm:$0xf]  ;;  %v8185_v15 = vld [vmem:[%s14795_s1 + $0x54] sm:$0xf0] }
   0x5   :  { %197 = vmatpush.bf16.msra.mxu1 %v8212_v7  ;;  %v8184_v16 = vor.u32 %v10736_v13, %v8183_v12  ;;  %v8188_v17 = vor.u32 %v10735_v14, %v8185_v15  ;;  %v8171_v18 = vld [vmem:[%s14795_s1 + $0x30] sm:$0xf]  ;;  %v10733_v19 = vld [vmem:[%s14795_s1 + $0x38] sm:$0xf0]  ;;  %v10732_v20 = vld [vmem:[%s14795_s1 + $0x34] sm:$0xf] }
   0x6   :  { %v8173_v21 = vld [vmem:[%s14795_s1 + $0x3c] sm:$0xf0]  ;;  %v8159_v22 = vld [vmem:[%s14795_s1 + $0x18] sm:$0xf]  ;;  %v10730_v23 = vld [vmem:[%s14795_s1 + $0x20] sm:$0xf0]  ;;  %v8172_v24 = vor.u32 %v10733_v19, %v8171_v18 }
   0x7   :  { %v10729_v25 = vld [vmem:[%s14795_s1 + $0x1c] sm:$0xf]  ;;  %v8176_v26 = vor.u32 %v10732_v20, %v8173_v21  ;;  %v8161_v27 = vld [vmem:[%s14795_s1 + $0x24] sm:$0xf0] }
   0x8   :  { %184 = vmatpush.bf16.msra.mxu0 %v8196_v10 }
   0x9   :  { %198 = vmatpush.bf16.msra.mxu1 %v8200_v11 }
   0xc   :  { %185 = vmatpush.bf16.msra.mxu0 %v8184_v16 }
   0xd   :  { %199 = vmatpush.bf16.msra.mxu1 %v8188_v17 }
   0xe   :  { %18 = vsyncpa [#allocation3], 0  ;;  %v8160_v28 = vor.u32 %v10730_v23, %v8159_v22  ;;  %v8164_v29 = vor.u32 %v10729_v25, %v8161_v27  ;;  %v8147_v30 = vld [vmem:[%s14795_s1] sm:$0xf]  ;;  %v10727_v31 = vld [vmem:[%s14795_s1 + $0x8] sm:$0xf0] }
   0xf   :  { %v10726_v32 = vld [vmem:[%s14795_s1 + $0x4] sm:$0xf]  ;;  %v8149_v33 = vld [vmem:[%s14795_s1 + $0xc] sm:$0xf0]  ;;  %v8148_v34 = vor.u32 %v10727_v31, %v8147_v30  ;;  %v47_v36 = vld [vmem:[%s14794_s0 + $0x8] sm:$0xff]  ;;  %vm177_vm0 = vcmask 785408  }
  0x10   :  { %186 = vmatpush.bf16.msra.mxu0 %v8172_v24  ;;  %v46_v35 = vld [vmem:[%s14794_s0] sm:$0xff]  ;;  %v8152_v37 = vor.u32 %v10726_v32, %v8149_v33  ;;  %vm223_vm1 = vcmask 130048   ;;  %s11420_s28 = smov 48   ;;  %s11421_s29 = smov 96   ;;  %vm668_vm2 = vcmask 64512  }
  0x11   :  { %200 = vmatpush.bf16.msra.mxu1 %v8176_v26  ;;  %v11578_v38 = vpack.c.bf16 %v47_v36, %v46_v35  ;;  %v11587_v39 = vld [vmem:[%s14796_s2] sm:$0x7]  ;;  %s11422_s30 = smov 112   ;;  %s11423_s14 = smov 80   ;;  %v10743_v63 = vld [vmem:[%s14795_s1 + $0x88] sm:$0xf0] }
  0x12   :  { %v76_v40 = vperm.slane %v11587_v39, 1  ;;  %v75_v41 = vperm.slane %v11587_v39, 0  ;;  %s11424_s15 = smov 64   ;;  %v8215_v62 = vld [vmem:[%s14795_s1 + $0x80] sm:$0xf]  ;;  %v77_v33 = vperm.slane %v11587_v39, 2 }
  0x13   :  { %v8216_v0 = vor.u32 %v10743_v63, %v8215_v62  ;;  %v8203_v1 = vld [vmem:[%s14795_s1 + $0x68] sm:$0xf]  ;;  %v10740_v2 = vld [vmem:[%s14795_s1 + $0x70] sm:$0xf0]  ;;  %v8191_v3 = vld [vmem:[%s14795_s1 + $0x50] sm:$0xf] }
  0x14   :  { %187 = vmatpush.bf16.msra.mxu0 %v8160_v28  ;;  %v8204_v4 = vor.u32 %v10740_v2, %v8203_v1  ;;  %v10737_v5 = vld [vmem:[%s14795_s1 + $0x58] sm:$0xf0]  ;;  %v8179_v7 = vld [vmem:[%s14795_s1 + $0x38] sm:$0xf]  ;;  %v10734_v8 = vld [vmem:[%s14795_s1 + $0x40] sm:$0xf0] }
  0x15   :  { %201 = vmatpush.bf16.msra.mxu1 %v8164_v29  ;;  %211 = vmatpush.bf16.msra.mxu2 %v8216_v0  ;;  %v8192_v6 = vor.u32 %v10737_v5, %v8191_v3  ;;  %v8180_v9 = vor.u32 %v10734_v8, %v8179_v7  ;;  %v8167_v10 = vld [vmem:[%s14795_s1 + $0x20] sm:$0xf]  ;;  %v10731_v11 = vld [vmem:[%s14795_s1 + $0x28] sm:$0xf0]  ;;  %v8155_v17 = vld [vmem:[%s14795_s1 + $0x8] sm:$0xf] }
  0x16   :  { %v8168_v13 = vor.u32 %v10731_v11, %v8167_v10  ;;  %v10728_v18 = vld [vmem:[%s14795_s1 + $0x10] sm:$0xf0]  ;;  %s11425_s16 = smov 16   ;;  %s14808_s17 = smov 32  }
  0x17   :  { %v8156_v19 = vor.u32 %v10728_v18, %v8155_v17  ;;  %s8133_s26 = sshll.u32 %s14807_s13, 4  ;;  %s11429_s27 = smov 8   ;;  %s8134_s26 = int_to_ptr.hbm [resolvable:$true] %s8133_s26 }
  0x18   :  { %188 = vmatpush.bf16.msra.mxu0 %v8148_v34 }
  0x19   :  { %202 = vmatpush.bf16.msra.mxu1 %v8152_v37  ;;  %212 = vmatpush.bf16.msra.mxu2 %v8204_v4 }
  0x1b   :  { %8217 = vmatmul.msk.bf16.vlgmr.msra.gmra.mxu0 %vm177_vm0, %v11578_v38 }
  0x1c   :  { %8218 = vmatmul.msk.bf16.vlgmr.msra.gmra.mxu1 %vm177_vm0, %v11578_v38 }
  0x1d   :  { %213 = vmatpush.bf16.msra.mxu2 %v8192_v6 }
  0x21   :  { %214 = vmatpush.bf16.msra.mxu2 %v8180_v9 }
  0x25   :  { %215 = vmatpush.bf16.msra.mxu2 %v8168_v13 }
  0x29   :  { %216 = vmatpush.bf16.msra.mxu2 %v8156_v19 }
  0x2c   :  { %8219 = vmatmul.msk.bf16.vlgmr.msra.gmra.mxu2 %vm177_vm0, %v11578_v38 }
  0x98   :  { %v190_v44 = vpop.f32.mrf.mxu0 }
  0x99   :  { %v204_v42 = vpop.f32.mrf.mxu1  ;;  %v11593_v45 = vadd.f32 %v190_v44, %v75_v41 }
  0x9a   :  { %v11591_v43 = vadd.f32 %v204_v42, %v76_v40 }
  0x9c   :  { %364 = vrot.lane.b32.xlu2 %v11591_v43, %s11420_s28  ;;  %280 = vrot.lane.b32.xlu1 %v11591_v43, %s11421_s29 }
  0x9d   :  { %252 = vrot.lane.b32.xlu0 %v11591_v43, %s11422_s30  ;;  %8220 = vmatpush.xpose.msk.msra.mxu3 %vm223_vm1, %v11591_v43 }
  0xa0   :  { %8221 = vmatmul.msk.f32.vlgmr.msra.gmra.mxu3 %vm223_vm1, %v11593_v45  ;;  %v192_v60 = vpop.f32.mrf.mxu0 }
  0xa1   :  { %v206_v56 = vpop.f32.mrf.mxu1  ;;  %v11634_v61 = vadd.f32 %v192_v60, %v75_v41 }
  0xa2   :  { %v11628_v58 = vadd.f32 %v206_v56, %v76_v40 }
  0xa4   :  { %362 = vrot.lane.b32.xlu2 %v11593_v45, %s11420_s28  ;;  %278 = vrot.lane.b32.xlu1 %v11593_v45, %s11421_s29 }
  0xa5   :  { %250 = vrot.lane.b32.xlu0 %v11593_v45, %s11422_s30 }
  0xac   :  { %308 = vrot.lane.b32.xlu2 %v11591_v43, %s11423_s14 }
  0xaf   :  { %v218_v36 = vpop.f32.mrf.mxu2 }
  0xb0   :  { %v11701_v37 = vadd.f32 %v218_v36, %v77_v33 }
  0xb4   :  { %306 = vrot.lane.b32.xlu2 %v11593_v45, %s11423_s14 }
  0xbc   :  { %336 = vrot.lane.b32.xlu2 %v11591_v43, %s11424_s15 }
  0xc4   :  { %334 = vrot.lane.b32.xlu2 %v11593_v45, %s11424_s15 }
  0xf6   :  { %v365_v46 = vpop.permute.xlu2 %364 }
  0xf7   :  { %8230 = vmatpush.xpose.msk.msrb.mxu0 %vm223_vm1, %v365_v46 }
  0xfe   :  { %v363_v47 = vpop.permute.xlu2 %362 }
  0xff   :  { %8231 = vmatmul.msk.f32.vlgmr.msrb.gmra.mxu0 %vm223_vm1, %v363_v47 }
 0x106   :  { %v309_v48 = vpop.permute.xlu2 %308 }
 0x10e   :  { %v281_v49 = vpop.permute.xlu1 %280  ;;  %v307_v51 = vpop.permute.xlu2 %306 }
 0x10f   :  { %v253_v50 = vpop.permute.xlu0 %252 }
 0x110   :  { %8222 = vmatpush.xpose.msk.msrb.mxu3 %vm223_vm1, %v253_v50 }
 0x114   :  { %8224 = vmatpush.xpose.msk.msra.mxu3 %vm223_vm1, %v281_v49 }
 0x116   :  { %v279_v53 = vpop.permute.xlu1 %278  ;;  %v337_v54 = vpop.permute.xlu2 %336 }
 0x117   :  { %v251_v52 = vpop.permute.xlu0 %250 }
 0x118   :  { %8223 = vmatmul.msk.f32.vlgmr.msrb.gmra.mxu3 %vm223_vm1, %v251_v52 }
 0x119   :  { %8226 = vmatpush.xpose.msk.msrb.mxu3 %vm223_vm1, %v309_v48 }
 0x11e   :  { %v335_v59 = vpop.permute.xlu2 %334 }
 0x120   :  { %8225 = vmatmul.msk.f32.vlgmr.msra.gmra.mxu3 %vm223_vm1, %v279_v53 }
 0x121   :  { %8228 = vmatpush.xpose.msk.msra.mxu3 %vm223_vm1, %v337_v54 }
 0x123   :  { %v247_v55 = vpop.f32.mrf.mxu3 }
 0x124   :  { %v669_v57 = vsel %vm668_vm2, %v247_v55, -inf }
 0x125   :  { %670 = vmax.xlane.f32.xlu0 %v669_v57 }
 0x128   :  { %8227 = vmatmul.msk.f32.vlgmr.msrb.gmra.mxu3 %vm223_vm1, %v307_v51 }
 0x129   :  { %8236 = vmatpush.xpose.msk.msrb.mxu3 %vm223_vm1, %v11628_v58 }
 0x130   :  { %8229 = vmatmul.msk.f32.vlgmr.msra.gmra.mxu3 %vm223_vm1, %v335_v59 }
 0x138   :  { %8237 = vmatmul.msk.f32.vlgmr.msrb.gmra.mxu3 %vm223_vm1, %v11634_v61 }
 0x17c   :  { %v387_v24 = vpop.f32.mrf.mxu0 }
 0x17d   :  { %v684_v25 = vsel %vm668_vm2, %v387_v24, -inf }
 0x198   :  { %v671_v12 = vpop.xlane.xlu0 %670 }
 0x199   :  { %v717_v14 = vsub.f32 %v247_v55, %v671_v12 }
 0x19b   :  { %v733_v15 = vmul.f32 1.442695, %v717_v14  ;;  %v11668_v16 = vpop.f32.mrf.mxu3 }
 0x19c   :  { %v672_v46 = vsel %vm668_vm2, %v11668_v16, -inf }
 0x19d   :  { %11248 = vpow2.f32 %v733_v15 }
 0x1a3   :  { %v11676_v20 = vpop.eup %11248  ;;  %v303_v21 = vpop.f32.mrf.mxu3 }
 0x1a4   :  { %v765_v22 = vsel %vm668_vm2, %v11676_v20, 0.0  ;;  %v675_v23 = vsel %vm668_vm2, %v303_v21, -inf }
 0x1a5   :  { %766 = vadd.xlane.f32.xlu2 %v765_v22  ;;  %676 = vmax.xlane.f32.xlu1 %v675_v23 }
 0x1ab   :  { %v11740_v59 = vpop.f32.mrf.mxu3 }
 0x1ad   :  { %685 = vmax.xlane.f32.xlu2 %v684_v25 }
 0x1b3   :  { %v359_v7 = vpop.f32.mrf.mxu3 }
 0x1b4   :  { %v681_v10 = vsel %vm668_vm2, %v359_v7, -inf }
 0x1be   :  { %558 = vrot.lane.b32.xlu1 %v11628_v58, %s11424_s15 }
 0x1c5   :  { %474 = vrot.lane.b32.xlu2 %v11628_v58, %s11422_s30 }
 0x1c6   :  { %1154 = vrot.lane.b32.xlu1 %v11701_v37, %s11421_s29 }
 0x1cd   :  { %472 = vrot.lane.b32.xlu2 %v11634_v61, %s11422_s30 }
 0x1d5   :  { %584 = vrot.lane.b32.xlu2 %v11634_v61, %s11420_s28 }
 0x218   :  { %v11692_v26 = vpop.xlane.xlu2 %766  ;;  %v677_v27 = vpop.xlane.xlu1 %676 }
 0x219   :  { %v719_v28 = vsub.f32 %v303_v21, %v677_v27  ;;  %v824_v56 = vand.u32 2147483648, %v11692_v26  ;;  %vm818_vm4 = vweird.f32 %v11692_v26 }
 0x21b   :  { %v737_v29 = vmul.f32 1.442695, %v719_v28  ;;  %v825_v0 = vor.u32 1.1754944e-38, %v824_v56 }
 0x21d   :  { %11250 = vpow2.f32 %v737_v29 }
 0x220   :  { %v686_v30 = vpop.xlane.xlu2 %685 }
 0x221   :  { %v722_v31 = vsub.f32 %v387_v24, %v686_v30 }
 0x223   :  { %v743_v32 = vmul.f32 1.442695, %v722_v31  ;;  %v11695_v34 = vpop.eup %11250 }
 0x224   :  { %v771_v35 = vsel %vm668_vm2, %v11695_v34, 0.0 }
 0x225   :  { %11252 = vpow2.f32 %v743_v32  ;;  %772 = vadd.xlane.f32.xlu0 %v771_v35 }
 0x226   :  { %11254 = vrcp.f32 %v11692_v26 }
 0x228   :  { %v475_v38 = vpop.permute.xlu2 %474 }
 0x229   :  { %8238 = vmatpush.xpose.msk.msra.mxu0 %vm223_vm1, %v475_v38 }
 0x22b   :  { %v11706_v40 = vpop.eup %11252 }
 0x22c   :  { %v780_v41 = vsel %vm668_vm2, %v11706_v40, 0.0  ;;  %v11255_v48 = vpop.eup %11254 }
 0x22d   :  { %781 = vadd.xlane.f32.xlu2 %v780_v41  ;;  %v814_v49 = vmul.f32 %v11255_v48, %v11692_v26  ;;  %vm819_vm3 = vweird.f32 %v11255_v48 }
 0x22e   :  { %vm820_vm5 = vmor %vm818_vm4, %vm819_vm3 }
 0x22f   :  { %v815_v50 = vsub.f32 1.0, %v814_v49 }
 0x230   :  { %v473_v42 = vpop.permute.xlu2 %472  ;;  %v559_v44 = vpop.permute.xlu1 %558 }
 0x231   :  { %8239 = vmatmul.msk.f32.vlgmr.msra.gmra.mxu0 %vm223_vm1, %v473_v42  ;;  %8244 = vmatpush.xpose.msk.msra.mxu3 %vm223_vm1, %v559_v44  ;;  %v816_v52 = vmul.f32 %v11255_v48, %v815_v50 }
 0x233   :  { %v817_v54 = vadd.f32 %v11255_v48, %v816_v52 }
 0x235   :  { %1071 = vmatpush.msrb.mxu3 %v11701_v37  ;;  %v821_v62 = vsel %vm820_vm5, %v11255_v48, %v817_v54 }
 0x238   :  { %v1155_v57 = vpop.permute.xlu1 %1154  ;;  %v585_v15 = vpop.permute.xlu2 %584 }
 0x239   :  { %556 = vrot.lane.b32.xlu0 %v11634_v61, %s11424_s15 }
 0x245   :  { %500 = vrot.lane.b32.xlu2 %v11634_v61, %s11421_s29 }
 0x24d   :  { %530 = vrot.lane.b32.xlu2 %v11628_v58, %s11423_s14 }
 0x255   :  { %528 = vrot.lane.b32.xlu2 %v11634_v61, %s11423_s14 }
 0x25d   :  { %640 = vrot.lane.b32.xlu2 %v11634_v61, %s11425_s16 }
 0x263   :  { %673 = vmax.xlane.f32.xlu0 %v672_v46 }
 0x265   :  { %1260 = vrot.lane.b32.xlu2 %v11701_v37, %s11424_s15 }
 0x277   :  { %586 = vrot.lane.b32.xlu0 %v11628_v58, %s11420_s28 }
 0x27f   :  { %1313 = vrot.lane.b32.xlu0 %v11701_v37, %s11420_s28 }
 0x287   :  { %420 = vrot.lane.b32.xlu0 %v11591_v43, %s11425_s16 }
 0x28f   :  { %392 = vrot.lane.b32.xlu0 %v11591_v43, %s14808_s17  ;;  %v822_v43 = vand.u32 2147483647, %v11692_v26  ;;  %v11771_v26 = vpop.f32.mrf.mxu3 }
 0x290   :  { %v693_v32 = vsel %vm668_vm2, %v11771_v26, -inf }
 0x291   :  { %vm823_vm6 = vcmp.eq.f32.partialorder %v822_v43, 8.507059e+37 }
 0x292   :  { %v826_v1 = vsel %vm823_vm6, %v825_v0, %v821_v62 }
 0x293   :  { %v1037_v5 = vmul.f32 %v11676_v20, %v826_v1 }
 0x298   :  { %v773_v47 = vpop.xlane.xlu0 %772 }
 0x299   :  { %11256 = vrcp.f32 %v773_v47  ;;  %v852_v3 = vand.u32 2147483648, %v773_v47  ;;  %vm846_vm8 = vweird.f32 %v773_v47  ;;  %v850_v4 = vand.u32 2147483647, %v773_v47 }
 0x29b   :  { %v853_v8 = vor.u32 1.1754944e-38, %v852_v3  ;;  %vm851_vm10 = vcmp.eq.f32.partialorder %v850_v4, 8.507059e+37  ;;  %v11800_v3 = vld [vmem:[%s14797_s3] sm:$0xff] }
 0x29f   :  { %v11257_v51 = vpop.eup %11256 }
 0x2a0   :  { %v842_v53 = vmul.f32 %v11257_v51, %v773_v47  ;;  %vm847_vm7 = vweird.f32 %v11257_v51  ;;  %v11752_v19 = vpop.xlane.xlu2 %781 }
 0x2a1   :  { %vm848_vm9 = vmor %vm846_vm8, %vm847_vm7  ;;  %v894_v4 = vand.u32 2147483648, %v11752_v19  ;;  %vm888_vm3 = vweird.f32 %v11752_v19 }
 0x2a2   :  { %v843_v55 = vsub.f32 1.0, %v842_v53  ;;  %v11789_v53 = vld [vmem:[%s14797_s3 + $0x10] sm:$0xff] }
 0x2a4   :  { %v844_v63 = vmul.f32 %v11257_v51, %v843_v55 }
 0x2a6   :  { %v845_v2 = vadd.f32 %v11257_v51, %v844_v63 }
 0x2a8   :  { %v849_v6 = vsel %vm848_vm9, %v11257_v51, %v845_v2  ;;  %v11756_v21 = vpop.permute.xlu2 %500 }
 0x2a9   :  { %v854_v9 = vsel %vm851_vm10, %v853_v8, %v849_v6 }
 0x2aa   :  { %v1039_v11 = vmul.f32 %v11695_v34, %v854_v9  ;;  %v895_v9 = vor.u32 1.1754944e-38, %v894_v4 }
 0x2ab   :  { %v557_v60 = vpop.permute.xlu0 %556 }
 0x2ac   :  { %8245 = vmatmul.msk.f32.vlgmr.msra.gmra.mxu3 %vm223_vm1, %v557_v60 }
 0x2ad   :  { %1175 = vmatpush.msra.mxu3 %v1155_v57 }
 0x2b0   :  { %v531_v24 = vpop.permute.xlu2 %530 }
 0x2b4   :  { %8252 = vmatmul.msk.f32.vlgmr.msrb.gmra.mxu3 %vm668_vm2, %v1037_v5  ;;  %v892_v5 = vand.u32 2147483647, %v11752_v19 }
 0x2b6   :  { %vm893_vm5 = vcmp.eq.f32.partialorder %v892_v5, 8.507059e+37 }
 0x2b8   :  { %v529_v60 = vpop.permute.xlu2 %528 }
 0x2b9   :  { %682 = vmax.xlane.f32.xlu0 %v681_v10 }
 0x2bc   :  { %8266 = vmatmul.msk.f32.vlgmr.msra.gmra.mxu3 %vm668_vm2, %v1039_v11 }
 0x2cd   :  { %642 = vrot.lane.b32.xlu0 %v11628_v58, %s11425_s16 }
 0x2d6   :  { %v674_v12 = vpop.xlane.xlu0 %673 }
 0x2d7   :  { %v718_v13 = vsub.f32 %v11668_v16, %v674_v12  ;;  %v678_v16 = vsel %vm668_vm2, %v11740_v59, -inf }
 0x2d9   :  { %v735_v14 = vmul.f32 1.442695, %v718_v13 }
 0x2db   :  { %11258 = vpow2.f32 %v735_v14 }
 0x2e1   :  { %v11259_v17 = vpop.eup %11258 }
 0x2e2   :  { %v768_v18 = vsel %vm668_vm2, %v11259_v17, 0.0 }
 0x2e3   :  { %769 = vadd.xlane.f32.xlu1 %v768_v18 }
 0x2e9   :  { %v587_v20 = vpop.permute.xlu0 %586 }
 0x2ea   :  { %8246 = vmatpush.xpose.msk.msrb.mxu0 %vm223_vm1, %v587_v20 }
 0x2ed   :  { %8247 = vmatmul.msk.f32.vlgmr.msrb.gmra.mxu0 %vm223_vm1, %v585_v15 }
 0x2f1   :  { %v1314_v22 = vpop.permute.xlu0 %1313 }
 0x2f7   :  { %679 = vmax.xlane.f32.xlu0 %v678_v16 }
 0x2f9   :  { %v421_v23 = vpop.permute.xlu0 %420 }
 0x2fa   :  { %8234 = vmatpush.xpose.msk.msrb.mxu2 %vm223_vm1, %v421_v23 }
 0x2fc   :  { %1080 = vrot.lane.b32.xlu1 %v11701_v37, %s11422_s30 }
 0x2fe   :  { %8242 = vmatpush.xpose.msk.msra.mxu2 %vm223_vm1, %v531_v24 }
 0x301   :  { %v393_v25 = vpop.permute.xlu0 %392 }
 0x302   :  { %8232 = vmatpush.xpose.msk.msrb.mxu1 %vm223_vm1, %v393_v25 }
 0x304   :  { %418 = vrot.lane.b32.xlu1 %v11593_v45, %s11425_s16 }
 0x30c   :  { %390 = vrot.lane.b32.xlu1 %v11593_v45, %s14808_s17 }
 0x314   :  { %502 = vrot.lane.b32.xlu1 %v11628_v58, %s11421_s29 }
 0x32c   :  { %v683_v29 = vpop.xlane.xlu0 %682 }
 0x32d   :  { %v721_v30 = vsub.f32 %v359_v7, %v683_v29  ;;  %v641_v7 = vpop.permute.xlu2 %640 }
 0x32f   :  { %v11773_v27 = vpop.f32.mrf.mxu3  ;;  %v741_v31 = vmul.f32 1.442695, %v721_v30 }
 0x330   :  { %v705_v28 = vsel %vm668_vm2, %v11773_v27, -inf }
 0x331   :  { %706 = vmax.xlane.f32.xlu0 %v705_v28  ;;  %11260 = vpow2.f32 %v741_v31 }
 0x335   :  { %v1261_v13 = vpop.permute.xlu2 %1260 }
 0x337   :  { %v11779_v45 = vpop.eup %11260  ;;  %v1073_v49 = vpop.f32.mrf.mxu3 }
 0x338   :  { %v777_v34 = vsel %vm668_vm2, %v11779_v45, 0.0  ;;  %v1076_v14 = vpack.c.bf16 %v1073_v49, %v1073_v49 }
 0x33e   :  { %694 = vmax.xlane.f32.xlu1 %v693_v32 }
 0x33f   :  { %v1177_v43 = vpop.f32.mrf.mxu3  ;;  %v643_v0 = vpop.permute.xlu0 %642 }
 0x340   :  { %v1180_v62 = vpack.c.bf16 %v1177_v43, %v1177_v43 }
 0x345   :  { %1207 = vrot.lane.b32.xlu0 %v11701_v37, %s11423_s14 }
 0x346   :  { %778 = vadd.xlane.f32.xlu1 %v777_v34  ;;  %v220_v34 = vpop.f32.mrf.mxu2 }
 0x356   :  { %v770_v35 = vpop.xlane.xlu1 %769 }
 0x357   :  { %11262 = vrcp.f32 %v770_v35  ;;  %v838_v46 = vand.u32 2147483648, %v770_v35  ;;  %vm832_vm12 = vweird.f32 %v770_v35  ;;  %v836_v47 = vand.u32 2147483647, %v770_v35 }
 0x358   :  { %11264 = vrcp.f32 %v11752_v19 }
 0x359   :  { %v839_v50 = vor.u32 1.1754944e-38, %v838_v46  ;;  %vm837_vm14 = vcmp.eq.f32.partialorder %v836_v47, 8.507059e+37 }
 0x35d   :  { %v11263_v36 = vpop.eup %11262 }
 0x35e   :  { %v828_v38 = vmul.f32 %v11263_v36, %v770_v35  ;;  %vm833_vm11 = vweird.f32 %v11263_v36  ;;  %v11265_v52 = vpop.eup %11264 }
 0x35f   :  { %vm834_vm13 = vmor %vm832_vm12, %vm833_vm11  ;;  %v884_v56 = vmul.f32 %v11265_v52, %v11752_v19  ;;  %vm889_vm15 = vweird.f32 %v11265_v52 }
 0x360   :  { %v829_v41 = vsub.f32 1.0, %v828_v38  ;;  %vm890_vm4 = vmor %vm888_vm3, %vm889_vm15 }
 0x361   :  { %v885_v57 = vsub.f32 1.0, %v884_v56 }
 0x362   :  { %v830_v42 = vmul.f32 %v11263_v36, %v829_v41  ;;  %v11829_v41 = vadd.f32 %v220_v34, %v77_v33 }
 0x363   :  { %v886_v1 = vmul.f32 %v11265_v52, %v885_v57 }
 0x364   :  { %v831_v44 = vadd.f32 %v11263_v36, %v830_v42  ;;  %v11835_v42 = vpop.f32.mrf.mxu0 }
 0x365   :  { %v887_v2 = vadd.f32 %v11265_v52, %v886_v1 }
 0x366   :  { %v835_v48 = vsel %vm834_vm13, %v11263_v36, %v831_v44 }
 0x367   :  { %v840_v51 = vsel %vm837_vm14, %v839_v50, %v835_v48  ;;  %v891_v8 = vsel %vm890_vm4, %v11265_v52, %v887_v2 }
 0x368   :  { %v1038_v55 = vmul.f32 %v11259_v17, %v840_v51  ;;  %v896_v10 = vsel %vm893_vm5, %v895_v9, %v891_v8  ;;  %v11818_v17 = vld [vmem:[%s14797_s3 + $0x28] sm:$0xff] }
 0x369   :  { %v1042_v12 = vmul.f32 %v11706_v40, %v896_v10 }
 0x36a   :  { %v680_v15 = vpop.xlane.xlu0 %679 }
 0x36b   :  { %v720_v48 = vsub.f32 %v11740_v59, %v680_v15  ;;  %v696_v59 = vsel %vm668_vm2, %v11835_v42, -inf }
 0x36c   :  { %v11839_v44 = vpop.f32.mrf.mxu0 }
 0x36d   :  { %v739_v50 = vmul.f32 1.442695, %v720_v48 }
 0x36e   :  { %v1081_v54 = vpop.permute.xlu1 %1080 }
 0x36f   :  { %1101 = vmatpush.msra.mxu0 %v1081_v54 }
 0x370   :  { %8253 = vmatmul.msk.f32.vlgmr.msra.gmra.mxu0 %vm668_vm2, %v1038_v55 }
 0x371   :  { %1200 = vmatpush.bf16.msrb.mxu0 %v11789_v53 }
 0x375   :  { %1334 = vmatpush.msra.mxu0 %v1314_v22 }
 0x376   :  { %v419_v63 = vpop.permute.xlu1 %418 }
 0x377   :  { %8235 = vmatmul.msk.f32.vlgmr.msrb.gmra.mxu2 %vm223_vm1, %v419_v63 }
 0x378   :  { %8250 = vmatpush.xpose.msk.msrb.mxu2 %vm223_vm1, %v643_v0  ;;  %8273 = vmatmul.msk.bf16.vlgmr.msrb.gmra.mxu0 %vm223_vm1, %v1180_v62 }
 0x37e   :  { %v391_v6 = vpop.permute.xlu1 %390 }
 0x37f   :  { %8233 = vmatmul.msk.f32.vlgmr.msrb.gmra.mxu1 %vm223_vm1, %v391_v6  ;;  %8243 = vmatmul.msk.f32.vlgmr.msra.gmra.mxu2 %vm223_vm1, %v529_v60 }
 0x380   :  { %1148 = vmatpush.bf16.msra.mxu2 %v11800_v3 }
 0x386   :  { %v503_v11 = vpop.permute.xlu1 %502 }
 0x387   :  { %8240 = vmatpush.xpose.msk.msra.mxu1 %vm223_vm1, %v503_v11  ;;  %8251 = vmatmul.msk.f32.vlgmr.msrb.gmra.mxu2 %vm223_vm1, %v641_v7 }
 0x388   :  { %1281 = vmatpush.msrb.mxu2 %v1261_v13  ;;  %8290 = vmatmul.msk.f32.vlgmr.msra.gmra.mxu0 %vm668_vm2, %v1042_v12  ;;  %v11874_v13 = vld [vmem:[%s14797_s3 + $0x8] sm:$0xff] }
 0x38a   :  { %8241 = vmatmul.msk.f32.vlgmr.msra.gmra.mxu1 %vm223_vm1, %v11756_v21 }
 0x38f   :  { %8265 = vmatmul.msk.bf16.vlgmr.msra.gmra.mxu2 %vm223_vm1, %v1076_v14 }
 0x390   :  { %1359 = vmatpush.bf16.msra.mxu2 %v11818_v17 }
 0x3a4   :  { %v707_v40 = vpop.xlane.xlu0 %706 }
 0x3a5   :  { %v729_v49 = vsub.f32 %v11773_v27, %v707_v40  ;;  %v708_v40 = vsel %vm668_vm2, %v11839_v44, -inf }
 0x3b1   :  { %v695_v18 = vpop.xlane.xlu1 %694 }
 0x3b2   :  { %v725_v19 = vsub.f32 %v11771_v26, %v695_v18 }
 0x3b4   :  { %v749_v20 = vmul.f32 1.442695, %v725_v19 }
 0x3b6   :  { %11266 = vpow2.f32 %v749_v20 }
 0x3b7   :  { %v1208_v22 = vpop.permute.xlu0 %1207 }
 0x3b8   :  { %1228 = vmatpush.msrb.mxu3 %v1208_v22 }
 0x3b9   :  { %v779_v21 = vpop.xlane.xlu1 %778 }
 0x3ba   :  { %11268 = vrcp.f32 %v779_v21  ;;  %v880_v29 = vand.u32 2147483648, %v779_v21  ;;  %v878_v31 = vand.u32 2147483647, %v779_v21  ;;  %vm874_vm7 = vweird.f32 %v779_v21 }
 0x3bb   :  { %11270 = vpow2.f32 %v739_v50 }
 0x3bc   :  { %v11822_v16 = vpop.eup %11266  ;;  %v881_v32 = vor.u32 1.1754944e-38, %v880_v29  ;;  %vm879_vm9 = vcmp.eq.f32.partialorder %v878_v31, 8.507059e+37 }
 0x3bd   :  { %v789_v23 = vsel %vm668_vm2, %v11822_v16, 0.0 }
 0x3be   :  { %790 = vadd.xlane.f32.xlu1 %v789_v23 }
 0x3c0   :  { %v11269_v24 = vpop.eup %11268 }
 0x3c1   :  { %v870_v25 = vmul.f32 %v11269_v24, %v779_v21  ;;  %vm875_vm6 = vweird.f32 %v11269_v24  ;;  %v11857_v43 = vpop.eup %11270 }
 0x3c2   :  { %vm876_vm8 = vmor %vm874_vm7, %vm875_vm6  ;;  %v774_v60 = vsel %vm668_vm2, %v11857_v43, 0.0 }
 0x3c3   :  { %v871_v28 = vsub.f32 1.0, %v870_v25  ;;  %v11893_v25 = vld [vmem:[%s14797_s3 + $0x20] sm:$0xff] }
 0x3c4   :  { %1306 = vmatpush.bf16.msra.mxu3 %v11893_v25 }
 0x3c5   :  { %v872_v30 = vmul.f32 %v11269_v24, %v871_v28 }
 0x3c7   :  { %v873_v26 = vadd.f32 %v11269_v24, %v872_v30 }
 0x3c9   :  { %v877_v35 = vsel %vm876_vm8, %v11269_v24, %v873_v26 }
 0x3ca   :  { %v882_v36 = vsel %vm879_vm9, %v881_v32, %v877_v35 }
 0x3cb   :  { %v1041_v38 = vmul.f32 %v11779_v45, %v882_v36 }
 0x3cd   :  { %8282 = vmatmul.msk.f32.vlgmr.msrb.gmra.mxu2 %vm668_vm2, %v1041_v38 }
 0x3ce   :  { %1490 = vmatpush.msrb.mxu2 %v11829_v41 }
 0x3d7   :  { %614 = vrot.lane.b32.xlu1 %v11628_v58, %s14808_s17 }
 0x3df   :  { %612 = vrot.lane.b32.xlu1 %v11634_v61, %s14808_s17  ;;  %v757_v61 = vmul.f32 1.442695, %v729_v49 }
 0x3e1   :  { %11272 = vpow2.f32 %v757_v61 }
 0x3e7   :  { %v11859_v57 = vpop.eup %11272 }
 0x3e8   :  { %v801_v62 = vsel %vm668_vm2, %v11859_v57, 0.0 }
 0x3ed   :  { %v1103_v46 = vpop.f32.mrf.mxu0 }
 0x3ee   :  { %v1106_v18 = vpack.c.bf16 %v1103_v46, %v1103_v46 }
 0x3f5   :  { %v11841_v45 = vpop.f32.mrf.mxu0 }
 0x3fa   :  { %v443_v39 = vpop.f32.mrf.mxu2 }
 0x3fb   :  { %v690_v33 = vsel %vm668_vm2, %v443_v39, -inf }
 0x3fc   :  { %691 = vmax.xlane.f32.xlu2 %v690_v33  ;;  %v11846_v58 = vpop.f32.mrf.mxu1 }
 0x3fd   :  { %v1204_v47 = vpop.f32.mrf.mxu0  ;;  %v687_v50 = vsel %vm668_vm2, %v11846_v58, -inf }
 0x402   :  { %v11848_v51 = vpop.f32.mrf.mxu2 }
 0x405   :  { %v1336_v52 = vpop.f32.mrf.mxu0 }
 0x406   :  { %v1339_v54 = vpack.c.bf16 %v1336_v52, %v1336_v52 }
 0x407   :  { %v525_v55 = vpop.f32.mrf.mxu1 }
 0x408   :  { %8297 = vmatmul.msk.bf16.vlgmr.msra.gmra.mxu2 %vm223_vm1, %v1339_v54  ;;  %v699_v56 = vsel %vm668_vm2, %v525_v55, -inf }
 0x409   :  { %700 = vmax.xlane.f32.xlu2 %v699_v56  ;;  %697 = vmax.xlane.f32.xlu1 %v696_v59 }
 0x40a   :  { %v11854_v27 = vpop.f32.mrf.mxu2  ;;  %1550 = vmatpush.bf16.msra.mxu2 %v11800_v3 }
 0x411   :  { %775 = vadd.xlane.f32.xlu2 %v774_v60  ;;  %802 = vadd.xlane.f32.xlu1 %v801_v62  ;;  %v714_v60 = vsel %vm668_vm2, %v11854_v27, -inf }
 0x412   :  { %v11865_v63 = vpop.f32.mrf.mxu2 }
 0x41a   :  { %v1152_v0 = vpop.f32.mrf.mxu2 }
 0x42a   :  { %1497 = vrot.lane.b32.xlu1 %v11829_v41, %s11422_s30 }
 0x431   :  { %v791_v1 = vpop.xlane.xlu1 %790 }
 0x432   :  { %11274 = vrcp.f32 %v791_v1  ;;  %v936_v5 = vand.u32 2147483648, %v791_v1  ;;  %v934_v7 = vand.u32 2147483647, %v791_v1  ;;  %vm930_vm11 = vweird.f32 %v791_v1 }
 0x434   :  { %v937_v9 = vor.u32 1.1754944e-38, %v936_v5  ;;  %vm935_vm13 = vcmp.eq.f32.partialorder %v934_v7, 8.507059e+37 }
 0x438   :  { %v11275_v2 = vpop.eup %11274 }
 0x439   :  { %v926_v3 = vmul.f32 %v11275_v2, %v791_v1  ;;  %vm931_vm10 = vweird.f32 %v11275_v2 }
 0x43a   :  { %vm932_vm12 = vmor %vm930_vm11, %vm931_vm10 }
 0x43b   :  { %v927_v4 = vsub.f32 1.0, %v926_v3 }
 0x43d   :  { %v928_v6 = vmul.f32 %v11275_v2, %v927_v4  ;;  %v702_v4 = vsel %vm668_vm2, %v11848_v51, -inf }
 0x43f   :  { %v929_v8 = vadd.f32 %v11275_v2, %v928_v6 }
 0x441   :  { %v933_v10 = vsel %vm932_vm12, %v11275_v2, %v929_v8 }
 0x442   :  { %v938_v11 = vsel %vm935_vm13, %v937_v9, %v933_v10 }
 0x443   :  { %v1045_v12 = vmul.f32 %v11822_v16, %v938_v11 }
 0x445   :  { %8314 = vmatmul.msk.f32.vlgmr.msrb.gmra.mxu2 %vm668_vm2, %v1045_v12  ;;  %v11937_v12 = vld [vmem:[%s14797_s3 + $0x18] sm:$0xff] }
 0x449   :  { %v615_v14 = vpop.permute.xlu1 %614 }
 0x44a   :  { %8248 = vmatpush.xpose.msk.msrb.mxu1 %vm223_vm1, %v615_v14 }
 0x44e   :  { %1126 = vmatpush.bf16.msra.mxu1 %v11874_v13 }
 0x450   :  { %v1283_v26 = vpop.f32.mrf.mxu2 }
 0x451   :  { %v613_v15 = vpop.permute.xlu1 %612  ;;  %v1286_v62 = vpack.c.bf16 %v1283_v26, %v1283_v26 }
 0x452   :  { %8249 = vmatmul.msk.f32.vlgmr.msrb.gmra.mxu1 %vm223_vm1, %v613_v15 }
 0x453   :  { %1253 = vmatpush.bf16.msrb.mxu1 %v11937_v12 }
 0x454   :  { %709 = vmax.xlane.f32.xlu1 %v708_v40 }
 0x45a   :  { %8260 = vmatmul.msk.bf16.vlgmr.msra.gmra.mxu1 %vm223_vm1, %v1106_v18 }
 0x46d   :  { %1600 = vrot.lane.b32.xlu1 %v11829_v41, %s11423_s14 }
 0x46f   :  { %v692_v19 = vpop.xlane.xlu2 %691 }
 0x470   :  { %v724_v20 = vsub.f32 %v443_v39, %v692_v19 }
 0x472   :  { %v747_v22 = vmul.f32 1.442695, %v724_v20 }
 0x474   :  { %11276 = vpow2.f32 %v747_v22 }
 0x475   :  { %1776 = vrot.lane.b32.xlu1 %v11829_v41, %s11425_s16 }
 0x47a   :  { %v11886_v21 = vpop.eup %11276 }
 0x47b   :  { %v786_v16 = vsel %vm668_vm2, %v11886_v21, 0.0 }
 0x47c   :  { %v701_v23 = vpop.xlane.xlu2 %700  ;;  %787 = vadd.xlane.f32.xlu2 %v786_v16  ;;  %v698_v24 = vpop.xlane.xlu1 %697 }
 0x47d   :  { %v727_v28 = vsub.f32 %v525_v55, %v701_v23  ;;  %v726_v29 = vsub.f32 %v11835_v42, %v698_v24  ;;  %1732 = vrot.lane.b32.xlu1 %v11829_v41, %s14808_s17 }
 0x47f   :  { %v753_v30 = vmul.f32 1.442695, %v727_v28  ;;  %v751_v31 = vmul.f32 1.442695, %v726_v29 }
 0x481   :  { %11278 = vpow2.f32 %v753_v30 }
 0x482   :  { %11280 = vpow2.f32 %v751_v31 }
 0x484   :  { %v776_v32 = vpop.xlane.xlu2 %775  ;;  %v11931_v7 = vpop.xlane.xlu1 %802 }
 0x485   :  { %11282 = vrcp.f32 %v776_v32  ;;  %v866_v47 = vand.u32 2147483648, %v776_v32  ;;  %v864_v49 = vand.u32 2147483647, %v776_v32  ;;  %vm860_vm15 = vweird.f32 %v776_v32 }
 0x486   :  { %vm986_vm12 = vweird.f32 %v11931_v7 }
 0x487   :  { %v11899_v34 = vpop.eup %11278  ;;  %v867_v52 = vor.u32 1.1754944e-38, %v866_v47  ;;  %vm865_vm4 = vcmp.eq.f32.partialorder %v864_v49, 8.507059e+37 }
 0x488   :  { %v11901_v35 = vpop.eup %11280  ;;  %v795_v36 = vsel %vm668_vm2, %v11899_v34, 0.0 }
 0x489   :  { %v792_v38 = vsel %vm668_vm2, %v11901_v35, 0.0  ;;  %796 = vadd.xlane.f32.xlu0 %v795_v36 }
 0x48a   :  { %793 = vadd.xlane.f32.xlu2 %v792_v38 }
 0x48b   :  { %v11283_v42 = vpop.eup %11282  ;;  %v11907_v46 = vpop.f32.mrf.mxu2 }
 0x48c   :  { %v856_v39 = vmul.f32 %v11283_v42, %v776_v32  ;;  %vm861_vm14 = vweird.f32 %v11283_v42 }
 0x48d   :  { %vm862_vm3 = vmor %vm860_vm15, %vm861_vm14 }
 0x48e   :  { %v857_v33 = vsub.f32 1.0, %v856_v39 }
 0x490   :  { %v858_v48 = vmul.f32 %v11283_v42, %v857_v33 }
 0x491   :  { %688 = vmax.xlane.f32.xlu0 %v687_v50 }
 0x492   :  { %v859_v61 = vadd.f32 %v11283_v42, %v858_v48 }
 0x493   :  { %v1363_v54 = vpop.f32.mrf.mxu2 }
 0x494   :  { %v863_v55 = vsel %vm862_vm3, %v11283_v42, %v859_v61 }
 0x495   :  { %v868_v56 = vsel %vm865_vm4, %v867_v52, %v863_v55 }
 0x496   :  { %v1040_v59 = vmul.f32 %v11857_v43, %v868_v56  ;;  %v990_v56 = vand.u32 2147483647, %v11931_v7 }
 0x498   :  { %8274 = vmatmul.msk.f32.vlgmr.msrb.gmra.mxu3 %vm668_vm2, %v1040_v59  ;;  %v992_v59 = vand.u32 2147483648, %v11931_v7 }
 0x499   :  { %715 = vmax.xlane.f32.xlu0 %v714_v60 }
 0x49c   :  { %v1498_v24 = vpop.permute.xlu1 %1497 }
 0x4a0   :  { %8289 = vmatmul.msk.bf16.vlgmr.msra.gmra.mxu3 %vm223_vm1, %v1286_v62 }
 0x4a2   :  { %1419 = vrot.lane.b32.xlu2 %v11701_v37, %s11425_s16 }
 0x4aa   :  { %1556 = vrot.lane.b32.xlu2 %v11829_v41, %s11421_s29 }
 0x4b2   :  { %1644 = vrot.lane.b32.xlu2 %v11829_v41, %s11424_s15 }
 0x4c7   :  { %v11952_v52 = vpop.xlane.xlu1 %709 }
 0x4c8   :  { %v1492_v0 = vpop.f32.mrf.mxu2 }
 0x4c9   :  { %v1495_v43 = vpack.c.bf16 %v1492_v0, %v1492_v0 }
 0x4cb   :  { %8317 = vmatmul.msk.bf16.vlgmr.msra.gmra.mxu2 %vm223_vm1, %v1495_v43 }
 0x4cf   :  { %v11923_v1 = vpop.f32.mrf.mxu1 }
 0x4d0   :  { %v711_v2 = vsel %vm668_vm2, %v11923_v1, -inf }
 0x4d1   :  { %712 = vmax.xlane.f32.xlu0 %v711_v2 }
 0x4d7   :  { %v11927_v3 = vpop.f32.mrf.mxu1 }
 0x4db   :  { %703 = vmax.xlane.f32.xlu2 %v702_v4 }
 0x4df   :  { %v1130_v5 = vpop.f32.mrf.mxu1 }
 0x4ef   :  { %v788_v6 = vpop.xlane.xlu2 %787 }
 0x4f0   :  { %11284 = vrcp.f32 %v788_v6  ;;  %v922_v15 = vand.u32 2147483648, %v788_v6  ;;  %vm916_vm6 = vweird.f32 %v788_v6  ;;  %v920_v19 = vand.u32 2147483647, %v788_v6 }
 0x4f1   :  { %11286 = vrcp.f32 %v11931_v7 }
 0x4f2   :  { %v923_v23 = vor.u32 1.1754944e-38, %v922_v15  ;;  %vm921_vm8 = vcmp.eq.f32.partialorder %v920_v19, 8.507059e+37  ;;  %v1601_v15 = vpop.permute.xlu1 %1600 }
 0x4f6   :  { %v11285_v8 = vpop.eup %11284 }
 0x4f7   :  { %v912_v9 = vmul.f32 %v11285_v8, %v788_v6  ;;  %vm917_vm5 = vweird.f32 %v11285_v8  ;;  %v11939_v14 = vpop.eup %11286 }
 0x4f8   :  { %vm918_vm7 = vmor %vm916_vm6, %vm917_vm5  ;;  %v982_v22 = vmul.f32 %v11939_v14, %v11931_v7  ;;  %vm987_vm10 = vweird.f32 %v11939_v14  ;;  %vm991_vm6 = vcmp.eq.f32.partialorder %v990_v56, 8.507059e+37 }
 0x4f9   :  { %v913_v10 = vsub.f32 1.0, %v912_v9  ;;  %vm11959_vm3 = vmor %vm986_vm12, %vm987_vm10 }
 0x4fa   :  { %v983_v30 = vsub.f32 1.0, %v982_v22 }
 0x4fb   :  { %v914_v11 = vmul.f32 %v11285_v8, %v913_v10  ;;  %v993_v10 = vor.u32 1.1754944e-38, %v992_v59 }
 0x4fc   :  { %v11941_v40 = vpop.xlane.xlu0 %796  ;;  %v984_v47 = vmul.f32 %v11939_v14, %v983_v30 }
 0x4fd   :  { %v915_v18 = vadd.f32 %v11285_v8, %v914_v11  ;;  %v794_v20 = vpop.xlane.xlu2 %793  ;;  %11288 = vrcp.f32 %v11941_v40  ;;  %v964_v5 = vand.u32 2147483648, %v11941_v40  ;;  %vm958_vm4 = vweird.f32 %v11941_v40 }
 0x4fe   :  { %11290 = vrcp.f32 %v794_v20  ;;  %v948_v50 = vand.u32 2147483647, %v794_v20  ;;  %v950_v61 = vand.u32 2147483648, %v794_v20  ;;  %vm944_vm11 = vweird.f32 %v794_v20 }
 0x4ff   :  { %v919_v16 = vsel %vm918_vm7, %v11285_v8, %v915_v18  ;;  %v962_v8 = vand.u32 2147483647, %v11941_v40 }
 0x500   :  { %v924_v28 = vsel %vm921_vm8, %v923_v23, %v919_v16  ;;  %v951_v60 = vor.u32 1.1754944e-38, %v950_v61  ;;  %vm949_vm14 = vcmp.eq.f32.partialorder %v948_v50, 8.507059e+37 }
 0x501   :  { %v1044_v39 = vmul.f32 %v11886_v21, %v924_v28  ;;  %vm963_vm7 = vcmp.eq.f32.partialorder %v962_v8, 8.507059e+37 }
 0x503   :  { %v11289_v29 = vpop.eup %11288 }
 0x504   :  { %v11291_v31 = vpop.eup %11290  ;;  %v954_v26 = vmul.f32 %v11289_v29, %v11941_v40  ;;  %v689_v32 = vpop.xlane.xlu0 %688  ;;  %vm959_vm15 = vweird.f32 %v11289_v29 }
 0x505   :  { %v940_v36 = vmul.f32 %v11291_v31, %v794_v20  ;;  %v1420_v38 = vpop.permute.xlu2 %1419  ;;  %v723_v42 = vsub.f32 %v11846_v58, %v689_v32  ;;  %vm945_vm9 = vweird.f32 %v11291_v31  ;;  %v985_v58 = vadd.f32 %v11939_v14, %v984_v47  ;;  %vm960_vm5 = vmor %vm958_vm4, %vm959_vm15 }
 0x506   :  { %v955_v33 = vsub.f32 1.0, %v954_v26  ;;  %1440 = vmatpush.msrb.mxu3 %v1420_v38  ;;  %vm946_vm13 = vmor %vm944_vm11, %vm945_vm9  ;;  %v965_v20 = vor.u32 1.1754944e-38, %v964_v5 }
 0x507   :  { %v941_v48 = vsub.f32 1.0, %v940_v36  ;;  %v745_v49 = vmul.f32 1.442695, %v723_v42  ;;  %8306 = vmatmul.msk.f32.vlgmr.msrb.gmra.mxu3 %vm668_vm2, %v1044_v39  ;;  %v989_v7 = vsel %vm11959_vm3, %v11939_v14, %v985_v58 }
 0x508   :  { %1518 = vmatpush.msra.mxu3 %v1498_v24  ;;  %v956_v55 = vmul.f32 %v11289_v29, %v955_v33  ;;  %v994_v19 = vsel %vm991_vm6, %v993_v10, %v989_v7 }
 0x509   :  { %v942_v54 = vmul.f32 %v11291_v31, %v941_v48  ;;  %11292 = vpow2.f32 %v745_v49  ;;  %v1049_v40 = vmul.f32 %v11859_v57, %v994_v19 }
 0x50a   :  { %v957_v0 = vadd.f32 %v11289_v29, %v956_v55 }
 0x50b   :  { %v943_v21 = vadd.f32 %v11291_v31, %v942_v54 }
 0x50c   :  { %v961_v18 = vsel %vm960_vm5, %v11289_v29, %v957_v0  ;;  %v716_v28 = vpop.xlane.xlu0 %715  ;;  %v12017_v0 = vld [vmem:[%s14797_s3 + $0x38] sm:$0xff] }
 0x50d   :  { %v947_v62 = vsel %vm946_vm13, %v11291_v31, %v943_v21  ;;  %v1557_v43 = vpop.permute.xlu2 %1556  ;;  %v966_v14 = vsel %vm963_vm7, %v965_v20, %v961_v18  ;;  %v732_v29 = vsub.f32 %v11854_v27, %v716_v28 }
 0x50e   :  { %v952_v4 = vsel %vm949_vm14, %v951_v60, %v947_v62  ;;  %1577 = vmatpush.msrb.mxu3 %v1557_v43  ;;  %v1151_v62 = vadd.f32 %v11865_v63, %v11927_v3 }
 0x50f   :  { %v11964_v6 = vpop.eup %11292  ;;  %v1046_v9 = vmul.f32 %v11901_v35, %v952_v4  ;;  %v1047_v35 = vmul.f32 %v11899_v34, %v966_v14  ;;  %v763_v34 = vmul.f32 1.442695, %v732_v29 }
 0x510   :  { %v783_v11 = vsel %vm668_vm2, %v11964_v6, 0.0  ;;  %v1206_v4 = vadd.f32 %v11841_v45, %v1151_v62 }
 0x511   :  { %8315 = vmatmul.msk.f32.vlgmr.msra.gmra.mxu3 %vm668_vm2, %v1046_v9  ;;  %784 = vadd.xlane.f32.xlu0 %v783_v11  ;;  %11294 = vpow2.f32 %v763_v34 }
 0x512   :  { %1621 = vmatpush.msra.mxu3 %v1601_v15 }
 0x515   :  { %v1645_v22 = vpop.permute.xlu2 %1644 }
 0x516   :  { %1665 = vmatpush.msrb.mxu2 %v1645_v22 }
 0x517   :  { %8322 = vmatmul.msk.f32.vlgmr.msrb.gmra.mxu2 %vm668_vm2, %v1049_v40 }
 0x518   :  { %1725 = vmatpush.bf16.msra.mxu2 %v11818_v17  ;;  %v11987_v17 = vpop.eup %11294 }
 0x519   :  { %8318 = vmatmul.msk.f32.vlgmr.msrb.gmra.mxu3 %vm668_vm2, %v1047_v35  ;;  %v1777_v35 = vpop.permute.xlu1 %1776 }
 0x51a   :  { %1681 = vmatpush.bf16.msrb.mxu3 %v11893_v25  ;;  %v810_v25 = vsel %vm668_vm2, %v11987_v17, 0.0 }
 0x51b   :  { %v1230_v16 = vpop.f32.mrf.mxu3 }
 0x51c   :  { %v1233_v23 = vpack.c.bf16 %v1230_v16, %v1230_v16 }
 0x51e   :  { %8281 = vmatmul.msk.bf16.vlgmr.msrb.gmra.mxu1 %vm223_vm1, %v1233_v23 }
 0x523   :  { %v11982_v24 = vpop.f32.mrf.mxu3 }
 0x525   :  { %1366 = vrot.lane.b32.xlu0 %v11701_v37, %s14808_s17  ;;  %v730_v37 = vsub.f32 %v11839_v44, %v11952_v52 }
 0x527   :  { %v759_v36 = vmul.f32 1.442695, %v730_v37 }
 0x52b   :  { %v1310_v57 = vpop.f32.mrf.mxu3 }
 0x544   :  { %v713_v27 = vpop.xlane.xlu0 %712 }
 0x545   :  { %v731_v39 = vsub.f32 %v11923_v1, %v713_v27 }
 0x547   :  { %v761_v47 = vmul.f32 1.442695, %v731_v39 }
 0x54e   :  { %v704_v30 = vpop.xlane.xlu2 %703  ;;  %v11989_v31 = vpop.f32.mrf.mxu2 }
 0x54f   :  { %v728_v26 = vsub.f32 %v11848_v51, %v704_v30  ;;  %811 = vadd.xlane.f32.xlu0 %v810_v25 }
 0x551   :  { %v755_v32 = vmul.f32 1.442695, %v728_v26 }
 0x553   :  { %11296 = vpow2.f32 %v755_v32 }
 0x554   :  { %11298 = vpow2.f32 %v759_v36 }
 0x555   :  { %11300 = vpow2.f32 %v761_v47 }
 0x556   :  { %v1554_v38 = vpop.f32.mrf.mxu2 }
 0x559   :  { %v11996_v42 = vpop.eup %11296 }
 0x55a   :  { %v798_v33 = vsel %vm668_vm2, %v11996_v42, 0.0  ;;  %v12001_v51 = vpop.eup %11298 }
 0x55b   :  { %799 = vadd.xlane.f32.xlu2 %v798_v33  ;;  %v804_v44 = vsel %vm668_vm2, %v12001_v51, 0.0  ;;  %v12005_v48 = vpop.eup %11300 }
 0x55c   :  { %v807_v49 = vsel %vm668_vm2, %v12005_v48, 0.0 }
 0x563   :  { %805 = vadd.xlane.f32.xlu2 %v804_v44 }
 0x56b   :  { %808 = vadd.xlane.f32.xlu2 %v807_v49 }
 0x583   :  { %1688 = vrot.lane.b32.xlu2 %v11829_v41, %s11420_s28 }
 0x584   :  { %v785_v1 = vpop.xlane.xlu0 %784 }
 0x585   :  { %11302 = vrcp.f32 %v785_v1  ;;  %v908_v54 = vand.u32 2147483648, %v785_v1  ;;  %v906_v58 = vand.u32 2147483647, %v785_v1  ;;  %vm902_vm9 = vweird.f32 %v785_v1 }
 0x587   :  { %v909_v56 = vor.u32 1.1754944e-38, %v908_v54  ;;  %vm907_vm11 = vcmp.eq.f32.partialorder %v906_v58, 8.507059e+37 }
 0x58a   :  { %v1442_v2 = vpop.f32.mrf.mxu3 }
 0x58b   :  { %v11303_v50 = vpop.eup %11302  ;;  %v1445_v3 = vpack.c.bf16 %v1442_v2, %v1442_v2 }
 0x58c   :  { %v898_v61 = vmul.f32 %v11303_v50, %v785_v1  ;;  %vm903_vm8 = vweird.f32 %v11303_v50  ;;  %v1733_v1 = vpop.permute.xlu1 %1732 }
 0x58d   :  { %vm904_vm10 = vmor %vm902_vm9, %vm903_vm8 }
 0x58e   :  { %v899_v52 = vsub.f32 1.0, %v898_v61 }
 0x590   :  { %v900_v55 = vmul.f32 %v11303_v50, %v899_v52 }
 0x592   :  { %v901_v21 = vadd.f32 %v11303_v50, %v900_v55 }
 0x594   :  { %v905_v59 = vsel %vm904_vm10, %v11303_v50, %v901_v21 }
 0x595   :  { %v910_v60 = vsel %vm907_vm11, %v909_v56, %v905_v59 }
 0x596   :  { %v1043_v41 = vmul.f32 %v11964_v6, %v910_v60  ;;  %v12026_v6 = vpop.f32.mrf.mxu3 }
 0x597   :  { %v1367_v43 = vpop.permute.xlu0 %1366 }
 0x598   :  { %1387 = vmatpush.msrb.mxu0 %v1367_v43 }
 0x599   :  { %8298 = vmatmul.msk.f32.vlgmr.msrb.gmra.mxu0 %vm668_vm2, %v1043_v41 }
 0x59a   :  { %1465 = vmatpush.bf16.msra.mxu0 %v12017_v0  ;;  %v1667_v39 = vpop.f32.mrf.mxu2 }
 0x59b   :  { %v1255_v5 = vpop.f32.mrf.mxu1  ;;  %v1670_v61 = vpack.c.bf16 %v1667_v39, %v1667_v39 }
 0x59c   :  { %v12023_v63 = vadd.f32 %v1255_v5, %v1206_v4 }
 0x59e   :  { %1593 = vmatpush.bf16.msrb.mxu0 %v11789_v53  ;;  %v1579_v8 = vpop.f32.mrf.mxu3 }
 0x59f   :  { %v1582_v9 = vpack.c.bf16 %v1579_v8, %v1579_v8 }
 0x5a1   :  { %8313 = vmatmul.msk.bf16.vlgmr.msra.gmra.mxu0 %vm223_vm1, %v1445_v3 }
 0x5a3   :  { %v1257_v7 = vpop.f32.mrf.mxu1 }
 0x5a4   :  { %v10750_v7 = vld [vmem:[%s14797_s3 + $0x30] sm:$0xff] }
 0x5a5   :  { %1412 = vmatpush.bf16.msra.mxu1 %v10750_v7 }
 0x5a9   :  { %1534 = vmatpush.bf16.msrb.mxu1 %v11874_v13 }
 0x5b1   :  { %8319 = vmatmul.msk.bf16.vlgmr.msrb.gmra.mxu0 %vm223_vm1, %v1582_v9 }
 0x5c2   :  { %v12029_v11 = vpop.xlane.xlu0 %811 }
 0x5c3   :  { %v1032_v2 = vand.u32 2147483647, %v12029_v11 }
 0x5ce   :  { %v800_v10 = vpop.xlane.xlu2 %799 }
 0x5cf   :  { %11304 = vrcp.f32 %v800_v10  ;;  %v978_v19 = vand.u32 2147483648, %v800_v10  ;;  %v976_v14 = vand.u32 2147483647, %v800_v10  ;;  %vm972_vm13 = vweird.f32 %v800_v10 }
 0x5d1   :  { %v979_v16 = vor.u32 1.1754944e-38, %v978_v19  ;;  %vm977_vm15 = vcmp.eq.f32.partialorder %v976_v14, 8.507059e+37 }
 0x5d5   :  { %v11305_v45 = vpop.eup %11304 }
 0x5d6   :  { %v968_v15 = vmul.f32 %v11305_v45, %v800_v10  ;;  %v806_v18 = vpop.xlane.xlu2 %805  ;;  %vm973_vm12 = vweird.f32 %v11305_v45 }
 0x5d7   :  { %11306 = vrcp.f32 %v806_v18  ;;  %vm974_vm14 = vmor %vm972_vm13, %vm973_vm12  ;;  %v1006_v26 = vand.u32 2147483648, %v806_v18  ;;  %v1004_v36 = vand.u32 2147483647, %v806_v18  ;;  %vm1000_vm4 = vweird.f32 %v806_v18 }
 0x5d8   :  { %v969_v53 = vsub.f32 1.0, %v968_v15  ;;  %11308 = vrcp.f32 %v12029_v11  ;;  %vm1028_vm12 = vweird.f32 %v12029_v11 }
 0x5d9   :  { %v1007_v33 = vor.u32 1.1754944e-38, %v1006_v26  ;;  %vm1005_vm6 = vcmp.eq.f32.partialorder %v1004_v36, 8.507059e+37 }
 0x5da   :  { %v970_v20 = vmul.f32 %v11305_v45, %v969_v53 }
 0x5dc   :  { %v971_v22 = vadd.f32 %v11305_v45, %v970_v20 }
 0x5dd   :  { %v11307_v40 = vpop.eup %11306 }
 0x5de   :  { %v975_v23 = vsel %vm974_vm14, %v11305_v45, %v971_v22  ;;  %v996_v57 = vmul.f32 %v11307_v40, %v806_v18  ;;  %v809_v28 = vpop.xlane.xlu2 %808  ;;  %v11309_v29 = vpop.eup %11308  ;;  %vm1001_vm3 = vweird.f32 %v11307_v40  ;;  %vm1033_vm14 = vcmp.eq.f32.partialorder %v1032_v2, 8.507059e+37 }
 0x5df   :  { %v980_v34 = vsel %vm977_vm15, %v979_v16, %v975_v23  ;;  %11310 = vrcp.f32 %v809_v28  ;;  %v1024_v37 = vmul.f32 %v11309_v29, %v12029_v11  ;;  %vm1002_vm5 = vmor %vm1000_vm4, %vm1001_vm3  ;;  %v1020_v55 = vand.u32 2147483648, %v809_v28 }
 0x5e0   :  { %v997_v30 = vsub.f32 1.0, %v996_v57  ;;  %v1048_v25 = vmul.f32 %v11996_v42, %v980_v34  ;;  %v1018_v56 = vand.u32 2147483647, %v809_v28  ;;  %vm1014_vm8 = vweird.f32 %v809_v28 }
 0x5e1   :  { %v1025_v47 = vsub.f32 1.0, %v1024_v37  ;;  %v1021_v60 = vor.u32 1.1754944e-38, %v1020_v55  ;;  %vm1029_vm10 = vweird.f32 %v11309_v29 }
 0x5e2   :  { %v998_v32 = vmul.f32 %v11307_v40, %v997_v30  ;;  %8320 = vmatmul.msk.f32.vlgmr.msra.gmra.mxu3 %vm668_vm2, %v1048_v25  ;;  %vm1019_vm11 = vcmp.eq.f32.partialorder %v1018_v56, 8.507059e+37  ;;  %vm1030_vm13 = vmor %vm1028_vm12, %vm1029_vm10  ;;  %v11392_v30 = vld [vmem:[%s14794_s0] sm:$0xff] }
 0x5e3   :  { %1797 = vmatpush.msra.mxu3 %v1777_v35  ;;  %v1026_v58 = vmul.f32 %v11309_v29, %v1025_v47  ;;  %v1312_v35 = vadd.f32 %v11982_v24, %v12023_v63 }
 0x5e4   :  { %v999_v27 = vadd.f32 %v11307_v40, %v998_v32 }
 0x5e5   :  { %v11311_v38 = vpop.eup %11310  ;;  %v1027_v62 = vadd.f32 %v11309_v29, %v1026_v58  ;;  %v1365_v16 = vadd.f32 %v11907_v46, %v1312_v35  ;;  %v8598_v35 = vld [vmem:[%s14799_s5 + $0x248] sm:$0xf0] }
 0x5e6   :  { %v1003_v44 = vsel %vm1002_vm5, %v11307_v40, %v999_v27  ;;  %v1010_v49 = vmul.f32 %v11311_v38, %v809_v28  ;;  %v1689_v42 = vpop.permute.xlu2 %1688  ;;  %vm1015_vm7 = vweird.f32 %v11311_v38  ;;  %v11236_v28 = vld [vmem:[%s14798_s4] ss:$0 sm:$0xff] }
 0x5e7   :  { %v1008_v50 = vsel %vm1005_vm6, %v1007_v33, %v1003_v44  ;;  %1709 = vmatpush.msra.mxu0 %v1689_v42  ;;  %vm1016_vm9 = vmor %vm1014_vm8, %vm1015_vm7  ;;  %v1031_v5 = vsel %vm1030_vm13, %v11309_v29, %v1027_v62 }
 0x5e8   :  { %v1011_v52 = vsub.f32 1.0, %v1010_v49  ;;  %v1050_v54 = vmul.f32 %v12001_v51, %v1008_v50  ;;  %v1034_v51 = vand.u32 2147483648, %v12029_v11  ;;  %v1523_v11 = vpack.c.bf16 %v12026_v6, %v12026_v6 }
 0x5e9   :  { %1753 = vmatpush.msrb.mxu0 %v1733_v1 }
 0x5ea   :  { %v1012_v21 = vmul.f32 %v11311_v38, %v1011_v52  ;;  %8323 = vmatmul.msk.bf16.vlgmr.msrb.gmra.mxu3 %vm223_vm1, %v1670_v61  ;;  %8324 = vmatmul.msk.f32.vlgmr.msra.gmra.mxu0 %vm668_vm2, %v1050_v54  ;;  %v11393_v54 = vld [vmem:[%s14794_s0 + $0x8] sm:$0xff] }
 0x5eb   :  { %1813 = vmatpush.bf16.msra.mxu0 %v12017_v0  ;;  %v1035_v0 = vor.u32 1.1754944e-38, %v1034_v51 }
 0x5ec   :  { %v1013_v59 = vadd.f32 %v11311_v38, %v1012_v21 }
 0x5ed   :  { %v1036_v3 = vsel %vm1033_vm14, %v1035_v0, %v1031_v5  ;;  %v8652_v5 = vld [vmem:[%s14799_s5 + $0x280] sm:$0xf] }
 0x5ee   :  { %v1017_v41 = vsel %vm1016_vm9, %v11311_v38, %v1013_v59  ;;  %v1052_v8 = vmul.f32 %v11987_v17, %v1036_v3  ;;  %v10840_v0 = vld [vmem:[%s14799_s5 + $0x2bc] sm:$0xf0]  ;;  %v10832_v3 = vld [vmem:[%s14799_s5 + $0x284] sm:$0xf] }
 0x5ef   :  { %v1022_v43 = vsel %vm1019_vm11, %v1021_v60, %v1017_v41 }
 0x5f0   :  { %v1051_v4 = vmul.f32 %v12005_v48, %v1022_v43 }
 0x5f2   :  { %8326 = vmatmul.msk.f32.vlgmr.msrb.gmra.mxu0 %vm668_vm2, %v1051_v4 }
 0x5fa   :  { %8328 = vmatmul.msk.f32.vlgmr.msra.gmra.mxu3 %vm668_vm2, %v1052_v8  ;;  %v8654_v8 = vld [vmem:[%s14799_s5 + $0x2c0] sm:$0xf0] }
 0x616   :  { %v1389_v9 = vpop.f32.mrf.mxu0 }
 0x617   :  { %v1392_v48 = vpack.c.bf16 %v1389_v9, %v1389_v9  ;;  %v8660_v9 = vld [vmem:[%s14799_s5 + $0x288] sm:$0xf] }
 0x619   :  { %8305 = vmatmul.msk.bf16.vlgmr.msra.gmra.mxu1 %vm223_vm1, %v1392_v48  ;;  %v10841_v48 = vld [vmem:[%s14799_s5 + $0x2c4] sm:$0xf0] }
 0x61a   :  { %1637 = vmatpush.bf16.msra.mxu1 %v11937_v12 }
 0x61e   :  { %v1467_v10 = vpop.f32.mrf.mxu0 }
 0x626   :  { %v1469_v45 = vpop.f32.mrf.mxu0 }
 0x627   :  { %v8661_v45 = vor.u32 %v10841_v48, %v8660_v9  ;;  %v8334_v9 = vld [vmem:[%s14799_s5 + $0x40] sm:$0xf0]  ;;  %v8340_v48 = vld [vmem:[%s14799_s5 + $0x8] sm:$0xf] }
 0x629   :  { %8316 = vmatmul.msk.bf16.vlgmr.msrb.gmra.mxu1 %vm223_vm1, %v1523_v11  ;;  %v10833_v11 = vld [vmem:[%s14799_s5 + $0x28c] sm:$0xf]  ;;  %2530 = vmatpush.bf16.msrb.mxu3 %v8661_v45 }
 0x62a   :  { %1769 = vmatpush.bf16.msrb.mxu1 %v10750_v7  ;;  %v8653_v7 = vor.u32 %v10840_v0, %v8652_v5  ;;  %v8332_v0 = vld [vmem:[%s14799_s5] sm:$0xf] }
 0x62c   :  { %2502 = vmatpush.bf16.msrb.mxu2 %v8653_v7  ;;  %v10752_v7 = vld [vmem:[%s14799_s5 + $0x4] sm:$0xf] }
 0x62d   :  { %v8337_v45 = vor.u32 %v10752_v7, %v8334_v9  ;;  %v10778_v7 = vld [vmem:[%s14799_s5 + $0xcc] sm:$0xf0] }
 0x62e   :  { %v1595_v17 = vpop.f32.mrf.mxu0 }
 0x636   :  { %v1597_v15 = vpop.f32.mrf.mxu0 }
 0x637   :  { %v8588_v15 = vld [vmem:[%s14799_s5 + $0x200] sm:$0xf] }
 0x665   :  { %v1623_v18 = vpop.f32.mrf.mxu3 }
 0x666   :  { %v1626_v13 = vpack.c.bf16 %v1623_v18, %v1623_v18 }
 0x667   :  { %v1711_v53 = vpop.f32.mrf.mxu0 }
 0x668   :  { %v1714_v19 = vpack.c.bf16 %v1711_v53, %v1711_v53  ;;  %8321 = vmatmul.msk.bf16.vlgmr.msra.gmra.mxu1 %vm223_vm1, %v1626_v13  ;;  %v10824_v13 = vld [vmem:[%s14799_s5 + $0x23c] sm:$0xf0]  ;;  %v10816_v53 = vld [vmem:[%s14799_s5 + $0x204] sm:$0xf] }
 0x66a   :  { %8325 = vmatmul.msk.bf16.vlgmr.msra.gmra.mxu2 %vm223_vm1, %v1714_v19  ;;  %v8590_v19 = vld [vmem:[%s14799_s5 + $0x240] sm:$0xf0] }
 0x66d   :  { %v1683_v20 = vpop.f32.mrf.mxu3 }
 0x66f   :  { %v1755_v12 = vpop.f32.mrf.mxu0 }
 0x670   :  { %v1758_v22 = vpack.c.bf16 %v1755_v12, %v1755_v12  ;;  %v8593_v12 = vor.u32 %v10816_v53, %v8590_v19  ;;  %v10842_v53 = vld [vmem:[%s14799_s5 + $0x2cc] sm:$0xf0]  ;;  %v10834_v19 = vld [vmem:[%s14799_s5 + $0x294] sm:$0xf] }
 0x675   :  { %v1685_v14 = vpop.f32.mrf.mxu3 }
 0x676   :  { %v8596_v14 = vld [vmem:[%s14799_s5 + $0x208] sm:$0xf] }
 0x678   :  { %8327 = vmatmul.msk.bf16.vlgmr.msrb.gmra.mxu1 %vm223_vm1, %v1758_v22  ;;  %v10825_v22 = vld [vmem:[%s14799_s5 + $0x244] sm:$0xf0] }
 0x67d   :  { %v1799_v6 = vpop.f32.mrf.mxu3 }
 0x67e   :  { %v1802_v40 = vpack.c.bf16 %v1799_v6, %v1799_v6  ;;  %v10817_v6 = vld [vmem:[%s14799_s5 + $0x20c] sm:$0xf] }
 0x680   :  { %8329 = vmatmul.msk.bf16.vlgmr.msra.gmra.mxu0 %vm223_vm1, %v1802_v40  ;;  %v8597_v40 = vor.u32 %v10825_v22, %v8596_v14  ;;  %v8676_v22 = vld [vmem:[%s14799_s5 + $0x298] sm:$0xf] }
 0x682   :  { %2531 = vmatpush.bf16.msrb.mxu3 %v8597_v40  ;;  %v10835_v40 = vld [vmem:[%s14799_s5 + $0x29c] sm:$0xf] }
 0x696   :  { %v1414_v23 = vpop.f32.mrf.mxu1 }
 0x697   :  { %v1418_v57 = vadd.f32 %v1414_v23, %v1365_v16  ;;  %v8601_v16 = vor.u32 %v10817_v6, %v8598_v35  ;;  %v8524_v23 = vld [vmem:[%s14799_s5 + $0x180] sm:$0xf]  ;;  %v10843_v6 = vld [vmem:[%s14799_s5 + $0x2d4] sm:$0xf0] }
 0x698   :  { %v8677_v35 = vor.u32 %v10843_v6, %v8676_v22 }
 0x699   :  { %v1471_v29 = vadd.f32 %v1467_v10, %v1418_v57  ;;  %v8657_v10 = vor.u32 %v10832_v3, %v8654_v8  ;;  %v10808_v57 = vld [vmem:[%s14799_s5 + $0x1bc] sm:$0xf0] }
 0x69a   :  { %v10760_v3 = vld [vmem:[%s14799_s5 + $0x3c] sm:$0xf0] }
 0x69b   :  { %v1824_v34 = vadd.f32 %v11236_v28, %v1471_v29  ;;  %2516 = vmatpush.bf16.msra.mxu1 %v8657_v10  ;;  %v8525_v29 = vor.u32 %v10808_v57, %v8524_v23  ;;  %v8333_v8 = vor.u32 %v10760_v3, %v8332_v0  ;;  %v10761_v10 = vld [vmem:[%s14799_s5 + $0x44] sm:$0xf0]  ;;  %v8604_v23 = vld [vmem:[%s14799_s5 + $0x210] sm:$0xf] }
 0x69c   :  { %v10826_v57 = vld [vmem:[%s14799_s5 + $0x24c] sm:$0xf0] }
 0x69d   :  { %v1828_v25 = vadd.f32 %v11392_v30, %v1824_v34  ;;  %v8526_v34 = vld [vmem:[%s14799_s5 + $0x1c0] sm:$0xf0]  ;;  %v8532_v30 = vld [vmem:[%s14799_s5 + $0x188] sm:$0xf]  ;;  %v8412_v3 = vld [vmem:[%s14799_s5 + $0x90] sm:$0xf] }
 0x69e   :  { %v1416_v26 = vpop.f32.mrf.mxu1  ;;  %v8413_v9 = vor.u32 %v10778_v7, %v8412_v3  ;;  %v8628_v3 = vld [vmem:[%s14799_s5 + $0x228] sm:$0xf] }
 0x69f   :  { %v1830_v37 = vsel %vm177_vm0, %v1828_v25, 0.0  ;;  %2517 = vmatpush.bf16.msra.mxu1 %v8593_v12  ;;  %v10829_v7 = vld [vmem:[%s14799_s5 + $0x264] sm:$0xf0] }
 0x6a0   :  { %1831 = vadd.xlane.f32.xlu1 %v1830_v37 }
 0x6a6   :  { %v1536_v24 = vpop.f32.mrf.mxu1 }
 0x6a7   :  { %v1553_v27 = vadd.f32 %v11989_v31, %v1536_v24  ;;  %v10801_v24 = vld [vmem:[%s14799_s5 + $0x18c] sm:$0xf] }
 0x6a9   :  { %v1599_v38 = vadd.f32 %v1595_v17, %v1553_v27  ;;  %v8662_v17 = vld [vmem:[%s14799_s5 + $0x2c8] sm:$0xf0]  ;;  %v10792_v27 = vld [vmem:[%s14799_s5 + $0x13c] sm:$0xf0] }
 0x6aa   :  { %v8665_v18 = vor.u32 %v10833_v11, %v8662_v17  ;;  %v8341_v11 = vor.u32 %v10761_v10, %v8340_v48  ;;  %v10753_v17 = vld [vmem:[%s14799_s5 + $0xc] sm:$0xf]  ;;  %v8414_v48 = vld [vmem:[%s14799_s5 + $0xd0] sm:$0xf0]  ;;  %v8420_v10 = vld [vmem:[%s14799_s5 + $0x98] sm:$0xf] }
 0x6ac   :  { %2544 = vmatpush.bf16.msrb.mxu0 %v8665_v18  ;;  %v8668_v18 = vld [vmem:[%s14799_s5 + $0x290] sm:$0xf] }
 0x6ad   :  { %v8669_v12 = vor.u32 %v10842_v53, %v8668_v18  ;;  %v8422_v18 = vld [vmem:[%s14799_s5 + $0xd8] sm:$0xf0] }
 0x6ae   :  { %v1538_v63 = vpop.f32.mrf.mxu1 }
 0x6af   :  { %v8534_v63 = vld [vmem:[%s14799_s5 + $0x1c8] sm:$0xf0] }
 0x6b0   :  { %2545 = vmatpush.bf16.msrb.mxu0 %v8601_v16  ;;  %v8678_v16 = vld [vmem:[%s14799_s5 + $0x2d8] sm:$0xf0] }
 0x6e5   :  { %v1639_v46 = vpop.f32.mrf.mxu1 }
 0x6e6   :  { %v1643_v39 = vadd.f32 %v1639_v46, %v1599_v38  ;;  %v8537_v46 = vor.u32 %v10801_v24, %v8534_v63  ;;  %v10784_v38 = vld [vmem:[%s14799_s5 + $0x104] sm:$0xf]  ;;  %v10819_v24 = vld [vmem:[%s14799_s5 + $0x21c] sm:$0xf] }
 0x6e7   :  { %v8614_v63 = vld [vmem:[%s14799_s5 + $0x258] sm:$0xf0] }
 0x6e8   :  { %v1687_v44 = vadd.f32 %v1683_v20, %v1643_v39  ;;  %v8589_v20 = vor.u32 %v10824_v13, %v8588_v15  ;;  %2546 = vmatpush.bf16.msrb.mxu0 %v8537_v46  ;;  %v8342_v15 = vld [vmem:[%s14799_s5 + $0x48] sm:$0xf0] }
 0x6e9   :  { %v8345_v13 = vor.u32 %v10753_v17, %v8342_v15  ;;  %v10771_v15 = vld [vmem:[%s14799_s5 + $0x9c] sm:$0xf] }
 0x6ea   :  { %2503 = vmatpush.bf16.msrb.mxu2 %v8589_v20  ;;  %v8670_v20 = vld [vmem:[%s14799_s5 + $0x2d0] sm:$0xf0] }
 0x6eb   :  { %v8673_v14 = vor.u32 %v10834_v19, %v8670_v20  ;;  %v8348_v20 = vld [vmem:[%s14799_s5 + $0x10] sm:$0xf] }
 0x6ed   :  { %v1641_v32 = vpop.f32.mrf.mxu1  ;;  %v1727_v36 = vpop.f32.mrf.mxu2 }
 0x6ee   :  { %v1731_v49 = vadd.f32 %v1727_v36, %v1687_v44  ;;  %2504 = vmatpush.bf16.msrb.mxu2 %v8525_v29  ;;  %v8460_v36 = vld [vmem:[%s14799_s5 + $0x100] sm:$0xf]  ;;  %v10793_v44 = vld [vmem:[%s14799_s5 + $0x144] sm:$0xf0]  ;;  %v8605_v29 = vor.u32 %v10826_v57, %v8604_v23  ;;  %v10763_v23 = vld [vmem:[%s14799_s5 + $0x54] sm:$0xf0] }
 0x6ef   :  { %v8461_v39 = vor.u32 %v10792_v27, %v8460_v36  ;;  %v8540_v36 = vld [vmem:[%s14799_s5 + $0x190] sm:$0xf]  ;;  %v10755_v57 = vld [vmem:[%s14799_s5 + $0x1c] sm:$0xf] }
 0x6f0   :  { %v10810_v27 = vld [vmem:[%s14799_s5 + $0x1cc] sm:$0xf0] }
 0x6f2   :  { %2505 = vmatpush.bf16.msrb.mxu2 %v8461_v39  ;;  %v8541_v39 = vor.u32 %v10810_v27, %v8540_v36 }
 0x6f5   :  { %v1729_v33 = vpop.f32.mrf.mxu2  ;;  %v1771_v47 = vpop.f32.mrf.mxu1 }
 0x6f6   :  { %v1775_v42 = vadd.f32 %v1771_v47, %v1731_v49  ;;  %v8462_v33 = vld [vmem:[%s14799_s5 + $0x140] sm:$0xf0]  ;;  %v8468_v47 = vld [vmem:[%s14799_s5 + $0x108] sm:$0xf] }
 0x6f7   :  { %v8465_v49 = vor.u32 %v10784_v38, %v8462_v33  ;;  %v10802_v38 = vld [vmem:[%s14799_s5 + $0x194] sm:$0xf] }
 0x6f8   :  { %v8542_v33 = vld [vmem:[%s14799_s5 + $0x1d0] sm:$0xf0] }
 0x6fd   :  { %v1773_v1 = vpop.f32.mrf.mxu1  ;;  %v1815_v50 = vpop.f32.mrf.mxu0 }
 0x6fe   :  { %v1819_v61 = vadd.f32 %v1815_v50, %v1775_v42  ;;  %v8469_v42 = vor.u32 %v10793_v44, %v8468_v47  ;;  %v10785_v1 = vld [vmem:[%s14799_s5 + $0x10c] sm:$0xf]  ;;  %v8548_v47 = vld [vmem:[%s14799_s5 + $0x198] sm:$0xf] }
 0x6ff   :  { %v8470_v50 = vld [vmem:[%s14799_s5 + $0x148] sm:$0xf0]  ;;  %v10811_v44 = vld [vmem:[%s14799_s5 + $0x1d4] sm:$0xf0] }
 0x700   :  { %v1825_v52 = vadd.f32 %v11236_v28, %v1819_v61  ;;  %v10800_v28 = vld [vmem:[%s14799_s5 + $0x184] sm:$0xf] }
 0x701   :  { %v8529_v26 = vor.u32 %v10800_v28, %v8526_v34  ;;  %v8681_v28 = vor.u32 %v10835_v40, %v8678_v16  ;;  %v10818_v34 = vld [vmem:[%s14799_s5 + $0x214] sm:$0xf] }
 0x702   :  { %v1829_v55 = vadd.f32 %v11393_v54, %v1825_v52  ;;  %v8473_v52 = vor.u32 %v10785_v1, %v8470_v50  ;;  %v8396_v54 = vld [vmem:[%s14799_s5 + $0x80] sm:$0xf]  ;;  %v10803_v1 = vld [vmem:[%s14799_s5 + $0x19c] sm:$0xf]  ;;  %v8350_v40 = vld [vmem:[%s14799_s5 + $0x50] sm:$0xf0] }
 0x703   :  { %2518 = vmatpush.bf16.msra.mxu1 %v8529_v26  ;;  %v8550_v50 = vld [vmem:[%s14799_s5 + $0x1d8] sm:$0xf0] }
 0x704   :  { %v1833_v58 = vsel %vm177_vm0, %v1829_v55, 0.0  ;;  %2547 = vmatpush.bf16.msrb.mxu0 %v8473_v52  ;;  %v8476_v52 = vld [vmem:[%s14799_s5 + $0x110] sm:$0xf] }
 0x705   :  { %1834 = vadd.xlane.f32.xlu2 %v1833_v58  ;;  %v1817_v31 = vpop.f32.mrf.mxu0  ;;  %v10768_v58 = vld [vmem:[%s14799_s5 + $0x84] sm:$0xf] }
 0x707   :  { %2519 = vmatpush.bf16.msra.mxu1 %v8465_v49  ;;  %v8545_v49 = vor.u32 %v10802_v38, %v8542_v33  ;;  %v11237_v38 = vld [vmem:[%s14803_s9] ss:$0 sm:$0xff] }
 0x713   :  { %v1832_v21 = vpop.xlane.xlu1 %1831 }
 0x714   :  { %v1836_v56 = vmul.f32 0.010416667, %v1832_v21  ;;  %v8398_v21 = vld [vmem:[%s14799_s5 + $0xc0] sm:$0xf0] }
 0x716   :  { %v12074_v59 = vsub.f32 %v1828_v25, %v1836_v56  ;;  %v10809_v25 = vld [vmem:[%s14799_s5 + $0x1c4] sm:$0xf0] }
 0x717   :  { %v8533_v37 = vor.u32 %v10809_v25, %v8532_v30  ;;  %v8404_v56 = vld [vmem:[%s14799_s5 + $0x88] sm:$0xf]  ;;  %v8606_v30 = vld [vmem:[%s14799_s5 + $0x250] sm:$0xf0]  ;;  %v8612_v25 = vld [vmem:[%s14799_s5 + $0x218] sm:$0xf] }
 0x718   :  { %v1840_v60 = vmul.f32 %v12074_v59, %v12074_v59  ;;  %v8609_v26 = vor.u32 %v10818_v34, %v8606_v30 }
 0x719   :  { %2532 = vmatpush.bf16.msrb.mxu3 %v8533_v37  ;;  %v10827_v37 = vld [vmem:[%s14799_s5 + $0x254] sm:$0xf0] }
 0x71a   :  { %v1842_v62 = vsel %vm177_vm0, %v1840_v60, 0.0  ;;  %v10777_v60 = vld [vmem:[%s14799_s5 + $0xc4] sm:$0xf0]  ;;  %v8613_v46 = vor.u32 %v10827_v37, %v8612_v25 }
 0x71b   :  { %1843 = vadd.xlane.f32.xlu0 %v1842_v62  ;;  %v8401_v62 = vor.u32 %v10768_v58, %v8398_v21  ;;  %v8478_v21 = vld [vmem:[%s14799_s5 + $0x150] sm:$0xf0] }
 0x71d   :  { %2533 = vmatpush.bf16.msrb.mxu3 %v8469_v42  ;;  %2520 = vmatpush.bf16.msra.mxu1 %v8401_v62  ;;  %v8549_v42 = vor.u32 %v10811_v44, %v8548_v47 }
 0x721   :  { %2521 = vmatpush.bf16.msra.mxu1 %v8337_v45  ;;  %v10779_v45 = vld [vmem:[%s14799_s5 + $0xd4] sm:$0xf0] }
 0x722   :  { %v8421_v17 = vor.u32 %v10779_v45, %v8420_v10  ;;  %v8556_v45 = vld [vmem:[%s14799_s5 + $0x1a0] sm:$0xf] }
 0x725   :  { %2572 = vmatpush.bf16.msrb.mxu1 %v8673_v14  ;;  %v10754_v14 = vld [vmem:[%s14799_s5 + $0x14] sm:$0xf] }
 0x726   :  { %v8353_v16 = vor.u32 %v10754_v14, %v8350_v40  ;;  %v10796_v40 = vld [vmem:[%s14799_s5 + $0x15c] sm:$0xf0] }
 0x729   :  { %2573 = vmatpush.bf16.msrb.mxu1 %v8609_v26 }
 0x72d   :  { %2574 = vmatpush.bf16.msrb.mxu1 %v8545_v49 }
 0x778   :  { %v1835_v41 = vpop.xlane.xlu2 %1834 }
 0x779   :  { %v1837_v51 = vmul.f32 0.010416667, %v1835_v41  ;;  %v8405_v41 = vor.u32 %v10777_v60, %v8404_v56  ;;  %v8484_v56 = vld [vmem:[%s14799_s5 + $0x118] sm:$0xf] }
 0x77a   :  { %v10795_v60 = vld [vmem:[%s14799_s5 + $0x154] sm:$0xf0] }
 0x77b   :  { %v12079_v43 = vsub.f32 %v1829_v55, %v1837_v51  ;;  %v10776_v55 = vld [vmem:[%s14799_s5 + $0xbc] sm:$0xf0]  ;;  %v10769_v51 = vld [vmem:[%s14799_s5 + $0x8c] sm:$0xf]  ;;  %2534 = vmatpush.bf16.msrb.mxu3 %v8405_v41  ;;  %v8485_v41 = vor.u32 %v10795_v60, %v8484_v56 }
 0x77c   :  { %v8397_v31 = vor.u32 %v10776_v55, %v8396_v54  ;;  %v10794_v54 = vld [vmem:[%s14799_s5 + $0x14c] sm:$0xf0]  ;;  %v10786_v55 = vld [vmem:[%s14799_s5 + $0x114] sm:$0xf] }
 0x77d   :  { %v1841_v2 = vmul.f32 %v12079_v43, %v12079_v43  ;;  %v8481_v62 = vor.u32 %v10786_v55, %v8478_v21  ;;  %v10845_v55 = vld [vmem:[%s14799_s5 + $0x2e4] sm:$0xf0] }
 0x77e   :  { %2506 = vmatpush.bf16.msrb.mxu2 %v8397_v31  ;;  %v8477_v31 = vor.u32 %v10794_v54, %v8476_v52 }
 0x77f   :  { %v1845_v4 = vsel %vm177_vm0, %v1841_v2, 0.0  ;;  %v8406_v2 = vld [vmem:[%s14799_s5 + $0xc8] sm:$0xf0]  ;;  %2535 = vmatpush.bf16.msrb.mxu3 %v8341_v11  ;;  %2575 = vmatpush.bf16.msrb.mxu1 %v8481_v62  ;;  %v8620_v62 = vld [vmem:[%s14799_s5 + $0x220] sm:$0xf] }
 0x780   :  { %1846 = vadd.xlane.f32.xlu0 %v1845_v4  ;;  %v8409_v5 = vor.u32 %v10769_v51, %v8406_v2  ;;  %v10787_v51 = vld [vmem:[%s14799_s5 + $0x11c] sm:$0xf] }
 0x781   :  { %v8486_v2 = vld [vmem:[%s14799_s5 + $0x158] sm:$0xf0] }
 0x782   :  { %2548 = vmatpush.bf16.msrb.mxu0 %v8409_v5  ;;  %2507 = vmatpush.bf16.msrb.mxu2 %v8333_v8  ;;  %v8489_v5 = vor.u32 %v10787_v51, %v8486_v2  ;;  %v10770_v8 = vld [vmem:[%s14799_s5 + $0x94] sm:$0xf] }
 0x783   :  { %2586 = vmatpush.bf16.msra.mxu3 %v8677_v35  ;;  %v8417_v11 = vor.u32 %v10770_v8, %v8414_v48  ;;  %v8356_v35 = vld [vmem:[%s14799_s5 + $0x18] sm:$0xf]  ;;  %v10821_v8 = vld [vmem:[%s14799_s5 + $0x22c] sm:$0xf] }
 0x784   :  { %v8357_v34 = vor.u32 %v10763_v23, %v8356_v35  ;;  %v10788_v23 = vld [vmem:[%s14799_s5 + $0x124] sm:$0xf] }
 0x785   :  { %2576 = vmatpush.bf16.msrb.mxu1 %v8417_v11  ;;  %v10812_v11 = vld [vmem:[%s14799_s5 + $0x1dc] sm:$0xf0] }
 0x786   :  { %2549 = vmatpush.bf16.msrb.mxu0 %v8345_v13  ;;  %2558 = vmatpush.bf16.msra.mxu2 %v8669_v12  ;;  %v8425_v13 = vor.u32 %v10771_v15, %v8422_v18  ;;  %v10762_v12 = vld [vmem:[%s14799_s5 + $0x4c] sm:$0xf0]  ;;  %v10804_v18 = vld [vmem:[%s14799_s5 + $0x1a4] sm:$0xf]  ;;  %v8557_v14 = vor.u32 %v10812_v11, %v8556_v45 }
 0x787   :  { %2587 = vmatpush.bf16.msra.mxu3 %v8613_v46  ;;  %v8349_v6 = vor.u32 %v10762_v12, %v8348_v20  ;;  %v10805_v20 = vld [vmem:[%s14799_s5 + $0x1ac] sm:$0xf]  ;;  %v10830_v45 = vld [vmem:[%s14799_s5 + $0x26c] sm:$0xf0] }
 0x788   :  { %v8566_v12 = vld [vmem:[%s14799_s5 + $0x1e8] sm:$0xf0] }
 0x789   :  { %2577 = vmatpush.bf16.msrb.mxu1 %v8353_v16  ;;  %v8569_v16 = vor.u32 %v10805_v20, %v8566_v12  ;;  %v8646_v20 = vld [vmem:[%s14799_s5 + $0x278] sm:$0xf0] }
 0x78a   :  { %2600 = vmatpush.bf16.msra.mxu0 %v8681_v28  ;;  %2559 = vmatpush.bf16.msra.mxu2 %v8605_v29  ;;  %v8358_v28 = vld [vmem:[%s14799_s5 + $0x58] sm:$0xf0] }
 0x78b   :  { %2588 = vmatpush.bf16.msra.mxu3 %v8549_v42  ;;  %v8361_v30 = vor.u32 %v10755_v57, %v8358_v28  ;;  %v8494_v57 = vld [vmem:[%s14799_s5 + $0x160] sm:$0xf0]  ;;  %v8500_v28 = vld [vmem:[%s14799_s5 + $0x128] sm:$0xf] }
 0x78e   :  { %v1844_v32 = vpop.xlane.xlu0 %1843  ;;  %2560 = vmatpush.bf16.msra.mxu2 %v8541_v39 }
 0x78f   :  { %v1848_v61 = vmul.f32 0.010416667, %v1844_v32  ;;  %v8617_v32 = vor.u32 %v10819_v24, %v8614_v63  ;;  %2589 = vmatpush.bf16.msra.mxu3 %v8485_v41  ;;  %v10828_v41 = vld [vmem:[%s14799_s5 + $0x25c] sm:$0xf0] }
 0x790   :  { %v8621_v48 = vor.u32 %v10828_v41, %v8620_v62  ;;  %v8702_v62 = vld [vmem:[%s14799_s5 + $0x2f0] sm:$0xf0]  ;;  %v8708_v41 = vld [vmem:[%s14799_s5 + $0x2b8] sm:$0xf] }
 0x791   :  { %v12204_v4 = vadd.f32 1e-05, %v1848_v61  ;;  %2601 = vmatpush.bf16.msra.mxu0 %v8617_v32  ;;  %v8553_v61 = vor.u32 %v10803_v1, %v8550_v50  ;;  %v8684_v1 = vld [vmem:[%s14799_s5 + $0x2a0] sm:$0xf]  ;;  %v10836_v50 = vld [vmem:[%s14799_s5 + $0x2a4] sm:$0xf] }
 0x792   :  { %2561 = vmatpush.bf16.msra.mxu2 %v8477_v31  ;;  %v8694_v31 = vld [vmem:[%s14799_s5 + $0x2e8] sm:$0xf0] }
 0x793   :  { %11312 = vrsqrt.f32 %v12204_v4  ;;  %2590 = vmatpush.bf16.msra.mxu3 %v8421_v17  ;;  %vm1858_vm3 = vweird.f32 %v12204_v4  ;;  %v8629_v17 = vor.u32 %v10829_v7, %v8628_v3  ;;  %v8710_v3 = vld [vmem:[%s14799_s5 + $0x2f8] sm:$0xf0] }
 0x795   :  { %2602 = vmatpush.bf16.msra.mxu0 %v8553_v61  ;;  %v8686_v61 = vld [vmem:[%s14799_s5 + $0x2e0] sm:$0xf0] }
 0x796   :  { %2562 = vmatpush.bf16.msra.mxu2 %v8413_v9  ;;  %v8689_v60 = vor.u32 %v10836_v50, %v8686_v61  ;;  %v8630_v9 = vld [vmem:[%s14799_s5 + $0x268] sm:$0xf0]  ;;  %v8372_v61 = vld [vmem:[%s14799_s5 + $0x28] sm:$0xf] }
 0x797   :  { %2591 = vmatpush.bf16.msra.mxu3 %v8357_v34  ;;  %v8633_v15 = vor.u32 %v10821_v8, %v8630_v9  ;;  %v10789_v34 = vld [vmem:[%s14799_s5 + $0x12c] sm:$0xf] }
 0x799   :  { %v12312_v58 = vpop.eup %11312  ;;  %2603 = vmatpush.bf16.msra.mxu0 %v8489_v5  ;;  %v10820_v5 = vld [vmem:[%s14799_s5 + $0x224] sm:$0xf] }
 0x79a   :  { %v1853_v0 = vmul.f32 %v12312_v58, %v12204_v4  ;;  %2563 = vmatpush.bf16.msra.mxu2 %v8349_v6  ;;  %vm1859_vm15 = vweird.f32 %v12312_v58  ;;  %v11238_v4 = vld [vmem:[%s14804_s10] ss:$0 sm:$0xff] }
 0x79b   :  { %vm1860_vm4 = vmor %vm1858_vm3, %vm1859_vm15  ;;  %v8492_v6 = vld [vmem:[%s14799_s5 + $0x120] sm:$0xf] }
 0x79c   :  { %v1854_v53 = vmul.f32 %v12312_v58, %v1853_v0  ;;  %v8622_v0 = vld [vmem:[%s14799_s5 + $0x260] sm:$0xf0] }
 0x79d   :  { %2604 = vmatpush.bf16.msra.mxu0 %v8425_v13  ;;  %v8625_v10 = vor.u32 %v10820_v5, %v8622_v0  ;;  %v8558_v13 = vld [vmem:[%s14799_s5 + $0x1e0] sm:$0xf0]  ;;  %v10847_v5 = vld [vmem:[%s14799_s5 + $0x2f4] sm:$0xf0]  ;;  %v10839_v0 = vld [vmem:[%s14799_s5 + $0x2bc] sm:$0xf] }
 0x79e   :  { %v1855_v25 = vmul.f32 0.5, %v1854_v53  ;;  %v8564_v53 = vld [vmem:[%s14799_s5 + $0x1a8] sm:$0xf]  ;;  %v8709_v11 = vor.u32 %v10847_v5, %v8708_v41  ;;  %v8388_v5 = vld [vmem:[%s14799_s5 + $0x38] sm:$0xf] }
 0x7a0   :  { %v1856_v26 = vsub.f32 1.5, %v1855_v25  ;;  %v8493_v25 = vor.u32 %v10796_v40, %v8492_v6  ;;  %v8572_v40 = vld [vmem:[%s14799_s5 + $0x1b0] sm:$0xf] }
 0x7a1   :  { %2605 = vmatpush.bf16.msra.mxu0 %v8361_v30  ;;  %v8502_v30 = vld [vmem:[%s14799_s5 + $0x168] sm:$0xf0] }
 0x7a2   :  { %v1857_v24 = vmul.f32 %v12312_v58, %v1856_v26  ;;  %v8497_v26 = vor.u32 %v10788_v23, %v8494_v57  ;;  %v8574_v23 = vld [vmem:[%s14799_s5 + $0x1f0] sm:$0xf0]  ;;  %v8580_v57 = vld [vmem:[%s14799_s5 + $0x1b8] sm:$0xf] }
 0x7a4   :  { %v1861_v32 = vsel %vm1860_vm4, %v12312_v58, %v1857_v24  ;;  %v10837_v58 = vld [vmem:[%s14799_s5 + $0x2ac] sm:$0xf]  ;;  %v10780_v24 = vld [vmem:[%s14799_s5 + $0xdc] sm:$0xf0] }
 0x7a5   :  { %v1872_v39 = vmul.f32 %v1861_v32, %v12074_v59  ;;  %v10844_v59 = vld [vmem:[%s14799_s5 + $0x2dc] sm:$0xf0]  ;;  %v8697_v2 = vor.u32 %v10837_v58, %v8694_v31  ;;  %v10772_v32 = vld [vmem:[%s14799_s5 + $0xa4] sm:$0xf]  ;;  %v8374_v58 = vld [vmem:[%s14799_s5 + $0x68] sm:$0xf0] }
 0x7a6   :  { %v8685_v56 = vor.u32 %v10844_v59, %v8684_v1  ;;  %v8366_v1 = vld [vmem:[%s14799_s5 + $0x60] sm:$0xf0]  ;;  %v8700_v31 = vld [vmem:[%s14799_s5 + $0x2b0] sm:$0xf] }
 0x7a7   :  { %v1877_v44 = vmul.f32 %v11237_v38, %v1872_v39  ;;  %v10773_v39 = vld [vmem:[%s14799_s5 + $0xac] sm:$0xf] }
 0x7a9   :  { %v12407_v52 = vadd.f32 %v11238_v4, %v1877_v44 }
 0x7f3   :  { %v1847_v19 = vpop.xlane.xlu0 %1846 }
 0x7f4   :  { %v1849_v22 = vmul.f32 0.010416667, %v1847_v19  ;;  %v10813_v19 = vld [vmem:[%s14799_s5 + $0x1e4] sm:$0xf0] }
 0x7f5   :  { %v8565_v35 = vor.u32 %v10813_v19, %v8564_v53  ;;  %v10831_v53 = vld [vmem:[%s14799_s5 + $0x274] sm:$0xf0]  ;;  %v10823_v19 = vld [vmem:[%s14799_s5 + $0x23c] sm:$0xf] }
 0x7f6   :  { %v1851_v29 = vadd.f32 1e-05, %v1849_v22  ;;  %v8561_v22 = vor.u32 %v10804_v18, %v8558_v13  ;;  %v8638_v18 = vld [vmem:[%s14799_s5 + $0x270] sm:$0xf0]  ;;  %v8644_v13 = vld [vmem:[%s14799_s5 + $0x238] sm:$0xf]  ;;  %v8649_v6 = vor.u32 %v10823_v19, %v8646_v20 }
 0x7f7   :  { %v10870_v19 = vld [vmem:[%s14801_s7 + $0xb0] sm:$0xff]  ;;  %v10861_v20 = vld [vmem:[%s14801_s7 + $0x68] sm:$0xff] }
 0x7f8   :  { %11314 = vrsqrt.f32 %v1851_v29  ;;  %vm1868_vm6 = vweird.f32 %v1851_v29 }
 0x7fe   :  { %v11315_v37 = vpop.eup %11314 }
 0x7ff   :  { %v1863_v63 = vmul.f32 %v11315_v37, %v1851_v29  ;;  %vm1869_vm5 = vweird.f32 %v11315_v37  ;;  %v10797_v29 = vld [vmem:[%s14799_s5 + $0x164] sm:$0xf0] }
 0x800   :  { %vm1870_vm7 = vmor %vm1868_vm6, %vm1869_vm5 }
 0x801   :  { %v1864_v46 = vmul.f32 %v11315_v37, %v1863_v63  ;;  %v8501_v63 = vor.u32 %v10797_v29, %v8500_v28  ;;  %v10815_v28 = vld [vmem:[%s14799_s5 + $0x1f4] sm:$0xf0]  ;;  %v10807_v29 = vld [vmem:[%s14799_s5 + $0x1bc] sm:$0xf] }
 0x803   :  { %v1865_v36 = vmul.f32 0.5, %v1864_v46  ;;  %v8505_v46 = vor.u32 %v10789_v34, %v8502_v30  ;;  %v8582_v34 = vld [vmem:[%s14799_s5 + $0x1f8] sm:$0xf0] }
 0x805   :  { %v1866_v27 = vsub.f32 1.5, %v1865_v36  ;;  %v8430_v36 = vld [vmem:[%s14799_s5 + $0xe0] sm:$0xf0] }
 0x806   :  { %v8433_v44 = vor.u32 %v10772_v32, %v8430_v36  ;;  %v8510_v32 = vld [vmem:[%s14799_s5 + $0x170] sm:$0xf0]  ;;  %v8516_v36 = vld [vmem:[%s14799_s5 + $0x138] sm:$0xf] }
 0x807   :  { %v1867_v33 = vmul.f32 %v11315_v37, %v1866_v27  ;;  %v8436_v27 = vld [vmem:[%s14799_s5 + $0xa8] sm:$0xf] }
 0x809   :  { %v1871_v47 = vsel %vm1870_vm7, %v11315_v37, %v1867_v33  ;;  %v8428_v37 = vld [vmem:[%s14799_s5 + $0xa0] sm:$0xf]  ;;  %v8438_v33 = vld [vmem:[%s14799_s5 + $0xe8] sm:$0xf0] }
 0x80a   :  { %v1873_v49 = vmul.f32 %v1871_v47, %v12079_v43  ;;  %v8692_v43 = vld [vmem:[%s14799_s5 + $0x2a8] sm:$0xf]  ;;  %v8364_v47 = vld [vmem:[%s14799_s5 + $0x20] sm:$0xf]  ;;  %v8441_v50 = vor.u32 %v10773_v39, %v8438_v33  ;;  %v8518_v39 = vld [vmem:[%s14799_s5 + $0x178] sm:$0xf0] }
 0x80b   :  { %v8693_v51 = vor.u32 %v10845_v55, %v8692_v43  ;;  %v10765_v43 = vld [vmem:[%s14799_s5 + $0x64] sm:$0xf0]  ;;  %v10757_v55 = vld [vmem:[%s14799_s5 + $0x2c] sm:$0xf] }
 0x80c   :  { %v1878_v42 = vmul.f32 %v11237_v38, %v1873_v49  ;;  %v10781_v38 = vld [vmem:[%s14799_s5 + $0xe4] sm:$0xf0]  ;;  %v10764_v49 = vld [vmem:[%s14799_s5 + $0x5c] sm:$0xf0]  ;;  %v8373_v7 = vor.u32 %v10765_v43, %v8372_v61  ;;  %v8377_v8 = vor.u32 %v10757_v55, %v8374_v58  ;;  %v10783_v61 = vld [vmem:[%s14799_s5 + $0xf4] sm:$0xf0] }
 0x80d   :  { %v8437_v59 = vor.u32 %v10781_v38, %v8436_v27  ;;  %v10799_v27 = vld [vmem:[%s14799_s5 + $0x174] sm:$0xf0]  ;;  %v10791_v38 = vld [vmem:[%s14799_s5 + $0x13c] sm:$0xf] }
 0x80e   :  { %v12409_v54 = vadd.f32 %v11238_v4, %v1878_v42  ;;  %v8429_v4 = vor.u32 %v10780_v24, %v8428_v37  ;;  %v10756_v42 = vld [vmem:[%s14799_s5 + $0x24] sm:$0xf]  ;;  %v10798_v37 = vld [vmem:[%s14799_s5 + $0x16c] sm:$0xf0]  ;;  %v8581_v24 = vor.u32 %v10815_v28, %v8580_v57  ;;  %v10775_v43 = vld [vmem:[%s14799_s5 + $0xbc] sm:$0xf] }
 0x80f   :  { %v8454_v55 = vld [vmem:[%s14799_s5 + $0xf8] sm:$0xf0] }
 0x810   :  { %v12422_v21 = vpack.c.bf16 %v12409_v54, %v12407_v52  ;;  %v8457_v41 = vor.u32 %v10775_v43, %v8454_v55  ;;  %v10851_v57 = vld [vmem:[%s14801_s7 + $0x18] sm:$0xff]  ;;  %v10885_v43 = vld [vmem:[%s14801_s7 + $0x128] sm:$0xff] }
 0x811   :  { %v10867_v28 = vld [vmem:[%s14801_s7 + $0x98] sm:$0xff]  ;;  %v10901_v55 = vld [vmem:[%s14801_s7 + $0x1a8] sm:$0xff] }
 0x812   :  { %8714 = vmatmul.msk.bf16.vlgmr.msrb.gmra.mxu2 %vm177_vm0, %v12422_v21  ;;  %8715 = vmatmul.msk.bf16.vlgmr.msra.gmra.mxu1 %vm177_vm0, %v12422_v21 }
 0x813   :  { %8716 = vmatmul.msk.bf16.vlgmr.msrb.gmra.mxu3 %vm177_vm0, %v12422_v21  ;;  %8717 = vmatmul.msk.bf16.vlgmr.msrb.gmra.mxu0 %vm177_vm0, %v12422_v21 }
 0x814   :  { %2614 = vmatpush.bf16.msrb.mxu2 %v8685_v56  ;;  %2628 = vmatpush.bf16.msra.mxu1 %v8689_v60  ;;  %v10846_v56 = vld [vmem:[%s14799_s5 + $0x2ec] sm:$0xf0]  ;;  %v10838_v60 = vld [vmem:[%s14799_s5 + $0x2b4] sm:$0xf] }
 0x815   :  { %2642 = vmatpush.bf16.msrb.mxu3 %v8693_v51  ;;  %2656 = vmatpush.bf16.msrb.mxu0 %v8697_v2  ;;  %v8365_v51 = vor.u32 %v10764_v49, %v8364_v47  ;;  %v8369_v2 = vor.u32 %v10756_v42, %v8366_v1  ;;  %v8701_v9 = vor.u32 %v10846_v56, %v8700_v31  ;;  %v10774_v1 = vld [vmem:[%s14799_s5 + $0xb4] sm:$0xf]  ;;  %v8380_v56 = vld [vmem:[%s14799_s5 + $0x30] sm:$0xf] }
 0x816   :  { %v8517_v49 = vor.u32 %v10799_v27, %v8516_v36  ;;  %v8521_v42 = vor.u32 %v10791_v38, %v8518_v39  ;;  %v10895_v36 = vld [vmem:[%s14801_s7 + $0x178] sm:$0xff]  ;;  %v10848_v38 = vld [vmem:[%s14801_s7] sm:$0xff] }
 0x817   :  { %v10911_v27 = vld [vmem:[%s14801_s7 + $0x1f8] sm:$0xff]  ;;  %v10864_v39 = vld [vmem:[%s14801_s7 + $0x80] sm:$0xff] }
 0x818   :  { %2615 = vmatpush.bf16.msrb.mxu2 %v8621_v48  ;;  %2629 = vmatpush.bf16.msra.mxu1 %v8625_v10  ;;  %v8705_v48 = vor.u32 %v10838_v60, %v8702_v62  ;;  %v8636_v10 = vld [vmem:[%s14799_s5 + $0x230] sm:$0xf] }
 0x819   :  { %2643 = vmatpush.bf16.msrb.mxu3 %v8629_v17  ;;  %2657 = vmatpush.bf16.msrb.mxu0 %v8633_v15  ;;  %v8713_v17 = vor.u32 %v10839_v0, %v8710_v3  ;;  %v10822_v15 = vld [vmem:[%s14799_s5 + $0x234] sm:$0xf]  ;;  %v8637_v12 = vor.u32 %v10830_v45, %v8636_v10  ;;  %v10766_v60 = vld [vmem:[%s14799_s5 + $0x6c] sm:$0xf0]  ;;  %v10767_v0 = vld [vmem:[%s14799_s5 + $0x74] sm:$0xf0] }
 0x81a   :  { %v10759_v3 = vld [vmem:[%s14799_s5 + $0x3c] sm:$0xf] }
 0x81b   :  { %v10863_v45 = vld [vmem:[%s14801_s7 + $0x78] sm:$0xff] }
 0x81c   :  { %2616 = vmatpush.bf16.msrb.mxu2 %v8557_v14  ;;  %2630 = vmatpush.bf16.msra.mxu1 %v8561_v22  ;;  %v8641_v14 = vor.u32 %v10822_v15, %v8638_v18  ;;  %v8645_v22 = vor.u32 %v10831_v53, %v8644_v13  ;;  %v10871_v15 = vld [vmem:[%s14801_s7 + $0xb8] sm:$0xff]  ;;  %v10862_v18 = vld [vmem:[%s14801_s7 + $0x70] sm:$0xff] }
 0x81d   :  { %2644 = vmatpush.bf16.msrb.mxu3 %v8565_v35  ;;  %2658 = vmatpush.bf16.msrb.mxu0 %v8569_v16  ;;  %v10814_v35 = vld [vmem:[%s14799_s5 + $0x1ec] sm:$0xf0]  ;;  %v10806_v16 = vld [vmem:[%s14799_s5 + $0x1b4] sm:$0xf] }
 0x81e   :  { %v8573_v30 = vor.u32 %v10814_v35, %v8572_v40  ;;  %v10878_v13 = vld [vmem:[%s14801_s7 + $0xf0] sm:$0xff]  ;;  %v10852_v40 = vld [vmem:[%s14801_s7 + $0x20] sm:$0xff] }
 0x81f   :  { %v10854_v53 = vld [vmem:[%s14801_s7 + $0x30] sm:$0xff]  ;;  %v10868_v35 = vld [vmem:[%s14801_s7 + $0xa0] sm:$0xff] }
 0x820   :  { %2617 = vmatpush.bf16.msrb.mxu2 %v8493_v25  ;;  %2631 = vmatpush.bf16.msra.mxu1 %v8497_v26  ;;  %v8577_v25 = vor.u32 %v10806_v16, %v8574_v23  ;;  %v8508_v26 = vld [vmem:[%s14799_s5 + $0x130] sm:$0xf]  ;;  %v10859_v16 = vld [vmem:[%s14801_s7 + $0x58] sm:$0xff] }
 0x821   :  { %2645 = vmatpush.bf16.msrb.mxu3 %v8501_v63  ;;  %2659 = vmatpush.bf16.msrb.mxu0 %v8505_v46  ;;  %v8585_v63 = vor.u32 %v10807_v29, %v8582_v34  ;;  %v10790_v46 = vld [vmem:[%s14799_s5 + $0x134] sm:$0xf]  ;;  %v8509_v33 = vor.u32 %v10798_v37, %v8508_v26  ;;  %v10875_v23 = vld [vmem:[%s14801_s7 + $0xd8] sm:$0xff]  ;;  %v10857_v26 = vld [vmem:[%s14801_s7 + $0x48] sm:$0xff] }
 0x822   :  { %8718 = vmatmul.msk.bf16.vlgmr.msra.gmra.mxu2 %vm177_vm0, %v12422_v21  ;;  %8719 = vmatmul.msk.bf16.vlgmr.msrb.gmra.mxu1 %vm177_vm0, %v12422_v21  ;;  %v8513_v47 = vor.u32 %v10790_v46, %v8510_v32  ;;  %v10858_v29 = vld [vmem:[%s14801_s7 + $0x50] sm:$0xff]  ;;  %v10873_v37 = vld [vmem:[%s14801_s7 + $0xc8] sm:$0xff]  ;;  %v10856_v46 = vld [vmem:[%s14801_s7 + $0x40] sm:$0xff] }
 0x823   :  { %8720 = vmatmul.msk.bf16.vlgmr.msra.gmra.mxu3 %vm177_vm0, %v12422_v21  ;;  %8721 = vmatmul.msk.bf16.vlgmr.msra.gmra.mxu0 %vm177_vm0, %v12422_v21  ;;  %v10874_v34 = vld [vmem:[%s14801_s7 + $0xd0] sm:$0xff]  ;;  %v10872_v32 = vld [vmem:[%s14801_s7 + $0xc0] sm:$0xff] }
 0x824   :  { %2618 = vmatpush.bf16.msrb.mxu2 %v8429_v4  ;;  %2632 = vmatpush.bf16.msra.mxu1 %v8433_v44  ;;  %v8444_v4 = vld [vmem:[%s14799_s5 + $0xb0] sm:$0xf] }
 0x825   :  { %2646 = vmatpush.bf16.msrb.mxu3 %v8437_v59  ;;  %2660 = vmatpush.bf16.msrb.mxu0 %v8441_v50  ;;  %v10782_v44 = vld [vmem:[%s14799_s5 + $0xec] sm:$0xf0]  ;;  %v8446_v59 = vld [vmem:[%s14799_s5 + $0xf0] sm:$0xf0]  ;;  %v8452_v50 = vld [vmem:[%s14799_s5 + $0xb8] sm:$0xf] }
 0x826   :  { %v8445_v58 = vor.u32 %v10782_v44, %v8444_v4  ;;  %v8449_v31 = vor.u32 %v10774_v1, %v8446_v59  ;;  %v8453_v62 = vor.u32 %v10783_v61, %v8452_v50  ;;  %v10894_v4 = vld [vmem:[%s14801_s7 + $0x170] sm:$0xff]  ;;  %v10893_v1 = vld [vmem:[%s14801_s7 + $0x168] sm:$0xff]  ;;  %v10892_v50 = vld [vmem:[%s14801_s7 + $0x160] sm:$0xff] }
 0x827   :  { %v10910_v44 = vld [vmem:[%s14801_s7 + $0x1f0] sm:$0xff]  ;;  %v10909_v59 = vld [vmem:[%s14801_s7 + $0x1e8] sm:$0xff]  ;;  %v10908_v61 = vld [vmem:[%s14801_s7 + $0x1e0] sm:$0xff] }
 0x828   :  { %2619 = vmatpush.bf16.msrb.mxu2 %v8365_v51  ;;  %2633 = vmatpush.bf16.msra.mxu1 %v8369_v2  ;;  %v10758_v51 = vld [vmem:[%s14799_s5 + $0x34] sm:$0xf] }
 0x829   :  { %2647 = vmatpush.bf16.msrb.mxu3 %v8373_v7  ;;  %2661 = vmatpush.bf16.msrb.mxu0 %v8377_v8  ;;  %v8382_v2 = vld [vmem:[%s14799_s5 + $0x70] sm:$0xf0]  ;;  %v8390_v7 = vld [vmem:[%s14799_s5 + $0x78] sm:$0xf0]  ;;  %v8381_v8 = vor.u32 %v10766_v60, %v8380_v56  ;;  %v10884_v56 = vld [vmem:[%s14801_s7 + $0x120] sm:$0xff] }
 0x82a   :  { %v8393_v10 = vor.u32 %v10759_v3, %v8390_v7  ;;  %v10900_v60 = vld [vmem:[%s14801_s7 + $0x1a0] sm:$0xff]  ;;  %v10882_v3 = vld [vmem:[%s14801_s7 + $0x110] sm:$0xff] }
 0x82b   :  { %v10898_v7 = vld [vmem:[%s14801_s7 + $0x190] sm:$0xff] }
 0x82c   :  { %2670 = vmatpush.bf16.msra.mxu2 %v8701_v9  ;;  %2684 = vmatpush.bf16.msrb.mxu1 %v8705_v48  ;;  %v8385_v9 = vor.u32 %v10758_v51, %v8382_v2  ;;  %v8389_v48 = vor.u32 %v10767_v0, %v8388_v5  ;;  %v10883_v51 = vld [vmem:[%s14801_s7 + $0x118] sm:$0xff]  ;;  %v10889_v5 = vld [vmem:[%s14801_s7 + $0x148] sm:$0xff] }
 0x82d   :  { %2698 = vmatpush.bf16.msra.mxu3 %v8709_v11  ;;  %2712 = vmatpush.bf16.msra.mxu0 %v8713_v17  ;;  %v10879_v11 = vld [vmem:[%s14801_s7 + $0xf8] sm:$0xff]  ;;  %v10905_v0 = vld [vmem:[%s14801_s7 + $0x1c8] sm:$0xff] }
 0x82e   :  { %v10855_v17 = vld [vmem:[%s14801_s7 + $0x38] sm:$0xff] }
 0x82f   :  { %v10899_v2 = vld [vmem:[%s14801_s7 + $0x198] sm:$0xff] }
 0x830   :  { %2671 = vmatpush.bf16.msra.mxu2 %v8637_v12  ;;  %2685 = vmatpush.bf16.msrb.mxu1 %v8641_v14  ;;  %v10853_v12 = vld [vmem:[%s14801_s7 + $0x28] sm:$0xff] }
 0x831   :  { %2699 = vmatpush.bf16.msra.mxu3 %v8645_v22  ;;  %2713 = vmatpush.bf16.msra.mxu0 %v8649_v6  ;;  %v10869_v14 = vld [vmem:[%s14801_s7 + $0xa8] sm:$0xff]  ;;  %v10860_v22 = vld [vmem:[%s14801_s7 + $0x60] sm:$0xff] }
 0x832   :  { %8722 = vmatmul.msk.bf16.vlgmr.msrb.gmra.mxu2 %vm177_vm0, %v12422_v21  ;;  %8723 = vmatmul.msk.bf16.vlgmr.msra.gmra.mxu1 %vm177_vm0, %v12422_v21  ;;  %v10876_v6 = vld [vmem:[%s14801_s7 + $0xe0] sm:$0xff] }
 0x833   :  { %8724 = vmatmul.msk.bf16.vlgmr.msrb.gmra.mxu3 %vm177_vm0, %v12422_v21  ;;  %8725 = vmatmul.msk.bf16.vlgmr.msrb.gmra.mxu0 %vm177_vm0, %v12422_v21 }
 0x834   :  { %2672 = vmatpush.bf16.msra.mxu2 %v8573_v30  ;;  %2686 = vmatpush.bf16.msrb.mxu1 %v8577_v25  ;;  %v10850_v30 = vld [vmem:[%s14801_s7 + $0x10] sm:$0xff] }
 0x835   :  { %2700 = vmatpush.bf16.msra.mxu3 %v8581_v24  ;;  %2714 = vmatpush.bf16.msra.mxu0 %v8585_v63  ;;  %v10866_v25 = vld [vmem:[%s14801_s7 + $0x90] sm:$0xff]  ;;  %v10849_v24 = vld [vmem:[%s14801_s7 + $0x8] sm:$0xff] }
 0x836   :  { %v10865_v63 = vld [vmem:[%s14801_s7 + $0x88] sm:$0xff] }
 0x838   :  { %2673 = vmatpush.bf16.msra.mxu2 %v8509_v33  ;;  %2687 = vmatpush.bf16.msrb.mxu1 %v8513_v47  ;;  %v10887_v33 = vld [vmem:[%s14801_s7 + $0x138] sm:$0xff] }
 0x839   :  { %2701 = vmatpush.bf16.msra.mxu3 %v8517_v49  ;;  %2715 = vmatpush.bf16.msra.mxu0 %v8521_v42  ;;  %v10903_v47 = vld [vmem:[%s14801_s7 + $0x1b8] sm:$0xff]  ;;  %v10886_v49 = vld [vmem:[%s14801_s7 + $0x130] sm:$0xff] }
 0x83a   :  { %v10902_v42 = vld [vmem:[%s14801_s7 + $0x1b0] sm:$0xff] }
 0x83c   :  { %2674 = vmatpush.bf16.msra.mxu2 %v8445_v58  ;;  %2688 = vmatpush.bf16.msrb.mxu1 %v8449_v31  ;;  %v10891_v58 = vld [vmem:[%s14801_s7 + $0x158] sm:$0xff] }
 0x83d   :  { %2702 = vmatpush.bf16.msra.mxu3 %v8453_v62  ;;  %2716 = vmatpush.bf16.msra.mxu0 %v8457_v41  ;;  %v10907_v31 = vld [vmem:[%s14801_s7 + $0x1d8] sm:$0xff]  ;;  %v10890_v62 = vld [vmem:[%s14801_s7 + $0x150] sm:$0xff] }
 0x83e   :  { %v10906_v41 = vld [vmem:[%s14801_s7 + $0x1d0] sm:$0xff] }
 0x840   :  { %2675 = vmatpush.bf16.msra.mxu2 %v8381_v8  ;;  %2689 = vmatpush.bf16.msrb.mxu1 %v8385_v9  ;;  %v10888_v8 = vld [vmem:[%s14801_s7 + $0x140] sm:$0xff] }
 0x841   :  { %2703 = vmatpush.bf16.msra.mxu3 %v8389_v48  ;;  %2717 = vmatpush.bf16.msra.mxu0 %v8393_v10  ;;  %v10904_v9 = vld [vmem:[%s14801_s7 + $0x1c0] sm:$0xff]  ;;  %v10881_v48 = vld [vmem:[%s14801_s7 + $0x108] sm:$0xff] }
 0x842   :  { %v10897_v10 = vld [vmem:[%s14801_s7 + $0x188] sm:$0xff] }
 0x843   :  { %8726 = vmatmul.msk.bf16.vlgmr.msra.gmra.mxu2 %vm177_vm0, %v12422_v21  ;;  %8727 = vmatmul.msk.bf16.vlgmr.msrb.gmra.mxu1 %vm177_vm0, %v12422_v21 }
 0x844   :  { %3814 = vmatpush.bf16.msra.mxu1 %v10863_v45  ;;  %8728 = vmatmul.msk.bf16.vlgmr.msra.gmra.mxu3 %vm177_vm0, %v12422_v21  ;;  %v10880_v45 = vld [vmem:[%s14801_s7 + $0x100] sm:$0xff] }
 0x845   :  { %3842 = vmatpush.bf16.msrb.mxu0 %v10879_v11  ;;  %3800 = vmatpush.bf16.msrb.mxu2 %v10855_v17  ;;  %v10896_v11 = vld [vmem:[%s14801_s7 + $0x180] sm:$0xff] }
 0x846   :  { %8729 = vmatmul.msk.bf16.vlgmr.msra.gmra.mxu0 %vm177_vm0, %v12422_v21  ;;  %3828 = vmatpush.bf16.msrb.mxu3 %v10871_v15  ;;  %v10877_v21 = vld [vmem:[%s14801_s7 + $0xe8] sm:$0xff]  ;;  %v12915_v17 = vld [vmem:[%s14800_s6] sm:$0xff] }
 0x848   :  { %3815 = vmatpush.bf16.msra.mxu1 %v10862_v18 }
 0x849   :  { %3843 = vmatpush.bf16.msrb.mxu0 %v10878_v13  ;;  %3801 = vmatpush.bf16.msrb.mxu2 %v10854_v53  ;;  %v1986_v13 = vperm.slane %v12915_v17, 1  ;;  %v1988_v53 = vperm.slane %v12915_v17, 3 }
 0x84a   :  { %3829 = vmatpush.bf16.msrb.mxu3 %v10870_v19 }
 0x84c   :  { %3816 = vmatpush.bf16.msra.mxu1 %v10861_v20 }
 0x84d   :  { %3844 = vmatpush.bf16.msrb.mxu0 %v10877_v21  ;;  %3802 = vmatpush.bf16.msrb.mxu2 %v10853_v12 }
 0x84e   :  { %3830 = vmatpush.bf16.msrb.mxu3 %v10869_v14 }
 0x850   :  { %3817 = vmatpush.bf16.msra.mxu1 %v10860_v22  ;;  %v1985_v22 = vperm.slane %v12915_v17, 0 }
 0x851   :  { %3845 = vmatpush.bf16.msrb.mxu0 %v10876_v6  ;;  %3803 = vmatpush.bf16.msrb.mxu2 %v10852_v40 }
 0x852   :  { %3831 = vmatpush.bf16.msrb.mxu3 %v10868_v35  ;;  %v1987_v35 = vperm.slane %v12915_v17, 2 }
 0x854   :  { %3818 = vmatpush.bf16.msra.mxu1 %v10859_v16 }
 0x855   :  { %3846 = vmatpush.bf16.msrb.mxu0 %v10875_v23  ;;  %3804 = vmatpush.bf16.msrb.mxu2 %v10851_v57 }
 0x856   :  { %3832 = vmatpush.bf16.msrb.mxu3 %v10867_v28 }
 0x858   :  { %3819 = vmatpush.bf16.msra.mxu1 %v10858_v29 }
 0x859   :  { %3847 = vmatpush.bf16.msrb.mxu0 %v10874_v34  ;;  %3805 = vmatpush.bf16.msrb.mxu2 %v10850_v30  ;;  %v10927_v34 = vld [vmem:[%s14801_s7 + $0x278] sm:$0xff] }
 0x85a   :  { %3833 = vmatpush.bf16.msrb.mxu3 %v10866_v25 }
 0x85c   :  { %3820 = vmatpush.bf16.msra.mxu1 %v10857_v26  ;;  %v10943_v26 = vld [vmem:[%s14801_s7 + $0x2f8] sm:$0xff] }
 0x85d   :  { %3848 = vmatpush.bf16.msrb.mxu0 %v10873_v37  ;;  %3806 = vmatpush.bf16.msrb.mxu2 %v10849_v24 }
 0x85e   :  { %3834 = vmatpush.bf16.msrb.mxu3 %v10865_v63 }
 0x860   :  { %3821 = vmatpush.bf16.msra.mxu1 %v10856_v46 }
 0x861   :  { %3849 = vmatpush.bf16.msrb.mxu0 %v10872_v32  ;;  %3807 = vmatpush.bf16.msrb.mxu2 %v10848_v38  ;;  %v10926_v38 = vld [vmem:[%s14801_s7 + $0x270] sm:$0xff] }
 0x862   :  { %3835 = vmatpush.bf16.msrb.mxu3 %v10864_v39 }
 0x864   :  { %3870 = vmatpush.bf16.msrb.mxu1 %v10895_v36 }
 0x865   :  { %3898 = vmatpush.bf16.msra.mxu0 %v10911_v27  ;;  %3856 = vmatpush.bf16.msra.mxu2 %v10887_v33 }
 0x866   :  { %3884 = vmatpush.bf16.msra.mxu3 %v10903_v47 }
 0x868   :  { %3871 = vmatpush.bf16.msrb.mxu1 %v10894_v4  ;;  %v10942_v4 = vld [vmem:[%s14801_s7 + $0x2f0] sm:$0xff] }
 0x869   :  { %3899 = vmatpush.bf16.msra.mxu0 %v10910_v44  ;;  %3857 = vmatpush.bf16.msra.mxu2 %v10886_v49 }
 0x86a   :  { %3885 = vmatpush.bf16.msra.mxu3 %v10902_v42  ;;  %v10919_v42 = vld [vmem:[%s14801_s7 + $0x238] sm:$0xff] }
 0x86c   :  { %3872 = vmatpush.bf16.msrb.mxu1 %v10893_v1 }
 0x86d   :  { %3900 = vmatpush.bf16.msra.mxu0 %v10909_v59  ;;  %3858 = vmatpush.bf16.msra.mxu2 %v10885_v43  ;;  %v1990_v59 = vperm.slane %v12915_v17, 5  ;;  %v1992_v43 = vperm.slane %v12915_v17, 7 }
 0x86e   :  { %3886 = vmatpush.bf16.msra.mxu3 %v10901_v55  ;;  %v10925_v55 = vld [vmem:[%s14801_s7 + $0x268] sm:$0xff] }
 0x870   :  { %3873 = vmatpush.bf16.msrb.mxu1 %v10892_v50  ;;  %v10935_v50 = vld [vmem:[%s14801_s7 + $0x2b8] sm:$0xff] }
 0x871   :  { %3901 = vmatpush.bf16.msra.mxu0 %v10908_v61  ;;  %3859 = vmatpush.bf16.msra.mxu2 %v10884_v56  ;;  %v10918_v56 = vld [vmem:[%s14801_s7 + $0x230] sm:$0xff] }
 0x872   :  { %3887 = vmatpush.bf16.msra.mxu3 %v10900_v60 }
 0x874   :  { %3874 = vmatpush.bf16.msrb.mxu1 %v10891_v58  ;;  %v10941_v58 = vld [vmem:[%s14801_s7 + $0x2e8] sm:$0xff] }
 0x875   :  { %3902 = vmatpush.bf16.msra.mxu0 %v10907_v31  ;;  %3860 = vmatpush.bf16.msra.mxu2 %v10883_v51 }
 0x876   :  { %3888 = vmatpush.bf16.msra.mxu3 %v10899_v2 }
 0x878   :  { %3875 = vmatpush.bf16.msrb.mxu1 %v10890_v62 }
 0x879   :  { %3903 = vmatpush.bf16.msra.mxu0 %v10906_v41  ;;  %3861 = vmatpush.bf16.msra.mxu2 %v10882_v3  ;;  %v10934_v41 = vld [vmem:[%s14801_s7 + $0x2b0] sm:$0xff] }
 0x87a   :  { %3889 = vmatpush.bf16.msra.mxu3 %v10898_v7 }
 0x87c   :  { %3876 = vmatpush.bf16.msrb.mxu1 %v10889_v5  ;;  %v10924_v5 = vld [vmem:[%s14801_s7 + $0x260] sm:$0xff] }
 0x87d   :  { %3904 = vmatpush.bf16.msra.mxu0 %v10905_v0  ;;  %3862 = vmatpush.bf16.msra.mxu2 %v10881_v48  ;;  %v1989_v0 = vperm.slane %v12915_v17, 4 }
 0x87e   :  { %3890 = vmatpush.bf16.msra.mxu3 %v10897_v10  ;;  %v10917_v10 = vld [vmem:[%s14801_s7 + $0x228] sm:$0xff] }
 0x880   :  { %3877 = vmatpush.bf16.msrb.mxu1 %v10888_v8  ;;  %v10940_v8 = vld [vmem:[%s14801_s7 + $0x2e0] sm:$0xff] }
 0x881   :  { %3905 = vmatpush.bf16.msra.mxu0 %v10904_v9  ;;  %3863 = vmatpush.bf16.msra.mxu2 %v10880_v45  ;;  %v1991_v9 = vperm.slane %v12915_v17, 6  ;;  %v10923_v17 = vld [vmem:[%s14801_s7 + $0x258] sm:$0xff] }
 0x882   :  { %3891 = vmatpush.bf16.msra.mxu3 %v10896_v11 }
 0x88f   :  { %v2523_v15 = vpop.f32.mrf.mxu1 }
 0x890   :  { %v2551_v18 = vpop.f32.mrf.mxu0  ;;  %v2524_v20 = vadd.f32 %v2523_v15, %v1986_v13  ;;  %v10933_v15 = vld [vmem:[%s14801_s7 + $0x2a8] sm:$0xff] }
 0x891   :  { %v2552_v12 = vadd.f32 %v2551_v18, %v1988_v53 }
 0x892   :  { %v2725_v23 = vmax.f32 %v2524_v20, 0.0  ;;  %v10939_v20 = vld [vmem:[%s14801_s7 + $0x2d8] sm:$0xff] }
 0x893   :  { %v2727_v28 = vmax.f32 %v2552_v12, 0.0 }
 0x895   :  { %v2509_v19 = vpop.f32.mrf.mxu2 }
 0x896   :  { %v2537_v21 = vpop.f32.mrf.mxu3  ;;  %v2510_v30 = vadd.f32 %v2509_v19, %v1985_v22 }
 0x897   :  { %v2525_v14 = vpop.f32.mrf.mxu1  ;;  %v2538_v37 = vadd.f32 %v2537_v21, %v1987_v35 }
 0x898   :  { %v2526_v6 = vadd.f32 %v2525_v14, %v1986_v13  ;;  %v2553_v40 = vpop.f32.mrf.mxu0  ;;  %v2724_v39 = vmax.f32 %v2510_v30, 0.0 }
 0x899   :  { %v2554_v16 = vadd.f32 %v2553_v40, %v1988_v53  ;;  %v2726_v44 = vmax.f32 %v2538_v37, 0.0 }
 0x89a   :  { %v2741_v57 = vmax.f32 %v2526_v6, 0.0 }
 0x89b   :  { %v2743_v29 = vmax.f32 %v2554_v16, 0.0 }
 0x89c   :  { %v2757_v25 = vpack.c.bf16 %v2741_v57, %v2725_v23  ;;  %v12982_v23 = vld [vmem:[%s14800_s6 + $0x8] sm:$0xff] }
 0x89d   :  { %v2759_v24 = vpack.c.bf16 %v2743_v29, %v2727_v28  ;;  %v2511_v63 = vpop.f32.mrf.mxu2  ;;  %v10922_v28 = vld [vmem:[%s14801_s7 + $0x250] sm:$0xff] }
 0x89e   :  { %v2512_v46 = vadd.f32 %v2511_v63, %v1985_v22  ;;  %v2539_v32 = vpop.f32.mrf.mxu3  ;;  %3822 = vmatmul.bf16.vlgmr.msra.gmra.mxu1 %v2757_v25  ;;  %v10916_v22 = vld [vmem:[%s14801_s7 + $0x220] sm:$0xff]  ;;  %v10938_v25 = vld [vmem:[%s14801_s7 + $0x2d0] sm:$0xff] }
 0x89f   :  { %v2540_v36 = vadd.f32 %v2539_v32, %v1987_v35  ;;  %3850 = vmatmul.bf16.vlgmr.msrb.gmra.mxu0 %v2759_v24  ;;  %3926 = vmatpush.bf16.msra.mxu1 %v10927_v34  ;;  %v2579_v27 = vpop.f32.mrf.mxu1  ;;  %v10932_v35 = vld [vmem:[%s14801_s7 + $0x2a0] sm:$0xff]  ;;  %v10915_v24 = vld [vmem:[%s14801_s7 + $0x218] sm:$0xff] }
 0x8a0   :  { %v2740_v33 = vmax.f32 %v2512_v46, 0.0  ;;  %3954 = vmatpush.bf16.msrb.mxu0 %v10943_v26  ;;  %v2607_v47 = vpop.f32.mrf.mxu0  ;;  %v2580_v60 = vadd.f32 %v2579_v27, %v1990_v59  ;;  %v1994_v46 = vperm.slane %v12982_v23, 1  ;;  %v10931_v32 = vld [vmem:[%s14801_s7 + $0x298] sm:$0xff]  ;;  %v1996_v27 = vperm.slane %v12982_v23, 3 }
 0x8a1   :  { %v2742_v49 = vmax.f32 %v2540_v36, 0.0  ;;  %v2608_v51 = vadd.f32 %v2607_v47, %v1992_v43  ;;  %v10914_v47 = vld [vmem:[%s14801_s7 + $0x210] sm:$0xff] }
 0x8a2   :  { %v2756_v1 = vpack.c.bf16 %v2740_v33, %v2724_v39  ;;  %v2729_v45 = vmax.f32 %v2580_v60, 0.0  ;;  %v10937_v39 = vld [vmem:[%s14801_s7 + $0x2c8] sm:$0xff]  ;;  %v10975_v60 = vld [vmem:[%s14801_s7 + $0x3f8] sm:$0xff] }
 0x8a3   :  { %v2758_v61 = vpack.c.bf16 %v2742_v49, %v2726_v44  ;;  %3927 = vmatpush.bf16.msra.mxu1 %v10926_v38  ;;  %v2731_v18 = vmax.f32 %v2608_v51, 0.0  ;;  %v10921_v38 = vld [vmem:[%s14801_s7 + $0x248] sm:$0xff]  ;;  %v10930_v49 = vld [vmem:[%s14801_s7 + $0x290] sm:$0xff] }
 0x8a4   :  { %3955 = vmatpush.bf16.msrb.mxu0 %v10942_v4  ;;  %3808 = vmatmul.bf16.vlgmr.msrb.gmra.mxu2 %v2756_v1 }
 0x8a5   :  { %3836 = vmatmul.bf16.vlgmr.msrb.gmra.mxu3 %v2758_v61  ;;  %3912 = vmatpush.bf16.msrb.mxu2 %v10919_v42  ;;  %v2565_v31 = vpop.f32.mrf.mxu2 }
 0x8a6   :  { %3940 = vmatpush.bf16.msrb.mxu3 %v10935_v50  ;;  %v2593_v62 = vpop.f32.mrf.mxu3  ;;  %v2566_v53 = vadd.f32 %v2565_v31, %v1989_v0  ;;  %v1993_v50 = vperm.slane %v12982_v23, 0  ;;  %v1995_v31 = vperm.slane %v12982_v23, 2 }
 0x8a7   :  { %3928 = vmatpush.bf16.msra.mxu1 %v10925_v55  ;;  %v2581_v2 = vpop.f32.mrf.mxu1  ;;  %v2594_v21 = vadd.f32 %v2593_v62, %v1991_v9  ;;  %v10936_v55 = vld [vmem:[%s14801_s7 + $0x2c0] sm:$0xff]  ;;  %v10913_v62 = vld [vmem:[%s14801_s7 + $0x208] sm:$0xff] }
 0x8a8   :  { %3956 = vmatpush.bf16.msrb.mxu0 %v10941_v58  ;;  %v2582_v3 = vadd.f32 %v2581_v2, %v1990_v59  ;;  %v2609_v7 = vpop.f32.mrf.mxu0  ;;  %v2728_v29 = vmax.f32 %v2566_v53, 0.0  ;;  %v10920_v59 = vld [vmem:[%s14801_s7 + $0x240] sm:$0xff]  ;;  %v10959_v58 = vld [vmem:[%s14801_s7 + $0x378] sm:$0xff]  ;;  %v10929_v2 = vld [vmem:[%s14801_s7 + $0x288] sm:$0xff] }
 0x8a9   :  { %v2610_v48 = vadd.f32 %v2609_v7, %v1992_v43  ;;  %3913 = vmatpush.bf16.msrb.mxu2 %v10918_v56  ;;  %v2730_v26 = vmax.f32 %v2594_v21, 0.0 }
 0x8aa   :  { %v2745_v11 = vmax.f32 %v2582_v3, 0.0  ;;  %3941 = vmatpush.bf16.msrb.mxu3 %v10934_v41 }
 0x8ab   :  { %v2747_v13 = vmax.f32 %v2610_v48, 0.0  ;;  %3929 = vmatpush.bf16.msra.mxu1 %v10924_v5 }
 0x8ac   :  { %v2761_v19 = vpack.c.bf16 %v2745_v11, %v2729_v45  ;;  %3957 = vmatpush.bf16.msrb.mxu0 %v10940_v8  ;;  %v10958_v8 = vld [vmem:[%s14801_s7 + $0x370] sm:$0xff]  ;;  %v10912_v11 = vld [vmem:[%s14801_s7 + $0x200] sm:$0xff] }
 0x8ad   :  { %v2763_v12 = vpack.c.bf16 %v2747_v13, %v2731_v18  ;;  %3914 = vmatpush.bf16.msrb.mxu2 %v10917_v10  ;;  %v2567_v14 = vpop.f32.mrf.mxu2  ;;  %v10974_v45 = vld [vmem:[%s14801_s7 + $0x3f0] sm:$0xff]  ;;  %v10928_v13 = vld [vmem:[%s14801_s7 + $0x280] sm:$0xff] }
 0x8ae   :  { %3942 = vmatpush.bf16.msrb.mxu3 %v10933_v15  ;;  %v2568_v6 = vadd.f32 %v2567_v14, %v1989_v0  ;;  %v2595_v40 = vpop.f32.mrf.mxu3  ;;  %3878 = vmatmul.bf16.vlgmr.msrb.gmra.mxu1 %v2761_v19  ;;  %v10967_v19 = vld [vmem:[%s14801_s7 + $0x3b8] sm:$0xff] }
 0x8af   :  { %v2596_v16 = vadd.f32 %v2595_v40, %v1991_v9  ;;  %3906 = vmatmul.bf16.vlgmr.msra.gmra.mxu0 %v2763_v12  ;;  %3930 = vmatpush.bf16.msra.mxu1 %v10923_v17  ;;  %v2635_v57 = vpop.f32.mrf.mxu1  ;;  %v10951_v17 = vld [vmem:[%s14801_s7 + $0x338] sm:$0xff]  ;;  %v10957_v12 = vld [vmem:[%s14801_s7 + $0x368] sm:$0xff] }
 0x8b0   :  { %v2744_v34 = vmax.f32 %v2568_v6, 0.0  ;;  %3958 = vmatpush.bf16.msrb.mxu0 %v10939_v20  ;;  %v2663_v30 = vpop.f32.mrf.mxu0  ;;  %v2636_v4 = vadd.f32 %v2635_v57, %v1994_v46  ;;  %v10973_v6 = vld [vmem:[%s14801_s7 + $0x3e8] sm:$0xff]  ;;  %v10966_v57 = vld [vmem:[%s14801_s7 + $0x3b0] sm:$0xff] }
 0x8b1   :  { %v2746_v37 = vmax.f32 %v2596_v16, 0.0  ;;  %3915 = vmatpush.bf16.msrb.mxu2 %v10916_v22  ;;  %v2664_v42 = vadd.f32 %v2663_v30, %v1996_v27  ;;  %v10972_v30 = vld [vmem:[%s14801_s7 + $0x3e0] sm:$0xff] }
 0x8b2   :  { %v2760_v63 = vpack.c.bf16 %v2744_v34, %v2728_v29  ;;  %3943 = vmatpush.bf16.msrb.mxu3 %v10932_v35  ;;  %v2733_v41 = vmax.f32 %v2636_v4, 0.0  ;;  %v10950_v35 = vld [vmem:[%s14801_s7 + $0x330] sm:$0xff]  ;;  %v10956_v29 = vld [vmem:[%s14801_s7 + $0x360] sm:$0xff] }
 0x8b3   :  { %v2762_v36 = vpack.c.bf16 %v2746_v37, %v2730_v26  ;;  %3931 = vmatpush.bf16.msra.mxu1 %v10922_v28  ;;  %v2735_v5 = vmax.f32 %v2664_v42, 0.0  ;;  %v10965_v26 = vld [vmem:[%s14801_s7 + $0x3a8] sm:$0xff]  ;;  %v10955_v37 = vld [vmem:[%s14801_s7 + $0x358] sm:$0xff] }
 0x8b4   :  { %3959 = vmatpush.bf16.msrb.mxu0 %v10938_v25  ;;  %3864 = vmatmul.bf16.vlgmr.msra.gmra.mxu2 %v2760_v63  ;;  %v10949_v25 = vld [vmem:[%s14801_s7 + $0x328] sm:$0xff] }
 0x8b5   :  { %3892 = vmatmul.bf16.vlgmr.msra.gmra.mxu3 %v2762_v36  ;;  %3916 = vmatpush.bf16.msrb.mxu2 %v10915_v24  ;;  %v2621_v33 = vpop.f32.mrf.mxu2  ;;  %v10971_v24 = vld [vmem:[%s14801_s7 + $0x3d8] sm:$0xff]  ;;  %v10964_v36 = vld [vmem:[%s14801_s7 + $0x3a0] sm:$0xff]  ;;  %v10953_v42 = vld [vmem:[%s14801_s7 + $0x348] sm:$0xff] }
 0x8b6   :  { %3944 = vmatpush.bf16.msrb.mxu3 %v10931_v32  ;;  %v2649_v44 = vpop.f32.mrf.mxu3  ;;  %v2622_v3 = vadd.f32 %v2621_v33, %v1993_v50  ;;  %v10947_v33 = vld [vmem:[%s14801_s7 + $0x318] sm:$0xff] }
 0x8b7   :  { %3932 = vmatpush.bf16.msra.mxu1 %v10921_v38  ;;  %v2637_v1 = vpop.f32.mrf.mxu1  ;;  %v2650_v9 = vadd.f32 %v2649_v44, %v1995_v31  ;;  %v10970_v38 = vld [vmem:[%s14801_s7 + $0x3d0] sm:$0xff]  ;;  %v10963_v44 = vld [vmem:[%s14801_s7 + $0x398] sm:$0xff] }
 0x8b8   :  { %3960 = vmatpush.bf16.msrb.mxu0 %v10937_v39  ;;  %v2638_v61 = vadd.f32 %v2637_v1, %v1994_v46  ;;  %v2665_v43 = vpop.f32.mrf.mxu0  ;;  %v2732_v20 = vmax.f32 %v2622_v3, 0.0  ;;  %v10948_v46 = vld [vmem:[%s14801_s7 + $0x320] sm:$0xff] }
 0x8b9   :  { %v2666_v56 = vadd.f32 %v2665_v43, %v1996_v27  ;;  %3917 = vmatpush.bf16.msrb.mxu2 %v10914_v47  ;;  %v2734_v14 = vmax.f32 %v2650_v9, 0.0  ;;  %v10954_v27 = vld [vmem:[%s14801_s7 + $0x350] sm:$0xff]  ;;  %v1998_v47 = vperm.slane %v12982_v23, 5 }
 0x8ba   :  { %v2749_v51 = vmax.f32 %v2638_v61, 0.0  ;;  %3945 = vmatpush.bf16.msrb.mxu3 %v10930_v49  ;;  %v2000_v49 = vperm.slane %v12982_v23, 7  ;;  %v10946_v61 = vld [vmem:[%s14801_s7 + $0x310] sm:$0xff] }
 0x8bb   :  { %v2751_v0 = vmax.f32 %v2666_v56, 0.0  ;;  %3933 = vmatpush.bf16.msra.mxu1 %v10920_v59  ;;  %v10969_v59 = vld [vmem:[%s14801_s7 + $0x3c8] sm:$0xff]  ;;  %v10952_v56 = vld [vmem:[%s14801_s7 + $0x340] sm:$0xff] }
 0x8bc   :  { %v2765_v7 = vpack.c.bf16 %v2749_v51, %v2733_v41  ;;  %3961 = vmatpush.bf16.msrb.mxu0 %v10936_v55  ;;  %v10962_v55 = vld [vmem:[%s14801_s7 + $0x390] sm:$0xff]  ;;  %v10968_v51 = vld [vmem:[%s14801_s7 + $0x3c0] sm:$0xff] }
 0x8bd   :  { %v2767_v48 = vpack.c.bf16 %v2751_v0, %v2735_v5  ;;  %3918 = vmatpush.bf16.msrb.mxu2 %v10913_v62  ;;  %v2623_v10 = vpop.f32.mrf.mxu2  ;;  %v10945_v0 = vld [vmem:[%s14801_s7 + $0x308] sm:$0xff] }
 0x8be   :  { %3946 = vmatpush.bf16.msrb.mxu3 %v10929_v2  ;;  %v2624_v15 = vadd.f32 %v2623_v10, %v1993_v50  ;;  %v2651_v18 = vpop.f32.mrf.mxu3  ;;  %3934 = vmatmul.bf16.vlgmr.msra.gmra.mxu1 %v2765_v7  ;;  %v1999_v2 = vperm.slane %v12982_v23, 6 }
 0x8bf   :  { %3982 = vmatpush.bf16.msrb.mxu1 %v10959_v58  ;;  %v2652_v53 = vadd.f32 %v2651_v18, %v1995_v31  ;;  %3962 = vmatmul.bf16.vlgmr.msrb.gmra.mxu0 %v2767_v48 }
 0x8c0   :  { %4010 = vmatpush.bf16.msra.mxu0 %v10975_v60  ;;  %v2748_v21 = vmax.f32 %v2624_v15, 0.0  ;;  %v2691_v28 = vpop.f32.mrf.mxu1  ;;  %v1997_v60 = vperm.slane %v12982_v23, 4  ;;  %v10944_v15 = vld [vmem:[%s14801_s7 + $0x300] sm:$0xff] }
 0x8c1   :  { %v2750_v22 = vmax.f32 %v2652_v53, 0.0  ;;  %3919 = vmatpush.bf16.msrb.mxu2 %v10912_v11  ;;  %v2692_v43 = vadd.f32 %v2691_v28, %v1998_v47 }
 0x8c2   :  { %v2764_v40 = vpack.c.bf16 %v2748_v21, %v2732_v20  ;;  %3947 = vmatpush.bf16.msrb.mxu3 %v10928_v13  ;;  %v10960_v13 = vld [vmem:[%s14801_s7 + $0x380] sm:$0xff] }
 0x8c3   :  { %3983 = vmatpush.bf16.msrb.mxu1 %v10958_v8  ;;  %v2766_v16 = vpack.c.bf16 %v2750_v22, %v2734_v14  ;;  %v2719_v34 = vpop.f32.mrf.mxu0  ;;  %v2737_v3 = vmax.f32 %v2692_v43, 0.0  ;;  %v10961_v8 = vld [vmem:[%s14801_s7 + $0x388] sm:$0xff] }
 0x8c4   :  { %4011 = vmatpush.bf16.msra.mxu0 %v10974_v45  ;;  %3920 = vmatmul.bf16.vlgmr.msrb.gmra.mxu2 %v2764_v40  ;;  %v2720_v58 = vadd.f32 %v2719_v34, %v2000_v49 }
 0x8c5   :  { %3968 = vmatpush.bf16.msra.mxu2 %v10951_v17  ;;  %3948 = vmatmul.bf16.vlgmr.msrb.gmra.mxu3 %v2766_v16 }
 0x8c6   :  { %3996 = vmatpush.bf16.msra.mxu3 %v10967_v19  ;;  %v2677_v63 = vpop.f32.mrf.mxu2  ;;  %v2739_v9 = vmax.f32 %v2720_v58, 0.0 }
 0x8c7   :  { %3984 = vmatpush.bf16.msrb.mxu1 %v10957_v12  ;;  %v2705_v32 = vpop.f32.mrf.mxu3  ;;  %v2678_v10 = vadd.f32 %v2677_v63, %v1997_v60 }
 0x8c8   :  { %4012 = vmatpush.bf16.msra.mxu0 %v10973_v6  ;;  %v2693_v39 = vpop.f32.mrf.mxu1  ;;  %v2706_v23 = vadd.f32 %v2705_v32, %v1999_v2 }
 0x8c9   :  { %3969 = vmatpush.bf16.msra.mxu2 %v10950_v35  ;;  %v2694_v1 = vadd.f32 %v2693_v39, %v1998_v47  ;;  %v2736_v53 = vmax.f32 %v2678_v10, 0.0 }
 0x8ca   :  { %3997 = vmatpush.bf16.msra.mxu3 %v10966_v57  ;;  %v2738_v19 = vmax.f32 %v2706_v23, 0.0  ;;  %v11239_v57 = vld [vmem:[%s14802_s8] ss:$0 sm:$0xff] }
 0x8cb   :  { %3985 = vmatpush.bf16.msrb.mxu1 %v10956_v29  ;;  %v2721_v4 = vpop.f32.mrf.mxu0  ;;  %v2753_v62 = vmax.f32 %v2694_v1, 0.0 }
 0x8cc   :  { %4013 = vmatpush.bf16.msra.mxu0 %v10972_v30  ;;  %v2722_v50 = vadd.f32 %v2721_v4, %v2000_v49 }
 0x8cd   :  { %3970 = vmatpush.bf16.msra.mxu2 %v10949_v25  ;;  %v2769_v45 = vpack.c.bf16 %v2753_v62, %v2737_v3 }
 0x8ce   :  { %3998 = vmatpush.bf16.msra.mxu3 %v10965_v26  ;;  %v2679_v31 = vpop.f32.mrf.mxu2  ;;  %v2755_v5 = vmax.f32 %v2722_v50, 0.0 }
 0x8cf   :  { %3986 = vmatpush.bf16.msrb.mxu1 %v10955_v37  ;;  %v2707_v41 = vpop.f32.mrf.mxu3  ;;  %v2680_v7 = vadd.f32 %v2679_v31, %v1997_v60 }
 0x8d0   :  { %4014 = vmatpush.bf16.msra.mxu0 %v10971_v24  ;;  %v2708_v48 = vadd.f32 %v2707_v41, %v1999_v2  ;;  %v2771_v11 = vpack.c.bf16 %v2755_v5, %v2739_v9 }
 0x8d1   :  { %3971 = vmatpush.bf16.msra.mxu2 %v10948_v46  ;;  %v2752_v18 = vmax.f32 %v2680_v7, 0.0 }
 0x8d2   :  { %3999 = vmatpush.bf16.msra.mxu3 %v10964_v36  ;;  %v2754_v17 = vmax.f32 %v2708_v48, 0.0 }
 0x8d3   :  { %3987 = vmatpush.bf16.msrb.mxu1 %v10954_v27  ;;  %v2768_v20 = vpack.c.bf16 %v2752_v18, %v2736_v53 }
 0x8d4   :  { %4015 = vmatpush.bf16.msra.mxu0 %v10970_v38  ;;  %v2770_v21 = vpack.c.bf16 %v2754_v17, %v2738_v19 }
 0x8d5   :  { %3972 = vmatpush.bf16.msra.mxu2 %v10947_v33 }
 0x8d6   :  { %4000 = vmatpush.bf16.msra.mxu3 %v10963_v44 }
 0x8d7   :  { %3988 = vmatpush.bf16.msrb.mxu1 %v10953_v42 }
 0x8d8   :  { %4016 = vmatpush.bf16.msra.mxu0 %v10969_v59 }
 0x8d9   :  { %3973 = vmatpush.bf16.msra.mxu2 %v10946_v61 }
 0x8da   :  { %4001 = vmatpush.bf16.msra.mxu3 %v10962_v55 }
 0x8db   :  { %3989 = vmatpush.bf16.msrb.mxu1 %v10952_v56 }
 0x8dc   :  { %4017 = vmatpush.bf16.msra.mxu0 %v10968_v51 }
 0x8dd   :  { %3974 = vmatpush.bf16.msra.mxu2 %v10945_v0 }
 0x8de   :  { %4002 = vmatpush.bf16.msra.mxu3 %v10961_v8  ;;  %3990 = vmatmul.bf16.vlgmr.msrb.gmra.mxu1 %v2769_v45 }
 0x8df   :  { %4018 = vmatmul.bf16.vlgmr.msra.gmra.mxu0 %v2771_v11 }
 0x8e1   :  { %3975 = vmatpush.bf16.msra.mxu2 %v10944_v15 }
 0x8e2   :  { %4003 = vmatpush.bf16.msra.mxu3 %v10960_v13 }
 0x8e4   :  { %3976 = vmatmul.bf16.vlgmr.msra.gmra.mxu2 %v2768_v20 }
 0x8e5   :  { %4004 = vmatmul.bf16.vlgmr.msra.gmra.mxu3 %v2770_v21 }
 0x91b   :  { %v3823_v12 = vpop.f32.mrf.mxu1 }
 0x91c   :  { %v3851_v6 = vpop.f32.mrf.mxu0 }
 0x923   :  { %v3825_v40 = vpop.f32.mrf.mxu1 }
 0x924   :  { %v3853_v28 = vpop.f32.mrf.mxu0 }
 0x927   :  { %v3809_v14 = vpop.f32.mrf.mxu2 }
 0x928   :  { %v3837_v22 = vpop.f32.mrf.mxu3  ;;  %v3810_v29 = vadd.f32 %v11239_v57, %v3809_v14 }
 0x92a   :  { %v3824_v25 = vadd.f32 %v3823_v12, %v3810_v29 }
 0x92b   :  { %v3879_v34 = vpop.f32.mrf.mxu1 }
 0x92c   :  { %v3907_v37 = vpop.f32.mrf.mxu0  ;;  %v3838_v24 = vadd.f32 %v3837_v22, %v3824_v25 }
 0x92e   :  { %v3852_v32 = vadd.f32 %v3851_v6, %v3838_v24  ;;  %v9329_v24 = vld [vmem:[%s14795_s1 + $0x108] sm:$0xf] }
 0x92f   :  { %v3811_v35 = vpop.f32.mrf.mxu2 }
 0x930   :  { %v3839_v16 = vpop.f32.mrf.mxu3  ;;  %v3812_v63 = vadd.f32 %v11239_v57, %v3811_v35 }
 0x932   :  { %v3826_v46 = vadd.f32 %v3825_v40, %v3812_v63  ;;  %v10992_v63 = vld [vmem:[%s14795_s1 + $0x110] sm:$0xf0] }
 0x933   :  { %v3881_v36 = vpop.f32.mrf.mxu1 }
 0x934   :  { %v3840_v33 = vadd.f32 %v3839_v16, %v3826_v46  ;;  %v3909_v47 = vpop.f32.mrf.mxu0  ;;  %v10991_v46 = vld [vmem:[%s14795_s1 + $0x10c] sm:$0xf] }
 0x936   :  { %v3854_v44 = vadd.f32 %v3853_v28, %v3840_v33 }
 0x937   :  { %v3865_v30 = vpop.f32.mrf.mxu2 }
 0x938   :  { %v3893_v26 = vpop.f32.mrf.mxu3  ;;  %v3866_v38 = vadd.f32 %v3865_v30, %v3852_v32  ;;  %v9330_v32 = vor.u32 %v10992_v63, %v9329_v24 }
 0x93a   :  { %v3880_v4 = vadd.f32 %v3879_v34, %v3866_v38  ;;  %v10993_v38 = vld [vmem:[%s14795_s1 + $0x118] sm:$0xf0]  ;;  %4218 = vmatpush.bf16.msrb.mxu2 %v9330_v32 }
 0x93b   :  { %v3935_v1 = vpop.f32.mrf.mxu1 }
 0x93c   :  { %v3894_v49 = vadd.f32 %v3893_v26, %v3880_v4  ;;  %v3963_v55 = vpop.f32.mrf.mxu0  ;;  %v10989_v4 = vld [vmem:[%s14795_s1 + $0xf8] sm:$0xf0] }
 0x93e   :  { %v3908_v43 = vadd.f32 %v3907_v37, %v3894_v49 }
 0x93f   :  { %v3867_v27 = vpop.f32.mrf.mxu2 }
 0x940   :  { %v3895_v39 = vpop.f32.mrf.mxu3  ;;  %v3868_v42 = vadd.f32 %v3867_v27, %v3854_v44  ;;  %v9337_v27 = vld [vmem:[%s14795_s1 + $0x110] sm:$0xf]  ;;  %v10988_v44 = vld [vmem:[%s14795_s1 + $0xf4] sm:$0xf] }
 0x941   :  { %v9338_v33 = vor.u32 %v10993_v38, %v9337_v27 }
 0x942   :  { %v3882_v61 = vadd.f32 %v3881_v36, %v3868_v42  ;;  %v9331_v36 = vld [vmem:[%s14795_s1 + $0x114] sm:$0xf0]  ;;  %v9319_v42 = vld [vmem:[%s14795_s1 + $0xfc] sm:$0xf0] }
 0x943   :  { %v3937_v60 = vpop.f32.mrf.mxu1  ;;  %4246 = vmatpush.bf16.msrb.mxu3 %v9338_v33 }
 0x944   :  { %v3896_v31 = vadd.f32 %v3895_v39, %v3882_v61  ;;  %v3965_v0 = vpop.f32.mrf.mxu0  ;;  %v9334_v39 = vor.u32 %v10991_v46, %v9331_v36 }
 0x946   :  { %v3910_v41 = vadd.f32 %v3909_v47, %v3896_v31  ;;  %4232 = vmatpush.bf16.msra.mxu1 %v9334_v39  ;;  %v9317_v47 = vld [vmem:[%s14795_s1 + $0xf0] sm:$0xf] }
 0x947   :  { %v3921_v59 = vpop.f32.mrf.mxu2  ;;  %v9318_v49 = vor.u32 %v10989_v4, %v9317_v47  ;;  %v11240_v4 = vld [vmem:[%s14805_s11] ss:$0 sm:$0xff] }
 0x948   :  { %v3949_v50 = vpop.f32.mrf.mxu3  ;;  %v3922_v58 = vadd.f32 %v3921_v59, %v3908_v43  ;;  %v10990_v59 = vld [vmem:[%s14795_s1 + $0x100] sm:$0xf0]  ;;  %v9305_v43 = vld [vmem:[%s14795_s1 + $0xd8] sm:$0xf] }
 0x949   :  { %4219 = vmatpush.bf16.msrb.mxu2 %v9318_v49 }
 0x94a   :  { %v3936_v56 = vadd.f32 %v3935_v1, %v3922_v58  ;;  %v9325_v1 = vld [vmem:[%s14795_s1 + $0xf8] sm:$0xf]  ;;  %v10985_v58 = vld [vmem:[%s14795_s1 + $0xdc] sm:$0xf] }
 0x94b   :  { %v9326_v61 = vor.u32 %v10990_v59, %v9325_v1  ;;  %v11241_v1 = vld [vmem:[%s14806_s12] ss:$0 sm:$0xff] }
 0x94c   :  { %v3950_v2 = vadd.f32 %v3949_v50, %v3936_v56  ;;  %v9322_v50 = vor.u32 %v10988_v44, %v9319_v42  ;;  %v9307_v56 = vld [vmem:[%s14795_s1 + $0xe4] sm:$0xf0] }
 0x94d   :  { %4247 = vmatpush.bf16.msrb.mxu3 %v9326_v61 }
 0x94e   :  { %v3964_v7 = vadd.f32 %v3963_v55, %v3950_v2  ;;  %4233 = vmatpush.bf16.msra.mxu1 %v9322_v50  ;;  %v10986_v55 = vld [vmem:[%s14795_s1 + $0xe0] sm:$0xf0]  ;;  %v9293_v2 = vld [vmem:[%s14795_s1 + $0xc0] sm:$0xf] }
 0x94f   :  { %v3923_v62 = vpop.f32.mrf.mxu2  ;;  %v9306_v31 = vor.u32 %v10986_v55, %v9305_v43 }
 0x950   :  { %v3951_v51 = vpop.f32.mrf.mxu3  ;;  %v3924_v5 = vadd.f32 %v3923_v62, %v3910_v41  ;;  %v10987_v62 = vld [vmem:[%s14795_s1 + $0xe8] sm:$0xf0]  ;;  %v9310_v41 = vor.u32 %v10985_v58, %v9307_v56 }
 0x951   :  { %4220 = vmatpush.bf16.msrb.mxu2 %v9306_v31 }
 0x952   :  { %v3938_v3 = vadd.f32 %v3937_v60, %v3924_v5  ;;  %v9313_v60 = vld [vmem:[%s14795_s1 + $0xe0] sm:$0xf]  ;;  %4234 = vmatpush.bf16.msra.mxu1 %v9310_v41  ;;  %v10983_v5 = vld [vmem:[%s14795_s1 + $0xc8] sm:$0xf0] }
 0x954   :  { %v3952_v45 = vadd.f32 %v3951_v51, %v3938_v3  ;;  %v9314_v51 = vor.u32 %v10987_v62, %v9313_v60  ;;  %v9294_v3 = vor.u32 %v10983_v5, %v9293_v2 }
 0x956   :  { %v3966_v13 = vadd.f32 %v3965_v0, %v3952_v45  ;;  %4248 = vmatpush.bf16.msrb.mxu3 %v9314_v51  ;;  %v10982_v0 = vld [vmem:[%s14795_s1 + $0xc4] sm:$0xf]  ;;  %4221 = vmatpush.bf16.msrb.mxu2 %v9294_v3  ;;  %v9281_v45 = vld [vmem:[%s14795_s1 + $0xa8] sm:$0xf] }
 0x95b   :  { %v3991_v8 = vpop.f32.mrf.mxu1 }
 0x95c   :  { %v4019_v11 = vpop.f32.mrf.mxu0 }
 0x963   :  { %v3993_v20 = vpop.f32.mrf.mxu1 }
 0x964   :  { %v4021_v6 = vpop.f32.mrf.mxu0 }
 0x967   :  { %v3977_v9 = vpop.f32.mrf.mxu2 }
 0x968   :  { %v3978_v48 = vadd.f32 %v3977_v9, %v3964_v7  ;;  %v4005_v10 = vpop.f32.mrf.mxu3  ;;  %v9295_v7 = vld [vmem:[%s14795_s1 + $0xcc] sm:$0xf0]  ;;  %v10984_v9 = vld [vmem:[%s14795_s1 + $0xd0] sm:$0xf0] }
 0x96a   :  { %v3992_v23 = vadd.f32 %v3991_v8, %v3978_v48  ;;  %v9301_v8 = vld [vmem:[%s14795_s1 + $0xc8] sm:$0xf]  ;;  %v9298_v48 = vor.u32 %v10982_v0, %v9295_v7 }
 0x96c   :  { %v4006_v15 = vadd.f32 %v4005_v10, %v3992_v23  ;;  %v9302_v10 = vor.u32 %v10984_v9, %v9301_v8  ;;  %4235 = vmatpush.bf16.msra.mxu1 %v9298_v48  ;;  %v10980_v23 = vld [vmem:[%s14795_s1 + $0xb0] sm:$0xf0] }
 0x96e   :  { %v4020_v18 = vadd.f32 %v4019_v11, %v4006_v15  ;;  %4249 = vmatpush.bf16.msrb.mxu3 %v9302_v10  ;;  %v10979_v11 = vld [vmem:[%s14795_s1 + $0xac] sm:$0xf]  ;;  %v9282_v15 = vor.u32 %v10980_v23, %v9281_v45 }
 0x96f   :  { %v3979_v17 = vpop.f32.mrf.mxu2 }
 0x970   :  { %v3980_v53 = vadd.f32 %v3979_v17, %v3966_v13  ;;  %v4026_v19 = vadd.f32 %v4020_v18, %v12407_v52  ;;  %v4007_v14 = vpop.f32.mrf.mxu3  ;;  %v9283_v18 = vld [vmem:[%s14795_s1 + $0xb4] sm:$0xf0]  ;;  %v9289_v13 = vld [vmem:[%s14795_s1 + $0xb0] sm:$0xf]  ;;  %v10981_v17 = vld [vmem:[%s14795_s1 + $0xb8] sm:$0xf0]  ;;  %4222 = vmatpush.bf16.msrb.mxu2 %v9282_v15 }
 0x972   :  { %v3994_v21 = vadd.f32 %v3993_v20, %v3980_v53  ;;  %v4028_v12 = vsel %vm177_vm0, %v4026_v19, 0.0  ;;  %v9290_v20 = vor.u32 %v10981_v17, %v9289_v13 }
 0x973   :  { %4029 = vadd.xlane.f32.xlu0 %v4028_v12  ;;  %v9269_v12 = vld [vmem:[%s14795_s1 + $0x90] sm:$0xf] }
 0x974   :  { %v4008_v22 = vadd.f32 %v4007_v14, %v3994_v21  ;;  %4250 = vmatpush.bf16.msrb.mxu3 %v9290_v20  ;;  %v10977_v14 = vld [vmem:[%s14795_s1 + $0x98] sm:$0xf0] }
 0x976   :  { %v4022_v40 = vadd.f32 %v4021_v6, %v4008_v22  ;;  %v10976_v22 = vld [vmem:[%s14795_s1 + $0x94] sm:$0xf] }
 0x978   :  { %v4027_v35 = vadd.f32 %v4022_v40, %v12409_v54  ;;  %v9270_v40 = vor.u32 %v10977_v14, %v9269_v12 }
 0x97a   :  { %v4031_v16 = vsel %vm177_vm0, %v4027_v35, 0.0  ;;  %4223 = vmatpush.bf16.msrb.mxu2 %v9270_v40 }
 0x97b   :  { %4032 = vadd.xlane.f32.xlu0 %v4031_v16  ;;  %v9277_v16 = vld [vmem:[%s14795_s1 + $0x98] sm:$0xf] }
 0x9e6   :  { %v4030_v57 = vpop.xlane.xlu0 %4029 }
 0x9e7   :  { %v4034_v28 = vmul.f32 0.010416667, %v4030_v57 }
 0x9e9   :  { %v13137_v29 = vsub.f32 %v4026_v19, %v4034_v28  ;;  %v9286_v19 = vor.u32 %v10979_v11, %v9283_v18  ;;  %v10978_v28 = vld [vmem:[%s14795_s1 + $0xa0] sm:$0xf0] }
 0x9eb   :  { %v4038_v52 = vmul.f32 %v13137_v29, %v13137_v29  ;;  %4236 = vmatpush.bf16.msra.mxu1 %v9286_v19 }
 0x9ed   :  { %v4040_v34 = vsel %vm177_vm0, %v4038_v52, 0.0  ;;  %v9278_v52 = vor.u32 %v10978_v28, %v9277_v16 }
 0x9ee   :  { %4041 = vadd.xlane.f32.xlu0 %v4040_v34  ;;  %v4033_v30 = vpop.xlane.xlu0 %4032 }
 0x9ef   :  { %v4035_v25 = vmul.f32 0.010416667, %v4033_v30  ;;  %4251 = vmatpush.bf16.msrb.mxu3 %v9278_v52 }
 0x9f1   :  { %v13142_v26 = vsub.f32 %v4027_v35, %v4035_v25  ;;  %v9271_v35 = vld [vmem:[%s14795_s1 + $0x9c] sm:$0xf0] }
 0x9f2   :  { %v9274_v57 = vor.u32 %v10976_v22, %v9271_v35 }
 0x9f3   :  { %v4039_v54 = vmul.f32 %v13142_v26, %v13142_v26 }
 0x9f4   :  { %4237 = vmatpush.bf16.msra.mxu1 %v9274_v57 }
 0x9f5   :  { %v4043_v37 = vsel %vm177_vm0, %v4039_v54, 0.0 }
 0x9f6   :  { %4044 = vadd.xlane.f32.xlu1 %v4043_v37 }
 0xa61   :  { %v4042_v53 = vpop.xlane.xlu0 %4041 }
 0xa62   :  { %v4046_v21 = vmul.f32 0.010416667, %v4042_v53 }
 0xa64   :  { %v4048_v6 = vadd.f32 1e-05, %v4046_v21 }
 0xa66   :  { %11316 = vrsqrt.f32 %v4048_v6  ;;  %vm4056_vm9 = vweird.f32 %v4048_v6 }
 0xa69   :  { %v4045_v34 = vpop.xlane.xlu1 %4044 }
 0xa6a   :  { %v4047_v30 = vmul.f32 0.010416667, %v4045_v34 }
 0xa6c   :  { %v11317_v25 = vpop.eup %11316  ;;  %v4049_v54 = vadd.f32 1e-05, %v4047_v30 }
 0xa6d   :  { %v4051_v37 = vmul.f32 %v11317_v25, %v4048_v6  ;;  %vm4057_vm8 = vweird.f32 %v11317_v25 }
 0xa6e   :  { %11318 = vrsqrt.f32 %v4049_v54  ;;  %vm4058_vm10 = vmor %vm4056_vm9, %vm4057_vm8  ;;  %vm4066_vm12 = vweird.f32 %v4049_v54 }
 0xa6f   :  { %v4052_v24 = vmul.f32 %v11317_v25, %v4051_v37 }
 0xa71   :  { %v4053_v63 = vmul.f32 0.5, %v4052_v24 }
 0xa73   :  { %v4054_v46 = vsub.f32 1.5, %v4053_v63 }
 0xa74   :  { %v11319_v32 = vpop.eup %11318 }
 0xa75   :  { %v4055_v36 = vmul.f32 %v11317_v25, %v4054_v46  ;;  %v4061_v27 = vmul.f32 %v11319_v32, %v4049_v54  ;;  %vm4067_vm11 = vweird.f32 %v11319_v32 }
 0xa76   :  { %vm4068_vm13 = vmor %vm4066_vm12, %vm4067_vm11 }
 0xa77   :  { %v4062_v38 = vmul.f32 %v11319_v32, %v4061_v27  ;;  %v4059_v39 = vsel %vm4058_vm10, %v11317_v25, %v4055_v36 }
 0xa78   :  { %v4070_v44 = vmul.f32 %v4059_v39, %v13137_v29  ;;  %v13275_v29 = vld [vmem:[%s14796_s2 + $0x3] sm:$0x7]  ;;  %s14812_s2 = smov 32  }
 0xa79   :  { %v4063_v33 = vmul.f32 0.5, %v4062_v38  ;;  %v4111_v60 = vperm.slane %v13275_v29, 0  ;;  %v4113_v12 = vperm.slane %v13275_v29, 2 }
 0xa7a   :  { %v4075_v59 = vmul.f32 %v11240_v4, %v4070_v44 }
 0xa7b   :  { %v4064_v47 = vsub.f32 1.5, %v4063_v33 }
 0xa7c   :  { %v13263_v43 = vadd.f32 %v11241_v1, %v4075_v59 }
 0xa7d   :  { %v4065_v49 = vmul.f32 %v11319_v32, %v4064_v47 }
 0xa7f   :  { %v4069_v42 = vsel %vm4068_vm13, %v11319_v32, %v4065_v49 }
 0xa80   :  { %v4071_v50 = vmul.f32 %v4069_v42, %v13142_v26  ;;  %v4112_v26 = vperm.slane %v13275_v29, 1 }
 0xa82   :  { %v4076_v61 = vmul.f32 %v11240_v4, %v4071_v50 }
 0xa84   :  { %v13265_v55 = vadd.f32 %v11241_v1, %v4076_v61 }
 0xa86   :  { %v4082_v58 = vpack.c.bf16 %v13265_v55, %v13263_v43 }
 0xa88   :  { %9339 = vmatmul.msk.bf16.vlgmr.msrb.gmra.mxu2 %vm177_vm0, %v4082_v58  ;;  %9340 = vmatmul.msk.bf16.vlgmr.msra.gmra.mxu1 %vm177_vm0, %v4082_v58 }
 0xa89   :  { %9341 = vmatmul.msk.bf16.vlgmr.msrb.gmra.mxu3 %vm177_vm0, %v4082_v58 }
 0xb05   :  { %v4239_v31 = vpop.f32.mrf.mxu1 }
 0xb06   :  { %v13278_v56 = vadd.f32 %v4239_v31, %v4112_v26 }
 0xb08   :  { %4286 = vrot.lane.b32.xlu1 %v13278_v56, %s11422_s30  ;;  %4314 = vrot.lane.b32.xlu2 %v13278_v56, %s11421_s29 }
 0xb09   :  { %9342 = vmatpush.xpose.msk.msrb.mxu0 %vm223_vm1, %v13278_v56 }
 0xb0b   :  { %v4225_v62 = vpop.f32.mrf.mxu2 }
 0xb0c   :  { %v13287_v41 = vadd.f32 %v4225_v62, %v4111_v60  ;;  %v4253_v14 = vpop.f32.mrf.mxu3 }
 0xb0d   :  { %v4241_v7 = vpop.f32.mrf.mxu1  ;;  %v13330_v22 = vadd.f32 %v4253_v14, %v4113_v12 }
 0xb0e   :  { %4312 = vrot.lane.b32.xlu0 %v13287_v41, %s11421_s29  ;;  %9343 = vmatmul.msk.f32.vlgmr.msrb.gmra.mxu0 %vm223_vm1, %v13287_v41  ;;  %v13309_v9 = vadd.f32 %v4241_v7, %v4112_v26 }
 0xb10   :  { %4398 = vrot.lane.b32.xlu2 %v13278_v56, %s11420_s28  ;;  %4396 = vrot.lane.b32.xlu1 %v13287_v41, %s11420_s28 }
 0xb13   :  { %v4227_v11 = vpop.f32.mrf.mxu2 }
 0xb14   :  { %v13316_v15 = vadd.f32 %v4227_v11, %v4111_v60 }
 0xb16   :  { %4284 = vrot.lane.b32.xlu0 %v13287_v41, %s11422_s30 }
 0xb18   :  { %4370 = vrot.lane.b32.xlu1 %v13278_v56, %s11424_s15 }
 0xb20   :  { %4368 = vrot.lane.b32.xlu1 %v13287_v41, %s11424_s15 }
 0xb62   :  { %v4315_v51 = vpop.permute.xlu2 %4314 }
 0xb63   :  { %9346 = vmatpush.xpose.msk.msra.mxu2 %vm223_vm1, %v4315_v51 }
 0xb6a   :  { %v4399_v2 = vpop.permute.xlu2 %4398 }
 0xb6b   :  { %9352 = vmatpush.xpose.msk.msrb.mxu2 %vm223_vm1, %v4399_v2 }
 0xb7a   :  { %v4287_v5 = vpop.permute.xlu1 %4286 }
 0xb7b   :  { %9344 = vmatpush.xpose.msk.msra.mxu0 %vm223_vm1, %v4287_v5 }
 0xb80   :  { %v4313_v0 = vpop.permute.xlu0 %4312 }
 0xb81   :  { %9347 = vmatmul.msk.f32.vlgmr.msra.gmra.mxu2 %vm223_vm1, %v4313_v0 }
 0xb82   :  { %v4397_v3 = vpop.permute.xlu1 %4396 }
 0xb88   :  { %v4285_v8 = vpop.permute.xlu0 %4284 }
 0xb89   :  { %9345 = vmatmul.msk.f32.vlgmr.msra.gmra.mxu0 %vm223_vm1, %v4285_v8  ;;  %9353 = vmatmul.msk.f32.vlgmr.msrb.gmra.mxu2 %vm223_vm1, %v4397_v3 }
 0xb8a   :  { %v4371_v48 = vpop.permute.xlu1 %4370 }
 0xb8b   :  { %v4281_v10 = vpop.f32.mrf.mxu0  ;;  %9350 = vmatpush.xpose.msk.msrb.mxu1 %vm223_vm1, %v4371_v48 }
 0xb8c   :  { %v4702_v45 = vsel %vm668_vm2, %v4281_v10, -inf }
 0xb8d   :  { %4703 = vmax.xlane.f32.xlu0 %v4702_v45 }
 0xb8f   :  { %9358 = vmatpush.xpose.msk.msra.mxu1 %vm223_vm1, %v13309_v9 }
 0xb92   :  { %v4369_v23 = vpop.permute.xlu1 %4368 }
 0xb93   :  { %9351 = vmatmul.msk.f32.vlgmr.msrb.gmra.mxu1 %vm223_vm1, %v4369_v23 }
 0xb9b   :  { %9359 = vmatmul.msk.f32.vlgmr.msra.gmra.mxu1 %vm223_vm1, %v13316_v15 }
 0xc00   :  { %v4704_v18 = vpop.xlane.xlu0 %4703 }
 0xc01   :  { %v4750_v13 = vsub.f32 %v4281_v10, %v4704_v18 }
 0xc03   :  { %v4766_v17 = vmul.f32 1.442695, %v4750_v13 }
 0xc04   :  { %v4337_v53 = vpop.f32.mrf.mxu2 }
 0xc05   :  { %11320 = vpow2.f32 %v4766_v17  ;;  %v4708_v19 = vsel %vm668_vm2, %v4337_v53, -inf }
 0xc06   :  { %4709 = vmax.xlane.f32.xlu2 %v4708_v19  ;;  %v4309_v6 = vpop.f32.mrf.mxu0 }
 0xc07   :  { %v4705_v40 = vsel %vm668_vm2, %v4309_v6, -inf }
 0xc0b   :  { %v13321_v20 = vpop.eup %11320 }
 0xc0c   :  { %v4798_v21 = vsel %vm668_vm2, %v13321_v20, 0.0  ;;  %v13347_v37 = vpop.f32.mrf.mxu2 }
 0xc0d   :  { %4799 = vadd.xlane.f32.xlu1 %v4798_v21  ;;  %v4717_v63 = vsel %vm668_vm2, %v13347_v37, -inf }
 0xc10   :  { %v13387_v7 = vpop.f32.mrf.mxu1 }
 0xc11   :  { %v4714_v8 = vsel %vm668_vm2, %v13387_v7, -inf }
 0xc1e   :  { %4592 = vrot.lane.b32.xlu2 %v13309_v9, %s11424_s15 }
 0xc26   :  { %5188 = vrot.lane.b32.xlu1 %v13330_v22, %s11421_s29 }
 0xc47   :  { %4706 = vmax.xlane.f32.xlu2 %v4705_v40 }
 0xc5f   :  { %4508 = vrot.lane.b32.xlu2 %v13309_v9, %s11422_s30 }
 0xc67   :  { %4618 = vrot.lane.b32.xlu2 %v13316_v15, %s11420_s28 }
 0xc79   :  { %v4710_v35 = vpop.xlane.xlu2 %4709 }
 0xc7a   :  { %v4752_v16 = vsub.f32 %v4337_v53, %v4710_v35  ;;  %v13400_v53 = vpop.f32.mrf.mxu1 }
 0xc7b   :  { %v4726_v21 = vsel %vm668_vm2, %v13400_v53, -inf }
 0xc7c   :  { %v4770_v57 = vmul.f32 1.442695, %v4752_v16 }
 0xc7e   :  { %11322 = vpow2.f32 %v4770_v57  ;;  %v13409_v57 = vld [vmem:[%s14797_s3 + $0x50] sm:$0xff] }
 0xc80   :  { %v4800_v36 = vpop.xlane.xlu1 %4799 }
 0xc81   :  { %v4593_v28 = vpop.permute.xlu2 %4592  ;;  %v4857_v1 = vand.u32 2147483648, %v4800_v36  ;;  %vm4851_vm15 = vweird.f32 %v4800_v36  ;;  %v4855_v59 = vand.u32 2147483647, %v4800_v36 }
 0xc82   :  { %9366 = vmatpush.xpose.msk.msrb.mxu1 %vm223_vm1, %v4593_v28 }
 0xc83   :  { %v4858_v31 = vor.u32 1.1754944e-38, %v4857_v1  ;;  %vm4856_vm4 = vcmp.eq.f32.partialorder %v4855_v59, 8.507059e+37 }
 0xc84   :  { %v13341_v52 = vpop.eup %11322 }
 0xc85   :  { %v4804_v34 = vsel %vm668_vm2, %v13341_v52, 0.0 }
 0xc86   :  { %5104 = vmatpush.msra.mxu1 %v13330_v22  ;;  %4805 = vadd.xlane.f32.xlu0 %v4804_v34 }
 0xc98   :  { %v5189_v58 = vpop.permute.xlu1 %5188 }
 0xc9a   :  { %4590 = vrot.lane.b32.xlu0 %v13316_v15, %s11424_s15 }
 0xcba   :  { %v4707_v30 = vpop.xlane.xlu2 %4706 }
 0xcbb   :  { %v4751_v25 = vsub.f32 %v4309_v6, %v4707_v30 }
 0xcbd   :  { %v4768_v54 = vmul.f32 1.442695, %v4751_v25 }
 0xcbf   :  { %11324 = vpow2.f32 %v4768_v54 }
 0xcc0   :  { %11326 = vrcp.f32 %v4800_v36 }
 0xcc2   :  { %v4509_v24 = vpop.permute.xlu2 %4508 }
 0xcc3   :  { %9360 = vmatpush.xpose.msk.msra.mxu2 %vm223_vm1, %v4509_v24 }
 0xcc4   :  { %4718 = vmax.xlane.f32.xlu0 %v4717_v63 }
 0xcc5   :  { %v13352_v46 = vpop.eup %11324 }
 0xcc6   :  { %v4801_v32 = vsel %vm668_vm2, %v13352_v46, 0.0  ;;  %v11327_v38 = vpop.eup %11326 }
 0xcc7   :  { %4802 = vadd.xlane.f32.xlu1 %v4801_v32  ;;  %v4847_v39 = vmul.f32 %v11327_v38, %v4800_v36  ;;  %vm4852_vm14 = vweird.f32 %v11327_v38 }
 0xcc8   :  { %vm4853_vm3 = vmor %vm4851_vm15, %vm4852_vm14 }
 0xcc9   :  { %v4848_v33 = vsub.f32 1.0, %v4847_v39 }
 0xccb   :  { %v4849_v4 = vmul.f32 %v11327_v38, %v4848_v33 }
 0xccd   :  { %v4850_v49 = vadd.f32 %v11327_v38, %v4849_v4 }
 0xccf   :  { %v4854_v61 = vsel %vm4853_vm3, %v11327_v38, %v4850_v49 }
 0xcd8   :  { %4506 = vrot.lane.b32.xlu0 %v13316_v15, %s11422_s30 }
 0xce0   :  { %5114 = vrot.lane.b32.xlu0 %v13330_v22, %s11422_s30  ;;  %4620 = vrot.lane.b32.xlu1 %v13309_v9, %s11420_s28 }
 0xce8   :  { %4342 = vrot.lane.b32.xlu0 %v13278_v56, %s11423_s14  ;;  %4454 = vrot.lane.b32.xlu1 %v13278_v56, %s11425_s16 }
 0xcf0   :  { %5347 = vrot.lane.b32.xlu0 %v13330_v22, %s11420_s28  ;;  %4452 = vrot.lane.b32.xlu1 %v13287_v41, %s11425_s16 }
 0xcf8   :  { %4340 = vrot.lane.b32.xlu0 %v13287_v41, %s11423_s14  ;;  %4536 = vrot.lane.b32.xlu1 %v13309_v9, %s11421_s29 }
 0xcf9   :  { %v4806_v27 = vpop.xlane.xlu0 %4805 }
 0xcfa   :  { %11328 = vrcp.f32 %v4806_v27  ;;  %v4885_v62 = vand.u32 2147483648, %v4806_v27  ;;  %vm4879_vm6 = vweird.f32 %v4806_v27  ;;  %v4883_v51 = vand.u32 2147483647, %v4806_v27 }
 0xcfc   :  { %v4886_v5 = vor.u32 1.1754944e-38, %v4885_v62  ;;  %vm4884_vm8 = vcmp.eq.f32.partialorder %v4883_v51, 8.507059e+37 }
 0xd00   :  { %4426 = vrot.lane.b32.xlu0 %v13278_v56, %s14812_s2  ;;  %v11329_v47 = vpop.eup %11328  ;;  %v4859_v56 = vsel %vm4856_vm4, %v4858_v31, %v4854_v61 }
 0xd01   :  { %v4875_v44 = vmul.f32 %v11329_v47, %v4806_v27  ;;  %vm4880_vm5 = vweird.f32 %v11329_v47 }
 0xd02   :  { %vm4881_vm7 = vmor %vm4879_vm6, %vm4880_vm5 }
 0xd03   :  { %v4876_v42 = vsub.f32 1.0, %v4875_v44 }
 0xd05   :  { %v4877_v26 = vmul.f32 %v11329_v47, %v4876_v42 }
 0xd07   :  { %v4878_v60 = vadd.f32 %v11329_v47, %v4877_v26 }
 0xd08   :  { %4424 = vrot.lane.b32.xlu0 %v13287_v41, %s14812_s2  ;;  %v5070_v41 = vmul.f32 %v13321_v20, %v4859_v56 }
 0xd09   :  { %v4882_v2 = vsel %vm4881_vm7, %v11329_v47, %v4878_v60 }
 0xd0a   :  { %v4887_v0 = vsel %vm4884_vm8, %v4886_v5, %v4882_v2 }
 0xd0b   :  { %v5072_v3 = vmul.f32 %v13341_v52, %v4887_v0  ;;  %v4619_v52 = vpop.permute.xlu2 %4618 }
 0xd0c   :  { %v4591_v50 = vpop.permute.xlu0 %4590 }
 0xd0d   :  { %9367 = vmatmul.msk.f32.vlgmr.msrb.gmra.mxu1 %vm223_vm1, %v4591_v50 }
 0xd0e   :  { %5209 = vmatpush.msrb.mxu1 %v5189_v58 }
 0xd10   :  { %4534 = vrot.lane.b32.xlu0 %v13316_v15, %s11421_s29 }
 0xd15   :  { %9374 = vmatmul.msk.f32.vlgmr.msra.gmra.mxu1 %vm668_vm2, %v5070_v41 }
 0xd18   :  { %4564 = vrot.lane.b32.xlu0 %v13309_v9, %s11423_s14 }
 0xd1d   :  { %9390 = vmatmul.msk.f32.vlgmr.msrb.gmra.mxu1 %vm668_vm2, %v5072_v3 }
 0xd20   :  { %4676 = vrot.lane.b32.xlu0 %v13309_v9, %s11425_s16 }
 0xd22   :  { %4715 = vmax.xlane.f32.xlu1 %v4714_v8 }
 0xd28   :  { %4674 = vrot.lane.b32.xlu0 %v13316_v15, %s11425_s16 }
 0xd37   :  { %v4719_v48 = vpop.xlane.xlu0 %4718 }
 0xd38   :  { %v4755_v10 = vsub.f32 %v13347_v37, %v4719_v48 }
 0xd3a   :  { %v4776_v45 = vmul.f32 1.442695, %v4755_v10  ;;  %v4803_v23 = vpop.xlane.xlu1 %4802 }
 0xd3b   :  { %v4871_v16 = vand.u32 2147483648, %v4803_v23  ;;  %vm4865_vm10 = vweird.f32 %v4803_v23  ;;  %v4869_v28 = vand.u32 2147483647, %v4803_v23 }
 0xd3c   :  { %11330 = vpow2.f32 %v4776_v45 }
 0xd3d   :  { %11332 = vrcp.f32 %v4803_v23  ;;  %v4872_v30 = vor.u32 1.1754944e-38, %v4871_v16  ;;  %vm4870_vm12 = vcmp.eq.f32.partialorder %v4869_v28, 8.507059e+37  ;;  %v13474_v16 = vld [vmem:[%s14797_s3 + $0x68] sm:$0xff] }
 0xd42   :  { %v13396_v11 = vpop.eup %11330 }
 0xd43   :  { %v11333_v18 = vpop.eup %11332  ;;  %v4813_v13 = vsel %vm668_vm2, %v13396_v11, 0.0 }
 0xd44   :  { %4814 = vadd.xlane.f32.xlu2 %v4813_v13  ;;  %v4861_v17 = vmul.f32 %v11333_v18, %v4803_v23  ;;  %vm4866_vm9 = vweird.f32 %v11333_v18 }
 0xd45   :  { %vm4867_vm11 = vmor %vm4865_vm10, %vm4866_vm9 }
 0xd46   :  { %v4862_v19 = vsub.f32 1.0, %v4861_v17 }
 0xd48   :  { %v4863_v14 = vmul.f32 %v11333_v18, %v4862_v19 }
 0xd4a   :  { %v4507_v20 = vpop.permute.xlu0 %4506  ;;  %v4864_v6 = vadd.f32 %v11333_v18, %v4863_v14  ;;  %v4255_v14 = vpop.f32.mrf.mxu3 }
 0xd4b   :  { %9361 = vmatmul.msk.f32.vlgmr.msra.gmra.mxu2 %vm223_vm1, %v4507_v20 }
 0xd4c   :  { %4727 = vmax.xlane.f32.xlu2 %v4726_v21  ;;  %v4868_v34 = vsel %vm4867_vm11, %v11333_v18, %v4864_v6 }
 0xd4d   :  { %v4873_v25 = vsel %vm4870_vm12, %v4872_v30, %v4868_v34 }
 0xd4e   :  { %v5071_v24 = vmul.f32 %v13352_v46, %v4873_v25 }
 0xd52   :  { %v5115_v40 = vpop.permute.xlu0 %5114  ;;  %v4621_v35 = vpop.permute.xlu1 %4620 }
 0xd53   :  { %9368 = vmatpush.xpose.msk.msrb.mxu2 %vm223_vm1, %v4621_v35 }
 0xd56   :  { %9369 = vmatmul.msk.f32.vlgmr.msrb.gmra.mxu2 %vm223_vm1, %v4619_v52 }
 0xd57   :  { %5135 = vmatpush.msra.mxu2 %v5115_v40 }
 0xd59   :  { %5234 = vmatpush.bf16.msrb.mxu2 %v13409_v57 }
 0xd5a   :  { %v4343_v54 = vpop.permute.xlu0 %4342  ;;  %v4455_v37 = vpop.permute.xlu1 %4454 }
 0xd5b   :  { %9348 = vmatpush.xpose.msk.msrb.mxu0 %vm223_vm1, %v4343_v54 }
 0xd5e   :  { %9377 = vmatmul.msk.f32.vlgmr.msra.gmra.mxu2 %vm668_vm2, %v5071_v24 }
 0xd5f   :  { %9356 = vmatpush.xpose.msk.msra.mxu0 %vm223_vm1, %v4455_v37 }
 0xd62   :  { %v5348_v63 = vpop.permute.xlu0 %5347  ;;  %v4453_v32 = vpop.permute.xlu1 %4452 }
 0xd63   :  { %5368 = vmatpush.msra.mxu2 %v5348_v63 }
 0xd64   :  { %4562 = vrot.lane.b32.xlu2 %v13316_v15, %s11423_s14 }
 0xd6a   :  { %v4341_v36 = vpop.permute.xlu0 %4340  ;;  %v4537_v38 = vpop.permute.xlu1 %4536 }
 0xd6b   :  { %9349 = vmatmul.msk.f32.vlgmr.msrb.gmra.mxu0 %vm223_vm1, %v4341_v36 }
 0xd6c   :  { %5294 = vrot.lane.b32.xlu2 %v13330_v22, %s11424_s15 }
 0xd72   :  { %v4427_v27 = vpop.permute.xlu0 %4426 }
 0xd73   :  { %9354 = vmatpush.xpose.msk.msra.mxu3 %vm223_vm1, %v4427_v27  ;;  %9357 = vmatmul.msk.f32.vlgmr.msra.gmra.mxu0 %vm223_vm1, %v4453_v32 }
 0xd77   :  { %9362 = vmatpush.xpose.msk.msrb.mxu3 %vm223_vm1, %v4537_v38 }
 0xd7a   :  { %v4425_v46 = vpop.permute.xlu0 %4424 }
 0xd7b   :  { %9355 = vmatmul.msk.f32.vlgmr.msra.gmra.mxu3 %vm223_vm1, %v4425_v46 }
 0xd82   :  { %v4535_v39 = vpop.permute.xlu0 %4534 }
 0xd83   :  { %9363 = vmatmul.msk.f32.vlgmr.msrb.gmra.mxu3 %vm223_vm1, %v4535_v39 }
 0xd8a   :  { %v13427_v33 = vpop.f32.mrf.mxu1  ;;  %v4565_v47 = vpop.permute.xlu0 %4564 }
 0xd8b   :  { %9364 = vmatpush.xpose.msk.msrb.mxu0 %vm223_vm1, %v4565_v47  ;;  %v4738_v52 = vsel %vm668_vm2, %v13427_v33, -inf  ;;  %v13488_v47 = vadd.f32 %v4255_v14, %v4113_v12 }
 0xd92   :  { %v5106_v4 = vpop.f32.mrf.mxu1  ;;  %v4677_v44 = vpop.permute.xlu0 %4676 }
 0xd93   :  { %9372 = vmatpush.xpose.msk.msra.mxu0 %vm223_vm1, %v4677_v44  ;;  %v5109_v19 = vpack.c.bf16 %v5106_v4, %v5106_v4 }
 0xd95   :  { %v4716_v49 = vpop.xlane.xlu1 %4715 }
 0xd96   :  { %v4754_v42 = vsub.f32 %v13387_v7, %v4716_v49 }
 0xd98   :  { %v4774_v1 = vmul.f32 1.442695, %v4754_v42 }
 0xd9a   :  { %11334 = vpow2.f32 %v4774_v1  ;;  %v5211_v59 = vpop.f32.mrf.mxu1  ;;  %v4675_v13 = vpop.permute.xlu0 %4674 }
 0xd9b   :  { %v5214_v50 = vpack.c.bf16 %v5211_v59, %v5211_v59 }
 0xd9d   :  { %9397 = vmatmul.msk.bf16.vlgmr.msrb.gmra.mxu2 %vm223_vm1, %v5214_v50 }
 0xda0   :  { %v13433_v61 = vpop.eup %11334 }
 0xda1   :  { %v4810_v58 = vsel %vm668_vm2, %v13433_v61, 0.0 }
 0xda2   :  { %4811 = vadd.xlane.f32.xlu0 %v4810_v58 }
 0xdb6   :  { %4646 = vrot.lane.b32.xlu0 %v13316_v15, %s14812_s2  ;;  %v13443_v15 = vld [vmem:[%s14797_s3 + $0x40] sm:$0xff] }
 0xdb7   :  { %v4815_v26 = vpop.xlane.xlu2 %4814 }
 0xdb8   :  { %11336 = vrcp.f32 %v4815_v26  ;;  %v4927_v51 = vand.u32 2147483648, %v4815_v26  ;;  %v4925_v0 = vand.u32 2147483647, %v4815_v26  ;;  %vm4921_vm14 = vweird.f32 %v4815_v26 }
 0xdba   :  { %v4928_v7 = vor.u32 1.1754944e-38, %v4927_v51  ;;  %vm4926_vm3 = vcmp.eq.f32.partialorder %v4925_v0, 8.507059e+37 }
 0xdbe   :  { %v11337_v31 = vpop.eup %11336 }
 0xdbf   :  { %v4917_v56 = vmul.f32 %v11337_v31, %v4815_v26  ;;  %v4728_v60 = vpop.xlane.xlu2 %4727  ;;  %vm4922_vm13 = vweird.f32 %v11337_v31 }
 0xdc0   :  { %v4758_v62 = vsub.f32 %v13400_v53, %v4728_v60  ;;  %vm4923_vm15 = vmor %vm4921_vm14, %vm4922_vm13 }
 0xdc1   :  { %v4918_v41 = vsub.f32 1.0, %v4917_v56 }
 0xdc2   :  { %v4782_v2 = vmul.f32 1.442695, %v4758_v62 }
 0xdc3   :  { %v4919_v5 = vmul.f32 %v11337_v31, %v4918_v41 }
 0xdc4   :  { %11338 = vpow2.f32 %v4782_v2 }
 0xdc5   :  { %v4920_v3 = vadd.f32 %v11337_v31, %v4919_v5 }
 0xdc7   :  { %v4924_v8 = vsel %vm4923_vm15, %v11337_v31, %v4920_v3  ;;  %v4563_v48 = vpop.permute.xlu2 %4562 }
 0xdc8   :  { %v4929_v10 = vsel %vm4926_vm3, %v4928_v7, %v4924_v8  ;;  %9365 = vmatmul.msk.f32.vlgmr.msrb.gmra.mxu0 %vm223_vm1, %v4563_v48 }
 0xdc9   :  { %v5075_v45 = vmul.f32 %v13396_v11, %v4929_v10  ;;  %5182 = vmatpush.bf16.msrb.mxu0 %v13443_v15 }
 0xdca   :  { %v13448_v23 = vpop.eup %11338 }
 0xdcb   :  { %9414 = vmatmul.msk.f32.vlgmr.msra.gmra.mxu2 %vm668_vm2, %v5075_v45  ;;  %v4822_v18 = vsel %vm668_vm2, %v13448_v23, 0.0  ;;  %v13518_v45 = vld [vmem:[%s14797_s3 + $0x48] sm:$0xff] }
 0xdcc   :  { %4823 = vadd.xlane.f32.xlu2 %v4822_v18 }
 0xdce   :  { %v13453_v53 = vpop.f32.mrf.mxu2 }
 0xdcf   :  { %v5295_v17 = vpop.permute.xlu2 %5294  ;;  %v4729_v11 = vsel %vm668_vm2, %v13453_v53, -inf }
 0xdd0   :  { %9373 = vmatmul.msk.f32.vlgmr.msra.gmra.mxu0 %vm223_vm1, %v4675_v13 }
 0xdd1   :  { %5315 = vmatpush.msra.mxu0 %v5295_v17 }
 0xdd4   :  { %4730 = vmax.xlane.f32.xlu2 %v4729_v11 }
 0xdd8   :  { %9389 = vmatmul.msk.bf16.vlgmr.msrb.gmra.mxu0 %vm223_vm1, %v5109_v19 }
 0xdd9   :  { %5393 = vmatpush.bf16.msrb.mxu0 %v13474_v16  ;;  %v13477_v28 = vpop.f32.mrf.mxu2 }
 0xde1   :  { %v13481_v34 = vpop.f32.mrf.mxu2 }
 0xde2   :  { %v5140_v19 = vpack.c.bf16 %v13481_v34, %v13481_v34 }
 0xde8   :  { %v13459_v20 = vpop.f32.mrf.mxu0 }
 0xde9   :  { %v4711_v21 = vsel %vm668_vm2, %v13459_v20, -inf }
 0xdea   :  { %4712 = vmax.xlane.f32.xlu1 %v4711_v21 }
 0xdf0   :  { %v13492_v44 = vpop.f32.mrf.mxu0 }
 0xdf1   :  { %v4723_v49 = vsel %vm668_vm2, %v13492_v44, -inf }
 0xdfe   :  { %v13463_v6 = vpop.f32.mrf.mxu3 }
 0xe03   :  { %4648 = vrot.lane.b32.xlu1 %v13309_v9, %s14812_s2 }
 0xe06   :  { %v13467_v40 = vpop.f32.mrf.mxu3 }
 0xe07   :  { %v4732_v35 = vsel %vm668_vm2, %v13467_v40, -inf }
 0xe08   :  { %4733 = vmax.xlane.f32.xlu2 %v4732_v35 }
 0xe10   :  { %4739 = vmax.xlane.f32.xlu2 %v4738_v52 }
 0xe15   :  { %v4812_v9 = vpop.xlane.xlu0 %4811 }
 0xe16   :  { %11340 = vrcp.f32 %v4812_v9  ;;  %v4913_v37 = vand.u32 2147483648, %v4812_v9  ;;  %v4911_v32 = vand.u32 2147483647, %v4812_v9  ;;  %vm4907_vm5 = vweird.f32 %v4812_v9 }
 0xe18   :  { %v4914_v27 = vor.u32 1.1754944e-38, %v4913_v37  ;;  %vm4912_vm7 = vcmp.eq.f32.partialorder %v4911_v32, 8.507059e+37 }
 0xe1c   :  { %v11341_v30 = vpop.eup %11340 }
 0xe1d   :  { %v4903_v25 = vmul.f32 %v11341_v30, %v4812_v9  ;;  %vm4908_vm4 = vweird.f32 %v11341_v30  ;;  %v4741_v9 = vsel %vm668_vm2, %v13477_v28, -inf }
 0xe1e   :  { %vm4909_vm6 = vmor %vm4907_vm5, %vm4908_vm4 }
 0xe1f   :  { %v4904_v54 = vsub.f32 1.0, %v4903_v25 }
 0xe20   :  { %v13483_v24 = vpop.f32.mrf.mxu2 }
 0xe21   :  { %v4905_v63 = vmul.f32 %v11341_v30, %v4904_v54 }
 0xe23   :  { %v4906_v36 = vadd.f32 %v11341_v30, %v4905_v63 }
 0xe25   :  { %v4910_v38 = vsel %vm4909_vm6, %v11341_v30, %v4906_v36 }
 0xe26   :  { %v4915_v46 = vsel %vm4912_vm7, %v4914_v27, %v4910_v38 }
 0xe27   :  { %v5074_v39 = vmul.f32 %v13433_v61, %v4915_v46 }
 0xe28   :  { %v5238_v4 = vpop.f32.mrf.mxu2  ;;  %5241 = vrot.lane.b32.xlu2 %v13330_v22, %s11423_s14 }
 0xe29   :  { %9406 = vmatmul.msk.f32.vlgmr.msra.gmra.mxu0 %vm668_vm2, %v5074_v39 }
 0xe2a   :  { %5524 = vmatpush.msra.mxu0 %v13488_v47 }
 0xe2d   :  { %4724 = vmax.xlane.f32.xlu1 %v4723_v49 }
 0xe3f   :  { %v4824_v42 = vpop.xlane.xlu2 %4823 }
 0xe40   :  { %11342 = vrcp.f32 %v4824_v42  ;;  %v4969_v60 = vand.u32 2147483648, %v4824_v42  ;;  %vm4963_vm9 = vweird.f32 %v4824_v42  ;;  %v4967_v62 = vand.u32 2147483647, %v4824_v42 }
 0xe42   :  { %v4970_v51 = vor.u32 1.1754944e-38, %v4969_v60  ;;  %vm4968_vm11 = vcmp.eq.f32.partialorder %v4967_v62, 8.507059e+37 }
 0xe45   :  { %v13498_v1 = vpop.f32.mrf.mxu0 }
 0xe46   :  { %v11343_v29 = vpop.eup %11342  ;;  %5453 = vrot.lane.b32.xlu1 %v13330_v22, %s11425_s16 }
 0xe47   :  { %v4959_v12 = vmul.f32 %v11343_v29, %v4824_v42  ;;  %vm4964_vm8 = vweird.f32 %v11343_v29  ;;  %v4731_v10 = vpop.xlane.xlu2 %4730 }
 0xe48   :  { %vm4965_vm10 = vmor %vm4963_vm9, %vm4964_vm8  ;;  %v4759_v54 = vsub.f32 %v13453_v53, %v4731_v10 }
 0xe49   :  { %v4960_v59 = vsub.f32 1.0, %v4959_v12 }
 0xe4a   :  { %v4784_v32 = vmul.f32 1.442695, %v4759_v54 }
 0xe4b   :  { %v4961_v26 = vmul.f32 %v11343_v29, %v4960_v59 }
 0xe4d   :  { %v13502_v50 = vpop.f32.mrf.mxu0  ;;  %v4962_v31 = vadd.f32 %v11343_v29, %v4961_v26 }
 0xe4e   :  { %v5370_v61 = vpop.f32.mrf.mxu2  ;;  %v4747_v38 = vsel %vm668_vm2, %v13502_v50, -inf }
 0xe4f   :  { %v5373_v58 = vpack.c.bf16 %v5370_v61, %v5370_v61  ;;  %v4966_v41 = vsel %vm4965_vm10, %v11343_v29, %v4962_v31 }
 0xe50   :  { %v4971_v2 = vsel %vm4968_vm11, %v4970_v51, %v4966_v41 }
 0xe51   :  { %9421 = vmatmul.msk.bf16.vlgmr.msrb.gmra.mxu0 %vm223_vm1, %v5373_v58  ;;  %v5078_v7 = vmul.f32 %v13448_v23, %v4971_v2  ;;  %v4647_v23 = vpop.permute.xlu0 %4646 }
 0xe52   :  { %5584 = vmatpush.bf16.msrb.mxu0 %v13443_v15 }
 0xe55   :  { %v13506_v56 = vpop.f32.mrf.mxu0 }
 0xe5d   :  { %v4713_v5 = vpop.xlane.xlu1 %4712  ;;  %v5186_v0 = vpop.f32.mrf.mxu0 }
 0xe5e   :  { %v4753_v3 = vsub.f32 %v13459_v20, %v4713_v5 }
 0xe60   :  { %v4772_v8 = vmul.f32 1.442695, %v4753_v3 }
 0xe61   :  { %9438 = vmatmul.msk.f32.vlgmr.msra.gmra.mxu0 %vm668_vm2, %v5078_v7 }
 0xe62   :  { %11344 = vpow2.f32 %v4772_v8 }
 0xe68   :  { %v13511_v15 = vpop.eup %11344 }
 0xe69   :  { %v4807_v48 = vsel %vm668_vm2, %v13511_v15, 0.0 }
 0xe6a   :  { %4808 = vadd.xlane.f32.xlu0 %v4807_v48 }
 0xe75   :  { %v4649_v18 = vpop.permute.xlu1 %4648 }
 0xe76   :  { %9370 = vmatpush.xpose.msk.msra.mxu3 %vm223_vm1, %v4649_v18 }
 0xe79   :  { %9371 = vmatmul.msk.f32.vlgmr.msra.gmra.mxu3 %vm223_vm1, %v4647_v23 }
 0xe7a   :  { %5160 = vmatpush.bf16.msrb.mxu3 %v13518_v45 }
 0xe7b   :  { %v4734_v13 = vpop.xlane.xlu2 %4733 }
 0xe7c   :  { %v4760_v17 = vsub.f32 %v13467_v40, %v4734_v13  ;;  %v4720_v40 = vsel %vm668_vm2, %v13463_v6, -inf }
 0xe7e   :  { %v4786_v11 = vmul.f32 1.442695, %v4760_v17  ;;  %5531 = vrot.lane.b32.xlu0 %v13488_v47, %s11422_s30 }
 0xe80   :  { %11346 = vpow2.f32 %v4786_v11 }
 0xe81   :  { %9384 = vmatmul.msk.bf16.vlgmr.msrb.gmra.mxu3 %vm223_vm1, %v5140_v19 }
 0xe83   :  { %v4740_v20 = vpop.xlane.xlu2 %4739 }
 0xe84   :  { %v4762_v52 = vsub.f32 %v13427_v33, %v4740_v20 }
 0xe86   :  { %v13529_v21 = vpop.eup %11346  ;;  %v4790_v34 = vmul.f32 1.442695, %v4762_v52 }
 0xe87   :  { %v4828_v14 = vsel %vm668_vm2, %v13529_v21, 0.0 }
 0xe88   :  { %4829 = vadd.xlane.f32.xlu2 %v4828_v14  ;;  %11348 = vpow2.f32 %v4790_v34 }
 0xe8b   :  { %v5242_v35 = vpop.permute.xlu2 %5241 }
 0xe8c   :  { %5262 = vmatpush.msra.mxu1 %v5242_v35 }
 0xe8e   :  { %v13540_v63 = vpop.eup %11348 }
 0xe8f   :  { %v4834_v36 = vsel %vm668_vm2, %v13540_v63, 0.0 }
 0xe90   :  { %4721 = vmax.xlane.f32.xlu2 %v4720_v40 }
 0xe98   :  { %4742 = vmax.xlane.f32.xlu2 %v4741_v9 }
 0xea0   :  { %v4725_v30 = vpop.xlane.xlu1 %4724 }
 0xea1   :  { %v4757_v25 = vsub.f32 %v13492_v44, %v4725_v30  ;;  %v13561_v44 = vld [vmem:[%s14797_s3 + $0x60] sm:$0xff] }
 0xea2   :  { %5340 = vmatpush.bf16.msrb.mxu1 %v13561_v44 }
 0xea3   :  { %v4780_v37 = vmul.f32 1.442695, %v4757_v25 }
 0xea5   :  { %11350 = vpow2.f32 %v4780_v37 }
 0xea6   :  { %11352 = vpow2.f32 %v4784_v32  ;;  %v5317_v39 = vpop.f32.mrf.mxu0 }
 0xea7   :  { %v5320_v3 = vpack.c.bf16 %v5317_v39, %v5317_v39 }
 0xea8   :  { %4835 = vadd.xlane.f32.xlu0 %v4834_v36 }
 0xeab   :  { %v13544_v33 = vpop.eup %11350 }
 0xeac   :  { %v4819_v27 = vsel %vm668_vm2, %v13544_v33, 0.0  ;;  %v13550_v53 = vpop.eup %11352 }
 0xead   :  { %4820 = vadd.xlane.f32.xlu1 %v4819_v27  ;;  %v4825_v46 = vsel %vm668_vm2, %v13550_v53, 0.0 }
 0xeb0   :  { %4748 = vmax.xlane.f32.xlu0 %v4747_v38 }
 0xeb5   :  { %4826 = vadd.xlane.f32.xlu1 %v4825_v46 }
 0xeb8   :  { %v5454_v0 = vpop.permute.xlu1 %5453 }
 0xece   :  { %5590 = vrot.lane.b32.xlu1 %v13488_v47, %s11421_s29  ;;  %v13556_v4 = vpop.f32.mrf.mxu0 }
 0xed6   :  { %5678 = vrot.lane.b32.xlu1 %v13488_v47, %s11424_s15  ;;  %v5397_v49 = vpop.f32.mrf.mxu0 }
 0xedd   :  { %v4809_v42 = vpop.xlane.xlu0 %4808 }
 0xede   :  { %11354 = vrcp.f32 %v4809_v42  ;;  %v5526_v29 = vpop.f32.mrf.mxu0  ;;  %v4899_v26 = vand.u32 2147483648, %v4809_v42  ;;  %v4897_v60 = vand.u32 2147483647, %v4809_v42  ;;  %vm4893_vm13 = vweird.f32 %v4809_v42 }
 0xedf   :  { %v5529_v12 = vpack.c.bf16 %v5526_v29, %v5526_v29 }
 0xee0   :  { %v4900_v41 = vor.u32 1.1754944e-38, %v4899_v26  ;;  %vm4898_vm15 = vcmp.eq.f32.partialorder %v4897_v60, 8.507059e+37 }
 0xee1   :  { %9441 = vmatmul.msk.bf16.vlgmr.msrb.gmra.mxu0 %vm223_vm1, %v5529_v12 }
 0xee4   :  { %v11355_v59 = vpop.eup %11354 }
 0xee5   :  { %v4889_v61 = vmul.f32 %v11355_v59, %v4809_v42  ;;  %vm4894_vm12 = vweird.f32 %v11355_v59 }
 0xee6   :  { %vm4895_vm14 = vmor %vm4893_vm13, %vm4894_vm12 }
 0xee7   :  { %v4890_v58 = vsub.f32 1.0, %v4889_v61 }
 0xee9   :  { %v4891_v31 = vmul.f32 %v11355_v59, %v4890_v58 }
 0xeeb   :  { %v4892_v62 = vadd.f32 %v11355_v59, %v4891_v31 }
 0xeed   :  { %v4896_v51 = vsel %vm4895_vm14, %v11355_v59, %v4892_v62 }
 0xeee   :  { %v4901_v2 = vsel %vm4898_vm15, %v4900_v41, %v4896_v51 }
 0xeef   :  { %v5073_v5 = vmul.f32 %v13511_v15, %v4901_v2  ;;  %v4735_v15 = vsel %vm668_vm2, %v13498_v1, -inf }
 0xef0   :  { %v5532_v7 = vpop.permute.xlu0 %5531 }
 0xef1   :  { %9398 = vmatmul.msk.f32.vlgmr.msra.gmra.mxu1 %vm668_vm2, %v5073_v5 }
 0xef2   :  { %5474 = vmatpush.msra.mxu1 %v5454_v0 }
 0xef9   :  { %9413 = vmatmul.msk.bf16.vlgmr.msrb.gmra.mxu1 %vm223_vm1, %v5320_v3 }
 0xefa   :  { %5552 = vmatpush.msrb.mxu1 %v5532_v7 }
 0xefb   :  { %v13570_v8 = vpop.xlane.xlu2 %4829 }
 0xefc   :  { %v13572_v48 = vpop.f32.mrf.mxu3  ;;  %vm4991_vm12 = vweird.f32 %v13570_v8  ;;  %v4995_v5 = vand.u32 2147483647, %v13570_v8 }
 0xefd   :  { %v4744_v10 = vsel %vm668_vm2, %v13572_v48, -inf }
 0xefe   :  { %4745 = vmax.xlane.f32.xlu2 %v4744_v10  ;;  %vm4996_vm14 = vcmp.eq.f32.partialorder %v4995_v5, 8.507059e+37 }
 0xf00   :  { %4736 = vmax.xlane.f32.xlu1 %v4735_v15 }
 0xf03   :  { %v4722_v18 = vpop.xlane.xlu2 %4721 }
 0xf04   :  { %v4756_v23 = vsub.f32 %v13463_v6, %v4722_v18  ;;  %v13579_v13 = vpop.f32.mrf.mxu3 }
 0xf06   :  { %v4778_v17 = vmul.f32 1.442695, %v4756_v23 }
 0xf08   :  { %11356 = vpow2.f32 %v4778_v17 }
 0xf0c   :  { %v5164_v11 = vpop.f32.mrf.mxu3 }
 0xf0e   :  { %v13581_v19 = vpop.eup %11356 }
 0xf0f   :  { %v4816_v20 = vsel %vm668_vm2, %v13581_v19, 0.0 }
 0xf10   :  { %4817 = vadd.xlane.f32.xlu2 %v4816_v20 }
 0xf1b   :  { %v13586_v35 = vpop.xlane.xlu0 %4835 }
 0xf1c   :  { %v5025_v23 = vand.u32 2147483648, %v13586_v35  ;;  %v5023_v17 = vand.u32 2147483647, %v13586_v35 }
 0xf1e   :  { %v5026_v20 = vor.u32 1.1754944e-38, %v5025_v23 }
 0xf20   :  { %v4821_v14 = vpop.xlane.xlu1 %4820 }
 0xf21   :  { %11358 = vrcp.f32 %v4821_v14  ;;  %v4955_v30 = vand.u32 2147483648, %v4821_v14  ;;  %v4953_v37 = vand.u32 2147483647, %v4821_v14  ;;  %vm4949_vm4 = vweird.f32 %v4821_v14 }
 0xf22   :  { %11360 = vrcp.f32 %v13570_v8 }
 0xf23   :  { %11362 = vrcp.f32 %v13586_v35  ;;  %v4956_v38 = vor.u32 1.1754944e-38, %v4955_v30  ;;  %vm4954_vm6 = vcmp.eq.f32.partialorder %v4953_v37, 8.507059e+37 }
 0xf27   :  { %v11359_v40 = vpop.eup %11358 }
 0xf28   :  { %v4945_v6 = vmul.f32 %v11359_v40, %v4821_v14  ;;  %5400 = vrot.lane.b32.xlu2 %v13330_v22, %s14812_s2  ;;  %v4827_v52 = vpop.xlane.xlu1 %4826  ;;  %v11361_v9 = vpop.eup %11360  ;;  %vm4950_vm3 = vweird.f32 %v11359_v40 }
 0xf29   :  { %11364 = vrcp.f32 %v4827_v52  ;;  %v4987_v25 = vmul.f32 %v11361_v9, %v13570_v8  ;;  %v11363_v32 = vpop.eup %11362  ;;  %vm4951_vm5 = vmor %vm4949_vm4, %vm4950_vm3  ;;  %v4983_v59 = vand.u32 2147483648, %v4827_v52  ;;  %v4981_v26 = vand.u32 2147483647, %v4827_v52 }
 0xf2a   :  { %v4946_v34 = vsub.f32 1.0, %v4945_v6  ;;  %v5015_v42 = vmul.f32 %v11363_v32, %v13586_v35  ;;  %vm4977_vm8 = vweird.f32 %v4827_v52  ;;  %vm4992_vm10 = vweird.f32 %v11361_v9 }
 0xf2b   :  { %v4988_v46 = vsub.f32 1.0, %v4987_v25  ;;  %v4984_v62 = vor.u32 1.1754944e-38, %v4983_v59  ;;  %vm4982_vm11 = vcmp.eq.f32.partialorder %v4981_v26, 8.507059e+37  ;;  %vm4993_vm13 = vmor %vm4991_vm12, %vm4992_vm10  ;;  %vm5020_vm15 = vweird.f32 %v11363_v32 }
 0xf2c   :  { %v4947_v54 = vmul.f32 %v11359_v40, %v4946_v34  ;;  %v5016_v31 = vsub.f32 1.0, %v5015_v42  ;;  %vm5019_vm3 = vweird.f32 %v13586_v35  ;;  %v13615_v35 = vld [vmem:[%s14797_s3 + $0x58] sm:$0xff] }
 0xf2d   :  { %v4989_v61 = vmul.f32 %v11361_v9, %v4988_v46  ;;  %vm5021_vm4 = vmor %vm5019_vm3, %vm5020_vm15  ;;  %5287 = vmatpush.bf16.msra.mxu3 %v13615_v35 }
 0xf2e   :  { %v4948_v36 = vadd.f32 %v11359_v40, %v4947_v54  ;;  %v5017_v0 = vmul.f32 %v11363_v32, %v5016_v31 }
 0xf2f   :  { %v11365_v27 = vpop.eup %11364  ;;  %v4990_v41 = vadd.f32 %v11361_v9, %v4989_v61 }
 0xf30   :  { %v4952_v39 = vsel %vm4951_vm5, %v11359_v40, %v4948_v36  ;;  %v4973_v22 = vmul.f32 %v11365_v27, %v4827_v52  ;;  %5722 = vrot.lane.b32.xlu2 %v13488_v47, %s11420_s28  ;;  %vm4978_vm7 = vweird.f32 %v11365_v27  ;;  %v5018_v15 = vadd.f32 %v11363_v32, %v5017_v0 }
 0xf31   :  { %v4957_v49 = vsel %vm4954_vm6, %v4956_v38, %v4952_v39  ;;  %vm4979_vm9 = vmor %vm4977_vm8, %vm4978_vm7  ;;  %v4994_v7 = vsel %vm4993_vm13, %v11361_v9, %v4990_v41  ;;  %vm5024_vm5 = vcmp.eq.f32.partialorder %v5023_v17, 8.507059e+37  ;;  %v4743_v9 = vpop.xlane.xlu2 %4742 }
 0xf32   :  { %v5077_v29 = vmul.f32 %v13544_v33, %v4957_v49  ;;  %v4974_v12 = vsub.f32 1.0, %v4973_v22  ;;  %v4997_v33 = vand.u32 2147483648, %v13570_v8  ;;  %v5022_v8 = vsel %vm5021_vm4, %v11363_v32, %v5018_v15 }
 0xf33   :  { %v5027_v14 = vsel %vm5024_vm5, %v5026_v20, %v5022_v8 }
 0xf34   :  { %v4975_v58 = vmul.f32 %v11365_v27, %v4974_v12  ;;  %9430 = vmatmul.msk.f32.vlgmr.msra.gmra.mxu1 %vm668_vm2, %v5077_v29  ;;  %v4998_v10 = vor.u32 1.1754944e-38, %v4997_v33  ;;  %v5082_v40 = vmul.f32 %v13540_v63, %v5027_v14  ;;  %v4749_v63 = vpop.xlane.xlu0 %4748  ;;  %v13671_v14 = vld [vmem:[%s14797_s3 + $0x70] sm:$0xff] }
 0xf35   :  { %v4765_v37 = vsub.f32 %v13502_v50, %v4749_v63  ;;  %5446 = vmatpush.bf16.msrb.mxu3 %v13671_v14 }
 0xf36   :  { %v4976_v60 = vadd.f32 %v11365_v27, %v4975_v58  ;;  %v4999_v18 = vsel %vm4996_vm14, %v4998_v10, %v4994_v7  ;;  %v13646_v58 = vld [vmem:[%s14797_s3 + $0x78] sm:$0xff] }
 0xf37   :  { %v4796_v39 = vmul.f32 1.442695, %v4765_v37 }
 0xf38   :  { %v4980_v51 = vsel %vm4979_vm9, %v11365_v27, %v4976_v60  ;;  %5810 = vrot.lane.b32.xlu2 %v13488_v47, %s11425_s16  ;;  %v4763_v27 = vsub.f32 %v13477_v28, %v4743_v9 }
 0xf39   :  { %v4985_v2 = vsel %vm4982_vm11, %v4984_v62, %v4980_v51 }
 0xf3a   :  { %v5079_v3 = vmul.f32 %v13550_v53, %v4985_v2  ;;  %v5080_v53 = vmul.f32 %v13529_v21, %v4999_v18  ;;  %v4792_v22 = vmul.f32 1.442695, %v4763_v27 }
 0xf3c   :  { %9439 = vmatmul.msk.f32.vlgmr.msrb.gmra.mxu1 %vm668_vm2, %v5079_v3 }
 0xf40   :  { %v5591_v11 = vpop.permute.xlu1 %5590 }
 0xf41   :  { %5611 = vmatpush.msra.mxu1 %v5591_v11 }
 0xf44   :  { %9442 = vmatmul.msk.f32.vlgmr.msra.gmra.mxu1 %vm668_vm2, %v5080_v53 }
 0xf48   :  { %v5679_v6 = vpop.permute.xlu1 %5678 }
 0xf49   :  { %5699 = vmatpush.msra.mxu0 %v5679_v6 }
 0xf4a   :  { %9446 = vmatmul.msk.f32.vlgmr.msra.gmra.mxu0 %vm668_vm2, %v5082_v40 }
 0xf4b   :  { %5759 = vmatpush.bf16.msrb.mxu0 %v13474_v16 }
 0xf5e   :  { %v13618_v21 = vpop.f32.mrf.mxu0 }
 0xf66   :  { %v5588_v52 = vpop.f32.mrf.mxu0 }
 0xf6e   :  { %v5264_v34 = vpop.f32.mrf.mxu1 }
 0xf6f   :  { %v5267_v30 = vpack.c.bf16 %v5264_v34, %v5264_v34 }
 0xf71   :  { %9405 = vmatmul.msk.bf16.vlgmr.msra.gmra.mxu3 %vm223_vm1, %v5267_v30  ;;  %v4746_v25 = vpop.xlane.xlu2 %4745 }
 0xf72   :  { %v4764_v54 = vsub.f32 %v13572_v48, %v4746_v25  ;;  %5568 = vmatpush.bf16.msra.mxu3 %v13518_v45 }
 0xf73   :  { %v4737_v16 = vpop.xlane.xlu1 %4736 }
 0xf74   :  { %v4794_v32 = vmul.f32 1.442695, %v4764_v54  ;;  %v4761_v36 = vsub.f32 %v13498_v1, %v4737_v16 }
 0xf76   :  { %11366 = vpow2.f32 %v4794_v32  ;;  %v4788_v38 = vmul.f32 1.442695, %v4761_v36  ;;  %v13625_v46 = vpop.f32.mrf.mxu1 }
 0xf78   :  { %11368 = vpow2.f32 %v4788_v38 }
 0xf79   :  { %11370 = vpow2.f32 %v4796_v39 }
 0xf7a   :  { %11372 = vpow2.f32 %v4792_v22 }
 0xf7c   :  { %v13627_v49 = vpop.eup %11366 }
 0xf7d   :  { %v4840_v48 = vsel %vm668_vm2, %v13627_v49, 0.0 }
 0xf7e   :  { %v13631_v42 = vpop.eup %11368  ;;  %4841 = vadd.xlane.f32.xlu1 %v4840_v48  ;;  %v5344_v1 = vpop.f32.mrf.mxu1 }
 0xf7f   :  { %v4831_v28 = vsel %vm668_vm2, %v13631_v42, 0.0  ;;  %v13635_v50 = vpop.eup %11370 }
 0xf80   :  { %4832 = vadd.xlane.f32.xlu0 %v4831_v28  ;;  %v13637_v12 = vpop.eup %11372  ;;  %v4843_v59 = vsel %vm668_vm2, %v13635_v50, 0.0 }
 0xf81   :  { %v4837_v61 = vsel %vm668_vm2, %v13637_v12, 0.0 }
 0xf83   :  { %v4818_v29 = vpop.xlane.xlu2 %4817 }
 0xf84   :  { %11374 = vrcp.f32 %v4818_v29  ;;  %v4941_v41 = vand.u32 2147483648, %v4818_v29  ;;  %v4939_v33 = vand.u32 2147483647, %v4818_v29  ;;  %vm4935_vm7 = vweird.f32 %v4818_v29 }
 0xf86   :  { %4844 = vadd.xlane.f32.xlu1 %v4843_v59  ;;  %v4942_v5 = vor.u32 1.1754944e-38, %v4941_v41  ;;  %vm4940_vm9 = vcmp.eq.f32.partialorder %v4939_v33, 8.507059e+37 }
 0xf88   :  { %4838 = vadd.xlane.f32.xlu0 %v4837_v61 }
 0xf8a   :  { %v11375_v26 = vpop.eup %11374 }
 0xf8b   :  { %v4931_v31 = vmul.f32 %v11375_v26, %v4818_v29  ;;  %v5401_v60 = vpop.permute.xlu2 %5400  ;;  %vm4936_vm6 = vweird.f32 %v11375_v26 }
 0xf8c   :  { %5421 = vmatpush.msrb.mxu2 %v5401_v60  ;;  %vm4937_vm8 = vmor %vm4935_vm7, %vm4936_vm6 }
 0xf8d   :  { %v4932_v62 = vsub.f32 1.0, %v4931_v31 }
 0xf8e   :  { %5499 = vmatpush.bf16.msra.mxu2 %v13646_v58 }
 0xf8f   :  { %v4933_v51 = vmul.f32 %v11375_v26, %v4932_v62 }
 0xf91   :  { %v4934_v2 = vadd.f32 %v11375_v26, %v4933_v51 }
 0xf93   :  { %v4938_v0 = vsel %vm4937_vm8, %v11375_v26, %v4934_v2  ;;  %v5723_v18 = vpop.permute.xlu2 %5722 }
 0xf94   :  { %v4943_v3 = vsel %vm4940_vm9, %v4942_v5, %v4938_v0 }
 0xf95   :  { %v5076_v7 = vmul.f32 %v13581_v19, %v4943_v3 }
 0xf97   :  { %9422 = vmatmul.msk.f32.vlgmr.msrb.gmra.mxu2 %vm668_vm2, %v5076_v7 }
 0xf98   :  { %5627 = vmatpush.bf16.msrb.mxu2 %v13409_v57  ;;  %v5185_v57 = vadd.f32 %v13506_v56, %v13579_v13 }
 0xf9b   :  { %v5811_v3 = vpop.permute.xlu2 %5810 }
 0xf9c   :  { %5634 = vrot.lane.b32.xlu0 %v13488_v47, %s11423_s14 }
 0xf9f   :  { %5766 = vrot.lane.b32.xlu1 %v13488_v47, %s14812_s2  ;;  %v5240_v47 = vadd.f32 %v13483_v24, %v5185_v57 }
 0xfb1   :  { %v5476_v10 = vpop.f32.mrf.mxu1 }
 0xfb2   :  { %v5479_v15 = vpack.c.bf16 %v5476_v10, %v5476_v10 }
 0xfb4   :  { %9437 = vmatmul.msk.bf16.vlgmr.msra.gmra.mxu2 %vm223_vm1, %v5479_v15 }
 0xfb5   :  { %5743 = vmatpush.msra.mxu2 %v5723_v18 }
 0xfb9   :  { %v13657_v23 = vpop.f32.mrf.mxu1 }
 0xfc1   :  { %v5613_v17 = vpop.f32.mrf.mxu1 }
 0xfc2   :  { %v5616_v19 = vpack.c.bf16 %v5613_v17, %v5613_v17 }
 0xfc4   :  { %9443 = vmatmul.msk.bf16.vlgmr.msrb.gmra.mxu2 %vm223_vm1, %v5616_v19 }
 0xff1   :  { %v13662_v11 = vpop.xlane.xlu1 %4841 }
 0xff2   :  { %v5053_v31 = vand.u32 2147483648, %v13662_v11  ;;  %vm5047_vm6 = vweird.f32 %v13662_v11  ;;  %v5051_v62 = vand.u32 2147483647, %v13662_v11 }
 0xff3   :  { %v4833_v53 = vpop.xlane.xlu0 %4832 }
 0xff4   :  { %11376 = vrcp.f32 %v4833_v53  ;;  %v5289_v8 = vpop.f32.mrf.mxu3  ;;  %v5011_v37 = vand.u32 2147483648, %v4833_v53  ;;  %vm5005_vm11 = vweird.f32 %v4833_v53  ;;  %v5009_v36 = vand.u32 2147483647, %v4833_v53 }
 0xff5   :  { %v13665_v20 = vadd.f32 %v5289_v8, %v5240_v47  ;;  %11378 = vrcp.f32 %v13662_v11  ;;  %v5054_v5 = vor.u32 1.1754944e-38, %v5053_v31  ;;  %vm5052_vm8 = vcmp.eq.f32.partialorder %v5051_v62, 8.507059e+37 }
 0xff6   :  { %v5012_v48 = vor.u32 1.1754944e-38, %v5011_v37  ;;  %vm5010_vm3 = vcmp.eq.f32.partialorder %v5009_v36, 8.507059e+37  ;;  %v11242_v37 = vld [vmem:[%s14798_s4 + $0x1] ss:$0 sm:$0xff] }
 0xff9   :  { %v13676_v25 = vpop.xlane.xlu1 %4844 }
 0xffa   :  { %v11377_v40 = vpop.eup %11376 }
 0xffb   :  { %v5001_v6 = vmul.f32 %v11377_v40, %v4833_v53  ;;  %v4839_v52 = vpop.xlane.xlu0 %4838  ;;  %v11379_v56 = vpop.eup %11378  ;;  %vm5006_vm10 = vweird.f32 %v11377_v40 }
 0xffc   :  { %11380 = vrcp.f32 %v4839_v52  ;;  %v5291_v13 = vpop.f32.mrf.mxu3  ;;  %v5043_v9 = vmul.f32 %v11379_v56, %v13662_v11  ;;  %v5039_v27 = vand.u32 2147483648, %v4839_v52  ;;  %vm5007_vm12 = vmor %vm5005_vm11, %vm5006_vm10  ;;  %v5037_v39 = vand.u32 2147483647, %v4839_v52 }
 0xffd   :  { %v5002_v24 = vsub.f32 1.0, %v5001_v6  ;;  %11382 = vrcp.f32 %v13676_v25  ;;  %vm5033_vm14 = vweird.f32 %v4839_v52  ;;  %vm5048_vm15 = vweird.f32 %v11379_v56 }
 0xffe   :  { %v5044_v63 = vsub.f32 1.0, %v5043_v9  ;;  %v5040_v28 = vor.u32 1.1754944e-38, %v5039_v27  ;;  %vm5038_vm5 = vcmp.eq.f32.partialorder %v5037_v39, 8.507059e+37  ;;  %vm5049_vm7 = vmor %vm5047_vm6, %vm5048_vm15  ;;  %vm5061_vm10 = vweird.f32 %v13676_v25 }
 0xfff   :  { %v5003_v34 = vmul.f32 %v11377_v40, %v5002_v24 }
0x1000   :  { %v5045_v38 = vmul.f32 %v11379_v56, %v5044_v63 }
0x1001   :  { %v5004_v16 = vadd.f32 %v11377_v40, %v5003_v34 }
0x1002   :  { %v11381_v30 = vpop.eup %11380  ;;  %v5046_v29 = vadd.f32 %v11379_v56, %v5045_v38 }
0x1003   :  { %v5029_v54 = vmul.f32 %v11381_v30, %v4839_v52  ;;  %vm5034_vm13 = vweird.f32 %v11381_v30  ;;  %v5008_v22 = vsel %vm5007_vm12, %v11377_v40, %v5004_v16  ;;  %v11383_v26 = vpop.eup %11382  ;;  %v5557_v40 = vpack.c.bf16 %v13657_v23, %v13657_v23 }
0x1004   :  { %vm5035_vm4 = vmor %vm5033_vm14, %vm5034_vm13  ;;  %v5013_v59 = vsel %vm5010_vm3, %v5012_v48, %v5008_v22  ;;  %v5050_v2 = vsel %vm5049_vm7, %v11379_v56, %v5046_v29  ;;  %v5057_v0 = vmul.f32 %v11383_v26, %v13676_v25  ;;  %vm5062_vm9 = vweird.f32 %v11383_v26 }
0x1005   :  { %v5030_v32 = vsub.f32 1.0, %v5029_v54  ;;  %v5081_v51 = vmul.f32 %v13631_v42, %v5013_v59  ;;  %v5055_v10 = vsel %vm5052_vm8, %v5054_v5, %v5050_v2  ;;  %vm5063_vm11 = vmor %vm5061_vm10, %vm5062_vm9  ;;  %v5346_v23 = vadd.f32 %v13625_v46, %v13665_v20 }
0x1006   :  { %v5058_v42 = vsub.f32 1.0, %v5057_v0  ;;  %v5084_v15 = vmul.f32 %v13627_v49, %v5055_v10 }
0x1007   :  { %v5031_v45 = vmul.f32 %v11381_v30, %v5030_v32 }
0x1008   :  { %v5059_v17 = vmul.f32 %v11383_v26, %v5058_v42  ;;  %v9877_v42 = vld [vmem:[%s14799_s5 + $0x580] sm:$0xf] }
0x1009   :  { %v5032_v1 = vadd.f32 %v11381_v30, %v5031_v45 }
0x100a   :  { %v5060_v11 = vadd.f32 %v11383_v26, %v5059_v17 }
0x100b   :  { %v5036_v61 = vsel %vm5035_vm4, %v11381_v30, %v5032_v1 }
0x100c   :  { %v5041_v60 = vsel %vm5038_vm5, %v5040_v28, %v5036_v61  ;;  %v5064_v49 = vsel %vm5063_vm11, %v11383_v26, %v5060_v11 }
0x100d   :  { %v5083_v41 = vmul.f32 %v13637_v12, %v5041_v60  ;;  %v5701_v12 = vpop.f32.mrf.mxu0 }
0x100e   :  { %v5635_v33 = vpop.permute.xlu0 %5634  ;;  %v5704_v18 = vpack.c.bf16 %v5701_v12, %v5701_v12 }
0x100f   :  { %5655 = vmatpush.msrb.mxu1 %v5635_v33  ;;  %9448 = vmatmul.msk.f32.vlgmr.msra.gmra.mxu2 %vm668_vm2, %v5083_v41 }
0x1010   :  { %9444 = vmatmul.msk.f32.vlgmr.msrb.gmra.mxu1 %vm668_vm2, %v5081_v51 }
0x1011   :  { %5715 = vmatpush.bf16.msra.mxu1 %v13561_v44  ;;  %v5767_v7 = vpop.permute.xlu1 %5766  ;;  %v5067_v44 = vand.u32 2147483648, %v13676_v25 }
0x1012   :  { %5787 = vmatpush.msrb.mxu2 %v5767_v7 }
0x1013   :  { %v5068_v53 = vor.u32 1.1754944e-38, %v5067_v44 }
0x1014   :  { %5847 = vmatpush.bf16.msra.mxu2 %v13646_v58  ;;  %v5065_v58 = vand.u32 2147483647, %v13676_v25 }
0x1015   :  { %5831 = vmatpush.msrb.mxu1 %v5811_v3 }
0x1016   :  { %vm5066_vm12 = vcmp.eq.f32.partialorder %v5065_v58, 8.507059e+37  ;;  %v11083_v58 = vld [vmem:[%s14799_s5 + $0x58c] sm:$0xf] }
0x1017   :  { %9450 = vmatmul.msk.f32.vlgmr.msrb.gmra.mxu2 %vm668_vm2, %v5084_v15  ;;  %v5069_v47 = vsel %vm5066_vm12, %v5068_v53, %v5064_v49  ;;  %v11090_v15 = vld [vmem:[%s14799_s5 + $0x5bc] sm:$0xf0]  ;;  %v9887_v49 = vld [vmem:[%s14799_s5 + $0x5c8] sm:$0xf0] }
0x1018   :  { %9447 = vmatmul.msk.bf16.vlgmr.msra.gmra.mxu1 %vm223_vm1, %v5704_v18  ;;  %v5085_v8 = vmul.f32 %v13635_v50, %v5069_v47  ;;  %v11082_v18 = vld [vmem:[%s14799_s5 + $0x584] sm:$0xf]  ;;  %v9878_v17 = vor.u32 %v11090_v15, %v9877_v42  ;;  %v9813_v53 = vld [vmem:[%s14799_s5 + $0x500] sm:$0xf]  ;;  %v9890_v47 = vor.u32 %v11083_v58, %v9887_v49  ;;  %v11019_v15 = vld [vmem:[%s14799_s5 + $0x38c] sm:$0xf] }
0x1019   :  { %v9559_v58 = vld [vmem:[%s14799_s5 + $0x340] sm:$0xf0]  ;;  %v9565_v49 = vld [vmem:[%s14799_s5 + $0x308] sm:$0xf] }
0x101a   :  { %v5423_v19 = vpop.f32.mrf.mxu2  ;;  %6541 = vmatpush.bf16.msra.mxu0 %v9878_v17  ;;  %6583 = vmatpush.bf16.msrb.mxu2 %v9890_v47 }
0x101b   :  { %v5426_v57 = vpack.c.bf16 %v5423_v19, %v5423_v19  ;;  %v9885_v19 = vld [vmem:[%s14799_s5 + $0x588] sm:$0xf] }
0x101d   :  { %9429 = vmatmul.msk.bf16.vlgmr.msrb.gmra.mxu3 %vm223_vm1, %v5426_v57  ;;  %v11091_v57 = vld [vmem:[%s14799_s5 + $0x5c4] sm:$0xf0] }
0x101e   :  { %5671 = vmatpush.bf16.msrb.mxu3 %v13615_v35  ;;  %v9886_v44 = vor.u32 %v11091_v57, %v9885_v19  ;;  %v9557_v19 = vld [vmem:[%s14799_s5 + $0x300] sm:$0xf] }
0x101f   :  { %v11010_v57 = vld [vmem:[%s14799_s5 + $0x33c] sm:$0xf0] }
0x1020   :  { %6569 = vmatpush.bf16.msra.mxu1 %v9886_v44  ;;  %v9558_v44 = vor.u32 %v11010_v57, %v9557_v19  ;;  %v9637_v57 = vld [vmem:[%s14799_s5 + $0x390] sm:$0xf] }
0x1028   :  { %9452 = vmatmul.msk.f32.vlgmr.msrb.gmra.mxu1 %vm668_vm2, %v5085_v8  ;;  %v11074_v8 = vld [vmem:[%s14799_s5 + $0x53c] sm:$0xf0] }
0x102d   :  { %9440 = vmatmul.msk.bf16.vlgmr.msra.gmra.mxu3 %vm223_vm1, %v5557_v40  ;;  %v11066_v40 = vld [vmem:[%s14799_s5 + $0x504] sm:$0xf] }
0x102e   :  { %5803 = vmatpush.bf16.msra.mxu3 %v13671_v14  ;;  %v5399_v14 = vadd.f32 %v13556_v4, %v5346_v23 }
0x1037   :  { %v5501_v6 = vpop.f32.mrf.mxu2 }
0x103f   :  { %v5503_v52 = vpop.f32.mrf.mxu2 }
0x1040   :  { %v9814_v52 = vor.u32 %v11074_v8, %v9813_v53  ;;  %v11011_v53 = vld [vmem:[%s14799_s5 + $0x344] sm:$0xf0] }
0x1041   :  { %v9566_v8 = vor.u32 %v11011_v53, %v9565_v49  ;;  %v9639_v49 = vld [vmem:[%s14799_s5 + $0x3d0] sm:$0xf0]  ;;  %v9645_v53 = vld [vmem:[%s14799_s5 + $0x398] sm:$0xf] }
0x1042   :  { %6542 = vmatpush.bf16.msra.mxu0 %v9814_v52  ;;  %v9893_v52 = vld [vmem:[%s14799_s5 + $0x590] sm:$0xf] }
0x1047   :  { %v5629_v56 = vpop.f32.mrf.mxu2 }
0x104f   :  { %v5631_v35 = vpop.f32.mrf.mxu2 }
0x1050   :  { %v9821_v35 = vld [vmem:[%s14799_s5 + $0x508] sm:$0xf] }
0x108d   :  { %v5657_v13 = vpop.f32.mrf.mxu1 }
0x108e   :  { %v5660_v24 = vpack.c.bf16 %v5657_v13, %v5657_v13  ;;  %v11075_v13 = vld [vmem:[%s14799_s5 + $0x544] sm:$0xf0] }
0x1090   :  { %9445 = vmatmul.msk.bf16.vlgmr.msrb.gmra.mxu3 %vm223_vm1, %v5660_v24  ;;  %v11067_v24 = vld [vmem:[%s14799_s5 + $0x50c] sm:$0xf] }
0x1092   :  { %v5745_v9 = vpop.f32.mrf.mxu2 }
0x1093   :  { %v5748_v34 = vpack.c.bf16 %v5745_v9, %v5745_v9  ;;  %v9822_v9 = vor.u32 %v11075_v13, %v9821_v35  ;;  %v11092_v35 = vld [vmem:[%s14799_s5 + $0x5cc] sm:$0xf0]  ;;  %v11084_v13 = vld [vmem:[%s14799_s5 + $0x594] sm:$0xf] }
0x1095   :  { %v5717_v50 = vpop.f32.mrf.mxu1  ;;  %9449 = vmatmul.msk.bf16.vlgmr.msrb.gmra.mxu0 %vm223_vm1, %v5748_v34  ;;  %v9823_v34 = vld [vmem:[%s14799_s5 + $0x548] sm:$0xf0]  ;;  %6570 = vmatpush.bf16.msra.mxu1 %v9822_v9  ;;  %v9894_v9 = vor.u32 %v11092_v35, %v9893_v52  ;;  %v9647_v52 = vld [vmem:[%s14799_s5 + $0x3d8] sm:$0xf0] }
0x109a   :  { %v5789_v30 = vpop.f32.mrf.mxu2 }
0x109b   :  { %v5792_v25 = vpack.c.bf16 %v5789_v30, %v5789_v30 }
0x109d   :  { %v5719_v63 = vpop.f32.mrf.mxu1 }
0x10a0   :  { %v5448_v54 = vpop.f32.mrf.mxu3  ;;  %9451 = vmatmul.msk.bf16.vlgmr.msra.gmra.mxu3 %vm223_vm1, %v5792_v25 }
0x10a1   :  { %v5452_v16 = vadd.f32 %v5448_v54, %v5399_v14  ;;  %v9749_v54 = vld [vmem:[%s14799_s5 + $0x480] sm:$0xf] }
0x10a3   :  { %v5505_v32 = vadd.f32 %v5501_v6, %v5452_v16  ;;  %v9815_v6 = vld [vmem:[%s14799_s5 + $0x540] sm:$0xf0]  ;;  %v11058_v16 = vld [vmem:[%s14799_s5 + $0x4bc] sm:$0xf0] }
0x10a5   :  { %v5859_v36 = vadd.f32 %v11242_v37, %v5505_v32  ;;  %v5833_v27 = vpop.f32.mrf.mxu1  ;;  %v9750_v32 = vor.u32 %v11058_v16, %v9749_v54  ;;  %v9829_v54 = vld [vmem:[%s14799_s5 + $0x510] sm:$0xf] }
0x10a6   :  { %v5836_v38 = vpack.c.bf16 %v5833_v27, %v5833_v27  ;;  %v9757_v27 = vld [vmem:[%s14799_s5 + $0x488] sm:$0xf]  ;;  %v11076_v16 = vld [vmem:[%s14799_s5 + $0x54c] sm:$0xf0] }
0x10a7   :  { %v5865_v45 = vadd.f32 %v5859_v36, %v13263_v43  ;;  %v9751_v36 = vld [vmem:[%s14799_s5 + $0x4c0] sm:$0xf0]  ;;  %6543 = vmatpush.bf16.msra.mxu0 %v9750_v32  ;;  %v9830_v32 = vor.u32 %v11076_v16, %v9829_v54  ;;  %v11013_v54 = vld [vmem:[%s14799_s5 + $0x354] sm:$0xf0]  ;;  %v11005_v16 = vld [vmem:[%s14799_s5 + $0x31c] sm:$0xf] }
0x10a8   :  { %v5450_v46 = vpop.f32.mrf.mxu3  ;;  %9453 = vmatmul.msk.bf16.vlgmr.msra.gmra.mxu2 %vm223_vm1, %v5836_v38  ;;  %v11059_v38 = vld [vmem:[%s14799_s5 + $0x4c4] sm:$0xf0] }
0x10a9   :  { %v5867_v20 = vsel %vm177_vm0, %v5865_v45, 0.0  ;;  %v9758_v46 = vor.u32 %v11059_v38, %v9757_v27  ;;  %v9831_v27 = vld [vmem:[%s14799_s5 + $0x550] sm:$0xf0]  ;;  %v9837_v38 = vld [vmem:[%s14799_s5 + $0x518] sm:$0xf] }
0x10aa   :  { %5868 = vadd.xlane.f32.xlu0 %v5867_v20  ;;  %v11051_v20 = vld [vmem:[%s14799_s5 + $0x48c] sm:$0xf] }
0x10ab   :  { %6571 = vmatpush.bf16.msra.mxu1 %v9758_v46  ;;  %v11077_v46 = vld [vmem:[%s14799_s5 + $0x554] sm:$0xf0] }
0x10b0   :  { %v5570_v4 = vpop.f32.mrf.mxu3 }
0x10b1   :  { %v5587_v1 = vadd.f32 %v13618_v21, %v5570_v4  ;;  %v9759_v4 = vld [vmem:[%s14799_s5 + $0x4c8] sm:$0xf0] }
0x10b3   :  { %v5633_v61 = vadd.f32 %v5629_v56, %v5587_v1  ;;  %v9818_v56 = vor.u32 %v11066_v40, %v9815_v6  ;;  %v11042_v1 = vld [vmem:[%s14799_s5 + $0x43c] sm:$0xf0]  ;;  %v11003_v40 = vld [vmem:[%s14799_s5 + $0x30c] sm:$0xf] }
0x10b4   :  { %v9567_v6 = vld [vmem:[%s14799_s5 + $0x348] sm:$0xf0] }
0x10b8   :  { %v5572_v39 = vpop.f32.mrf.mxu3 }
0x10b9   :  { %v9762_v39 = vor.u32 %v11051_v20, %v9759_v4  ;;  %v11069_v20 = vld [vmem:[%s14799_s5 + $0x51c] sm:$0xf] }
0x10ba   :  { %v9839_v4 = vld [vmem:[%s14799_s5 + $0x558] sm:$0xf0] }
0x1112   :  { %v5761_v22 = vpop.f32.mrf.mxu0 }
0x1113   :  { %v5673_v48 = vpop.f32.mrf.mxu3 }
0x1114   :  { %v5677_v31 = vadd.f32 %v5673_v48, %v5633_v61  ;;  %v9685_v48 = vld [vmem:[%s14799_s5 + $0x400] sm:$0xf]  ;;  %v9693_v61 = vld [vmem:[%s14799_s5 + $0x408] sm:$0xf] }
0x1116   :  { %v5721_v41 = vadd.f32 %v5717_v50, %v5677_v31  ;;  %v9826_v50 = vor.u32 %v11067_v24, %v9823_v34  ;;  %v9895_v24 = vld [vmem:[%s14799_s5 + $0x5d0] sm:$0xf0] }
0x1117   :  { %v9898_v34 = vor.u32 %v11084_v13, %v9895_v24  ;;  %v9573_v24 = vld [vmem:[%s14799_s5 + $0x310] sm:$0xf] }
0x1118   :  { %v5765_v33 = vadd.f32 %v5761_v22, %v5721_v41  ;;  %6584 = vmatpush.bf16.msrb.mxu2 %v9826_v50  ;;  %v9695_v41 = vld [vmem:[%s14799_s5 + $0x448] sm:$0xf0]  ;;  %v9901_v50 = vld [vmem:[%s14799_s5 + $0x598] sm:$0xf] }
0x111a   :  { %v5763_v28 = vpop.f32.mrf.mxu0 }
0x111b   :  { %v5675_v29 = vpop.f32.mrf.mxu3  ;;  %v11034_v28 = vld [vmem:[%s14799_s5 + $0x404] sm:$0xf] }
0x111c   :  { %6585 = vmatpush.bf16.msrb.mxu2 %v9762_v39  ;;  %v9686_v29 = vor.u32 %v11042_v1, %v9685_v48  ;;  %v9838_v39 = vor.u32 %v11077_v46, %v9837_v38  ;;  %v9765_v48 = vld [vmem:[%s14799_s5 + $0x490] sm:$0xf] }
0x111d   :  { %v5869_v59 = vpop.xlane.xlu0 %5868  ;;  %v11060_v1 = vld [vmem:[%s14799_s5 + $0x4cc] sm:$0xf0] }
0x111e   :  { %v5873_v26 = vmul.f32 0.010416667, %v5869_v59  ;;  %v9687_v59 = vld [vmem:[%s14799_s5 + $0x440] sm:$0xf0]  ;;  %6544 = vmatpush.bf16.msra.mxu0 %v9686_v29  ;;  %v9766_v29 = vor.u32 %v11060_v1, %v9765_v48 }
0x111f   :  { %v9690_v31 = vor.u32 %v11034_v28, %v9687_v59  ;;  %v11052_v28 = vld [vmem:[%s14799_s5 + $0x494] sm:$0xf] }
0x1120   :  { %v13716_v60 = vsub.f32 %v5865_v45, %v5873_v26  ;;  %v11043_v26 = vld [vmem:[%s14799_s5 + $0x444] sm:$0xf0]  ;;  %v9767_v59 = vld [vmem:[%s14799_s5 + $0x4d0] sm:$0xf0] }
0x1122   :  { %v5877_v43 = vmul.f32 %v13716_v60, %v13716_v60 }
0x1123   :  { %v5805_v62 = vpop.f32.mrf.mxu3 }
0x1124   :  { %v5879_v51 = vsel %vm177_vm0, %v5877_v43, 0.0  ;;  %v5809_v2 = vadd.f32 %v5805_v62, %v5765_v33  ;;  %v9694_v43 = vor.u32 %v11043_v26, %v9693_v61  ;;  %v11035_v62 = vld [vmem:[%s14799_s5 + $0x40c] sm:$0xf]  ;;  %v9773_v61 = vld [vmem:[%s14799_s5 + $0x498] sm:$0xf] }
0x1125   :  { %5880 = vadd.xlane.f32.xlu1 %v5879_v51  ;;  %v9698_v33 = vor.u32 %v11035_v62, %v9695_v41  ;;  %v11061_v26 = vld [vmem:[%s14799_s5 + $0x4d4] sm:$0xf0]  ;;  %v11053_v62 = vld [vmem:[%s14799_s5 + $0x49c] sm:$0xf] }
0x1126   :  { %6572 = vmatpush.bf16.msra.mxu1 %v9694_v43  ;;  %v9774_v43 = vor.u32 %v11061_v26, %v9773_v61  ;;  %v9775_v41 = vld [vmem:[%s14799_s5 + $0x4d8] sm:$0xf0] }
0x1127   :  { %6586 = vmatpush.bf16.msrb.mxu2 %v9698_v33  ;;  %v9701_v33 = vld [vmem:[%s14799_s5 + $0x410] sm:$0xf] }
0x112b   :  { %v5807_v5 = vpop.f32.mrf.mxu3  ;;  %v5849_v21 = vpop.f32.mrf.mxu2 }
0x112c   :  { %v5853_v0 = vadd.f32 %v5849_v21, %v5809_v2  ;;  %v9621_v2 = vld [vmem:[%s14799_s5 + $0x380] sm:$0xf]  ;;  %v11018_v21 = vld [vmem:[%s14799_s5 + $0x384] sm:$0xf] }
0x112d   :  { %v11026_v5 = vld [vmem:[%s14799_s5 + $0x3bc] sm:$0xf0] }
0x112e   :  { %v5860_v3 = vadd.f32 %v11242_v37, %v5853_v0  ;;  %v11050_v37 = vld [vmem:[%s14799_s5 + $0x484] sm:$0xf]  ;;  %v9622_v0 = vor.u32 %v11026_v5, %v9621_v2  ;;  %v11044_v2 = vld [vmem:[%s14799_s5 + $0x44c] sm:$0xf0]  ;;  %v11036_v5 = vld [vmem:[%s14799_s5 + $0x414] sm:$0xf] }
0x112f   :  { %v9754_v45 = vor.u32 %v11050_v37, %v9751_v36  ;;  %v11068_v36 = vld [vmem:[%s14799_s5 + $0x514] sm:$0xf] }
0x1130   :  { %v5866_v7 = vadd.f32 %v5860_v3, %v13265_v55  ;;  %v9879_v55 = vld [vmem:[%s14799_s5 + $0x5c0] sm:$0xf0]  ;;  %6545 = vmatpush.bf16.msra.mxu0 %v9622_v0  ;;  %v9702_v0 = vor.u32 %v11044_v2, %v9701_v33 }
0x1131   :  { %v9882_v11 = vor.u32 %v11082_v18, %v9879_v55  ;;  %v9623_v3 = vld [vmem:[%s14799_s5 + $0x3c0] sm:$0xf0]  ;;  %v9631_v18 = vld [vmem:[%s14799_s5 + $0x3c8] sm:$0xf0] }
0x1132   :  { %v5870_v10 = vsel %vm177_vm0, %v5866_v7, 0.0  ;;  %v9634_v55 = vor.u32 %v11019_v15, %v9631_v18  ;;  %v11037_v15 = vld [vmem:[%s14799_s5 + $0x41c] sm:$0xf] }
0x1133   :  { %v5851_v12 = vpop.f32.mrf.mxu2  ;;  %5871 = vadd.xlane.f32.xlu2 %v5870_v10  ;;  %6555 = vmatpush.bf16.msrb.mxu3 %v9882_v11  ;;  %v11027_v10 = vld [vmem:[%s14799_s5 + $0x3c4] sm:$0xf0]  ;;  %v11002_v11 = vld [vmem:[%s14799_s5 + $0x304] sm:$0xf]  ;;  %v9711_v18 = vld [vmem:[%s14799_s5 + $0x458] sm:$0xf0] }
0x1134   :  { %v9626_v12 = vor.u32 %v11018_v21, %v9623_v3  ;;  %6587 = vmatpush.bf16.msrb.mxu2 %v9634_v55  ;;  %v9562_v47 = vor.u32 %v11002_v11, %v9559_v58  ;;  %6546 = vmatpush.bf16.msra.mxu0 %v9558_v44  ;;  %v9703_v3 = vld [vmem:[%s14799_s5 + $0x450] sm:$0xf0]  ;;  %v9714_v55 = vor.u32 %v11037_v15, %v9711_v18  ;;  %v11028_v11 = vld [vmem:[%s14799_s5 + $0x3cc] sm:$0xf0] }
0x1135   :  { %v11020_v44 = vld [vmem:[%s14799_s5 + $0x394] sm:$0xf]  ;;  %v9638_v58 = vor.u32 %v11028_v11, %v9637_v57  ;;  %v9853_v57 = vld [vmem:[%s14799_s5 + $0x528] sm:$0xf] }
0x1136   :  { %v11079_v11 = vld [vmem:[%s14799_s5 + $0x564] sm:$0xf0] }
0x1137   :  { %6556 = vmatpush.bf16.msrb.mxu3 %v9818_v56  ;;  %v9570_v56 = vor.u32 %v11003_v40, %v9567_v6  ;;  %v11021_v6 = vld [vmem:[%s14799_s5 + $0x39c] sm:$0xf] }
0x1138   :  { %6597 = vmatpush.bf16.msrb.mxu0 %v9894_v9  ;;  %v11012_v9 = vld [vmem:[%s14799_s5 + $0x34c] sm:$0xf0] }
0x1139   :  { %6588 = vmatpush.bf16.msrb.mxu2 %v9570_v56  ;;  %v9650_v56 = vor.u32 %v11021_v6, %v9647_v52  ;;  %v11054_v52 = vld [vmem:[%s14799_s5 + $0x4a4] sm:$0xf] }
0x113b   :  { %6557 = vmatpush.bf16.msrb.mxu3 %v9754_v45  ;;  %v9834_v45 = vor.u32 %v11068_v36, %v9831_v27 }
0x113c   :  { %6598 = vmatpush.bf16.msrb.mxu0 %v9830_v32 }
0x113f   :  { %6558 = vmatpush.bf16.msrb.mxu3 %v9690_v31  ;;  %v9770_v31 = vor.u32 %v11052_v28, %v9767_v59  ;;  %v11243_v28 = vld [vmem:[%s14803_s9 + $0x1] ss:$0 sm:$0xff] }
0x1140   :  { %6599 = vmatpush.bf16.msrb.mxu0 %v9766_v29 }
0x1143   :  { %6559 = vmatpush.bf16.msrb.mxu3 %v9626_v12  ;;  %v9706_v12 = vor.u32 %v11036_v5, %v9703_v3  ;;  %v11095_v5 = vld [vmem:[%s14799_s5 + $0x5e4] sm:$0xf0] }
0x1144   :  { %6600 = vmatpush.bf16.msrb.mxu0 %v9702_v0  ;;  %v9919_v0 = vld [vmem:[%s14799_s5 + $0x5e8] sm:$0xf0] }
0x1147   :  { %6560 = vmatpush.bf16.msrb.mxu3 %v9562_v47  ;;  %v11029_v47 = vld [vmem:[%s14799_s5 + $0x3d4] sm:$0xf0] }
0x1148   :  { %v9646_v40 = vor.u32 %v11029_v47, %v9645_v53  ;;  %6601 = vmatpush.bf16.msrb.mxu0 %v9638_v58  ;;  %v9855_v58 = vld [vmem:[%s14799_s5 + $0x568] sm:$0xf0]  ;;  %v9781_v47 = vld [vmem:[%s14799_s5 + $0x4a0] sm:$0xf] }
0x114b   :  { %6611 = vmatpush.bf16.msra.mxu3 %v9898_v34  ;;  %v11004_v34 = vld [vmem:[%s14799_s5 + $0x314] sm:$0xf] }
0x114f   :  { %6612 = vmatpush.bf16.msra.mxu3 %v9834_v45 }
0x1153   :  { %6613 = vmatpush.bf16.msra.mxu3 %v9770_v31 }
0x1157   :  { %6614 = vmatpush.bf16.msra.mxu3 %v9706_v12  ;;  %v9845_v12 = vld [vmem:[%s14799_s5 + $0x520] sm:$0xf] }
0x1198   :  { %v5881_v22 = vpop.xlane.xlu1 %5880 }
0x1199   :  { %v5885_v51 = vmul.f32 0.010416667, %v5881_v22  ;;  %v9842_v22 = vor.u32 %v11069_v20, %v9839_v4 }
0x119b   :  { %v13848_v17 = vadd.f32 1e-05, %v5885_v51  ;;  %v9778_v51 = vor.u32 %v11053_v62, %v9775_v41  ;;  %v9909_v62 = vld [vmem:[%s14799_s5 + $0x5a0] sm:$0xf]  ;;  %v11086_v41 = vld [vmem:[%s14799_s5 + $0x5a4] sm:$0xf] }
0x119d   :  { %11384 = vrsqrt.f32 %v13848_v17  ;;  %vm5895_vm2 = vweird.f32 %v13848_v17 }
0x11a3   :  { %v13956_v21 = vpop.eup %11384 }
0x11a4   :  { %v5890_v19 = vmul.f32 %v13956_v21, %v13848_v17  ;;  %vm5896_vm1 = vweird.f32 %v13956_v21  ;;  %v11244_v17 = vld [vmem:[%s14804_s10 + $0x1] ss:$0 sm:$0xff] }
0x11a5   :  { %vm5897_vm13 = vmor %vm5895_vm2, %vm5896_vm1 }
0x11a6   :  { %v5872_v23 = vpop.xlane.xlu2 %5871  ;;  %v5891_v35 = vmul.f32 %v13956_v21, %v5890_v19  ;;  %v9847_v19 = vld [vmem:[%s14799_s5 + $0x560] sm:$0xf0] }
0x11a7   :  { %v5874_v30 = vmul.f32 0.010416667, %v5872_v23  ;;  %v11093_v23 = vld [vmem:[%s14799_s5 + $0x5d4] sm:$0xf0] }
0x11a8   :  { %v5892_v38 = vmul.f32 0.5, %v5891_v35  ;;  %v9789_v35 = vld [vmem:[%s14799_s5 + $0x4a8] sm:$0xf] }
0x11a9   :  { %v13771_v63 = vsub.f32 %v5866_v7, %v5874_v30  ;;  %v9629_v7 = vld [vmem:[%s14799_s5 + $0x388] sm:$0xf]  ;;  %v11085_v30 = vld [vmem:[%s14799_s5 + $0x59c] sm:$0xf] }
0x11aa   :  { %v9630_v42 = vor.u32 %v11027_v10, %v9629_v7  ;;  %v9709_v7 = vld [vmem:[%s14799_s5 + $0x418] sm:$0xf]  ;;  %v5893_v45 = vsub.f32 1.5, %v5892_v38 }
0x11ab   :  { %v5878_v25 = vmul.f32 %v13771_v63, %v13771_v63  ;;  %v11045_v10 = vld [vmem:[%s14799_s5 + $0x454] sm:$0xf0] }
0x11ac   :  { %6573 = vmatpush.bf16.msra.mxu1 %v9630_v42  ;;  %v9710_v42 = vor.u32 %v11045_v10, %v9709_v7  ;;  %v5894_v20 = vmul.f32 %v13956_v21, %v5893_v45 }
0x11ad   :  { %v5882_v14 = vsel %vm177_vm0, %v5878_v25, 0.0  ;;  %v9902_v25 = vor.u32 %v11093_v23, %v9901_v50  ;;  %v9574_v23 = vor.u32 %v11012_v9, %v9573_v24  ;;  %v11055_v24 = vld [vmem:[%s14799_s5 + $0x4ac] sm:$0xf] }
0x11ae   :  { %5883 = vadd.xlane.f32.xlu2 %v5882_v14  ;;  %v9903_v14 = vld [vmem:[%s14799_s5 + $0x5d8] sm:$0xf0]  ;;  %v9791_v9 = vld [vmem:[%s14799_s5 + $0x4e8] sm:$0xf0] }
0x11af   :  { %v9906_v37 = vor.u32 %v11085_v30, %v9903_v14  ;;  %v9575_v30 = vld [vmem:[%s14799_s5 + $0x350] sm:$0xf0]  ;;  %6602 = vmatpush.bf16.msrb.mxu0 %v9574_v23  ;;  %v9717_v23 = vld [vmem:[%s14799_s5 + $0x420] sm:$0xf] }
0x11b0   :  { %6574 = vmatpush.bf16.msra.mxu1 %v9566_v8  ;;  %v9642_v8 = vor.u32 %v11020_v44, %v9639_v49  ;;  %v9578_v14 = vor.u32 %v11004_v34, %v9575_v30  ;;  %v11071_v44 = vld [vmem:[%s14799_s5 + $0x52c] sm:$0xf]  ;;  %v11046_v30 = vld [vmem:[%s14799_s5 + $0x45c] sm:$0xf0] }
0x11b1   :  { %6639 = vmatpush.bf16.msra.mxu2 %v9906_v37  ;;  %v9583_v37 = vld [vmem:[%s14799_s5 + $0x358] sm:$0xf0]  ;;  %v9858_v6 = vor.u32 %v11071_v44, %v9855_v58  ;;  %v9718_v38 = vor.u32 %v11046_v30, %v9717_v23  ;;  %v9797_v30 = vld [vmem:[%s14799_s5 + $0x4b0] sm:$0xf] }
0x11b2   :  { %6615 = vmatpush.bf16.msra.mxu3 %v9642_v8  ;;  %v9586_v27 = vor.u32 %v11005_v16, %v9583_v37  ;;  %v11062_v8 = vld [vmem:[%s14799_s5 + $0x4dc] sm:$0xf0]  ;;  %v9719_v16 = vld [vmem:[%s14799_s5 + $0x460] sm:$0xf0]  ;;  %v9725_v37 = vld [vmem:[%s14799_s5 + $0x428] sm:$0xf] }
0x11b3   :  { %v9782_v34 = vor.u32 %v11062_v8, %v9781_v47  ;;  %v11080_v47 = vld [vmem:[%s14799_s5 + $0x56c] sm:$0xf0] }
0x11b4   :  { %6625 = vmatpush.bf16.msrb.mxu1 %v9902_v25  ;;  %v9581_v25 = vld [vmem:[%s14799_s5 + $0x318] sm:$0xf] }
0x11b5   :  { %6640 = vmatpush.bf16.msra.mxu2 %v9842_v22  ;;  %v9582_v36 = vor.u32 %v11013_v54, %v9581_v25  ;;  %v5898_v22 = vsel %vm5897_vm13, %v13956_v21, %v5894_v20  ;;  %v11087_v21 = vld [vmem:[%s14799_s5 + $0x5ac] sm:$0xf]  ;;  %v11038_v54 = vld [vmem:[%s14799_s5 + $0x424] sm:$0xf]  ;;  %v11030_v20 = vld [vmem:[%s14799_s5 + $0x3dc] sm:$0xf0] }
0x11b6   :  { %6616 = vmatpush.bf16.msra.mxu3 %v9578_v14  ;;  %v5909_v29 = vmul.f32 %v5898_v22, %v13716_v60  ;;  %v11094_v60 = vld [vmem:[%s14799_s5 + $0x5dc] sm:$0xf0]  ;;  %v9922_v18 = vor.u32 %v11087_v21, %v9919_v0  ;;  %v9794_v14 = vor.u32 %v11055_v24, %v9791_v9  ;;  %v9722_v45 = vor.u32 %v11038_v54, %v9719_v16  ;;  %v11022_v22 = vld [vmem:[%s14799_s5 + $0x3a4] sm:$0xf]  ;;  %v9599_v21 = vld [vmem:[%s14799_s5 + $0x368] sm:$0xf0] }
0x11b7   :  { %v9910_v7 = vor.u32 %v11094_v60, %v9909_v62  ;;  %v9591_v62 = vld [vmem:[%s14799_s5 + $0x360] sm:$0xf0]  ;;  %v9925_v0 = vld [vmem:[%s14799_s5 + $0x5b0] sm:$0xf]  ;;  %v9871_v24 = vld [vmem:[%s14799_s5 + $0x578] sm:$0xf0] }
0x11b8   :  { %6626 = vmatpush.bf16.msrb.mxu1 %v9838_v39  ;;  %v5914_v26 = vmul.f32 %v11243_v28, %v5909_v29  ;;  %v11023_v29 = vld [vmem:[%s14799_s5 + $0x3ac] sm:$0xf]  ;;  %v9799_v54 = vld [vmem:[%s14799_s5 + $0x4f0] sm:$0xf0]  ;;  %v9805_v16 = vld [vmem:[%s14799_s5 + $0x4b8] sm:$0xf] }
0x11b9   :  { %6641 = vmatpush.bf16.msra.mxu2 %v9778_v51  ;;  %v9911_v51 = vld [vmem:[%s14799_s5 + $0x5e0] sm:$0xf0] }
0x11ba   :  { %v14051_v33 = vadd.f32 %v11244_v17, %v5914_v26  ;;  %v9914_v10 = vor.u32 %v11086_v41, %v9911_v51  ;;  %v9597_v51 = vld [vmem:[%s14799_s5 + $0x328] sm:$0xf] }
0x11bc   :  { %6627 = vmatpush.bf16.msrb.mxu1 %v9774_v43 }
0x11bd   :  { %6642 = vmatpush.bf16.msra.mxu2 %v9714_v55  ;;  %v11070_v55 = vld [vmem:[%s14799_s5 + $0x524] sm:$0xf] }
0x11be   :  { %v9850_v53 = vor.u32 %v11070_v55, %v9847_v19  ;;  %v11097_v55 = vld [vmem:[%s14799_s5 + $0x5f4] sm:$0xf0]  ;;  %v11089_v19 = vld [vmem:[%s14799_s5 + $0x5bc] sm:$0xf] }
0x11c0   :  { %6628 = vmatpush.bf16.msrb.mxu1 %v9710_v42  ;;  %v11078_v42 = vld [vmem:[%s14799_s5 + $0x55c] sm:$0xf0] }
0x11c1   :  { %6643 = vmatpush.bf16.msra.mxu2 %v9650_v56  ;;  %v9846_v49 = vor.u32 %v11078_v42, %v9845_v12  ;;  %v9783_v56 = vld [vmem:[%s14799_s5 + $0x4e0] sm:$0xf0]  ;;  %v9927_v12 = vld [vmem:[%s14799_s5 + $0x5f0] sm:$0xf0]  ;;  %v9933_v42 = vld [vmem:[%s14799_s5 + $0x5b8] sm:$0xf] }
0x11c2   :  { %v9934_v8 = vor.u32 %v11097_v55, %v9933_v42  ;;  %v9613_v55 = vld [vmem:[%s14799_s5 + $0x338] sm:$0xf] }
0x11c4   :  { %6629 = vmatpush.bf16.msrb.mxu1 %v9646_v40  ;;  %v9854_v40 = vor.u32 %v11079_v11, %v9853_v57  ;;  %v9935_v57 = vld [vmem:[%s14799_s5 + $0x5f8] sm:$0xf0] }
0x11c5   :  { %6644 = vmatpush.bf16.msra.mxu2 %v9586_v27  ;;  %v9727_v27 = vld [vmem:[%s14799_s5 + $0x468] sm:$0xf0] }
0x11c8   :  { %6630 = vmatpush.bf16.msrb.mxu1 %v9582_v36  ;;  %v11039_v36 = vld [vmem:[%s14799_s5 + $0x42c] sm:$0xf] }
0x1221   :  { %v5884_v13 = vpop.xlane.xlu2 %5883 }
0x1222   :  { %v5886_v50 = vmul.f32 0.010416667, %v5884_v13  ;;  %v11063_v13 = vld [vmem:[%s14799_s5 + $0x4e4] sm:$0xf0] }
0x1223   :  { %v9790_v25 = vor.u32 %v11063_v13, %v9789_v35  ;;  %v11081_v35 = vld [vmem:[%s14799_s5 + $0x574] sm:$0xf0]  ;;  %v11073_v13 = vld [vmem:[%s14799_s5 + $0x53c] sm:$0xf] }
0x1224   :  { %v5888_v32 = vadd.f32 1e-05, %v5886_v50  ;;  %v9786_v50 = vor.u32 %v11054_v52, %v9783_v56  ;;  %v9863_v52 = vld [vmem:[%s14799_s5 + $0x570] sm:$0xf0]  ;;  %v9869_v56 = vld [vmem:[%s14799_s5 + $0x538] sm:$0xf]  ;;  %v9874_v23 = vor.u32 %v11073_v13, %v9871_v24 }
0x1225   :  { %v11128_v13 = vld [vmem:[%s14801_s7 + $0x4f0] sm:$0xff]  ;;  %v11103_v24 = vld [vmem:[%s14801_s7 + $0x428] sm:$0xff] }
0x1226   :  { %11386 = vrsqrt.f32 %v5888_v32  ;;  %vm5905_vm15 = vweird.f32 %v5888_v32 }
0x122c   :  { %v11387_v46 = vpop.eup %11386 }
0x122d   :  { %v5900_v4 = vmul.f32 %v11387_v46, %v5888_v32  ;;  %vm5906_vm14 = vweird.f32 %v11387_v46  ;;  %v11047_v32 = vld [vmem:[%s14799_s5 + $0x464] sm:$0xf0] }
0x122e   :  { %vm5907_vm3 = vmor %vm5905_vm15, %vm5906_vm14 }
0x122f   :  { %v5901_v39 = vmul.f32 %v11387_v46, %v5900_v4  ;;  %v9726_v4 = vor.u32 %v11047_v32, %v9725_v37  ;;  %v11065_v37 = vld [vmem:[%s14799_s5 + $0x4f4] sm:$0xf0]  ;;  %v11057_v32 = vld [vmem:[%s14799_s5 + $0x4bc] sm:$0xf] }
0x1231   :  { %v5902_v48 = vmul.f32 0.5, %v5901_v39  ;;  %v9730_v39 = vor.u32 %v11039_v36, %v9727_v27  ;;  %v9807_v36 = vld [vmem:[%s14799_s5 + $0x4f8] sm:$0xf0] }
0x1233   :  { %v5903_v1 = vsub.f32 1.5, %v5902_v48  ;;  %v9655_v48 = vld [vmem:[%s14799_s5 + $0x3e0] sm:$0xf0] }
0x1234   :  { %v9658_v26 = vor.u32 %v11022_v22, %v9655_v48  ;;  %v9735_v22 = vld [vmem:[%s14799_s5 + $0x470] sm:$0xf0]  ;;  %v9741_v48 = vld [vmem:[%s14799_s5 + $0x438] sm:$0xf] }
0x1235   :  { %v5904_v59 = vmul.f32 %v11387_v46, %v5903_v1  ;;  %v9661_v1 = vld [vmem:[%s14799_s5 + $0x3a8] sm:$0xf] }
0x1237   :  { %v5908_v61 = vsel %vm5907_vm3, %v11387_v46, %v5904_v59  ;;  %v9653_v46 = vld [vmem:[%s14799_s5 + $0x3a0] sm:$0xf]  ;;  %v9663_v59 = vld [vmem:[%s14799_s5 + $0x3e8] sm:$0xf0] }
0x1238   :  { %v5910_v31 = vmul.f32 %v5908_v61, %v13771_v63  ;;  %v9917_v63 = vld [vmem:[%s14799_s5 + $0x5a8] sm:$0xf]  ;;  %v9589_v61 = vld [vmem:[%s14799_s5 + $0x320] sm:$0xf]  ;;  %v9666_v41 = vor.u32 %v11023_v29, %v9663_v59  ;;  %v9743_v29 = vld [vmem:[%s14799_s5 + $0x478] sm:$0xf0] }
0x1239   :  { %v9918_v15 = vor.u32 %v11095_v5, %v9917_v63  ;;  %v11015_v63 = vld [vmem:[%s14799_s5 + $0x364] sm:$0xf0]  ;;  %v11007_v5 = vld [vmem:[%s14799_s5 + $0x32c] sm:$0xf] }
0x123a   :  { %v5915_v43 = vmul.f32 %v11243_v28, %v5910_v31  ;;  %v11031_v28 = vld [vmem:[%s14799_s5 + $0x3e4] sm:$0xf0]  ;;  %v11014_v31 = vld [vmem:[%s14799_s5 + $0x35c] sm:$0xf0]  ;;  %v9598_v11 = vor.u32 %v11015_v63, %v9597_v51  ;;  %v9602_v44 = vor.u32 %v11007_v5, %v9599_v21  ;;  %v11033_v51 = vld [vmem:[%s14799_s5 + $0x3f4] sm:$0xf0] }
0x123b   :  { %v9662_v60 = vor.u32 %v11031_v28, %v9661_v1  ;;  %v11049_v1 = vld [vmem:[%s14799_s5 + $0x474] sm:$0xf0]  ;;  %v11041_v28 = vld [vmem:[%s14799_s5 + $0x43c] sm:$0xf] }
0x123c   :  { %v14053_v2 = vadd.f32 %v11244_v17, %v5915_v43  ;;  %v9654_v17 = vor.u32 %v11030_v20, %v9653_v46  ;;  %v11006_v43 = vld [vmem:[%s14799_s5 + $0x324] sm:$0xf]  ;;  %v11048_v46 = vld [vmem:[%s14799_s5 + $0x46c] sm:$0xf0]  ;;  %v9806_v20 = vor.u32 %v11065_v37, %v9805_v16  ;;  %v11025_v63 = vld [vmem:[%s14799_s5 + $0x3bc] sm:$0xf] }
0x123d   :  { %v9679_v5 = vld [vmem:[%s14799_s5 + $0x3f8] sm:$0xf0] }
0x123e   :  { %v14066_v3 = vpack.c.bf16 %v14053_v2, %v14051_v33  ;;  %v9682_v42 = vor.u32 %v11025_v63, %v9679_v5  ;;  %v11109_v16 = vld [vmem:[%s14801_s7 + $0x458] sm:$0xff]  ;;  %v11143_v63 = vld [vmem:[%s14801_s7 + $0x568] sm:$0xff] }
0x123f   :  { %v11125_v37 = vld [vmem:[%s14801_s7 + $0x4d8] sm:$0xff]  ;;  %v11159_v5 = vld [vmem:[%s14801_s7 + $0x5e8] sm:$0xff] }
0x1240   :  { %9939 = vmatmul.msk.bf16.vlgmr.msra.gmra.mxu0 %vm177_vm0, %v14066_v3  ;;  %9940 = vmatmul.msk.bf16.vlgmr.msrb.gmra.mxu3 %vm177_vm0, %v14066_v3 }
0x1241   :  { %9941 = vmatmul.msk.bf16.vlgmr.msra.gmra.mxu1 %vm177_vm0, %v14066_v3  ;;  %9942 = vmatmul.msk.bf16.vlgmr.msrb.gmra.mxu2 %vm177_vm0, %v14066_v3 }
0x1242   :  { %6653 = vmatpush.bf16.msra.mxu0 %v9910_v7  ;;  %6667 = vmatpush.bf16.msrb.mxu3 %v9914_v10  ;;  %v11096_v7 = vld [vmem:[%s14799_s5 + $0x5ec] sm:$0xf0]  ;;  %v11088_v10 = vld [vmem:[%s14799_s5 + $0x5b4] sm:$0xf] }
0x1243   :  { %6681 = vmatpush.bf16.msra.mxu1 %v9918_v15  ;;  %6695 = vmatpush.bf16.msrb.mxu2 %v9922_v18  ;;  %v9590_v15 = vor.u32 %v11014_v31, %v9589_v61  ;;  %v9594_v18 = vor.u32 %v11006_v43, %v9591_v62  ;;  %v9926_v58 = vor.u32 %v11096_v7, %v9925_v0  ;;  %v11024_v62 = vld [vmem:[%s14799_s5 + $0x3b4] sm:$0xf]  ;;  %v9605_v7 = vld [vmem:[%s14799_s5 + $0x330] sm:$0xf] }
0x1244   :  { %v9742_v31 = vor.u32 %v11049_v1, %v9741_v48  ;;  %v9746_v43 = vor.u32 %v11041_v28, %v9743_v29  ;;  %v11137_v48 = vld [vmem:[%s14801_s7 + $0x538] sm:$0xff]  ;;  %v11106_v28 = vld [vmem:[%s14801_s7 + $0x440] sm:$0xff] }
0x1245   :  { %v11153_v1 = vld [vmem:[%s14801_s7 + $0x5b8] sm:$0xff]  ;;  %v11122_v29 = vld [vmem:[%s14801_s7 + $0x4c0] sm:$0xff] }
0x1246   :  { %6654 = vmatpush.bf16.msra.mxu0 %v9846_v49  ;;  %6668 = vmatpush.bf16.msrb.mxu3 %v9850_v53  ;;  %v9930_v49 = vor.u32 %v11088_v10, %v9927_v12  ;;  %v9861_v53 = vld [vmem:[%s14799_s5 + $0x530] sm:$0xf] }
0x1247   :  { %6682 = vmatpush.bf16.msra.mxu1 %v9854_v40  ;;  %6696 = vmatpush.bf16.msrb.mxu2 %v9858_v6  ;;  %v9938_v40 = vor.u32 %v11089_v19, %v9935_v57  ;;  %v11072_v6 = vld [vmem:[%s14799_s5 + $0x534] sm:$0xf]  ;;  %v9862_v9 = vor.u32 %v11080_v47, %v9861_v53  ;;  %v11016_v10 = vld [vmem:[%s14799_s5 + $0x36c] sm:$0xf0]  ;;  %v11017_v19 = vld [vmem:[%s14799_s5 + $0x374] sm:$0xf0] }
0x1248   :  { %v11009_v57 = vld [vmem:[%s14799_s5 + $0x33c] sm:$0xf] }
0x1249   :  { %v11105_v47 = vld [vmem:[%s14801_s7 + $0x438] sm:$0xff] }
0x124a   :  { %6655 = vmatpush.bf16.msra.mxu0 %v9782_v34  ;;  %6669 = vmatpush.bf16.msrb.mxu3 %v9786_v50  ;;  %v9866_v34 = vor.u32 %v11072_v6, %v9863_v52  ;;  %v9870_v50 = vor.u32 %v11081_v35, %v9869_v56  ;;  %v11129_v6 = vld [vmem:[%s14801_s7 + $0x4f8] sm:$0xff]  ;;  %v11104_v52 = vld [vmem:[%s14801_s7 + $0x430] sm:$0xff] }
0x124b   :  { %6683 = vmatpush.bf16.msra.mxu1 %v9790_v25  ;;  %6697 = vmatpush.bf16.msrb.mxu2 %v9794_v14  ;;  %v11064_v25 = vld [vmem:[%s14799_s5 + $0x4ec] sm:$0xf0]  ;;  %v11056_v14 = vld [vmem:[%s14799_s5 + $0x4b4] sm:$0xf] }
0x124c   :  { %v9798_v27 = vor.u32 %v11064_v25, %v9797_v30  ;;  %v11120_v56 = vld [vmem:[%s14801_s7 + $0x4b0] sm:$0xff]  ;;  %v11110_v30 = vld [vmem:[%s14801_s7 + $0x460] sm:$0xff] }
0x124d   :  { %v11112_v35 = vld [vmem:[%s14801_s7 + $0x470] sm:$0xff]  ;;  %v11126_v25 = vld [vmem:[%s14801_s7 + $0x4e0] sm:$0xff] }
0x124e   :  { %6656 = vmatpush.bf16.msra.mxu0 %v9718_v38  ;;  %6670 = vmatpush.bf16.msrb.mxu3 %v9722_v45  ;;  %v9802_v38 = vor.u32 %v11056_v14, %v9799_v54  ;;  %v9733_v45 = vld [vmem:[%s14799_s5 + $0x430] sm:$0xf]  ;;  %v11101_v14 = vld [vmem:[%s14801_s7 + $0x418] sm:$0xff] }
0x124f   :  { %6684 = vmatpush.bf16.msra.mxu1 %v9726_v4  ;;  %6698 = vmatpush.bf16.msrb.mxu2 %v9730_v39  ;;  %v9810_v4 = vor.u32 %v11057_v32, %v9807_v36  ;;  %v11040_v39 = vld [vmem:[%s14799_s5 + $0x434] sm:$0xf]  ;;  %v9734_v59 = vor.u32 %v11048_v46, %v9733_v45  ;;  %v11117_v54 = vld [vmem:[%s14801_s7 + $0x498] sm:$0xff]  ;;  %v11099_v45 = vld [vmem:[%s14801_s7 + $0x408] sm:$0xff] }
0x1250   :  { %9943 = vmatmul.msk.bf16.vlgmr.msrb.gmra.mxu0 %vm177_vm0, %v14066_v3  ;;  %9944 = vmatmul.msk.bf16.vlgmr.msra.gmra.mxu3 %vm177_vm0, %v14066_v3  ;;  %v9738_v61 = vor.u32 %v11040_v39, %v9735_v22  ;;  %v11100_v32 = vld [vmem:[%s14801_s7 + $0x410] sm:$0xff]  ;;  %v11115_v46 = vld [vmem:[%s14801_s7 + $0x488] sm:$0xff]  ;;  %v11098_v39 = vld [vmem:[%s14801_s7 + $0x400] sm:$0xff] }
0x1251   :  { %9945 = vmatmul.msk.bf16.vlgmr.msrb.gmra.mxu1 %vm177_vm0, %v14066_v3  ;;  %9946 = vmatmul.msk.bf16.vlgmr.msra.gmra.mxu2 %vm177_vm0, %v14066_v3  ;;  %v11116_v36 = vld [vmem:[%s14801_s7 + $0x490] sm:$0xff]  ;;  %v11114_v22 = vld [vmem:[%s14801_s7 + $0x480] sm:$0xff] }
0x1252   :  { %6657 = vmatpush.bf16.msra.mxu0 %v9654_v17  ;;  %6671 = vmatpush.bf16.msrb.mxu3 %v9658_v26  ;;  %v9669_v17 = vld [vmem:[%s14799_s5 + $0x3b0] sm:$0xf] }
0x1253   :  { %6685 = vmatpush.bf16.msra.mxu1 %v9662_v60  ;;  %6699 = vmatpush.bf16.msrb.mxu2 %v9666_v41  ;;  %v11032_v26 = vld [vmem:[%s14799_s5 + $0x3ec] sm:$0xf0]  ;;  %v9671_v60 = vld [vmem:[%s14799_s5 + $0x3f0] sm:$0xf0]  ;;  %v9677_v41 = vld [vmem:[%s14799_s5 + $0x3b8] sm:$0xf] }
0x1254   :  { %v9670_v21 = vor.u32 %v11032_v26, %v9669_v17  ;;  %v9674_v0 = vor.u32 %v11024_v62, %v9671_v60  ;;  %v9678_v12 = vor.u32 %v11033_v51, %v9677_v41  ;;  %v11136_v17 = vld [vmem:[%s14801_s7 + $0x530] sm:$0xff]  ;;  %v11135_v62 = vld [vmem:[%s14801_s7 + $0x528] sm:$0xff]  ;;  %v11134_v41 = vld [vmem:[%s14801_s7 + $0x520] sm:$0xff] }
0x1255   :  { %v11152_v26 = vld [vmem:[%s14801_s7 + $0x5b0] sm:$0xff]  ;;  %v11151_v60 = vld [vmem:[%s14801_s7 + $0x5a8] sm:$0xff]  ;;  %v11150_v51 = vld [vmem:[%s14801_s7 + $0x5a0] sm:$0xff] }
0x1256   :  { %6658 = vmatpush.bf16.msra.mxu0 %v9590_v15  ;;  %6672 = vmatpush.bf16.msrb.mxu3 %v9594_v18  ;;  %v11008_v15 = vld [vmem:[%s14799_s5 + $0x334] sm:$0xf] }
0x1257   :  { %6686 = vmatpush.bf16.msra.mxu1 %v9598_v11  ;;  %6700 = vmatpush.bf16.msrb.mxu2 %v9602_v44  ;;  %v9607_v18 = vld [vmem:[%s14799_s5 + $0x370] sm:$0xf0]  ;;  %v9615_v11 = vld [vmem:[%s14799_s5 + $0x378] sm:$0xf0]  ;;  %v9606_v44 = vor.u32 %v11016_v10, %v9605_v7  ;;  %v11142_v7 = vld [vmem:[%s14801_s7 + $0x560] sm:$0xff] }
0x1258   :  { %v9618_v53 = vor.u32 %v11009_v57, %v9615_v11  ;;  %v11158_v10 = vld [vmem:[%s14801_s7 + $0x5e0] sm:$0xff]  ;;  %v11140_v57 = vld [vmem:[%s14801_s7 + $0x550] sm:$0xff] }
0x1259   :  { %v11156_v11 = vld [vmem:[%s14801_s7 + $0x5d0] sm:$0xff] }
0x125a   :  { %6709 = vmatpush.bf16.msrb.mxu0 %v9926_v58  ;;  %6723 = vmatpush.bf16.msra.mxu3 %v9930_v49  ;;  %v9610_v58 = vor.u32 %v11008_v15, %v9607_v18  ;;  %v9614_v49 = vor.u32 %v11017_v19, %v9613_v55  ;;  %v11141_v15 = vld [vmem:[%s14801_s7 + $0x558] sm:$0xff]  ;;  %v11131_v55 = vld [vmem:[%s14801_s7 + $0x508] sm:$0xff] }
0x125b   :  { %6737 = vmatpush.bf16.msrb.mxu1 %v9934_v8  ;;  %6751 = vmatpush.bf16.msra.mxu2 %v9938_v40  ;;  %v11121_v8 = vld [vmem:[%s14801_s7 + $0x4b8] sm:$0xff]  ;;  %v11147_v19 = vld [vmem:[%s14801_s7 + $0x588] sm:$0xff] }
0x125c   :  { %v11113_v40 = vld [vmem:[%s14801_s7 + $0x478] sm:$0xff] }
0x125d   :  { %v11157_v18 = vld [vmem:[%s14801_s7 + $0x5d8] sm:$0xff] }
0x125e   :  { %6710 = vmatpush.bf16.msrb.mxu0 %v9862_v9  ;;  %6724 = vmatpush.bf16.msra.mxu3 %v9866_v34  ;;  %v11111_v9 = vld [vmem:[%s14801_s7 + $0x468] sm:$0xff] }
0x125f   :  { %6738 = vmatpush.bf16.msrb.mxu1 %v9870_v50  ;;  %6752 = vmatpush.bf16.msra.mxu2 %v9874_v23  ;;  %v11127_v34 = vld [vmem:[%s14801_s7 + $0x4e8] sm:$0xff]  ;;  %v11102_v50 = vld [vmem:[%s14801_s7 + $0x420] sm:$0xff] }
0x1260   :  { %9947 = vmatmul.msk.bf16.vlgmr.msra.gmra.mxu0 %vm177_vm0, %v14066_v3  ;;  %9948 = vmatmul.msk.bf16.vlgmr.msrb.gmra.mxu3 %vm177_vm0, %v14066_v3  ;;  %v11118_v23 = vld [vmem:[%s14801_s7 + $0x4a0] sm:$0xff] }
0x1261   :  { %9949 = vmatmul.msk.bf16.vlgmr.msra.gmra.mxu1 %vm177_vm0, %v14066_v3  ;;  %9950 = vmatmul.msk.bf16.vlgmr.msrb.gmra.mxu2 %vm177_vm0, %v14066_v3 }
0x1262   :  { %6711 = vmatpush.bf16.msrb.mxu0 %v9798_v27  ;;  %6725 = vmatpush.bf16.msra.mxu3 %v9802_v38  ;;  %v11108_v27 = vld [vmem:[%s14801_s7 + $0x450] sm:$0xff] }
0x1263   :  { %6739 = vmatpush.bf16.msrb.mxu1 %v9806_v20  ;;  %6753 = vmatpush.bf16.msra.mxu2 %v9810_v4  ;;  %v11124_v38 = vld [vmem:[%s14801_s7 + $0x4d0] sm:$0xff]  ;;  %v11107_v20 = vld [vmem:[%s14801_s7 + $0x448] sm:$0xff] }
0x1264   :  { %v11123_v4 = vld [vmem:[%s14801_s7 + $0x4c8] sm:$0xff] }
0x1266   :  { %6712 = vmatpush.bf16.msrb.mxu0 %v9734_v59  ;;  %6726 = vmatpush.bf16.msra.mxu3 %v9738_v61  ;;  %v11145_v59 = vld [vmem:[%s14801_s7 + $0x578] sm:$0xff] }
0x1267   :  { %6740 = vmatpush.bf16.msrb.mxu1 %v9742_v31  ;;  %6754 = vmatpush.bf16.msra.mxu2 %v9746_v43  ;;  %v11161_v61 = vld [vmem:[%s14801_s7 + $0x5f8] sm:$0xff]  ;;  %v11144_v31 = vld [vmem:[%s14801_s7 + $0x570] sm:$0xff] }
0x1268   :  { %v11160_v43 = vld [vmem:[%s14801_s7 + $0x5f0] sm:$0xff] }
0x126a   :  { %6713 = vmatpush.bf16.msrb.mxu0 %v9670_v21  ;;  %6727 = vmatpush.bf16.msra.mxu3 %v9674_v0  ;;  %v11133_v21 = vld [vmem:[%s14801_s7 + $0x518] sm:$0xff] }
0x126b   :  { %6741 = vmatpush.bf16.msrb.mxu1 %v9678_v12  ;;  %6755 = vmatpush.bf16.msra.mxu2 %v9682_v42  ;;  %v11149_v0 = vld [vmem:[%s14801_s7 + $0x598] sm:$0xff]  ;;  %v11132_v12 = vld [vmem:[%s14801_s7 + $0x510] sm:$0xff] }
0x126c   :  { %v11148_v42 = vld [vmem:[%s14801_s7 + $0x590] sm:$0xff] }
0x126e   :  { %6714 = vmatpush.bf16.msrb.mxu0 %v9606_v44  ;;  %6728 = vmatpush.bf16.msra.mxu3 %v9610_v58  ;;  %v11130_v44 = vld [vmem:[%s14801_s7 + $0x500] sm:$0xff] }
0x126f   :  { %6742 = vmatpush.bf16.msrb.mxu1 %v9614_v49  ;;  %6756 = vmatpush.bf16.msra.mxu2 %v9618_v53  ;;  %v11146_v58 = vld [vmem:[%s14801_s7 + $0x580] sm:$0xff]  ;;  %v11139_v49 = vld [vmem:[%s14801_s7 + $0x548] sm:$0xff] }
0x1270   :  { %v11155_v53 = vld [vmem:[%s14801_s7 + $0x5c8] sm:$0xff] }
0x1271   :  { %9951 = vmatmul.msk.bf16.vlgmr.msrb.gmra.mxu0 %vm177_vm0, %v14066_v3  ;;  %9952 = vmatmul.msk.bf16.vlgmr.msra.gmra.mxu3 %vm177_vm0, %v14066_v3 }
0x1272   :  { %7841 = vmatpush.bf16.msra.mxu0 %v11105_v47  ;;  %9953 = vmatmul.msk.bf16.vlgmr.msrb.gmra.mxu1 %vm177_vm0, %v14066_v3  ;;  %v11138_v47 = vld [vmem:[%s14801_s7 + $0x540] sm:$0xff] }
0x1273   :  { %7869 = vmatpush.bf16.msra.mxu1 %v11121_v8  ;;  %9954 = vmatmul.msk.bf16.vlgmr.msra.gmra.mxu2 %vm177_vm0, %v14066_v3  ;;  %v11119_v3 = vld [vmem:[%s14801_s7 + $0x4a8] sm:$0xff]  ;;  %v11154_v8 = vld [vmem:[%s14801_s7 + $0x5c0] sm:$0xff] }
0x1274   :  { %7855 = vmatpush.bf16.msrb.mxu3 %v11113_v40  ;;  %7883 = vmatpush.bf16.msrb.mxu2 %v11129_v6  ;;  %v14559_v40 = vld [vmem:[%s14800_s6 + $0x10] sm:$0xff] }
0x1276   :  { %7842 = vmatpush.bf16.msra.mxu0 %v11104_v52 }
0x1277   :  { %7870 = vmatpush.bf16.msra.mxu1 %v11120_v56  ;;  %v6024_v56 = vperm.slane %v14559_v40, 0 }
0x1278   :  { %7856 = vmatpush.bf16.msrb.mxu3 %v11112_v35  ;;  %7884 = vmatpush.bf16.msrb.mxu2 %v11128_v13  ;;  %v6026_v35 = vperm.slane %v14559_v40, 2 }
0x127a   :  { %7843 = vmatpush.bf16.msra.mxu0 %v11103_v24 }
0x127b   :  { %7871 = vmatpush.bf16.msra.mxu1 %v11119_v3 }
0x127c   :  { %7857 = vmatpush.bf16.msrb.mxu3 %v11111_v9  ;;  %7885 = vmatpush.bf16.msrb.mxu2 %v11127_v34 }
0x127e   :  { %7844 = vmatpush.bf16.msra.mxu0 %v11102_v50  ;;  %v6025_v50 = vperm.slane %v14559_v40, 1 }
0x127f   :  { %7872 = vmatpush.bf16.msra.mxu1 %v11118_v23 }
0x1280   :  { %7858 = vmatpush.bf16.msrb.mxu3 %v11110_v30  ;;  %7886 = vmatpush.bf16.msrb.mxu2 %v11126_v25  ;;  %v6027_v25 = vperm.slane %v14559_v40, 3 }
0x1282   :  { %7845 = vmatpush.bf16.msra.mxu0 %v11101_v14 }
0x1283   :  { %7873 = vmatpush.bf16.msra.mxu1 %v11117_v54 }
0x1284   :  { %7859 = vmatpush.bf16.msrb.mxu3 %v11109_v16  ;;  %7887 = vmatpush.bf16.msrb.mxu2 %v11125_v37 }
0x1286   :  { %7846 = vmatpush.bf16.msra.mxu0 %v11100_v32 }
0x1287   :  { %7874 = vmatpush.bf16.msra.mxu1 %v11116_v36  ;;  %v11169_v36 = vld [vmem:[%s14801_s7 + $0x638] sm:$0xff] }
0x1288   :  { %7860 = vmatpush.bf16.msrb.mxu3 %v11108_v27  ;;  %7888 = vmatpush.bf16.msrb.mxu2 %v11124_v38 }
0x128a   :  { %7847 = vmatpush.bf16.msra.mxu0 %v11099_v45  ;;  %v11185_v45 = vld [vmem:[%s14801_s7 + $0x6b8] sm:$0xff] }
0x128b   :  { %7875 = vmatpush.bf16.msra.mxu1 %v11115_v46 }
0x128c   :  { %7861 = vmatpush.bf16.msrb.mxu3 %v11107_v20  ;;  %7889 = vmatpush.bf16.msrb.mxu2 %v11123_v4 }
0x128e   :  { %7848 = vmatpush.bf16.msra.mxu0 %v11098_v39 }
0x128f   :  { %7876 = vmatpush.bf16.msra.mxu1 %v11114_v22 }
0x1290   :  { %7862 = vmatpush.bf16.msrb.mxu3 %v11106_v28  ;;  %7890 = vmatpush.bf16.msrb.mxu2 %v11122_v29  ;;  %v11168_v28 = vld [vmem:[%s14801_s7 + $0x630] sm:$0xff] }
0x1292   :  { %7897 = vmatpush.bf16.msrb.mxu0 %v11137_v48 }
0x1293   :  { %7925 = vmatpush.bf16.msrb.mxu1 %v11153_v1 }
0x1294   :  { %7911 = vmatpush.bf16.msra.mxu3 %v11145_v59  ;;  %7939 = vmatpush.bf16.msra.mxu2 %v11161_v61 }
0x1296   :  { %7898 = vmatpush.bf16.msrb.mxu0 %v11136_v17  ;;  %v11184_v17 = vld [vmem:[%s14801_s7 + $0x6b0] sm:$0xff] }
0x1297   :  { %7926 = vmatpush.bf16.msrb.mxu1 %v11152_v26 }
0x1298   :  { %7912 = vmatpush.bf16.msra.mxu3 %v11144_v31  ;;  %7940 = vmatpush.bf16.msra.mxu2 %v11160_v43  ;;  %v11177_v43 = vld [vmem:[%s14801_s7 + $0x678] sm:$0xff] }
0x129a   :  { %7899 = vmatpush.bf16.msrb.mxu0 %v11135_v62 }
0x129b   :  { %7927 = vmatpush.bf16.msrb.mxu1 %v11151_v60  ;;  %v6028_v60 = vperm.slane %v14559_v40, 4 }
0x129c   :  { %7913 = vmatpush.bf16.msra.mxu3 %v11143_v63  ;;  %7941 = vmatpush.bf16.msra.mxu2 %v11159_v5  ;;  %v6030_v63 = vperm.slane %v14559_v40, 6  ;;  %v11167_v5 = vld [vmem:[%s14801_s7 + $0x628] sm:$0xff] }
0x129e   :  { %7900 = vmatpush.bf16.msrb.mxu0 %v11134_v41  ;;  %v11193_v41 = vld [vmem:[%s14801_s7 + $0x6f8] sm:$0xff] }
0x129f   :  { %7928 = vmatpush.bf16.msrb.mxu1 %v11150_v51 }
0x12a0   :  { %7914 = vmatpush.bf16.msra.mxu3 %v11142_v7  ;;  %7942 = vmatpush.bf16.msra.mxu2 %v11158_v10  ;;  %v11176_v7 = vld [vmem:[%s14801_s7 + $0x670] sm:$0xff] }
0x12a2   :  { %7901 = vmatpush.bf16.msrb.mxu0 %v11133_v21  ;;  %v11183_v21 = vld [vmem:[%s14801_s7 + $0x6a8] sm:$0xff] }
0x12a3   :  { %7929 = vmatpush.bf16.msrb.mxu1 %v11149_v0 }
0x12a4   :  { %7915 = vmatpush.bf16.msra.mxu3 %v11141_v15  ;;  %7943 = vmatpush.bf16.msra.mxu2 %v11157_v18 }
0x12a6   :  { %7902 = vmatpush.bf16.msrb.mxu0 %v11132_v12 }
0x12a7   :  { %7930 = vmatpush.bf16.msrb.mxu1 %v11148_v42  ;;  %v11192_v42 = vld [vmem:[%s14801_s7 + $0x6f0] sm:$0xff] }
0x12a8   :  { %7916 = vmatpush.bf16.msra.mxu3 %v11140_v57  ;;  %7944 = vmatpush.bf16.msra.mxu2 %v11156_v11 }
0x12aa   :  { %7903 = vmatpush.bf16.msrb.mxu0 %v11131_v55  ;;  %v11166_v55 = vld [vmem:[%s14801_s7 + $0x620] sm:$0xff] }
0x12ab   :  { %7931 = vmatpush.bf16.msrb.mxu1 %v11147_v19  ;;  %v6029_v19 = vperm.slane %v14559_v40, 5 }
0x12ac   :  { %7917 = vmatpush.bf16.msra.mxu3 %v11139_v49  ;;  %7945 = vmatpush.bf16.msra.mxu2 %v11155_v53  ;;  %v11175_v53 = vld [vmem:[%s14801_s7 + $0x668] sm:$0xff] }
0x12ae   :  { %7904 = vmatpush.bf16.msrb.mxu0 %v11130_v44  ;;  %v11182_v44 = vld [vmem:[%s14801_s7 + $0x6a0] sm:$0xff] }
0x12af   :  { %7932 = vmatpush.bf16.msrb.mxu1 %v11146_v58  ;;  %v6031_v58 = vperm.slane %v14559_v40, 7  ;;  %v11165_v40 = vld [vmem:[%s14801_s7 + $0x618] sm:$0xff] }
0x12b0   :  { %7918 = vmatpush.bf16.msra.mxu3 %v11138_v47  ;;  %7946 = vmatpush.bf16.msra.mxu2 %v11154_v8 }
0x12bd   :  { %v6548_v6 = vpop.f32.mrf.mxu0 }
0x12be   :  { %v6576_v52 = vpop.f32.mrf.mxu1  ;;  %v6549_v24 = vadd.f32 %v6548_v6, %v6024_v56  ;;  %v11191_v6 = vld [vmem:[%s14801_s7 + $0x6e8] sm:$0xff] }
0x12bf   :  { %v6577_v9 = vadd.f32 %v6576_v52, %v6026_v35 }
0x12c0   :  { %v6763_v54 = vmax.f32 %v6549_v24, 0.0  ;;  %v11181_v24 = vld [vmem:[%s14801_s7 + $0x698] sm:$0xff] }
0x12c1   :  { %v6765_v37 = vmax.f32 %v6577_v9, 0.0 }
0x12c3   :  { %v6562_v13 = vpop.f32.mrf.mxu3 }
0x12c4   :  { %v6590_v3 = vpop.f32.mrf.mxu2  ;;  %v6563_v27 = vadd.f32 %v6562_v13, %v6025_v50 }
0x12c5   :  { %v6550_v34 = vpop.f32.mrf.mxu0  ;;  %v6591_v46 = vadd.f32 %v6590_v3, %v6027_v25 }
0x12c6   :  { %v6551_v23 = vadd.f32 %v6550_v34, %v6024_v56  ;;  %v6578_v30 = vpop.f32.mrf.mxu1  ;;  %v6764_v29 = vmax.f32 %v6563_v27, 0.0 }
0x12c7   :  { %v6579_v14 = vadd.f32 %v6578_v30, %v6026_v35  ;;  %v6766_v26 = vmax.f32 %v6591_v46, 0.0 }
0x12c8   :  { %v6779_v16 = vmax.f32 %v6551_v23, 0.0 }
0x12c9   :  { %v6781_v32 = vmax.f32 %v6579_v14, 0.0 }
0x12ca   :  { %v6795_v38 = vpack.c.bf16 %v6779_v16, %v6763_v54  ;;  %v14626_v54 = vld [vmem:[%s14800_s6 + $0x18] sm:$0xff] }
0x12cb   :  { %v6797_v20 = vpack.c.bf16 %v6781_v32, %v6765_v37  ;;  %v6564_v4 = vpop.f32.mrf.mxu3  ;;  %v11164_v37 = vld [vmem:[%s14801_s7 + $0x610] sm:$0xff] }
0x12cc   :  { %v6565_v39 = vadd.f32 %v6564_v4, %v6025_v50  ;;  %v6592_v22 = vpop.f32.mrf.mxu2  ;;  %7849 = vmatmul.bf16.vlgmr.msra.gmra.mxu0 %v6795_v38  ;;  %v11174_v50 = vld [vmem:[%s14801_s7 + $0x660] sm:$0xff]  ;;  %v11180_v38 = vld [vmem:[%s14801_s7 + $0x690] sm:$0xff] }
0x12cd   :  { %v6593_v48 = vadd.f32 %v6592_v22, %v6027_v25  ;;  %7877 = vmatmul.bf16.vlgmr.msra.gmra.mxu1 %v6797_v20  ;;  %7953 = vmatpush.bf16.msra.mxu0 %v11169_v36  ;;  %v6604_v1 = vpop.f32.mrf.mxu0  ;;  %v11190_v25 = vld [vmem:[%s14801_s7 + $0x6e0] sm:$0xff]  ;;  %v11173_v20 = vld [vmem:[%s14801_s7 + $0x658] sm:$0xff] }
0x12ce   :  { %v6780_v59 = vmax.f32 %v6565_v39, 0.0  ;;  %7981 = vmatpush.bf16.msra.mxu1 %v11185_v45  ;;  %v6632_v61 = vpop.f32.mrf.mxu1  ;;  %v6605_v10 = vadd.f32 %v6604_v1, %v6028_v60  ;;  %v6032_v39 = vperm.slane %v14626_v54, 0  ;;  %v11189_v22 = vld [vmem:[%s14801_s7 + $0x6d8] sm:$0xff]  ;;  %v6034_v1 = vperm.slane %v14626_v54, 2 }
0x12cf   :  { %v6782_v31 = vmax.f32 %v6593_v48, 0.0  ;;  %v6633_v15 = vadd.f32 %v6632_v61, %v6030_v63  ;;  %v11172_v61 = vld [vmem:[%s14801_s7 + $0x650] sm:$0xff] }
0x12d0   :  { %v6796_v62 = vpack.c.bf16 %v6780_v59, %v6764_v29  ;;  %v6767_v47 = vmax.f32 %v6605_v10, 0.0  ;;  %v11179_v29 = vld [vmem:[%s14801_s7 + $0x688] sm:$0xff]  ;;  %v11217_v10 = vld [vmem:[%s14801_s7 + $0x7b8] sm:$0xff] }
0x12d1   :  { %v6798_v51 = vpack.c.bf16 %v6782_v31, %v6766_v26  ;;  %7954 = vmatpush.bf16.msra.mxu0 %v11168_v28  ;;  %v6769_v52 = vmax.f32 %v6633_v15, 0.0  ;;  %v11163_v28 = vld [vmem:[%s14801_s7 + $0x608] sm:$0xff]  ;;  %v11188_v31 = vld [vmem:[%s14801_s7 + $0x6d0] sm:$0xff] }
0x12d2   :  { %7982 = vmatpush.bf16.msra.mxu1 %v11184_v17  ;;  %7863 = vmatmul.bf16.vlgmr.msrb.gmra.mxu3 %v6796_v62 }
0x12d3   :  { %7891 = vmatmul.bf16.vlgmr.msrb.gmra.mxu2 %v6798_v51  ;;  %7967 = vmatpush.bf16.msrb.mxu3 %v11177_v43  ;;  %v6618_v0 = vpop.f32.mrf.mxu3 }
0x12d4   :  { %7995 = vmatpush.bf16.msrb.mxu2 %v11193_v41  ;;  %v6646_v12 = vpop.f32.mrf.mxu2  ;;  %v6619_v35 = vadd.f32 %v6618_v0, %v6029_v19  ;;  %v6033_v41 = vperm.slane %v14626_v54, 1  ;;  %v6035_v0 = vperm.slane %v14626_v54, 3 }
0x12d5   :  { %7955 = vmatpush.bf16.msra.mxu0 %v11167_v5  ;;  %v6606_v18 = vpop.f32.mrf.mxu0  ;;  %v6647_v3 = vadd.f32 %v6646_v12, %v6031_v58  ;;  %v11178_v5 = vld [vmem:[%s14801_s7 + $0x680] sm:$0xff]  ;;  %v11171_v12 = vld [vmem:[%s14801_s7 + $0x648] sm:$0xff] }
0x12d6   :  { %7983 = vmatpush.bf16.msra.mxu1 %v11183_v21  ;;  %v6607_v57 = vadd.f32 %v6606_v18, %v6028_v60  ;;  %v6634_v11 = vpop.f32.mrf.mxu1  ;;  %v6768_v32 = vmax.f32 %v6619_v35, 0.0  ;;  %v11162_v60 = vld [vmem:[%s14801_s7 + $0x600] sm:$0xff]  ;;  %v11201_v21 = vld [vmem:[%s14801_s7 + $0x738] sm:$0xff]  ;;  %v11187_v18 = vld [vmem:[%s14801_s7 + $0x6c8] sm:$0xff] }
0x12d7   :  { %v6635_v49 = vadd.f32 %v6634_v11, %v6030_v63  ;;  %7968 = vmatpush.bf16.msrb.mxu3 %v11176_v7  ;;  %v6770_v45 = vmax.f32 %v6647_v3, 0.0 }
0x12d8   :  { %v6783_v8 = vmax.f32 %v6607_v57, 0.0  ;;  %7996 = vmatpush.bf16.msrb.mxu2 %v11192_v42 }
0x12d9   :  { %v6785_v56 = vmax.f32 %v6635_v49, 0.0  ;;  %7956 = vmatpush.bf16.msra.mxu0 %v11166_v55 }
0x12da   :  { %v6799_v13 = vpack.c.bf16 %v6783_v8, %v6767_v47  ;;  %7984 = vmatpush.bf16.msra.mxu1 %v11182_v44  ;;  %v11200_v44 = vld [vmem:[%s14801_s7 + $0x730] sm:$0xff]  ;;  %v11170_v8 = vld [vmem:[%s14801_s7 + $0x640] sm:$0xff] }
0x12db   :  { %v6801_v9 = vpack.c.bf16 %v6785_v56, %v6769_v52  ;;  %7969 = vmatpush.bf16.msrb.mxu3 %v11175_v53  ;;  %v6620_v34 = vpop.f32.mrf.mxu3  ;;  %v11216_v47 = vld [vmem:[%s14801_s7 + $0x7b0] sm:$0xff]  ;;  %v11186_v56 = vld [vmem:[%s14801_s7 + $0x6c0] sm:$0xff] }
0x12dc   :  { %7997 = vmatpush.bf16.msrb.mxu2 %v11191_v6  ;;  %v6621_v23 = vadd.f32 %v6620_v34, %v6029_v19  ;;  %v6648_v30 = vpop.f32.mrf.mxu2  ;;  %7905 = vmatmul.bf16.vlgmr.msrb.gmra.mxu0 %v6799_v13  ;;  %v11225_v13 = vld [vmem:[%s14801_s7 + $0x7f8] sm:$0xff] }
0x12dd   :  { %v6649_v14 = vadd.f32 %v6648_v30, %v6031_v58  ;;  %7933 = vmatmul.bf16.vlgmr.msrb.gmra.mxu1 %v6801_v9  ;;  %7957 = vmatpush.bf16.msra.mxu0 %v11165_v40  ;;  %v6660_v16 = vpop.f32.mrf.mxu0  ;;  %v11209_v40 = vld [vmem:[%s14801_s7 + $0x778] sm:$0xff]  ;;  %v11199_v9 = vld [vmem:[%s14801_s7 + $0x728] sm:$0xff] }
0x12de   :  { %v6784_v36 = vmax.f32 %v6621_v23, 0.0  ;;  %7985 = vmatpush.bf16.msra.mxu1 %v11181_v24  ;;  %v6688_v27 = vpop.f32.mrf.mxu1  ;;  %v6661_v17 = vadd.f32 %v6660_v16, %v6032_v39  ;;  %v11215_v23 = vld [vmem:[%s14801_s7 + $0x7a8] sm:$0xff]  ;;  %v11224_v16 = vld [vmem:[%s14801_s7 + $0x7f0] sm:$0xff] }
0x12df   :  { %v6786_v46 = vmax.f32 %v6649_v14, 0.0  ;;  %7970 = vmatpush.bf16.msrb.mxu3 %v11174_v50  ;;  %v6689_v43 = vadd.f32 %v6688_v27, %v6034_v1  ;;  %v11214_v27 = vld [vmem:[%s14801_s7 + $0x7a0] sm:$0xff] }
0x12e0   :  { %v6800_v4 = vpack.c.bf16 %v6784_v36, %v6768_v32  ;;  %7998 = vmatpush.bf16.msrb.mxu2 %v11190_v25  ;;  %v6771_v42 = vmax.f32 %v6661_v17, 0.0  ;;  %v11208_v25 = vld [vmem:[%s14801_s7 + $0x770] sm:$0xff]  ;;  %v11198_v32 = vld [vmem:[%s14801_s7 + $0x720] sm:$0xff] }
0x12e1   :  { %v6802_v48 = vpack.c.bf16 %v6786_v46, %v6770_v45  ;;  %7958 = vmatpush.bf16.msra.mxu0 %v11164_v37  ;;  %v6773_v55 = vmax.f32 %v6689_v43, 0.0  ;;  %v11223_v45 = vld [vmem:[%s14801_s7 + $0x7e8] sm:$0xff]  ;;  %v11197_v46 = vld [vmem:[%s14801_s7 + $0x718] sm:$0xff] }
0x12e2   :  { %7986 = vmatpush.bf16.msra.mxu1 %v11180_v38  ;;  %7919 = vmatmul.bf16.vlgmr.msra.gmra.mxu3 %v6800_v4  ;;  %v11207_v38 = vld [vmem:[%s14801_s7 + $0x768] sm:$0xff] }
0x12e3   :  { %7947 = vmatmul.bf16.vlgmr.msra.gmra.mxu2 %v6802_v48  ;;  %7971 = vmatpush.bf16.msrb.mxu3 %v11173_v20  ;;  %v6674_v59 = vpop.f32.mrf.mxu3  ;;  %v11213_v20 = vld [vmem:[%s14801_s7 + $0x798] sm:$0xff]  ;;  %v11222_v48 = vld [vmem:[%s14801_s7 + $0x7e0] sm:$0xff]  ;;  %v11195_v43 = vld [vmem:[%s14801_s7 + $0x708] sm:$0xff] }
0x12e4   :  { %7999 = vmatpush.bf16.msrb.mxu2 %v11189_v22  ;;  %v6702_v26 = vpop.f32.mrf.mxu2  ;;  %v6675_v57 = vadd.f32 %v6674_v59, %v6033_v41  ;;  %v11205_v59 = vld [vmem:[%s14801_s7 + $0x758] sm:$0xff] }
0x12e5   :  { %7959 = vmatpush.bf16.msra.mxu0 %v11163_v28  ;;  %v6662_v62 = vpop.f32.mrf.mxu0  ;;  %v6703_v58 = vadd.f32 %v6702_v26, %v6035_v0  ;;  %v11212_v28 = vld [vmem:[%s14801_s7 + $0x790] sm:$0xff]  ;;  %v11221_v26 = vld [vmem:[%s14801_s7 + $0x7d8] sm:$0xff] }
0x12e6   :  { %7987 = vmatpush.bf16.msra.mxu1 %v11179_v29  ;;  %v6663_v51 = vadd.f32 %v6662_v62, %v6032_v39  ;;  %v6690_v63 = vpop.f32.mrf.mxu1  ;;  %v6772_v24 = vmax.f32 %v6675_v57, 0.0  ;;  %v11206_v39 = vld [vmem:[%s14801_s7 + $0x760] sm:$0xff] }
0x12e7   :  { %v6691_v7 = vadd.f32 %v6690_v63, %v6034_v1  ;;  %7972 = vmatpush.bf16.msrb.mxu3 %v11172_v61  ;;  %v6774_v34 = vmax.f32 %v6703_v58, 0.0  ;;  %v11196_v1 = vld [vmem:[%s14801_s7 + $0x710] sm:$0xff]  ;;  %v6036_v61 = vperm.slane %v14626_v54, 4 }
0x12e8   :  { %v6787_v15 = vmax.f32 %v6663_v51, 0.0  ;;  %8000 = vmatpush.bf16.msrb.mxu2 %v11188_v31  ;;  %v6038_v31 = vperm.slane %v14626_v54, 6  ;;  %v11204_v51 = vld [vmem:[%s14801_s7 + $0x750] sm:$0xff] }
0x12e9   :  { %v6789_v19 = vmax.f32 %v6691_v7, 0.0  ;;  %7960 = vmatpush.bf16.msra.mxu0 %v11162_v60  ;;  %v11211_v60 = vld [vmem:[%s14801_s7 + $0x788] sm:$0xff]  ;;  %v11194_v7 = vld [vmem:[%s14801_s7 + $0x700] sm:$0xff] }
0x12ea   :  { %v6803_v11 = vpack.c.bf16 %v6787_v15, %v6771_v42  ;;  %7988 = vmatpush.bf16.msra.mxu1 %v11178_v5  ;;  %v11220_v5 = vld [vmem:[%s14801_s7 + $0x7d0] sm:$0xff]  ;;  %v11210_v15 = vld [vmem:[%s14801_s7 + $0x780] sm:$0xff] }
0x12eb   :  { %v6805_v49 = vpack.c.bf16 %v6789_v19, %v6773_v55  ;;  %7973 = vmatpush.bf16.msrb.mxu3 %v11171_v12  ;;  %v6676_v53 = vpop.f32.mrf.mxu3  ;;  %v11203_v19 = vld [vmem:[%s14801_s7 + $0x748] sm:$0xff] }
0x12ec   :  { %8001 = vmatpush.bf16.msrb.mxu2 %v11187_v18  ;;  %v6677_v6 = vadd.f32 %v6676_v53, %v6033_v41  ;;  %v6704_v52 = vpop.f32.mrf.mxu2  ;;  %7961 = vmatmul.bf16.vlgmr.msra.gmra.mxu0 %v6803_v11  ;;  %v6039_v18 = vperm.slane %v14626_v54, 7 }
0x12ed   :  { %8009 = vmatpush.bf16.msrb.mxu0 %v11201_v21  ;;  %v6705_v35 = vadd.f32 %v6704_v52, %v6035_v0  ;;  %7989 = vmatmul.bf16.vlgmr.msra.gmra.mxu1 %v6805_v49 }
0x12ee   :  { %8037 = vmatpush.bf16.msrb.mxu1 %v11217_v10  ;;  %v6788_v3 = vmax.f32 %v6677_v6, 0.0  ;;  %v6716_v37 = vpop.f32.mrf.mxu0  ;;  %v6037_v10 = vperm.slane %v14626_v54, 5  ;;  %v11202_v6 = vld [vmem:[%s14801_s7 + $0x740] sm:$0xff] }
0x12ef   :  { %v6790_v50 = vmax.f32 %v6705_v35, 0.0  ;;  %7974 = vmatpush.bf16.msrb.mxu3 %v11170_v8  ;;  %v6744_v36 = vpop.f32.mrf.mxu1  ;;  %v6717_v63 = vadd.f32 %v6716_v37, %v6036_v61  ;;  %v11245_v37 = vld [vmem:[%s14802_s8 + $0x1] ss:$0 sm:$0xff] }
0x12f0   :  { %v6804_v30 = vpack.c.bf16 %v6788_v3, %v6772_v24  ;;  %8002 = vmatpush.bf16.msrb.mxu2 %v11186_v56  ;;  %v6745_v21 = vadd.f32 %v6744_v36, %v6038_v31  ;;  %v11218_v56 = vld [vmem:[%s14801_s7 + $0x7c0] sm:$0xff] }
0x12f1   :  { %8010 = vmatpush.bf16.msrb.mxu0 %v11200_v44  ;;  %v6806_v14 = vpack.c.bf16 %v6790_v50, %v6774_v34  ;;  %v6775_v57 = vmax.f32 %v6717_v63, 0.0  ;;  %v11219_v44 = vld [vmem:[%s14801_s7 + $0x7c8] sm:$0xff] }
0x12f2   :  { %8038 = vmatpush.bf16.msrb.mxu1 %v11216_v47  ;;  %7975 = vmatmul.bf16.vlgmr.msrb.gmra.mxu3 %v6804_v30  ;;  %v6777_v58 = vmax.f32 %v6745_v21, 0.0 }
0x12f3   :  { %8023 = vmatpush.bf16.msra.mxu3 %v11209_v40  ;;  %8003 = vmatmul.bf16.vlgmr.msrb.gmra.mxu2 %v6806_v14 }
0x12f4   :  { %8051 = vmatpush.bf16.msra.mxu2 %v11225_v13  ;;  %v6730_v4 = vpop.f32.mrf.mxu3 }
0x12f5   :  { %8011 = vmatpush.bf16.msrb.mxu0 %v11199_v9  ;;  %v6731_v53 = vadd.f32 %v6730_v4, %v6037_v10 }
0x12f6   :  { %8039 = vmatpush.bf16.msrb.mxu1 %v11215_v23  ;;  %v6758_v22 = vpop.f32.mrf.mxu2  ;;  %v6718_v29 = vpop.f32.mrf.mxu0 }
0x12f7   :  { %8024 = vmatpush.bf16.msra.mxu3 %v11208_v25  ;;  %v6746_v17 = vpop.f32.mrf.mxu1  ;;  %v6719_v62 = vadd.f32 %v6718_v29, %v6036_v61  ;;  %v6759_v54 = vadd.f32 %v6758_v22, %v6039_v18  ;;  %v6776_v35 = vmax.f32 %v6731_v53, 0.0 }
0x12f8   :  { %8052 = vmatpush.bf16.msra.mxu2 %v11224_v16  ;;  %v6747_v41 = vadd.f32 %v6746_v17, %v6038_v31 }
0x12f9   :  { %8012 = vmatpush.bf16.msrb.mxu0 %v11198_v32  ;;  %v6791_v12 = vmax.f32 %v6719_v62, 0.0  ;;  %v6778_v13 = vmax.f32 %v6759_v54, 0.0 }
0x12fa   :  { %8040 = vmatpush.bf16.msrb.mxu1 %v11214_v27  ;;  %v6793_v55 = vmax.f32 %v6747_v41, 0.0 }
0x12fb   :  { %8025 = vmatpush.bf16.msra.mxu3 %v11207_v38  ;;  %v6807_v47 = vpack.c.bf16 %v6791_v12, %v6775_v57 }
0x12fc   :  { %8053 = vmatpush.bf16.msra.mxu2 %v11223_v45  ;;  %v6732_v0 = vpop.f32.mrf.mxu3  ;;  %v6809_v8 = vpack.c.bf16 %v6793_v55, %v6777_v58 }
0x12fd   :  { %8013 = vmatpush.bf16.msrb.mxu0 %v11197_v46  ;;  %v6733_v11 = vadd.f32 %v6732_v0, %v6037_v10 }
0x12fe   :  { %8041 = vmatpush.bf16.msrb.mxu1 %v11213_v20  ;;  %v6760_v42 = vpop.f32.mrf.mxu2 }
0x12ff   :  { %8026 = vmatpush.bf16.msra.mxu3 %v11206_v39  ;;  %v6761_v49 = vadd.f32 %v6760_v42, %v6039_v18  ;;  %v6792_v52 = vmax.f32 %v6733_v11, 0.0 }
0x1300   :  { %8054 = vmatpush.bf16.msra.mxu2 %v11222_v48 }
0x1301   :  { %8014 = vmatpush.bf16.msrb.mxu0 %v11196_v1  ;;  %v6794_v40 = vmax.f32 %v6761_v49, 0.0  ;;  %v6808_v24 = vpack.c.bf16 %v6792_v52, %v6776_v35 }
0x1302   :  { %8042 = vmatpush.bf16.msrb.mxu1 %v11212_v28 }
0x1303   :  { %8027 = vmatpush.bf16.msra.mxu3 %v11205_v59  ;;  %v6810_v3 = vpack.c.bf16 %v6794_v40, %v6778_v13 }
0x1304   :  { %8055 = vmatpush.bf16.msra.mxu2 %v11221_v26 }
0x1305   :  { %8015 = vmatpush.bf16.msrb.mxu0 %v11195_v43 }
0x1306   :  { %8043 = vmatpush.bf16.msrb.mxu1 %v11211_v60 }
0x1307   :  { %8028 = vmatpush.bf16.msra.mxu3 %v11204_v51 }
0x1308   :  { %8056 = vmatpush.bf16.msra.mxu2 %v11220_v5 }
0x1309   :  { %8016 = vmatpush.bf16.msrb.mxu0 %v11194_v7 }
0x130a   :  { %8044 = vmatpush.bf16.msrb.mxu1 %v11210_v15 }
0x130b   :  { %8029 = vmatpush.bf16.msra.mxu3 %v11203_v19 }
0x130c   :  { %8057 = vmatpush.bf16.msra.mxu2 %v11219_v44  ;;  %8017 = vmatmul.bf16.vlgmr.msrb.gmra.mxu0 %v6807_v47 }
0x130d   :  { %8045 = vmatmul.bf16.vlgmr.msrb.gmra.mxu1 %v6809_v8 }
0x130f   :  { %8030 = vmatpush.bf16.msra.mxu3 %v11202_v6 }
0x1310   :  { %8058 = vmatpush.bf16.msra.mxu2 %v11218_v56 }
0x1312   :  { %8031 = vmatmul.bf16.vlgmr.msra.gmra.mxu3 %v6808_v24 }
0x1313   :  { %8059 = vmatmul.bf16.vlgmr.msra.gmra.mxu2 %v6810_v3 }
0x1349   :  { %v7850_v9 = vpop.f32.mrf.mxu0 }
0x134a   :  { %v7878_v34 = vpop.f32.mrf.mxu1  ;;  %v7851_v36 = vadd.f32 %v11245_v37, %v7850_v9 }
0x1351   :  { %v7852_v30 = vpop.f32.mrf.mxu0 }
0x1352   :  { %v7880_v25 = vpop.f32.mrf.mxu1  ;;  %v7853_v39 = vadd.f32 %v11245_v37, %v7852_v30 }
0x1355   :  { %v7864_v50 = vpop.f32.mrf.mxu3 }
0x1356   :  { %v7892_v23 = vpop.f32.mrf.mxu2  ;;  %v7865_v27 = vadd.f32 %v7864_v50, %v7851_v36 }
0x1358   :  { %v7879_v20 = vadd.f32 %v7878_v34, %v7865_v27 }
0x1359   :  { %v7906_v32 = vpop.f32.mrf.mxu0 }
0x135a   :  { %v7934_v38 = vpop.f32.mrf.mxu1  ;;  %v7893_v22 = vadd.f32 %v7892_v23, %v7879_v20 }
0x135c   :  { %v7907_v29 = vadd.f32 %v7906_v32, %v7893_v22 }
0x135d   :  { %v7866_v14 = vpop.f32.mrf.mxu3 }
0x135e   :  { %v7894_v16 = vpop.f32.mrf.mxu2  ;;  %v7867_v48 = vadd.f32 %v7866_v14, %v7853_v39 }
0x1360   :  { %v7881_v59 = vadd.f32 %v7880_v25, %v7867_v48 }
0x1361   :  { %v7908_v4 = vpop.f32.mrf.mxu0 }
0x1362   :  { %v7936_v1 = vpop.f32.mrf.mxu1  ;;  %v7895_v31 = vadd.f32 %v7894_v16, %v7881_v59 }
0x1364   :  { %v7909_v62 = vadd.f32 %v7908_v4, %v7895_v31 }
0x1365   :  { %v7920_v45 = vpop.f32.mrf.mxu3 }
0x1366   :  { %v7948_v46 = vpop.f32.mrf.mxu2  ;;  %v7921_v17 = vadd.f32 %v7920_v45, %v7907_v29 }
0x1368   :  { %v7935_v43 = vadd.f32 %v7934_v38, %v7921_v17 }
0x1369   :  { %v7962_v26 = vpop.f32.mrf.mxu0 }
0x136a   :  { %v7990_v60 = vpop.f32.mrf.mxu1  ;;  %v7949_v51 = vadd.f32 %v7948_v46, %v7935_v43 }
0x136c   :  { %v7963_v0 = vadd.f32 %v7962_v26, %v7949_v51  ;;  %v11247_v51 = vld [vmem:[%s14806_s12 + $0x1] ss:$0 sm:$0xff]  ;;  %s11428_s12 = smov 128  }
0x136d   :  { %v7922_v28 = vpop.f32.mrf.mxu3 }
0x136e   :  { %v7950_v61 = vpop.f32.mrf.mxu2  ;;  %v7923_v63 = vadd.f32 %v7922_v28, %v7909_v62  ;;  %v11246_v62 = vld [vmem:[%s14805_s11 + $0x1] ss:$0 sm:$0xff]  ;;  %s11427_s11 = smov [#allocation2]  }
0x136f   :  { %s8131_s24 = sshll.u32 %s11427_s11, 4  ;;  %s8132_s24 = int_to_ptr.vmem [resolvable:$true] %s8131_s24 }
0x1370   :  { %v7937_v7 = vadd.f32 %v7936_v1, %v7923_v63 }
0x1371   :  { %v7964_v21 = vpop.f32.mrf.mxu0 }
0x1372   :  { %v7951_v12 = vadd.f32 %v7950_v61, %v7937_v7  ;;  %v7992_v42 = vpop.f32.mrf.mxu1 }
0x1374   :  { %v7965_v57 = vadd.f32 %v7964_v21, %v7951_v12 }
0x1375   :  { %v7976_v41 = vpop.f32.mrf.mxu3 }
0x1376   :  { %v8004_v5 = vpop.f32.mrf.mxu2  ;;  %v7977_v10 = vadd.f32 %v7976_v41, %v7963_v0 }
0x1378   :  { %v7991_v18 = vadd.f32 %v7990_v60, %v7977_v10 }
0x137a   :  { %v8005_v11 = vadd.f32 %v8004_v5, %v7991_v18 }
0x137d   :  { %v7978_v15 = vpop.f32.mrf.mxu3 }
0x137e   :  { %v8006_v55 = vpop.f32.mrf.mxu2  ;;  %v7979_v44 = vadd.f32 %v7978_v15, %v7965_v57 }
0x1380   :  { %v7993_v47 = vadd.f32 %v7992_v42, %v7979_v44 }
0x1382   :  { %v8007_v56 = vadd.f32 %v8006_v55, %v7993_v47 }
0x1389   :  { %v8018_v19 = vpop.f32.mrf.mxu0 }
0x138a   :  { %v8019_v58 = vadd.f32 %v8018_v19, %v8005_v11  ;;  %v8046_v49 = vpop.f32.mrf.mxu1 }
0x1391   :  { %v8020_v52 = vpop.f32.mrf.mxu0 }
0x1392   :  { %v8021_v35 = vadd.f32 %v8020_v52, %v8007_v56  ;;  %v8048_v34 = vpop.f32.mrf.mxu1 }
0x1395   :  { %v8032_v53 = vpop.f32.mrf.mxu3 }
0x1396   :  { %v8033_v54 = vadd.f32 %v8032_v53, %v8019_v58  ;;  %v8060_v8 = vpop.f32.mrf.mxu2 }
0x1398   :  { %v8047_v6 = vadd.f32 %v8046_v49, %v8033_v54 }
0x139a   :  { %v8061_v40 = vadd.f32 %v8060_v8, %v8047_v6 }
0x139c   :  { %v8069_v13 = vadd.f32 %v8061_v40, %v14051_v33 }
0x139d   :  { %v8034_v24 = vpop.f32.mrf.mxu3 }
0x139e   :  { %v8035_v3 = vadd.f32 %v8034_v24, %v8021_v35  ;;  %v8071_v9 = vsel %vm177_vm0, %v8069_v13, 0.0  ;;  %v8062_v23 = vpop.f32.mrf.mxu2 }
0x139f   :  { %8072 = vadd.xlane.f32.xlu0 %v8071_v9 }
0x13a0   :  { %v8049_v50 = vadd.f32 %v8048_v34, %v8035_v3 }
0x13a2   :  { %v8063_v30 = vadd.f32 %v8062_v23, %v8049_v50 }
0x13a4   :  { %v8070_v25 = vadd.f32 %v8063_v30, %v14053_v2 }
0x13a6   :  { %v8074_v14 = vsel %vm177_vm0, %v8070_v25, 0.0 }
0x13a7   :  { %8075 = vadd.xlane.f32.xlu2 %v8074_v14 }
0x1412   :  { %v8073_v16 = vpop.xlane.xlu0 %8072 }
0x1413   :  { %v8077_v37 = vmul.f32 0.010416667, %v8073_v16 }
0x1415   :  { %v8079_v32 = vsub.f32 %v8069_v13, %v8077_v37 }
0x1417   :  { %v8081_v36 = vmul.f32 %v8079_v32, %v8079_v32 }
0x1419   :  { %v8083_v33 = vsel %vm177_vm0, %v8081_v36, 0.0 }
0x141a   :  { %v8076_v27 = vpop.xlane.xlu2 %8075  ;;  %8084 = vadd.xlane.f32.xlu0 %v8083_v33 }
0x141b   :  { %v8078_v38 = vmul.f32 0.010416667, %v8076_v27 }
0x141d   :  { %v8080_v45 = vsub.f32 %v8070_v25, %v8078_v38 }
0x141f   :  { %v8082_v46 = vmul.f32 %v8080_v45, %v8080_v45 }
0x1421   :  { %v8086_v20 = vsel %vm177_vm0, %v8082_v46, 0.0 }
0x1422   :  { %8087 = vadd.xlane.f32.xlu1 %v8086_v20 }
0x148d   :  { %v8085_v4 = vpop.xlane.xlu0 %8084 }
0x148e   :  { %v8089_v39 = vmul.f32 0.010416667, %v8085_v4 }
0x1490   :  { %v8091_v2 = vadd.f32 1e-05, %v8089_v39 }
0x1492   :  { %11388 = vrsqrt.f32 %v8091_v2  ;;  %vm8099_vm5 = vweird.f32 %v8091_v2 }
0x1495   :  { %v8088_v22 = vpop.xlane.xlu1 %8087 }
0x1496   :  { %v8090_v48 = vmul.f32 0.010416667, %v8088_v22 }
0x1498   :  { %v11389_v1 = vpop.eup %11388  ;;  %v8092_v28 = vadd.f32 1e-05, %v8090_v48 }
0x1499   :  { %v8094_v29 = vmul.f32 %v11389_v1, %v8091_v2  ;;  %vm8100_vm4 = vweird.f32 %v11389_v1 }
0x149a   :  { %11390 = vrsqrt.f32 %v8092_v28  ;;  %vm8101_vm6 = vmor %vm8099_vm5, %vm8100_vm4  ;;  %vm8109_vm8 = vweird.f32 %v8092_v28 }
0x149b   :  { %v8095_v59 = vmul.f32 %v11389_v1, %v8094_v29 }
0x149d   :  { %v8096_v61 = vmul.f32 0.5, %v8095_v59 }
0x149f   :  { %v8097_v17 = vsub.f32 1.5, %v8096_v61 }
0x14a0   :  { %v11391_v26 = vpop.eup %11390 }
0x14a1   :  { %v8098_v31 = vmul.f32 %v11389_v1, %v8097_v17  ;;  %v8104_v43 = vmul.f32 %v11391_v26, %v8092_v28  ;;  %vm8110_vm7 = vweird.f32 %v11391_v26 }
0x14a2   :  { %vm8111_vm9 = vmor %vm8109_vm8, %vm8110_vm7 }
0x14a3   :  { %v8102_v60 = vsel %vm8101_vm6, %v11389_v1, %v8098_v31  ;;  %v8105_v41 = vmul.f32 %v11391_v26, %v8104_v43 }
0x14a4   :  { %v8113_v63 = vmul.f32 %v8102_v60, %v8079_v32 }
0x14a5   :  { %v8106_v5 = vmul.f32 0.5, %v8105_v41 }
0x14a6   :  { %v8118_v21 = vmul.f32 %v11246_v62, %v8113_v63 }
0x14a7   :  { %v8107_v0 = vsub.f32 1.5, %v8106_v5 }
0x14a8   :  { %v8123_v7 = vadd.f32 %v11247_v51, %v8118_v21 }
0x14a9   :  { %v8108_v10 = vmul.f32 %v11391_v26, %v8107_v0 }
0x14aa   :  { %8125 = vst.msk [vmem:[#allocation2] sm:$0xff] %vm177_vm0, %v8123_v7 }
0x14ab   :  { %v8112_v12 = vsel %vm8111_vm9, %v11391_v26, %v8108_v10 }
0x14ac   :  { %v8114_v42 = vmul.f32 %v8112_v12, %v8080_v45 }
0x14ae   :  { %v8119_v15 = vmul.f32 %v11246_v62, %v8114_v42 }
0x14b0   :  { %v8124_v18 = vadd.f32 %v11247_v51, %v8119_v15 }
0x14b2   :  { %8126 = vst.msk [vmem:[#allocation2 + $0x8] sm:$0xff] %vm177_vm0, %v8124_v18 }
0x14b3   :  { %8139 = dma.vmem_to_hbm [thread:$0]  %s8132_s24, 256, %s8134_s26, [#allocation3], %s11428_s12, %s11428_s12, %s11429_s27  }
0x14b4   :  { %11418 = dma.done.wait [#allocation3], 256  }
0x14b5   :  { %11419 = vsyncadd [#allocation3], 4294967040 }
0x14b6   :  { %8144 = vsyncpa [#allocation3], 1 }

</bundles_post_ra>
